<compile_context>
chip_gen: v6e
topology: v6e:2x2x1
jax: 0.10.0
libtpu: 0.0.40
codegen_flags: <defaults>
</compile_context>

<pallas_src>
import itertools
import numpy as np
import jax
import jax.numpy as jnp
from jax.experimental import pallas as pl
from jax.experimental.pallas import tpu as pltpu


def afm_kernel(embt_ref, logit_ref, wst_ref, b1_ref, w2t_ref, out_ref):
    # embt_ref : (E, F*BT)        bf16  embedding slab; column f*BT + b = (field f, batch b)
    # logit_ref: (1, BT)          f32   precomputed relu(X @ wl.T + bl) + bp
    # wst_ref  : (2*H*AF + H, E)  bf16  stacked [W1_left_blockdiag; W1_right_blockdiag; Wq]
    # b1_ref   : (H*AF, 1)        f32
    # w2t_ref  : (H, H*AF)        f32   block-diagonal second attention Linear (transposed)
    # out_ref  : (1, BT)          f32   sigmoid(logit + fm)
    H, HAF = w2t_ref.shape
    BT = logit_ref.shape[-1]
    F = embt_ref.shape[-1] // BT
    pairs = list(itertools.combinations(range(F), 2))

    # Stage 1: one fused per-field projection matmul for all heads (bf16 in, f32 accumulate).
    st = jnp.dot(wst_ref[...], embt_ref[...], preferred_element_type=jnp.float32)
    a_l = st[0:HAF, :] + b1_ref[...]          # left half + bias (broadcast once)  (HAF, F*BT)
    a_r = st[HAF:2 * HAF, :]                  # right half                          (HAF, F*BT)
    q_f = st[2 * HAF:2 * HAF + H, :]          # per-field <wp_h, emb_h>             (H,  F*BT)
    w2t = w2t_ref[...]

    def blk(x, f):                            # lane-tile-aligned field slice (BT % 128 == 0)
        return x[:, f * BT:(f + 1) * BT]

    # Stage 2: per-pair attention logits; pairs are independent -> MXU/VPU work pipelines.
    al = []                                   # (H, BT) attention logits per pair
    qs = []                                   # (H, BT) per-head left projections per pair
    for r, c in pairs:
        s_p = jnp.maximum(blk(a_l, r) + blk(a_r, c), 0.0)                    # (HAF, BT)
        al.append(jnp.dot(w2t, s_p, preferred_element_type=jnp.float32))     # (H, BT)
        qs.append(blk(q_f, r))

    # Softmax over the P pairs: log-depth tree max, then f32 exp / accumulate.
    ml = al
    while len(ml) > 1:
        nxt = [jnp.maximum(ml[2 * i], ml[2 * i + 1]) for i in range(len(ml) // 2)]
        if len(ml) % 2:
            nxt.append(ml[-1])
        ml = nxt
    m = ml[0]                                                                # (H, BT)

    den = jnp.zeros_like(m)
    num = jnp.zeros_like(m)
    for p in range(len(pairs)):
        e = jnp.exp(al[p] - m)
        den = den + e
        num = num + e * qs[p]

    # Division -> EUP approximate reciprocal (frees VALU cycles).
    fm = jnp.sum(num * pl.reciprocal(den, approx=True), axis=0, keepdims=True)   # (1, BT)

    # TODO(synk): nn.Dropout layers are identity here (eval-mode forward); training-mode
    # dropout masks are not implemented.
    out_ref[...] = jax.nn.sigmoid(logit_ref[...] + fm)


def afm_forward(X, tables, w1, b1, w2, wp, bp, wl, bl, *, num_heads, b_tile=512):
    B, F = X.shape
    E = tables.shape[-1]
    H = num_heads
    hd = E // H
    AF = w1.shape[1]
    assert b_tile % 128 == 0, "b_tile must be a multiple of 128 for lane-dense IO"

    # --- glue: embedding lookup ---
    ids = X.astype(jnp.int32)
    embeds = jnp.stack([tables[j][ids[:, j]] for j in range(F)], axis=1)      # (B, F, E)

    # --- glue: trivial DNN branch + projection bias, precomputed as (B,) ---
    dnn_logit = jnp.maximum(X @ wl.reshape(1, F).T + bl.reshape(1, 1), 0.0)
    dnn_logit = (dnn_logit + bp.reshape(1, 1)).reshape(B)

    # --- pad batch to a multiple of b_tile; padded rows are zeros and sliced off below ---
    Bp = ((B + b_tile - 1) // b_tile) * b_tile
    NT = Bp // b_tile      # on v7x keep NT >= 2 (b_tile <= B/2) so both TensorCores get work
    if Bp != B:
        embeds = jnp.pad(embeds, ((0, Bp - B), (0, 0), (0, 0)))
        dnn_logit = jnp.pad(dnn_logit, (0, Bp - B))
    logit3 = dnn_logit.reshape(NT, 1, b_tile)

    # --- glue: per-tile-contiguous bf16 embedding slab (NT, E, F*b_tile); col = f*BT + b ---
    embt = jnp.transpose(embeds.reshape(NT, b_tile, F, E), (0, 3, 2, 1))
    embt = embt.reshape(NT, E, F * b_tile).astype(jnp.bfloat16)

    # --- glue: stacked / block-diagonal weight re-layout (fuses the per-head loop) ---
    Wst = jnp.zeros((2 * H * AF + H, E), jnp.float32)       # [W1_left; W1_right; Wq]
    W2bd = jnp.zeros((H, H * AF), jnp.float32)
    for h in range(H):
        Wst = Wst.at[h * AF:(h + 1) * AF, h * hd:(h + 1) * hd].set(w1[h, :, :hd])
        Wst = Wst.at[H * AF + h * AF:H * AF + (h + 1) * AF, h * hd:(h + 1) * hd].set(w1[h, :, hd:])
        Wst = Wst.at[2 * H * AF + h, h * hd:(h + 1) * hd].set(wp[0, h * hd:(h + 1) * hd])
        W2bd = W2bd.at[h, h * AF:(h + 1) * AF].set(w2[h, 0, :])
    wst_k = Wst.astype(jnp.bfloat16)                        # (2*H*AF + H, E)
    b1_k = b1.reshape(H * AF, 1)                            # (H*AF, 1)

    out = pl.pallas_call(
        afm_kernel,
        out_shape=jax.ShapeDtypeStruct((NT, 1, b_tile), jnp.float32),
        grid_spec=pltpu.PrefetchScalarGridSpec(
            num_scalar_prefetch=0,
            grid=(NT,),
            in_specs=[
                pl.BlockSpec((None, E, F * b_tile), lambda i: (i, 0, 0)),
                pl.BlockSpec((None, 1, b_tile), lambda i: (i, 0, 0)),
                # weights: constant block index -> resident across grid steps
                pl.BlockSpec((2 * H * AF + H, E), lambda i: (0, 0)),
                pl.BlockSpec((H * AF, 1), lambda i: (0, 0)),
                pl.BlockSpec((H, H * AF), lambda i: (0, 0)),
            ],
            out_specs=pl.BlockSpec((None, 1, b_tile), lambda i: (i, 0, 0)),
        ),
        compiler_params=pltpu.CompilerParams(dimension_semantics=("parallel",)),
    )(embt, logit3, wst_k, b1_k, W2bd)
    return out.reshape(Bp)[:B].reshape(B, 1)


def build_cross_pairs(embeds, num_heads):
    """embeds: (B, F, E) -> (B, H, P, 2*hd) per-head cross pairs (reference glue)."""
    B, Fs, E = embeds.shape
    hd = E // num_heads
    head_embeds = embeds.reshape(B, Fs, num_heads, hd)
    row, col = zip(*itertools.combinations(range(Fs), 2))
    left = head_embeds[:, jnp.array(row)]     # (B, P, H, hd)
    right = head_embeds[:, jnp.array(col)]    # (B, P, H, hd)
    pairs = jnp.concatenate([left, right], axis=-1)          # (B, P, H, 2*hd)
    return jnp.transpose(pairs, (0, 2, 1, 3))                # (B, H, P, 2*hd)


def reference_forward(X, tables, w1, b1, w2, wp, bp, wl, bl, *, num_heads):
    """Pure-JAX f32 reference mirroring the PyTorch forward (eval mode)."""
    B, F = X.shape
    E = tables.shape[-1]
    hd = E // num_heads
    ids = X.astype(jnp.int32)
    embeds = jnp.stack([tables[j][ids[:, j]] for j in range(F)], axis=1)   # (B, F, E)
    cross = build_cross_pairs(embeds, num_heads)                           # (B, H, P, 2hd)

    logit = jnp.maximum(X @ wl.T + bl, 0.0)                                # (B, 1)

    head_outs = []
    for h in range(num_heads):
        ph = cross[:, h]                                                   # (B, P, 2hd)
        s = jnp.maximum(ph @ w1[h].T + b1[h], 0.0)                         # (B, P, AF)
        al = s @ w2[h].T                                                   # (B, P, 1)
        aw = jax.nn.softmax(al, axis=1)
        head_outs.append(jnp.sum(aw * ph[..., :hd], axis=1))               # (B, hd)
    multi = jnp.concatenate(head_outs, axis=-1)                            # (B, E)
    fm_out = multi @ wp.T + bp                                             # (B, 1)
    return jax.nn.sigmoid(logit + fm_out)


if __name__ == "__main__":
    # Shapes consistent with the module: 6 sparse features, embedding_size=32,
    # num_heads=4 (head_dim=8), attention_factor=16 (hard-coded in AFM.__init__).
    # B=600 exercises both the multi-tile grid (NT=2 at b_tile=512) and batch padding.
    B, F, E, H, AF, VOCAB = 600, 6, 32, 4, 16, 10
    hd = E // H

    key = jax.random.PRNGKey(0)
    keys = jax.random.split(key, 9)

    def xavier(k, shape):
        fan_out, fan_in = shape[-2], shape[-1]
        std = (2.0 / (fan_in + fan_out)) ** 0.5
        return std * jax.random.normal(k, shape, dtype=jnp.float32)

    # Parameters (deterministic, shapes per module __init__)
    tables = jax.random.normal(keys[0], (F, VOCAB, E), dtype=jnp.float32)   # nn.Embedding tables
    w1 = xavier(keys[1], (H, AF, 2 * hd))                                   # attn Linear(2*hd, AF).weight
    b1 = 0.1 * jax.random.normal(keys[2], (H, AF), dtype=jnp.float32)       # attn Linear bias
    w2 = xavier(keys[3], (H, 1, AF))                                        # attn Linear(AF, 1, bias=False)
    wp = xavier(keys[4], (1, E))                                            # projection weight
    bp = 0.1 * jax.random.normal(keys[5], (1,), dtype=jnp.float32)          # projection bias
    wl = 1e-5 * jax.random.normal(keys[6], (1, F), dtype=jnp.float32)       # DNN Linear(F, 1), std=1e-5
    bl = 0.1 * jax.random.normal(keys[7], (1,), dtype=jnp.float32)

    # Input: sparse feature ids stored as floats (as in the PyTorch model's X)
    X = jax.random.randint(keys[8], (B, F), 0, VOCAB).astype(jnp.float32)

    y = afm_forward(X, tables, w1, b1, w2, wp, bp, wl, bl, num_heads=H)
    y = jax.block_until_ready(y)

    y_ref = reference_forward(X, tables, w1, b1, w2, wp, bp, wl, bl, num_heads=H)
    # Tolerance loosened vs the f32-only version because embeddings / stage-1 weights are
    # streamed as bf16 (accumulation and softmax stay f32).
    np.testing.assert_allclose(np.asarray(y), np.asarray(y_ref), rtol=2e-2, atol=2e-2)

    print("KERNEL_OK")
</pallas_src>

<mosaic_0001>
module attributes {stable_mosaic.version = 11 : i64} {
  func.func @afm_kernel(%arg0: i32, %arg1: memref<1x32x3072xbf16, #tpu.memory_space<vmem>>, %arg2: memref<1x1x512xf32, #tpu.memory_space<vmem>>, %arg3: memref<132x32xbf16, #tpu.memory_space<vmem>>, %arg4: memref<64x1xf32, #tpu.memory_space<vmem>>, %arg5: memref<4x64xf32, #tpu.memory_space<vmem>>, %arg6: memref<1x1x512xf32, #tpu.memory_space<vmem>>) attributes {dimension_semantics = [#tpu.dimension_semantics<parallel>], iteration_bounds = array<i64: 2>, scalar_prefetch = 0 : i64, scratch_operands = 0 : i64, tpu.core_type = #tpu.core_type<tc>, window_params = [{transform_indices = @transform_0, window_bounds = array<i64: 1, 32, 3072>}, {transform_indices = @transform_1, window_bounds = array<i64: 1, 1, 512>}, {pipeline_mode = #tpu.pipeline_mode<synchronous>, transform_indices = @transform_2, window_bounds = array<i64: 132, 32>}, {pipeline_mode = #tpu.pipeline_mode<synchronous>, transform_indices = @transform_3, window_bounds = array<i64: 64, 1>}, {pipeline_mode = #tpu.pipeline_mode<synchronous>, transform_indices = @transform_4, window_bounds = array<i64: 4, 64>}, {transform_indices = @transform_5, window_bounds = array<i64: 1, 1, 512>}]} {
    %c0 = arith.constant 0 : index
    %c0_0 = arith.constant 0 : index
    %0 = vector.load %arg3[%c0, %c0_0] : memref<132x32xbf16, #tpu.memory_space<vmem>>, vector<132x32xbf16>
    %c0_1 = arith.constant 0 : index
    %c0_2 = arith.constant 0 : index
    %c0_3 = arith.constant 0 : index
    %1 = vector.load %arg1[%c0_1, %c0_2, %c0_3] : memref<1x32x3072xbf16, #tpu.memory_space<vmem>>, vector<1x32x3072xbf16>
    %2 = vector.shape_cast %1 : vector<1x32x3072xbf16> to vector<32x3072xbf16>
    %cst = arith.constant dense<0.000000e+00> : vector<132x3072xf32>
    %3 = tpu.matmul %0, %2, %cst {dimension_numbers = #tpu.dot_dimension_numbers<[1], [0], [0], [1], [0, 0, 1, 1], [], []>} : vector<132x32xbf16>, vector<32x3072xbf16>, vector<132x3072xf32> -> vector<132x3072xf32>
    %4 = vector.extract_strided_slice %3 {offsets = [0, 0], sizes = [64, 3072], strides = [1, 1]} : vector<132x3072xf32> to vector<64x3072xf32>
    %c0_4 = arith.constant 0 : index
    %c0_5 = arith.constant 0 : index
    %5 = vector.load %arg4[%c0_4, %c0_5] : memref<64x1xf32, #tpu.memory_space<vmem>>, vector<64x1xf32>
    %6 = vector.broadcast %5 : vector<64x1xf32> to vector<64x3072xf32>
    %7 = arith.addf %4, %6 : vector<64x3072xf32>
    %8 = vector.extract_strided_slice %3 {offsets = [64, 0], sizes = [64, 3072], strides = [1, 1]} : vector<132x3072xf32> to vector<64x3072xf32>
    %9 = vector.extract_strided_slice %3 {offsets = [128, 0], sizes = [4, 3072], strides = [1, 1]} : vector<132x3072xf32> to vector<4x3072xf32>
    %c0_6 = arith.constant 0 : index
    %c0_7 = arith.constant 0 : index
    %10 = vector.load %arg5[%c0_6, %c0_7] : memref<4x64xf32, #tpu.memory_space<vmem>>, vector<4x64xf32>
    %11 = vector.extract_strided_slice %7 {offsets = [0, 0], sizes = [64, 512], strides = [1, 1]} : vector<64x3072xf32> to vector<64x512xf32>
    %12 = vector.extract_strided_slice %8 {offsets = [0, 512], sizes = [64, 512], strides = [1, 1]} : vector<64x3072xf32> to vector<64x512xf32>
    %13 = arith.addf %11, %12 : vector<64x512xf32>
    %cst_8 = arith.constant 0.000000e+00 : f32
    %14 = vector.broadcast %cst_8 : f32 to vector<64x512xf32>
    %15 = arith.maximumf %13, %14 : vector<64x512xf32>
    %cst_9 = arith.constant dense<0.000000e+00> : vector<4x512xf32>
    %16 = tpu.matmul %10, %15, %cst_9 {dimension_numbers = #tpu.dot_dimension_numbers<[1], [0], [0], [1], [0, 0, 1, 1], [], []>} : vector<4x64xf32>, vector<64x512xf32>, vector<4x512xf32> -> vector<4x512xf32>
    %17 = vector.extract_strided_slice %9 {offsets = [0, 0], sizes = [4, 512], strides = [1, 1]} : vector<4x3072xf32> to vector<4x512xf32>
    %18 = vector.extract_strided_slice %7 {offsets = [0, 0], sizes = [64, 512], strides = [1, 1]} : vector<64x3072xf32> to vector<64x512xf32>
    %19 = vector.extract_strided_slice %8 {offsets = [0, 1024], sizes = [64, 512], strides = [1, 1]} : vector<64x3072xf32> to vector<64x512xf32>
    %20 = arith.addf %18, %19 : vector<64x512xf32>
    %cst_10 = arith.constant 0.000000e+00 : f32
    %21 = vector.broadcast %cst_10 : f32 to vector<64x512xf32>
    %22 = arith.maximumf %20, %21 : vector<64x512xf32>
    %cst_11 = arith.constant dense<0.000000e+00> : vector<4x512xf32>
    %23 = tpu.matmul %10, %22, %cst_11 {dimension_numbers = #tpu.dot_dimension_numbers<[1], [0], [0], [1], [0, 0, 1, 1], [], []>} : vector<4x64xf32>, vector<64x512xf32>, vector<4x512xf32> -> vector<4x512xf32>
    %24 = vector.extract_strided_slice %9 {offsets = [0, 0], sizes = [4, 512], strides = [1, 1]} : vector<4x3072xf32> to vector<4x512xf32>
    %25 = vector.extract_strided_slice %7 {offsets = [0, 0], sizes = [64, 512], strides = [1, 1]} : vector<64x3072xf32> to vector<64x512xf32>
    %26 = vector.extract_strided_slice %8 {offsets = [0, 1536], sizes = [64, 512], strides = [1, 1]} : vector<64x3072xf32> to vector<64x512xf32>
    %27 = arith.addf %25, %26 : vector<64x512xf32>
    %cst_12 = arith.constant 0.000000e+00 : f32
    %28 = vector.broadcast %cst_12 : f32 to vector<64x512xf32>
    %29 = arith.maximumf %27, %28 : vector<64x512xf32>
    %cst_13 = arith.constant dense<0.000000e+00> : vector<4x512xf32>
    %30 = tpu.matmul %10, %29, %cst_13 {dimension_numbers = #tpu.dot_dimension_numbers<[1], [0], [0], [1], [0, 0, 1, 1], [], []>} : vector<4x64xf32>, vector<64x512xf32>, vector<4x512xf32> -> vector<4x512xf32>
    %31 = vector.extract_strided_slice %9 {offsets = [0, 0], sizes = [4, 512], strides = [1, 1]} : vector<4x3072xf32> to vector<4x512xf32>
    %32 = vector.extract_strided_slice %7 {offsets = [0, 0], sizes = [64, 512], strides = [1, 1]} : vector<64x3072xf32> to vector<64x512xf32>
    %33 = vector.extract_strided_slice %8 {offsets = [0, 2048], sizes = [64, 512], strides = [1, 1]} : vector<64x3072xf32> to vector<64x512xf32>
    %34 = arith.addf %32, %33 : vector<64x512xf32>
    %cst_14 = arith.constant 0.000000e+00 : f32
    %35 = vector.broadcast %cst_14 : f32 to vector<64x512xf32>
    %36 = arith.maximumf %34, %35 : vector<64x512xf32>
    %cst_15 = arith.constant dense<0.000000e+00> : vector<4x512xf32>
    %37 = tpu.matmul %10, %36, %cst_15 {dimension_numbers = #tpu.dot_dimension_numbers<[1], [0], [0], [1], [0, 0, 1, 1], [], []>} : vector<4x64xf32>, vector<64x512xf32>, vector<4x512xf32> -> vector<4x512xf32>
    %38 = vector.extract_strided_slice %9 {offsets = [0, 0], sizes = [4, 512], strides = [1, 1]} : vector<4x3072xf32> to vector<4x512xf32>
    %39 = vector.extract_strided_slice %7 {offsets = [0, 0], sizes = [64, 512], strides = [1, 1]} : vector<64x3072xf32> to vector<64x512xf32>
    %40 = vector.extract_strided_slice %8 {offsets = [0, 2560], sizes = [64, 512], strides = [1, 1]} : vector<64x3072xf32> to vector<64x512xf32>
    %41 = arith.addf %39, %40 : vector<64x512xf32>
    %cst_16 = arith.constant 0.000000e+00 : f32
    %42 = vector.broadcast %cst_16 : f32 to vector<64x512xf32>
    %43 = arith.maximumf %41, %42 : vector<64x512xf32>
    %cst_17 = arith.constant dense<0.000000e+00> : vector<4x512xf32>
    %44 = tpu.matmul %10, %43, %cst_17 {dimension_numbers = #tpu.dot_dimension_numbers<[1], [0], [0], [1], [0, 0, 1, 1], [], []>} : vector<4x64xf32>, vector<64x512xf32>, vector<4x512xf32> -> vector<4x512xf32>
    %45 = vector.extract_strided_slice %9 {offsets = [0, 0], sizes = [4, 512], strides = [1, 1]} : vector<4x3072xf32> to vector<4x512xf32>
    %46 = vector.extract_strided_slice %7 {offsets = [0, 512], sizes = [64, 512], strides = [1, 1]} : vector<64x3072xf32> to vector<64x512xf32>
    %47 = vector.extract_strided_slice %8 {offsets = [0, 1024], sizes = [64, 512], strides = [1, 1]} : vector<64x3072xf32> to vector<64x512xf32>
    %48 = arith.addf %46, %47 : vector<64x512xf32>
    %cst_18 = arith.constant 0.000000e+00 : f32
    %49 = vector.broadcast %cst_18 : f32 to vector<64x512xf32>
    %50 = arith.maximumf %48, %49 : vector<64x512xf32>
    %cst_19 = arith.constant dense<0.000000e+00> : vector<4x512xf32>
    %51 = tpu.matmul %10, %50, %cst_19 {dimension_numbers = #tpu.dot_dimension_numbers<[1], [0], [0], [1], [0, 0, 1, 1], [], []>} : vector<4x64xf32>, vector<64x512xf32>, vector<4x512xf32> -> vector<4x512xf32>
    %52 = vector.extract_strided_slice %9 {offsets = [0, 512], sizes = [4, 512], strides = [1, 1]} : vector<4x3072xf32> to vector<4x512xf32>
    %53 = vector.extract_strided_slice %7 {offsets = [0, 512], sizes = [64, 512], strides = [1, 1]} : vector<64x3072xf32> to vector<64x512xf32>
    %54 = vector.extract_strided_slice %8 {offsets = [0, 1536], sizes = [64, 512], strides = [1, 1]} : vector<64x3072xf32> to vector<64x512xf32>
    %55 = arith.addf %53, %54 : vector<64x512xf32>
    %cst_20 = arith.constant 0.000000e+00 : f32
    %56 = vector.broadcast %cst_20 : f32 to vector<64x512xf32>
    %57 = arith.maximumf %55, %56 : vector<64x512xf32>
    %cst_21 = arith.constant dense<0.000000e+00> : vector<4x512xf32>
    %58 = tpu.matmul %10, %57, %cst_21 {dimension_numbers = #tpu.dot_dimension_numbers<[1], [0], [0], [1], [0, 0, 1, 1], [], []>} : vector<4x64xf32>, vector<64x512xf32>, vector<4x512xf32> -> vector<4x512xf32>
    %59 = vector.extract_strided_slice %9 {offsets = [0, 512], sizes = [4, 512], strides = [1, 1]} : vector<4x3072xf32> to vector<4x512xf32>
    %60 = vector.extract_strided_slice %7 {offsets = [0, 512], sizes = [64, 512], strides = [1, 1]} : vector<64x3072xf32> to vector<64x512xf32>
    %61 = vector.extract_strided_slice %8 {offsets = [0, 2048], sizes = [64, 512], strides = [1, 1]} : vector<64x3072xf32> to vector<64x512xf32>
    %62 = arith.addf %60, %61 : vector<64x512xf32>
    %cst_22 = arith.constant 0.000000e+00 : f32
    %63 = vector.broadcast %cst_22 : f32 to vector<64x512xf32>
    %64 = arith.maximumf %62, %63 : vector<64x512xf32>
    %cst_23 = arith.constant dense<0.000000e+00> : vector<4x512xf32>
    %65 = tpu.matmul %10, %64, %cst_23 {dimension_numbers = #tpu.dot_dimension_numbers<[1], [0], [0], [1], [0, 0, 1, 1], [], []>} : vector<4x64xf32>, vector<64x512xf32>, vector<4x512xf32> -> vector<4x512xf32>
    %66 = vector.extract_strided_slice %9 {offsets = [0, 512], sizes = [4, 512], strides = [1, 1]} : vector<4x3072xf32> to vector<4x512xf32>
    %67 = vector.extract_strided_slice %7 {offsets = [0, 512], sizes = [64, 512], strides = [1, 1]} : vector<64x3072xf32> to vector<64x512xf32>
    %68 = vector.extract_strided_slice %8 {offsets = [0, 2560], sizes = [64, 512], strides = [1, 1]} : vector<64x3072xf32> to vector<64x512xf32>
    %69 = arith.addf %67, %68 : vector<64x512xf32>
    %cst_24 = arith.constant 0.000000e+00 : f32
    %70 = vector.broadcast %cst_24 : f32 to vector<64x512xf32>
    %71 = arith.maximumf %69, %70 : vector<64x512xf32>
    %cst_25 = arith.constant dense<0.000000e+00> : vector<4x512xf32>
    %72 = tpu.matmul %10, %71, %cst_25 {dimension_numbers = #tpu.dot_dimension_numbers<[1], [0], [0], [1], [0, 0, 1, 1], [], []>} : vector<4x64xf32>, vector<64x512xf32>, vector<4x512xf32> -> vector<4x512xf32>
    %73 = vector.extract_strided_slice %9 {offsets = [0, 512], sizes = [4, 512], strides = [1, 1]} : vector<4x3072xf32> to vector<4x512xf32>
    %74 = vector.extract_strided_slice %7 {offsets = [0, 1024], sizes = [64, 512], strides = [1, 1]} : vector<64x3072xf32> to vector<64x512xf32>
    %75 = vector.extract_strided_slice %8 {offsets = [0, 1536], sizes = [64, 512], strides = [1, 1]} : vector<64x3072xf32> to vector<64x512xf32>
    %76 = arith.addf %74, %75 : vector<64x512xf32>
    %cst_26 = arith.constant 0.000000e+00 : f32
    %77 = vector.broadcast %cst_26 : f32 to vector<64x512xf32>
    %78 = arith.maximumf %76, %77 : vector<64x512xf32>
    %cst_27 = arith.constant dense<0.000000e+00> : vector<4x512xf32>
    %79 = tpu.matmul %10, %78, %cst_27 {dimension_numbers = #tpu.dot_dimension_numbers<[1], [0], [0], [1], [0, 0, 1, 1], [], []>} : vector<4x64xf32>, vector<64x512xf32>, vector<4x512xf32> -> vector<4x512xf32>
    %80 = vector.extract_strided_slice %9 {offsets = [0, 1024], sizes = [4, 512], strides = [1, 1]} : vector<4x3072xf32> to vector<4x512xf32>
    %81 = vector.extract_strided_slice %7 {offsets = [0, 1024], sizes = [64, 512], strides = [1, 1]} : vector<64x3072xf32> to vector<64x512xf32>
    %82 = vector.extract_strided_slice %8 {offsets = [0, 2048], sizes = [64, 512], strides = [1, 1]} : vector<64x3072xf32> to vector<64x512xf32>
    %83 = arith.addf %81, %82 : vector<64x512xf32>
    %cst_28 = arith.constant 0.000000e+00 : f32
    %84 = vector.broadcast %cst_28 : f32 to vector<64x512xf32>
    %85 = arith.maximumf %83, %84 : vector<64x512xf32>
    %cst_29 = arith.constant dense<0.000000e+00> : vector<4x512xf32>
    %86 = tpu.matmul %10, %85, %cst_29 {dimension_numbers = #tpu.dot_dimension_numbers<[1], [0], [0], [1], [0, 0, 1, 1], [], []>} : vector<4x64xf32>, vector<64x512xf32>, vector<4x512xf32> -> vector<4x512xf32>
    %87 = vector.extract_strided_slice %9 {offsets = [0, 1024], sizes = [4, 512], strides = [1, 1]} : vector<4x3072xf32> to vector<4x512xf32>
    %88 = vector.extract_strided_slice %7 {offsets = [0, 1024], sizes = [64, 512], strides = [1, 1]} : vector<64x3072xf32> to vector<64x512xf32>
    %89 = vector.extract_strided_slice %8 {offsets = [0, 2560], sizes = [64, 512], strides = [1, 1]} : vector<64x3072xf32> to vector<64x512xf32>
    %90 = arith.addf %88, %89 : vector<64x512xf32>
    %cst_30 = arith.constant 0.000000e+00 : f32
    %91 = vector.broadcast %cst_30 : f32 to vector<64x512xf32>
    %92 = arith.maximumf %90, %91 : vector<64x512xf32>
    %cst_31 = arith.constant dense<0.000000e+00> : vector<4x512xf32>
    %93 = tpu.matmul %10, %92, %cst_31 {dimension_numbers = #tpu.dot_dimension_numbers<[1], [0], [0], [1], [0, 0, 1, 1], [], []>} : vector<4x64xf32>, vector<64x512xf32>, vector<4x512xf32> -> vector<4x512xf32>
    %94 = vector.extract_strided_slice %9 {offsets = [0, 1024], sizes = [4, 512], strides = [1, 1]} : vector<4x3072xf32> to vector<4x512xf32>
    %95 = vector.extract_strided_slice %7 {offsets = [0, 1536], sizes = [64, 512], strides = [1, 1]} : vector<64x3072xf32> to vector<64x512xf32>
    %96 = vector.extract_strided_slice %8 {offsets = [0, 2048], sizes = [64, 512], strides = [1, 1]} : vector<64x3072xf32> to vector<64x512xf32>
    %97 = arith.addf %95, %96 : vector<64x512xf32>
    %cst_32 = arith.constant 0.000000e+00 : f32
    %98 = vector.broadcast %cst_32 : f32 to vector<64x512xf32>
    %99 = arith.maximumf %97, %98 : vector<64x512xf32>
    %cst_33 = arith.constant dense<0.000000e+00> : vector<4x512xf32>
    %100 = tpu.matmul %10, %99, %cst_33 {dimension_numbers = #tpu.dot_dimension_numbers<[1], [0], [0], [1], [0, 0, 1, 1], [], []>} : vector<4x64xf32>, vector<64x512xf32>, vector<4x512xf32> -> vector<4x512xf32>
    %101 = vector.extract_strided_slice %9 {offsets = [0, 1536], sizes = [4, 512], strides = [1, 1]} : vector<4x3072xf32> to vector<4x512xf32>
    %102 = vector.extract_strided_slice %7 {offsets = [0, 1536], sizes = [64, 512], strides = [1, 1]} : vector<64x3072xf32> to vector<64x512xf32>
    %103 = vector.extract_strided_slice %8 {offsets = [0, 2560], sizes = [64, 512], strides = [1, 1]} : vector<64x3072xf32> to vector<64x512xf32>
    %104 = arith.addf %102, %103 : vector<64x512xf32>
    %cst_34 = arith.constant 0.000000e+00 : f32
    %105 = vector.broadcast %cst_34 : f32 to vector<64x512xf32>
    %106 = arith.maximumf %104, %105 : vector<64x512xf32>
    %cst_35 = arith.constant dense<0.000000e+00> : vector<4x512xf32>
    %107 = tpu.matmul %10, %106, %cst_35 {dimension_numbers = #tpu.dot_dimension_numbers<[1], [0], [0], [1], [0, 0, 1, 1], [], []>} : vector<4x64xf32>, vector<64x512xf32>, vector<4x512xf32> -> vector<4x512xf32>
    %108 = vector.extract_strided_slice %9 {offsets = [0, 1536], sizes = [4, 512], strides = [1, 1]} : vector<4x3072xf32> to vector<4x512xf32>
    %109 = vector.extract_strided_slice %7 {offsets = [0, 2048], sizes = [64, 512], strides = [1, 1]} : vector<64x3072xf32> to vector<64x512xf32>
    %110 = vector.extract_strided_slice %8 {offsets = [0, 2560], sizes = [64, 512], strides = [1, 1]} : vector<64x3072xf32> to vector<64x512xf32>
    %111 = arith.addf %109, %110 : vector<64x512xf32>
    %cst_36 = arith.constant 0.000000e+00 : f32
    %112 = vector.broadcast %cst_36 : f32 to vector<64x512xf32>
    %113 = arith.maximumf %111, %112 : vector<64x512xf32>
    %cst_37 = arith.constant dense<0.000000e+00> : vector<4x512xf32>
    %114 = tpu.matmul %10, %113, %cst_37 {dimension_numbers = #tpu.dot_dimension_numbers<[1], [0], [0], [1], [0, 0, 1, 1], [], []>} : vector<4x64xf32>, vector<64x512xf32>, vector<4x512xf32> -> vector<4x512xf32>
    %115 = vector.extract_strided_slice %9 {offsets = [0, 2048], sizes = [4, 512], strides = [1, 1]} : vector<4x3072xf32> to vector<4x512xf32>
    %116 = arith.maximumf %16, %23 : vector<4x512xf32>
    %117 = arith.maximumf %30, %37 : vector<4x512xf32>
    %118 = arith.maximumf %44, %51 : vector<4x512xf32>
    %119 = arith.maximumf %58, %65 : vector<4x512xf32>
    %120 = arith.maximumf %72, %79 : vector<4x512xf32>
    %121 = arith.maximumf %86, %93 : vector<4x512xf32>
    %122 = arith.maximumf %100, %107 : vector<4x512xf32>
    %123 = arith.maximumf %116, %117 : vector<4x512xf32>
    %124 = arith.maximumf %118, %119 : vector<4x512xf32>
    %125 = arith.maximumf %120, %121 : vector<4x512xf32>
    %126 = arith.maximumf %122, %114 : vector<4x512xf32>
    %127 = arith.maximumf %123, %124 : vector<4x512xf32>
    %128 = arith.maximumf %125, %126 : vector<4x512xf32>
    %129 = arith.maximumf %127, %128 : vector<4x512xf32>
    %cst_38 = arith.constant 0.000000e+00 : f32
    %130 = vector.broadcast %cst_38 : f32 to vector<4x512xf32>
    %cst_39 = arith.constant 0.000000e+00 : f32
    %131 = vector.broadcast %cst_39 : f32 to vector<4x512xf32>
    %132 = arith.subf %16, %129 : vector<4x512xf32>
    %133 = math.exp %132 : vector<4x512xf32>
    %134 = arith.addf %130, %133 : vector<4x512xf32>
    %135 = arith.mulf %133, %17 : vector<4x512xf32>
    %136 = arith.addf %131, %135 : vector<4x512xf32>
    %137 = arith.subf %23, %129 : vector<4x512xf32>
    %138 = math.exp %137 : vector<4x512xf32>
    %139 = arith.addf %134, %138 : vector<4x512xf32>
    %140 = arith.mulf %138, %24 : vector<4x512xf32>
    %141 = arith.addf %136, %140 : vector<4x512xf32>
    %142 = arith.subf %30, %129 : vector<4x512xf32>
    %143 = math.exp %142 : vector<4x512xf32>
    %144 = arith.addf %139, %143 : vector<4x512xf32>
    %145 = arith.mulf %143, %31 : vector<4x512xf32>
    %146 = arith.addf %141, %145 : vector<4x512xf32>
    %147 = arith.subf %37, %129 : vector<4x512xf32>
    %148 = math.exp %147 : vector<4x512xf32>
    %149 = arith.addf %144, %148 : vector<4x512xf32>
    %150 = arith.mulf %148, %38 : vector<4x512xf32>
    %151 = arith.addf %146, %150 : vector<4x512xf32>
    %152 = arith.subf %44, %129 : vector<4x512xf32>
    %153 = math.exp %152 : vector<4x512xf32>
    %154 = arith.addf %149, %153 : vector<4x512xf32>
    %155 = arith.mulf %153, %45 : vector<4x512xf32>
    %156 = arith.addf %151, %155 : vector<4x512xf32>
    %157 = arith.subf %51, %129 : vector<4x512xf32>
    %158 = math.exp %157 : vector<4x512xf32>
    %159 = arith.addf %154, %158 : vector<4x512xf32>
    %160 = arith.mulf %158, %52 : vector<4x512xf32>
    %161 = arith.addf %156, %160 : vector<4x512xf32>
    %162 = arith.subf %58, %129 : vector<4x512xf32>
    %163 = math.exp %162 : vector<4x512xf32>
    %164 = arith.addf %159, %163 : vector<4x512xf32>
    %165 = arith.mulf %163, %59 : vector<4x512xf32>
    %166 = arith.addf %161, %165 : vector<4x512xf32>
    %167 = arith.subf %65, %129 : vector<4x512xf32>
    %168 = math.exp %167 : vector<4x512xf32>
    %169 = arith.addf %164, %168 : vector<4x512xf32>
    %170 = arith.mulf %168, %66 : vector<4x512xf32>
    %171 = arith.addf %166, %170 : vector<4x512xf32>
    %172 = arith.subf %72, %129 : vector<4x512xf32>
    %173 = math.exp %172 : vector<4x512xf32>
    %174 = arith.addf %169, %173 : vector<4x512xf32>
    %175 = arith.mulf %173, %73 : vector<4x512xf32>
    %176 = arith.addf %171, %175 : vector<4x512xf32>
    %177 = arith.subf %79, %129 : vector<4x512xf32>
    %178 = math.exp %177 : vector<4x512xf32>
    %179 = arith.addf %174, %178 : vector<4x512xf32>
    %180 = arith.mulf %178, %80 : vector<4x512xf32>
    %181 = arith.addf %176, %180 : vector<4x512xf32>
    %182 = arith.subf %86, %129 : vector<4x512xf32>
    %183 = math.exp %182 : vector<4x512xf32>
    %184 = arith.addf %179, %183 : vector<4x512xf32>
    %185 = arith.mulf %183, %87 : vector<4x512xf32>
    %186 = arith.addf %181, %185 : vector<4x512xf32>
    %187 = arith.subf %93, %129 : vector<4x512xf32>
    %188 = math.exp %187 : vector<4x512xf32>
    %189 = arith.addf %184, %188 : vector<4x512xf32>
    %190 = arith.mulf %188, %94 : vector<4x512xf32>
    %191 = arith.addf %186, %190 : vector<4x512xf32>
    %192 = arith.subf %100, %129 : vector<4x512xf32>
    %193 = math.exp %192 : vector<4x512xf32>
    %194 = arith.addf %189, %193 : vector<4x512xf32>
    %195 = arith.mulf %193, %101 : vector<4x512xf32>
    %196 = arith.addf %191, %195 : vector<4x512xf32>
    %197 = arith.subf %107, %129 : vector<4x512xf32>
    %198 = math.exp %197 : vector<4x512xf32>
    %199 = arith.addf %194, %198 : vector<4x512xf32>
    %200 = arith.mulf %198, %108 : vector<4x512xf32>
    %201 = arith.addf %196, %200 : vector<4x512xf32>
    %202 = arith.subf %114, %129 : vector<4x512xf32>
    %203 = math.exp %202 : vector<4x512xf32>
    %204 = arith.addf %199, %203 : vector<4x512xf32>
    %205 = arith.mulf %203, %115 : vector<4x512xf32>
    %206 = arith.addf %201, %205 : vector<4x512xf32>
    %207 = tpu.reciprocal %204 {approx = true} : vector<4x512xf32> -> vector<4x512xf32>
    %208 = arith.mulf %206, %207 : vector<4x512xf32>
    %cst_40 = arith.constant dense<0.000000e+00> : vector<512xf32>
    %209 = vector.multi_reduction <add>, %208, %cst_40 [0] : vector<4x512xf32> to vector<512xf32>
    %210 = vector.shape_cast %209 : vector<512xf32> to vector<1x512xf32>
    %c0_41 = arith.constant 0 : index
    %c0_42 = arith.constant 0 : index
    %c0_43 = arith.constant 0 : index
    %211 = vector.load %arg2[%c0_41, %c0_42, %c0_43] : memref<1x1x512xf32, #tpu.memory_space<vmem>>, vector<1x1x512xf32>
    %212 = vector.shape_cast %211 : vector<1x1x512xf32> to vector<1x512xf32>
    %213 = arith.addf %212, %210 : vector<1x512xf32>
    %214 = arith.negf %213 : vector<1x512xf32>
    %215 = math.exp %214 : vector<1x512xf32>
    %cst_44 = arith.constant 1.000000e+00 : f32
    %216 = vector.broadcast %cst_44 : f32 to vector<1x512xf32>
    %217 = arith.addf %216, %215 : vector<1x512xf32>
    %218 = arith.divf %216, %217 : vector<1x512xf32>
    %c0_45 = arith.constant 0 : index
    %c0_46 = arith.constant 0 : index
    %c0_47 = arith.constant 0 : index
    %219 = vector.load %arg6[%c0_45, %c0_46, %c0_47] : memref<1x1x512xf32, #tpu.memory_space<vmem>>, vector<1x1x512xf32>
    %220 = vector.shape_cast %219 : vector<1x1x512xf32> to vector<1x512xf32>
    %221 = vector.shape_cast %218 : vector<1x512xf32> to vector<1x1x512xf32>
    tpu.vector_store %arg6[%c0_45, %c0_46, %c0_47], %221 {strides = array<i32>} : memref<1x1x512xf32, #tpu.memory_space<vmem>>, vector<1x1x512xf32>,
    return
  }
  func.func @transform_0(%arg0: i32) -> (i32, i32, i32) {
    %c0_i32 = arith.constant 0 : i32
    %c0_i32_0 = arith.constant 0 : i32
    %c0_i32_1 = arith.constant 0 : i32
    return %arg0, %c0_i32, %c0_i32_0 : i32, i32, i32
  }
  func.func @transform_1(%arg0: i32) -> (i32, i32, i32) {
    %c0_i32 = arith.constant 0 : i32
    %c0_i32_0 = arith.constant 0 : i32
    %c0_i32_1 = arith.constant 0 : i32
    return %arg0, %c0_i32, %c0_i32_0 : i32, i32, i32
  }
  func.func @transform_2(%arg0: i32) -> (i32, i32) {
    %c0_i32 = arith.constant 0 : i32
    %c0_i32_0 = arith.constant 0 : i32
    %c0_i32_1 = arith.constant 0 : i32
    return %c0_i32, %c0_i32_0 : i32, i32
  }
  func.func @transform_3(%arg0: i32) -> (i32, i32) {
    %c0_i32 = arith.constant 0 : i32
    %c0_i32_0 = arith.constant 0 : i32
    %c0_i32_1 = arith.constant 0 : i32
    return %c0_i32, %c0_i32_0 : i32, i32
  }
  func.func @transform_4(%arg0: i32) -> (i32, i32) {
    %c0_i32 = arith.constant 0 : i32
    %c0_i32_0 = arith.constant 0 : i32
    %c0_i32_1 = arith.constant 0 : i32
    return %c0_i32, %c0_i32_0 : i32, i32
  }
  func.func @transform_5(%arg0: i32) -> (i32, i32, i32) {
    %c0_i32 = arith.constant 0 : i32
    %c0_i32_0 = arith.constant 0 : i32
    %c0_i32_1 = arith.constant 0 : i32
    return %arg0, %c0_i32, %c0_i32_0 : i32, i32, i32
  }
}

</mosaic_0001>

<bundles_post_ra>
// kernel: tpu_custom_call.1
= control target key start
LH: loop header
LB: loop body
LE: loop exit
PB: predicated region body
PF: predicated region fallthrough
CT: control target
= control target key end

     0   :  { %10 = vsyncpa [#allocation3], 0  ;;  %s10719_s0 = inlined_call_operand.hbm [shape: bf16[2,32,3072], index: 0, kind: input, shape index: {}]   ;;  %s10720_s1 = inlined_call_operand.vmem [shape: f32[2,1,512], index: 1, kind: input, shape index: {}]   ;;  %s10721_s2 = inlined_call_operand.vmem [shape: bf16[132,32], index: 2, kind: input, shape index: {}]   ;;  %s10722_s3 = inlined_call_operand.vmem [shape: f32[64,1], index: 3, kind: input, shape index: {}]   ;;  %s10723_s4 = inlined_call_operand.vmem [shape: f32[4,64], index: 4, kind: input, shape index: {}]   ;;  %s10724_s5 = inlined_call_operand.hbm [shape: f32[2,1,512], index: 5, kind: output, shape index: {}]  }
   0x1   :  { %12 = vsyncpa [#allocation3 + $0x1], 0 }
   0x2   :  { %13 = vsyncpa [#allocation4], 0 }
   0x3   :  { %15 = vsyncpa [#allocation4 + $0x1], 0  ;;  %s6464_s18 = smov 0   ;;  %s6466_s19 = smov 0  }
   0x4   :  { %s6468_s20 = smov 0   ;;  %s6470_s21 = smov 0  }
   0x5 LB: > { %s6485_s22 = sadd.s32 4294967295, %s6425_s21   ;;  %s5916_s23 = sadd.s32 4294967294, %s6425_s21   ;;  %s6425_s21 = sphi %s6470_s21, %s12406_s21   ;;  %s6421_s20 = sphi %s6468_s20, %s12405_s20   ;;  %s6417_s19 = sphi %s6466_s19, %s12404_s19   ;;  %s6413_s18 = sphi %s6464_s18, %s12403_s18  }
   0x6   : > { %s6489_s24 = sadd.s32 1, %s6425_s21   ;;  %s28_s25 = sadd.s32 1, %s6421_s20 }
   0x7   : > { %s25_s26 = ssub.s32 %s6425_s21, %s6489_s24  ;;  %p35_p0 = scmp.ne.s32.totalorder %s6421_s20, %s6417_s19 }
   0x8   : > { %p26_p1 = scmp.eq.s32.totalorder %s25_s26, 0  ;;  %p36_p2 = scmp.eq.s32.totalorder %s6425_s21, 0 }
   0x9   : > { %p41_p3 = scmp.ne.s32.totalorder %s6417_s19, %s6413_s18  ;;  %p42_p4 = scmp.eq.s32.totalorder %s6485_s22, 0 }
   0xa   : > { %s6501_s27 = scalar_select %p26_p1, %s6421_s20, %s28_s25  }
   0xb   : > { %p37_p5 = por %p36_p2, %p35_p0  ;;  %p6503_p6 = por %p42_p4, %p41_p3 }
   0xc   : > { %p154_p7 = scmp.eq.s32.totalorder %s6485_s22, 1  ;;  %p160_p8 = scmp.eq.s32.totalorder %s5916_s23, 1 }
   0xd   : > { %s11080_s28 = scalar_select %p6503_p6, 1, 0 }
   0xe   : > { %p6140_p10 = scmp.lt.s32.totalorder %s6425_s21, 2  ;;  %p6510_p11 = por %p154_p7, %p35_p0 }
   0xf   : > { %p6514_p12 = por %p160_p8, %p41_p3  ;;  %s189_s6 = sand.u32 1, %s6421_s20  }
  0x10   : > { %s11081_s29 = scalar_select %p6510_p11, 1, 0 }
  0x11   : > { %s11082_s30 = scalar_select %p6514_p12, 1, 0 }
  0x12   : > { %s6126_s7 = smul.u32 6144, %s6425_s21  ;;  %p6525_p13 = pnand %p6140_p10, %p37_p5 }
  0x13   : > { %s6125_s8 = smul.u32 384, %s189_s6  ;;  %s6531_s15 = scalar_lea.sflag [#allocation3], %s189_s6 }
  0x14   : > { %s6523_s11 = scalar_lea.hbm %s10719_s0, %s6126_s7  ;;  %p6335_p1 = pneg %p6525_p13 }
  0x15   : > { %s193_s13 = scalar_lea.vmem [#allocation2], %s6125_s8  ;;  %s6333_s16 = scalar_lea.hbm %s6523_s11, 6144 }
  0x16   : > { %s200_s14 = sshll.u32 %s193_s13, 4  ;;  %p6334_p0 = scmp.ne.s32.totalorder %s6523_s11, %s6333_s16  ;;  %s6529_s14 = int_to_ptr.vmem [resolvable:$true] %s200_s14 }
  0x17   : > { %s6338_s25 = scalar_lea.hbm %s10719_s0, 12288  ;;  %p6339_p4 = scmp.lt.s32.totalorder %s6523_s11, %s10719_s0 }
  0x18   : > { %p6336_p2 = pnand %p6335_p1, %p6334_p0  ;;  %p6340_p5 = scmp.lt.s32.totalorder %s6338_s25, %s6333_s16 }
  0x1a   : > { %p6337_p3 = pneg %p6336_p2  ;;  %p6341_p7 = por %p6340_p5, %p6339_p4 }
  0x1c   : > { %p6342_p8 = pnand %p6341_p7, %p6337_p3 }
  0x1e   : > { %6345 = shalt.err (!%p6342_p8)
}
  0x1f   : > { %s6346_s6 = scalar_lea.vmem %s6529_s14, 6144  ;;  %s6427_s8 = smov [#allocation2]  }
  0x20   : > { %p6347_p10 = scmp.ne.s32.totalorder %s6529_s14, %s6346_s6  ;;  %s6351_s9 = sshll.u32 %s6427_s8, 4  ;;  %s6352_s9 = int_to_ptr.vmem [resolvable:$false] %s6351_s9 }
  0x21   : > { %s6353_s10 = scalar_lea.vmem %s6352_s9, 12288  ;;  %p6354_p2 = scmp.lt.s32.totalorder %s6529_s14, %s6352_s9 }
  0x22   : > { %p6349_p9 = pnand %p6347_p10, %p6335_p1  ;;  %p6355_p12 = scmp.lt.s32.totalorder %s6353_s10, %s6346_s6 }
  0x24   : > { %p6350_p0 = pneg %p6349_p9  ;;  %p6356_p11 = por %p6355_p12, %p6354_p2 }
  0x26   : > { %p6357_p6 = pnand %p6356_p11, %p6350_p0 }
  0x28   : > { %6360 = shalt.err (!%p6357_p6)
}
  0x29   : > { %s6428_s13 = smov 1536   ;;  %s6429_s16 = smov 96  }
  0x2a   : > { %6135 = dma.hbm_to_vmem [thread:$0]  (!%p6525_p13), %s6523_s11, 6144, %s6529_s14, %s6531_s15, %s6428_s13, %s6428_s13, %s6429_s16  }
  0x2b   : > { %p5920_p9 = scmp.ge.s32.totalorder %s6425_s21, 1  ;;  %p215_p1 = scmp.lt.s32.totalorder %s6425_s21, 3 }
  0x2d   : > { %p216_p3 = pnand %p5920_p9, %p215_p1 }
  0x2f   : > { %219 = sbr.rel (%p216_p3) target bundleno = 1311 (0x51f), region = 40 }
  0x34   : > { %s6555_s17 = sand.u32 1, %s6417_s19   ;;  %p11084_p6 = scmp.ne.s32.totalorder %s11080_s28, 0 }
  0x35   : > { %s6127_s23 = smul.u32 384, %s6555_s17  ;;  %s222_s25 = scalar_lea.sflag [#allocation3], %s6555_s17 }
  0x37   : > { %s6559_s26 = scalar_lea.vmem [#allocation2], %s6127_s23 }
  0x38   : > { %6404 = dma.done.wait (%p11084_p6), %s222_s25, 6144  }
  0x39   : > { %6406 = vsyncadd (%p11084_p6), %s222_s25, 4294961152  ;;  %v10731_v0 = vmov 0   ;;  %v302_v1 = vld [vmem:[%s6559_s26 + $0xc0] sm:$0xff]  ;;  %v303_v3 = vld [vmem:[%s6559_s26 + $0xc8] sm:$0xff]  ;;  %vm609_vm0 = vcmask 261120   ;;  %vm2294_vm1 = vcmask 523264  }
  0x3a   : > { %669 = vmatprep.mubr.bf16.mxu0 %v10731_v0  ;;  %774 = vmatprep.mubr.bf16.mxu1 %v10731_v0  ;;  %v314_v2 = vld [vmem:[%s6559_s26 + $0x120] sm:$0xff]  ;;  %v315_v5 = vld [vmem:[%s6559_s26 + $0x128] sm:$0xff]  ;;  %v304_v15 = vld [vmem:[%s6559_s26 + $0xd0] sm:$0xff]  ;;  %vm5748_vm2 = vcmask 1043456   ;;  %p256_p11 = scmp.lt.s32.totalorder %s6485_s22, 1  ;;  %s5921_s7 = sshll.u32 %s6555_s17, 2 }
  0x3b   : > { %6180 = vset.pattern.permute.xlu1 %v10731_v0  ;;  %6179 = vset.pattern.permute.xlu0 %v10731_v0  ;;  %v5957_v4 = vcombine.high %v302_v1, %v314_v2  ;;  %v5956_v6 = vcombine.low %v302_v1, %v314_v2  ;;  %v278_v7 = vld [vmem:[%s6559_s26] sm:$0xff]  ;;  %v5959_v9 = vcombine.high %v303_v3, %v315_v5  ;;  %v279_v12 = vld [vmem:[%s6559_s26 + $0x8] sm:$0xff]  ;;  %v316_v17 = vld [vmem:[%s6559_s26 + $0x130] sm:$0xff]  ;;  %s255_s6 = scalar_lea.vmem [#allocation5], %s5921_s7  ;;  %s5820_s16 = scalar_lea.sflag [#allocation4], %s6555_s17 }
  0x3c   : > { %v290_v8 = vld [vmem:[%s6559_s26 + $0x60] sm:$0xff]  ;;  %v5958_v10 = vcombine.low %v303_v3, %v315_v5  ;;  %v291_v13 = vld [vmem:[%s6559_s26 + $0x68] sm:$0xff]  ;;  %v305_v18 = vld [vmem:[%s6559_s26 + $0xd8] sm:$0xff]  ;;  %v5961_v21 = vcombine.high %v304_v15, %v316_v17  ;;  %v5960_v24 = vcombine.low %v304_v15, %v316_v17  ;;  %s257_s28 = scalar_select %p256_p11, %s6485_s22, 1 }
  0x3d   : > { %v5933_v11 = vcombine.high %v278_v7, %v290_v8  ;;  %649 = vmatprep.subr.bf16.mxu0 %v5957_v4  ;;  %v5935_v14 = vcombine.high %v279_v12, %v291_v13  ;;  %754 = vmatprep.subr.bf16.mxu1 %v5959_v9  ;;  %v5932_v16 = vcombine.low %v278_v7, %v290_v8  ;;  %v317_v19 = vld [vmem:[%s6559_s26 + $0x138] sm:$0xff]  ;;  %v6584_v23 = vld [vmem:[%s10721_s2] sm:$0xff]   ;;  %v280_v26 = vld [vmem:[%s6559_s26 + $0x10] sm:$0xff]  ;;  %s5834_s8 = sshll.u32 %s255_s6, 4  ;;  %p12400_p13 = scmp.ne.s32.totalorder %s11081_s29, 0  ;;  %s5835_s8 = int_to_ptr.vmem [resolvable:$true] %s5834_s8 }
  0x3e   : > { %650 = vmatpush1.bf16.msra.mxu0 %v5956_v6  ;;  %755 = vmatpush1.bf16.msra.mxu1 %v5958_v10  ;;  %v5934_v20 = vcombine.low %v279_v12, %v291_v13  ;;  %v5963_v22 = vcombine.high %v305_v18, %v317_v19  ;;  %v5962_v25 = vcombine.low %v305_v18, %v317_v19  ;;  %v292_v27 = vld [vmem:[%s6559_s26 + $0x70] sm:$0xff]  ;;  %v281_v28 = vld [vmem:[%s6559_s26 + $0x18] sm:$0xff]  ;;  %v2026_v34 = vld [vmem:[%s10722_s3 + $0x28] sm:$0xff]  ;;  %s5922_s11 = sshll.u32 %s257_s28, 2  ;;  %s6361_s23 = scalar_lea.vmem %s5835_s8, 64 }
  0x3f   : > { %651 = vmatprep.subr.bf16.mxu0 %v5933_v11  ;;  %756 = vmatprep.subr.bf16.mxu1 %v5935_v14  ;;  %v5937_v29 = vcombine.high %v280_v26, %v292_v27  ;;  %v293_v30 = vld [vmem:[%s6559_s26 + $0x78] sm:$0xff]  ;;  %v5936_v32 = vcombine.low %v280_v26, %v292_v27  ;;  %v6605_v36 = vld [vmem:[%s10721_s2 + $0x8] sm:$0xff]   ;;  %v2025_v37 = vld [vmem:[%s10722_s3 + $0x20] sm:$0xff]  ;;  %s259_s15 = scalar_lea.vmem %s10720_s1, %s5922_s11  ;;  %p6362_p12 = scmp.ne.s32.totalorder %s5835_s8, %s6361_s23 }
  0x40   : > { %v5939_v31 = vcombine.high %v281_v28, %v293_v30  ;;  %v5938_v33 = vcombine.low %v281_v28, %v293_v30  ;;  %v2028_v35 = vld [vmem:[%s10722_s3 + $0x38] sm:$0xff]  ;;  %2056 = vperm.xlu1 %6180, %v2026_v34   ;;  %v6611_v38 = vld [vmem:[%s6559_s26 + $0xe0] sm:$0xff]  ;;  %v6617_v40 = vld [vmem:[%s6559_s26 + $0xe8] sm:$0xff]  ;;  %s6433_s25 = smov [#allocation5]  }
  0x41   : > { %2066 = vperm.xlu0 %6179, %v2028_v35   ;;  %v6614_v39 = vld [vmem:[%s6559_s26 + $0x140] sm:$0xff]  ;;  %v6620_v41 = vld [vmem:[%s6559_s26 + $0x148] sm:$0xff]  ;;  %v2027_v42 = vld [vmem:[%s10722_s3 + $0x30] sm:$0xff]  ;;  %p6363_p4 = pnand %p6362_p12, %p12400_p13  ;;  %s6365_s28 = sshll.u32 %s6433_s25, 4  ;;  %s6366_s28 = int_to_ptr.vmem [resolvable:$false] %s6365_s28 }
  0x42   : > { %652 = vmatpush1.bf16.msra.mxu0 %v5932_v16  ;;  %757 = vmatpush1.bf16.msra.mxu1 %v5934_v20  ;;  %v5965_v43 = vcombine.high %v6611_v38, %v6614_v39  ;;  %v5967_v44 = vcombine.high %v6617_v40, %v6620_v41  ;;  %v2023_v45 = vld [vmem:[%s10722_s3 + $0x10] sm:$0xff]  ;;  %v2024_v46 = vld [vmem:[%s10722_s3 + $0x18] sm:$0xff]  ;;  %v2021_v48 = vld [vmem:[%s10722_s3] sm:$0xff]  ;;  %v5964_v1 = vcombine.low %v6611_v38, %v6614_v39  ;;  %p6368_p7 = scmp.lt.s32.totalorder %s5835_s8, %s6366_s28 }
  0x43   : > { %859 = vmatprep.subr.bf16.mxu0 %v5961_v21  ;;  %980 = vmatprep.subr.bf16.mxu1 %v5963_v22  ;;  %v6644_v47 = vld [vmem:[%s10721_s2 + $0x10] sm:$0xff]   ;;  %v2022_v49 = vld [vmem:[%s10722_s3 + $0x8] sm:$0xff]  ;;  %v6664_v52 = vld [vmem:[%s6559_s26 + $0xf8] sm:$0xff]  ;;  %v5966_v4 = vcombine.low %v6617_v40, %v6620_v41  ;;  %p6364_p5 = pneg %p6363_p4 }
  0x44   : > { %2051 = vperm.xlu1 %6180, %v2025_v37   ;;  %v6658_v50 = vld [vmem:[%s6559_s26 + $0xf0] sm:$0xff]  ;;  %v6670_v54 = vld [vmem:[%s6559_s26 + $0x158] sm:$0xff]  ;;  %v6688_v57 = vld [vmem:[%s10721_s2 + $0x20] sm:$0xff]  }
  0x45   : > { %5980 = vmatmul.mubr.msk.bf16.vlgmr.msra.gmra.mxu0 %vm609_vm0, %v6584_v23  ;;  %5989 = vmatmul.mubr.msk.bf16.vlgmr.msra.gmra.mxu1 %vm609_vm0, %v6584_v23  ;;  %v6661_v51 = vld [vmem:[%s6559_s26 + $0x150] sm:$0xff]  ;;  %v5970_v55 = vcombine.low %v6664_v52, %v6670_v54  ;;  %v6677_v56 = vld [vmem:[%s10721_s2 + $0x18] sm:$0xff]   ;;  %v6699_v58 = vld [vmem:[%s10721_s2 + $0x28] sm:$0xff]   ;;  %v5971_v10 = vcombine.high %v6664_v52, %v6670_v54 }
  0x46   : > { %860 = vmatpush1.bf16.msra.mxu0 %v5960_v24  ;;  %981 = vmatpush1.bf16.msra.mxu1 %v5962_v25  ;;  %v5968_v53 = vcombine.low %v6658_v50, %v6661_v51  ;;  %v6710_v59 = vld [vmem:[%s10721_s2 + $0x30] sm:$0xff]   ;;  %v6721_v60 = vld [vmem:[%s10721_s2 + $0x38] sm:$0xff]   ;;  %v6732_v61 = vld [vmem:[%s10721_s2 + $0x40] ss:$0 sps:$4 sm:$0x33]   ;;  %v5969_v9 = vcombine.high %v6658_v50, %v6661_v51 }
  0x47   : > { %679 = vmatprep.mubr.bf16.mxu0 %v10731_v0  ;;  %784 = vmatprep.mubr.bf16.mxu1 %v10731_v0  ;;  %v282_v62 = vld [vmem:[%s6559_s26 + $0x20] sm:$0xff]  ;;  %v283_v2 = vld [vmem:[%s6559_s26 + $0x28] sm:$0xff]  ;;  %v284_v17 = vld [vmem:[%s6559_s26 + $0x30] sm:$0xff] }
  0x48   : > { %861 = vmatprep.subr.bf16.mxu0 %v5937_v29  ;;  %982 = vmatprep.subr.bf16.mxu1 %v5939_v31  ;;  %v294_v63 = vld [vmem:[%s6559_s26 + $0x80] sm:$0xff]  ;;  %v295_v3 = vld [vmem:[%s6559_s26 + $0x88] sm:$0xff]  ;;  %v296_v18 = vld [vmem:[%s6559_s26 + $0x90] sm:$0xff] }
  0x49   : > { %2061 = vperm.xlu0 %6179, %v2027_v42   ;;  %2041 = vperm.xlu1 %6180, %v2023_v45   ;;  %v5941_v5 = vcombine.high %v282_v62, %v294_v63  ;;  %v5943_v6 = vcombine.high %v283_v2, %v295_v3  ;;  %v5940_v7 = vcombine.low %v282_v62, %v294_v63  ;;  %v6771_v11 = vld [vmem:[%s6559_s26 + $0x100] sm:$0xff]  ;;  %v6777_v13 = vld [vmem:[%s6559_s26 + $0x108] sm:$0xff]  ;;  %v285_v19 = vld [vmem:[%s6559_s26 + $0x38] sm:$0xff] }
  0x4a   : > { %862 = vmatpush1.bf16.msra.mxu0 %v5936_v32  ;;  %983 = vmatpush1.bf16.msra.mxu1 %v5938_v33  ;;  %v5942_v8 = vcombine.low %v283_v2, %v295_v3  ;;  %v6774_v12 = vld [vmem:[%s6559_s26 + $0x160] sm:$0xff]  ;;  %v6782_v15 = vld [vmem:[%s6559_s26 + $0x168] sm:$0xff]  ;;  %v297_v20 = vld [vmem:[%s6559_s26 + $0x98] sm:$0xff]  ;;  %v5945_v21 = vcombine.high %v284_v17, %v296_v18  ;;  %v5944_v24 = vcombine.low %v284_v17, %v296_v18 }
  0x4b   : > { %1101 = vmatprep.subr.bf16.mxu0 %v5965_v43  ;;  %1222 = vmatprep.subr.bf16.mxu1 %v5967_v44  ;;  %v5972_v14 = vcombine.low %v6771_v11, %v6774_v12  ;;  %v5974_v16 = vcombine.low %v6777_v13, %v6782_v15  ;;  %v5947_v22 = vcombine.high %v285_v19, %v297_v20  ;;  %v6855_v28 = vld [vmem:[%s6559_s26 + $0x110] sm:$0xff]  ;;  %v6861_v30 = vld [vmem:[%s6559_s26 + $0x118] sm:$0xff]  ;;  %v286_v63 = vld [vmem:[%s6559_s26 + $0x40] sm:$0xff] }
  0x4c   : > { %v5946_v25 = vcombine.low %v285_v19, %v297_v20  ;;  %v5973_v26 = vcombine.high %v6771_v11, %v6774_v12  ;;  %v5975_v27 = vcombine.high %v6777_v13, %v6782_v15  ;;  %v6858_v29 = vld [vmem:[%s6559_s26 + $0x170] sm:$0xff]  ;;  %v6866_v32 = vld [vmem:[%s6559_s26 + $0x178] sm:$0xff]  ;;  %v287_v3 = vld [vmem:[%s6559_s26 + $0x48] sm:$0xff] }
  0x4d   : > { %5981 = vmatmul.mubr.msk.bf16.gmra.mxu0 %vm609_vm0, %v6605_v36  ;;  %5990 = vmatmul.mubr.msk.bf16.gmra.mxu1 %vm609_vm0, %v6605_v36  ;;  %v5977_v20 = vcombine.high %v6855_v28, %v6858_v29  ;;  %v5979_v11 = vcombine.high %v6861_v30, %v6866_v32 }
  0x4e   : > { %689 = vmatprep.mubr.bf16.mxu0 %v10731_v0  ;;  %794 = vmatprep.mubr.bf16.mxu1 %v10731_v0 }
  0x4f   : > { %2046 = vperm.xlu0 %6179, %v2024_v46   ;;  %2031 = vperm.xlu1 %6180, %v2021_v48  }
  0x53   : > { %2036 = vperm.xlu0 %6179, %v2022_v49  }
  0x55   : > { %5982 = vmatmul.mubr.msk.bf16.gmra.mxu0 %vm609_vm0, %v6644_v47  ;;  %5991 = vmatmul.mubr.msk.bf16.gmra.mxu1 %vm609_vm0, %v6644_v47 }
  0x56   : > { %699 = vmatprep.mubr.bf16.mxu0 %v10731_v0  ;;  %804 = vmatprep.mubr.bf16.mxu1 %v10731_v0 }
  0x5d   : > { %5983 = vmatmul.mubr.msk.bf16.gmra.mxu0 %vm609_vm0, %v6677_v56  ;;  %5992 = vmatmul.mubr.msk.bf16.gmra.mxu1 %vm609_vm0, %v6677_v56 }
  0x5e   : > { %709 = vmatprep.mubr.bf16.mxu0 %v10731_v0  ;;  %814 = vmatprep.mubr.bf16.mxu1 %v10731_v0 }
  0x65   : > { %5984 = vmatmul.mubr.msk.bf16.gmra.mxu0 %vm609_vm0, %v6688_v57  ;;  %5993 = vmatmul.mubr.msk.bf16.gmra.mxu1 %vm609_vm0, %v6688_v57 }
  0x66   : > { %715 = vmatprep.mubr.bf16.mxu0 %v10731_v0  ;;  %820 = vmatprep.mubr.bf16.mxu1 %v10731_v0 }
  0x6d   : > { %5985 = vmatmul.mubr.msk.bf16.gmra.mxu0 %vm609_vm0, %v6699_v58  ;;  %5994 = vmatmul.mubr.msk.bf16.gmra.mxu1 %vm609_vm0, %v6699_v58 }
  0x6e   : > { %721 = vmatprep.mubr.bf16.mxu0 %v10731_v0  ;;  %826 = vmatprep.mubr.bf16.mxu1 %v10731_v0 }
  0x75   : > { %5986 = vmatmul.mubr.msk.bf16.gmra.mxu0 %vm609_vm0, %v6710_v59  ;;  %5995 = vmatmul.mubr.msk.bf16.gmra.mxu1 %vm609_vm0, %v6710_v59 }
  0x76   : > { %727 = vmatprep.mubr.bf16.mxu0 %v10731_v0  ;;  %832 = vmatprep.mubr.bf16.mxu1 %v10731_v0 }
  0x7d   : > { %5987 = vmatmul.mubr.msk.bf16.gmra.mxu0 %vm609_vm0, %v6721_v60  ;;  %5996 = vmatmul.mubr.msk.bf16.gmra.mxu1 %vm609_vm0, %v6721_v60 }
  0x7e   : > { %733 = vmatprep.mubr.bf16.mxu0 %v10731_v0  ;;  %838 = vmatprep.mubr.bf16.mxu1 %v10731_v0 }
  0x85   : > { %5988 = vmatmul.mubr.msk.bf16.gmra.mxu0 %vm609_vm0, %v6732_v61  ;;  %5997 = vmatmul.mubr.msk.bf16.gmra.mxu1 %vm609_vm0, %v6732_v61 }
  0x86   : > { %879 = vmatprep.mubr.bf16.mxu0 %v10731_v0  ;;  %1000 = vmatprep.mubr.bf16.mxu1 %v10731_v0 }
  0x8d   : > { %5998 = vmatmul.mubr.msk.bf16.vlgmr.msra.gmra.mxu0 %vm609_vm0, %v6584_v23  ;;  %6007 = vmatmul.mubr.msk.bf16.vlgmr.msra.gmra.mxu1 %vm609_vm0, %v6584_v23 }
  0x8e   : > { %1102 = vmatpush1.bf16.msra.mxu0 %v5964_v1  ;;  %1223 = vmatpush1.bf16.msra.mxu1 %v5966_v4  ;;  %v298_v1 = vld [vmem:[%s6559_s26 + $0xa0] sm:$0xff]  ;;  %v299_v4 = vld [vmem:[%s6559_s26 + $0xa8] sm:$0xff] }
  0x8f   : > { %889 = vmatprep.mubr.bf16.mxu0 %v10731_v0  ;;  %1010 = vmatprep.mubr.bf16.mxu1 %v10731_v0  ;;  %v5948_v17 = vcombine.low %v286_v63, %v298_v1  ;;  %v5950_v19 = vcombine.low %v287_v3, %v299_v4 }
  0x90   : > { %1103 = vmatprep.subr.bf16.mxu0 %v5941_v5  ;;  %1224 = vmatprep.subr.bf16.mxu1 %v5943_v6 }
  0x92   : > { %1104 = vmatpush1.bf16.msra.mxu0 %v5940_v7  ;;  %1225 = vmatpush1.bf16.msra.mxu1 %v5942_v8  ;;  %v5949_v7 = vcombine.high %v286_v63, %v298_v1 }
  0x93   : > { %1343 = vmatprep.subr.bf16.mxu0 %v5969_v9  ;;  %1464 = vmatprep.subr.bf16.mxu1 %v5971_v10  ;;  %v5951_v9 = vcombine.high %v287_v3, %v299_v4 }
  0x95   : > { %5999 = vmatmul.mubr.msk.bf16.gmra.mxu0 %vm609_vm0, %v6605_v36  ;;  %6008 = vmatmul.mubr.msk.bf16.gmra.mxu1 %vm609_vm0, %v6605_v36 }
  0x96   : > { %899 = vmatprep.mubr.bf16.mxu0 %v10731_v0  ;;  %1020 = vmatprep.mubr.bf16.mxu1 %v10731_v0 }
  0x9d   : > { %6000 = vmatmul.mubr.msk.bf16.gmra.mxu0 %vm609_vm0, %v6644_v47  ;;  %6009 = vmatmul.mubr.msk.bf16.gmra.mxu1 %vm609_vm0, %v6644_v47 }
  0x9e   : > { %909 = vmatprep.mubr.bf16.mxu0 %v10731_v0  ;;  %1030 = vmatprep.mubr.bf16.mxu1 %v10731_v0 }
  0xa5   : > { %6001 = vmatmul.mubr.msk.bf16.gmra.mxu0 %vm609_vm0, %v6677_v56  ;;  %6010 = vmatmul.mubr.msk.bf16.gmra.mxu1 %vm609_vm0, %v6677_v56 }
  0xa6   : > { %919 = vmatprep.mubr.bf16.mxu0 %v10731_v0  ;;  %1040 = vmatprep.mubr.bf16.mxu1 %v10731_v0 }
  0xad   : > { %6002 = vmatmul.mubr.msk.bf16.gmra.mxu0 %vm609_vm0, %v6688_v57  ;;  %6011 = vmatmul.mubr.msk.bf16.gmra.mxu1 %vm609_vm0, %v6688_v57 }
  0xae   : > { %929 = vmatprep.mubr.bf16.mxu0 %v10731_v0  ;;  %1050 = vmatprep.mubr.bf16.mxu1 %v10731_v0 }
  0xb5   : > { %6003 = vmatmul.mubr.msk.bf16.gmra.mxu0 %vm609_vm0, %v6699_v58  ;;  %6012 = vmatmul.mubr.msk.bf16.gmra.mxu1 %vm609_vm0, %v6699_v58 }
  0xb6   : > { %939 = vmatprep.mubr.bf16.mxu0 %v10731_v0  ;;  %1060 = vmatprep.mubr.bf16.mxu1 %v10731_v0 }
  0xbd   : > { %6004 = vmatmul.mubr.msk.bf16.gmra.mxu0 %vm609_vm0, %v6710_v59  ;;  %6013 = vmatmul.mubr.msk.bf16.gmra.mxu1 %vm609_vm0, %v6710_v59 }
  0xbe   : > { %949 = vmatprep.mubr.bf16.mxu0 %v10731_v0  ;;  %1070 = vmatprep.mubr.bf16.mxu1 %v10731_v0 }
  0xc5   : > { %6005 = vmatmul.mubr.msk.bf16.gmra.mxu0 %vm609_vm0, %v6721_v60  ;;  %6014 = vmatmul.mubr.msk.bf16.gmra.mxu1 %vm609_vm0, %v6721_v60 }
  0xc6   : > { %959 = vmatprep.mubr.bf16.mxu0 %v10731_v0  ;;  %1080 = vmatprep.mubr.bf16.mxu1 %v10731_v0 }
  0xcd   : > { %6006 = vmatmul.mubr.msk.bf16.gmra.mxu0 %vm609_vm0, %v6732_v61  ;;  %6015 = vmatmul.mubr.msk.bf16.gmra.mxu1 %vm609_vm0, %v6732_v61 }
  0xce   : > { %1121 = vmatprep.mubr.bf16.mxu0 %v10731_v0  ;;  %1242 = vmatprep.mubr.bf16.mxu1 %v10731_v0 }
  0xd5   : > { %6016 = vmatmul.mubr.msk.bf16.vlgmr.msra.gmra.mxu0 %vm609_vm0, %v6584_v23  ;;  %6025 = vmatmul.mubr.msk.bf16.vlgmr.msra.gmra.mxu1 %vm609_vm0, %v6584_v23 }
  0xd6   : > { %1344 = vmatpush1.bf16.msra.mxu0 %v5968_v53  ;;  %1465 = vmatpush1.bf16.msra.mxu1 %v5970_v55 }
  0xd7   : > { %1131 = vmatprep.mubr.bf16.mxu0 %v10731_v0  ;;  %1252 = vmatprep.mubr.bf16.mxu1 %v10731_v0 }
  0xd8   : > { %1345 = vmatprep.subr.bf16.mxu0 %v5945_v21  ;;  %1466 = vmatprep.subr.bf16.mxu1 %v5947_v22 }
  0xda   : > { %1346 = vmatpush1.bf16.msra.mxu0 %v5944_v24  ;;  %1467 = vmatpush1.bf16.msra.mxu1 %v5946_v25 }
  0xdb   : > { %1585 = vmatprep.subr.bf16.mxu0 %v5973_v26  ;;  %1706 = vmatprep.subr.bf16.mxu1 %v5975_v27 }
  0xdd   : > { %6017 = vmatmul.mubr.msk.bf16.gmra.mxu0 %vm609_vm0, %v6605_v36  ;;  %6026 = vmatmul.mubr.msk.bf16.gmra.mxu1 %vm609_vm0, %v6605_v36 }
  0xde   : > { %1141 = vmatprep.mubr.bf16.mxu0 %v10731_v0  ;;  %1262 = vmatprep.mubr.bf16.mxu1 %v10731_v0 }
  0xe5   : > { %6018 = vmatmul.mubr.msk.bf16.gmra.mxu0 %vm609_vm0, %v6644_v47  ;;  %6027 = vmatmul.mubr.msk.bf16.gmra.mxu1 %vm609_vm0, %v6644_v47 }
  0xe6   : > { %1151 = vmatprep.mubr.bf16.mxu0 %v10731_v0  ;;  %1272 = vmatprep.mubr.bf16.mxu1 %v10731_v0 }
  0xed   : > { %6019 = vmatmul.mubr.msk.bf16.gmra.mxu0 %vm609_vm0, %v6677_v56  ;;  %6028 = vmatmul.mubr.msk.bf16.gmra.mxu1 %vm609_vm0, %v6677_v56 }
  0xee   : > { %1161 = vmatprep.mubr.bf16.mxu0 %v10731_v0  ;;  %1282 = vmatprep.mubr.bf16.mxu1 %v10731_v0 }
  0xf5   : > { %6020 = vmatmul.mubr.msk.bf16.gmra.mxu0 %vm609_vm0, %v6688_v57  ;;  %6029 = vmatmul.mubr.msk.bf16.gmra.mxu1 %vm609_vm0, %v6688_v57 }
  0xf6   : > { %1171 = vmatprep.mubr.bf16.mxu0 %v10731_v0  ;;  %1292 = vmatprep.mubr.bf16.mxu1 %v10731_v0 }
  0xfd   : > { %6021 = vmatmul.mubr.msk.bf16.gmra.mxu0 %vm609_vm0, %v6699_v58  ;;  %6030 = vmatmul.mubr.msk.bf16.gmra.mxu1 %vm609_vm0, %v6699_v58 }
  0xfe   : > { %1181 = vmatprep.mubr.bf16.mxu0 %v10731_v0  ;;  %1302 = vmatprep.mubr.bf16.mxu1 %v10731_v0 }
 0x105   : > { %v6888_v34 = vpop.f32.mrf.mxu0  ;;  %6022 = vmatmul.mubr.msk.bf16.gmra.mxu0 %vm609_vm0, %v6710_v59  ;;  %v6892_v35 = vpop.f32.mrf.mxu1  ;;  %6031 = vmatmul.mubr.msk.bf16.gmra.mxu1 %vm609_vm0, %v6710_v59 }
 0x106   : > { %1191 = vmatprep.mubr.bf16.mxu0 %v10731_v0  ;;  %1312 = vmatprep.mubr.bf16.mxu1 %v10731_v0 }
 0x107   : > { %v6897_v37 = vpop.f32.mrf.mxu0  ;;  %v6900_v38 = vpop.f32.mrf.mxu1 }
 0x109   : > { %v6902_v39 = vpop.f32.mrf.mxu0  ;;  %v6904_v40 = vpop.f32.mrf.mxu1 }
 0x10b   : > { %v6906_v41 = vpop.f32.mrf.mxu0  ;;  %v6908_v42 = vpop.f32.mrf.mxu1 }
 0x10d   : > { %v6910_v43 = vpop.f32.mrf.mxu0  ;;  %6023 = vmatmul.mubr.msk.bf16.gmra.mxu0 %vm609_vm0, %v6721_v60  ;;  %v6914_v44 = vpop.f32.mrf.mxu1  ;;  %6032 = vmatmul.mubr.msk.bf16.gmra.mxu1 %vm609_vm0, %v6721_v60 }
 0x10e   : > { %1201 = vmatprep.mubr.bf16.mxu0 %v10731_v0  ;;  %1322 = vmatprep.mubr.bf16.mxu1 %v10731_v0 }
 0x10f   : > { %v6919_v45 = vpop.f32.mrf.mxu0  ;;  %v6922_v46 = vpop.f32.mrf.mxu1 }
 0x111   : > { %v6924_v48 = vpop.f32.mrf.mxu0  ;;  %v6926_v49 = vpop.f32.mrf.mxu1 }
 0x113   : > { %v6928_v50 = vpop.f32.mrf.mxu0  ;;  %v6930_v51 = vpop.f32.mrf.mxu1 }
 0x115   : > { %v6932_v52 = vpop.f32.mrf.mxu0  ;;  %6024 = vmatmul.mubr.msk.bf16.gmra.mxu0 %vm609_vm0, %v6732_v61  ;;  %v6936_v53 = vpop.f32.mrf.mxu1  ;;  %6033 = vmatmul.mubr.msk.bf16.gmra.mxu1 %vm609_vm0, %v6732_v61 }
 0x116   : > { %1363 = vmatprep.mubr.bf16.mxu0 %v10731_v0  ;;  %1484 = vmatprep.mubr.bf16.mxu1 %v10731_v0 }
 0x117   : > { %v6941_v54 = vpop.f32.mrf.mxu0  ;;  %v6944_v55 = vpop.f32.mrf.mxu1 }
 0x119   : > { %v6946_v62 = vpop.f32.mrf.mxu0  ;;  %v6950_v2 = vpop.f32.mrf.mxu1 }
 0x11b   : > { %v6954_v5 = vpop.f32.mrf.mxu0  ;;  %v6956_v6 = vpop.f32.mrf.mxu1 }
 0x11d   : > { %v6958_v8 = vpop.f32.mrf.mxu0  ;;  %6034 = vmatmul.mubr.msk.bf16.vlgmr.msra.gmra.mxu0 %vm609_vm0, %v6584_v23  ;;  %v6962_v10 = vpop.f32.mrf.mxu1  ;;  %6043 = vmatmul.mubr.msk.bf16.vlgmr.msra.gmra.mxu1 %vm609_vm0, %v6584_v23 }
 0x11e   : > { %1586 = vmatpush1.bf16.msra.mxu0 %v5972_v14  ;;  %1707 = vmatpush1.bf16.msra.mxu1 %v5974_v16 }
 0x11f   : > { %v6972_v18 = vpop.f32.mrf.mxu0  ;;  %1373 = vmatprep.mubr.bf16.mxu0 %v10731_v0  ;;  %v6977_v21 = vpop.f32.mrf.mxu1  ;;  %1494 = vmatprep.mubr.bf16.mxu1 %v10731_v0 }
 0x120   : > { %1587 = vmatprep.subr.bf16.mxu0 %v5949_v7  ;;  %1708 = vmatprep.subr.bf16.mxu1 %v5951_v9 }
 0x121   : > { %v6982_v12 = vpop.f32.mrf.mxu0  ;;  %v6984_v13 = vpop.f32.mrf.mxu1 }
 0x122   : > { %1588 = vmatpush1.bf16.msra.mxu0 %v5948_v17  ;;  %1709 = vmatpush1.bf16.msra.mxu1 %v5950_v19 }
 0x123   : > { %v6986_v14 = vpop.f32.mrf.mxu0  ;;  %1827 = vmatprep.subr.bf16.mxu0 %v5977_v20  ;;  %v6988_v15 = vpop.f32.mrf.mxu1  ;;  %1930 = vmatprep.subr.bf16.mxu1 %v5979_v11 }
 0x125   : > { %v711_v16 = vpop.f32.mrf.mxu0  ;;  %6035 = vmatmul.mubr.msk.bf16.gmra.mxu0 %vm609_vm0, %v6605_v36  ;;  %v816_v22 = vpop.f32.mrf.mxu1  ;;  %6044 = vmatmul.mubr.msk.bf16.gmra.mxu1 %vm609_vm0, %v6605_v36 }
 0x126   : > { %1383 = vmatprep.mubr.bf16.mxu0 %v10731_v0  ;;  %1504 = vmatprep.mubr.bf16.mxu1 %v10731_v0 }
 0x127   : > { %v712_v24 = vpop.f32.mrf.mxu0  ;;  %v817_v25 = vpop.f32.mrf.mxu1 }
 0x129   : > { %v713_v26 = vpop.f32.mrf.mxu0  ;;  %v818_v27 = vpop.f32.mrf.mxu1 }
 0x12b   : > { %v714_v63 = vpop.f32.mrf.mxu0  ;;  %v819_v1 = vpop.f32.mrf.mxu1 }
 0x12d   : > { %v717_v3 = vpop.f32.mrf.mxu0  ;;  %6036 = vmatmul.mubr.msk.bf16.gmra.mxu0 %vm609_vm0, %v6644_v47  ;;  %v822_v4 = vpop.f32.mrf.mxu1  ;;  %6045 = vmatmul.mubr.msk.bf16.gmra.mxu1 %vm609_vm0, %v6644_v47 }
 0x12e   : > { %1393 = vmatprep.mubr.bf16.mxu0 %v10731_v0  ;;  %1514 = vmatprep.mubr.bf16.mxu1 %v10731_v0 }
 0x12f   : > { %v718_v7 = vpop.f32.mrf.mxu0  ;;  %v823_v9 = vpop.f32.mrf.mxu1 }
 0x131   : > { %v719_v17 = vpop.f32.mrf.mxu0  ;;  %v824_v19 = vpop.f32.mrf.mxu1 }
 0x133   : > { %v720_v20 = vpop.f32.mrf.mxu0  ;;  %v825_v11 = vpop.f32.mrf.mxu1 }
 0x135   : > { %v723_v16 = vpop.f32.mrf.mxu0  ;;  %6037 = vmatmul.mubr.msk.bf16.gmra.mxu0 %vm609_vm0, %v6677_v56  ;;  %v828_v22 = vpop.f32.mrf.mxu1  ;;  %6046 = vmatmul.mubr.msk.bf16.gmra.mxu1 %vm609_vm0, %v6677_v56 }
 0x136   : > { %1403 = vmatprep.mubr.bf16.mxu0 %v10731_v0  ;;  %1524 = vmatprep.mubr.bf16.mxu1 %v10731_v0 }
 0x137   : > { %v724_v24 = vpop.f32.mrf.mxu0  ;;  %v829_v25 = vpop.f32.mrf.mxu1 }
 0x139   : > { %v725_v26 = vpop.f32.mrf.mxu0  ;;  %v830_v27 = vpop.f32.mrf.mxu1 }
 0x13b   : > { %v726_v63 = vpop.f32.mrf.mxu0  ;;  %v831_v1 = vpop.f32.mrf.mxu1 }
 0x13d   : > { %v729_v3 = vpop.f32.mrf.mxu0  ;;  %6038 = vmatmul.mubr.msk.bf16.gmra.mxu0 %vm609_vm0, %v6688_v57  ;;  %v834_v4 = vpop.f32.mrf.mxu1  ;;  %6047 = vmatmul.mubr.msk.bf16.gmra.mxu1 %vm609_vm0, %v6688_v57 }
 0x13e   : > { %1413 = vmatprep.mubr.bf16.mxu0 %v10731_v0  ;;  %1534 = vmatprep.mubr.bf16.mxu1 %v10731_v0 }
 0x13f   : > { %v730_v7 = vpop.f32.mrf.mxu0  ;;  %v835_v9 = vpop.f32.mrf.mxu1 }
 0x141   : > { %v731_v17 = vpop.f32.mrf.mxu0  ;;  %v836_v19 = vpop.f32.mrf.mxu1 }
 0x143   : > { %v732_v20 = vpop.f32.mrf.mxu0  ;;  %v837_v11 = vpop.f32.mrf.mxu1 }
 0x145   : > { %v7014_v16 = vpop.f32.mrf.mxu0  ;;  %6039 = vmatmul.mubr.msk.bf16.gmra.mxu0 %vm609_vm0, %v6699_v58  ;;  %v7018_v22 = vpop.f32.mrf.mxu1  ;;  %6048 = vmatmul.mubr.msk.bf16.gmra.mxu1 %vm609_vm0, %v6699_v58 }
 0x146   : > { %11085 = vst [vmem:[#allocation8_spill] sm:$0xff] %v7014_v16  ;;  %11086 = vst [vmem:[#allocation9_spill] sm:$0xff] %v7018_v22  ;;  %1423 = vmatprep.mubr.bf16.mxu0 %v10731_v0  ;;  %1544 = vmatprep.mubr.bf16.mxu1 %v10731_v0 }
 0x147   : > { %v7023_v24 = vpop.f32.mrf.mxu0  ;;  %v7026_v25 = vpop.f32.mrf.mxu1 }
 0x148   : > { %11087 = vst [vmem:[#allocation10_spill] sm:$0xff] %v7023_v24  ;;  %11088 = vst [vmem:[#allocation11_spill] sm:$0xff] %v7026_v25 }
 0x149   : > { %v739_v26 = vpop.f32.mrf.mxu0  ;;  %v844_v27 = vpop.f32.mrf.mxu1 }
 0x14b   : > { %v740_v63 = vpop.f32.mrf.mxu0  ;;  %v845_v1 = vpop.f32.mrf.mxu1 }
 0x14d   : > { %v7028_v3 = vpop.f32.mrf.mxu0  ;;  %6040 = vmatmul.mubr.msk.bf16.gmra.mxu0 %vm609_vm0, %v6710_v59  ;;  %v7032_v4 = vpop.f32.mrf.mxu1  ;;  %6049 = vmatmul.mubr.msk.bf16.gmra.mxu1 %vm609_vm0, %v6710_v59 }
 0x14e   : > { %1433 = vmatprep.mubr.bf16.mxu0 %v10731_v0  ;;  %1554 = vmatprep.mubr.bf16.mxu1 %v10731_v0 }
 0x14f   : > { %v7037_v7 = vpop.f32.mrf.mxu0  ;;  %v7040_v9 = vpop.f32.mrf.mxu1 }
 0x150   : > { %11089 = vst [vmem:[#allocation12_spill] sm:$0xff] %v7037_v7  ;;  %11090 = vst [vmem:[#allocation13_spill] sm:$0xff] %v7040_v9 }
 0x151   : > { %v7042_v17 = vpop.f32.mrf.mxu0  ;;  %v7044_v19 = vpop.f32.mrf.mxu1 }
 0x152   : > { %11091 = vst [vmem:[#allocation14_spill] sm:$0xff] %v7042_v17  ;;  %11092 = vst [vmem:[#allocation15_spill] sm:$0xff] %v7044_v19  ;;  %v7221_v17 = vpop.permute.xlu1 %2056 }
 0x153   : > { %v7046_v20 = vpop.f32.mrf.mxu0  ;;  %v7048_v11 = vpop.f32.mrf.mxu1  ;;  %11141 = vst [vmem:[#allocation61_spill] sm:$0xff] %v7221_v17 }
 0x154   : > { %11093 = vst [vmem:[#allocation16_spill] sm:$0xff] %v7046_v20  ;;  %11094 = vst [vmem:[#allocation17_spill] sm:$0xff] %v7048_v11 }
 0x155   : > { %v7050_v26 = vpop.f32.mrf.mxu0  ;;  %6041 = vmatmul.mubr.msk.bf16.gmra.mxu0 %vm609_vm0, %v6721_v60  ;;  %v7054_v27 = vpop.f32.mrf.mxu1  ;;  %6050 = vmatmul.mubr.msk.bf16.gmra.mxu1 %vm609_vm0, %v6721_v60 }
 0x156   : > { %11095 = vst [vmem:[#allocation18_spill] sm:$0xff] %v7050_v26  ;;  %11096 = vst [vmem:[#allocation19_spill] sm:$0xff] %v7054_v27  ;;  %1443 = vmatprep.mubr.bf16.mxu0 %v10731_v0  ;;  %1564 = vmatprep.mubr.bf16.mxu1 %v10731_v0  ;;  %v301_v27 = vld [vmem:[%s6559_s26 + $0xb8] sm:$0xff] }
 0x157   : > { %v7059_v63 = vpop.f32.mrf.mxu0  ;;  %v7062_v1 = vpop.f32.mrf.mxu1 }
 0x158   : > { %11097 = vst [vmem:[#allocation20_spill] sm:$0xff] %v7059_v63  ;;  %11098 = vst [vmem:[#allocation21_spill] sm:$0xff] %v7062_v1  ;;  %v289_v63 = vld [vmem:[%s6559_s26 + $0x58] sm:$0xff] }
 0x159   : > { %v7064_v33 = vpop.f32.mrf.mxu0  ;;  %v7066_v31 = vpop.f32.mrf.mxu1 }
 0x15a   : > { %11099 = vst [vmem:[#allocation22_spill] sm:$0xff] %v7064_v33  ;;  %11100 = vst [vmem:[#allocation23_spill] sm:$0xff] %v7066_v31 }
 0x15b   : > { %v7068_v25 = vpop.f32.mrf.mxu0  ;;  %v7070_v24 = vpop.f32.mrf.mxu1 }
 0x15c   : > { %11101 = vst [vmem:[#allocation24_spill] sm:$0xff] %v7068_v25  ;;  %11102 = vst [vmem:[#allocation25_spill] sm:$0xff] %v7070_v24  ;;  %v288_v24 = vld [vmem:[%s6559_s26 + $0x50] sm:$0xff] }
 0x15d   : > { %v7072_v22 = vpop.f32.mrf.mxu0  ;;  %6042 = vmatmul.mubr.msk.bf16.gmra.mxu0 %vm609_vm0, %v6732_v61  ;;  %v7076_v16 = vpop.f32.mrf.mxu1  ;;  %6051 = vmatmul.mubr.msk.bf16.gmra.mxu1 %vm609_vm0, %v6732_v61 }
 0x15e   : > { %11103 = vst [vmem:[#allocation26_spill] sm:$0xff] %v7072_v22  ;;  %11104 = vst [vmem:[#allocation27_spill] sm:$0xff] %v7076_v16  ;;  %1605 = vmatprep.mubr.bf16.mxu0 %v10731_v0  ;;  %1726 = vmatprep.mubr.bf16.mxu1 %v10731_v0  ;;  %v300_v22 = vld [vmem:[%s6559_s26 + $0xb0] sm:$0xff]  ;;  %v5955_v0 = vcombine.high %v289_v63, %v301_v27  ;;  %s6124_s26 = sshll.u32 %s6485_s22, 6  ;;  %s6367_s22 = scalar_lea.vmem %s6366_s28, 128 }
 0x15f   : > { %v7081_v33 = vpop.f32.mrf.mxu0  ;;  %v7084_v31 = vpop.f32.mrf.mxu1  ;;  %v5953_v11 = vcombine.high %v288_v24, %v300_v22  ;;  %s10682_s13 = scalar_lea.hbm %s10724_s5, %s6124_s26  ;;  %p6369_p8 = scmp.lt.s32.totalorder %s6367_s22, %s6361_s23 }
 0x160   : > { %11105 = vst [vmem:[#allocation28_spill] sm:$0xff] %v7081_v33  ;;  %11106 = vst [vmem:[#allocation29_spill] sm:$0xff] %v7084_v31  ;;  %v5954_v33 = vcombine.low %v289_v63, %v301_v27 }
 0x161   : > { %v7086_v25 = vpop.f32.mrf.mxu0  ;;  %v7090_v1 = vpop.f32.mrf.mxu1  ;;  %p6370_p10 = por %p6369_p8, %p6368_p7 }
 0x162   : > { %11107 = vst [vmem:[#allocation30_spill] sm:$0xff] %v7086_v25  ;;  %11108 = vst [vmem:[#allocation31_spill] sm:$0xff] %v7090_v1  ;;  %v11113_v1 = vcombine.low %v6855_v28, %v6858_v29  ;;  %v5952_v25 = vcombine.low %v288_v24, %v300_v22 }
 0x163   : > { %v7094_v16 = vpop.f32.mrf.mxu0  ;;  %v7096_v26 = vpop.f32.mrf.mxu1  ;;  %p6371_p0 = pnand %p6370_p10, %p6364_p5 }
 0x164   : > { %11109 = vst [vmem:[#allocation32_spill] sm:$0xff] %v7094_v16  ;;  %11110 = vst [vmem:[#allocation33_spill] sm:$0xff] %v7096_v26  ;;  %v11114_v26 = vcombine.low %v6861_v30, %v6866_v32 }
 0x165   : > { %v7098_v20 = vpop.f32.mrf.mxu0  ;;  %6052 = vmatmul.mubr.msk.bf16.vlgmr.msra.gmra.mxu0 %vm609_vm0, %v6584_v23  ;;  %v7102_v31 = vpop.f32.mrf.mxu1  ;;  %6061 = vmatmul.mubr.msk.bf16.vlgmr.msra.gmra.mxu1 %vm609_vm0, %v6584_v23 }
 0x166   : > { %11111 = vst [vmem:[#allocation34_spill] sm:$0xff] %v7098_v20  ;;  %11112 = vst [vmem:[#allocation35_spill] sm:$0xff] %v7102_v31  ;;  %1828 = vmatpush1.bf16.msra.mxu0 %v11113_v1  ;;  %1931 = vmatpush1.bf16.msra.mxu1 %v11114_v26  ;;  %v11116_v20 = vmov 0  }
 0x167   : > { %v7112_v16 = vpop.f32.mrf.mxu0  ;;  %1615 = vmatprep.mubr.bf16.mxu0 %v11116_v20  ;;  %v7115_v19 = vpop.f32.mrf.mxu1  ;;  %1736 = vmatprep.mubr.bf16.mxu1 %v11116_v20 }
 0x168   : > { %11115 = vst [vmem:[#allocation36_spill] sm:$0xff] %v7112_v16  ;;  %11117 = vst [vmem:[#allocation37_spill] sm:$0xff] %v7115_v19  ;;  %1829 = vmatprep.subr.bf16.mxu0 %v5953_v11  ;;  %1932 = vmatprep.subr.bf16.mxu1 %v5955_v0 }
 0x169   : > { %v7118_v23 = vpop.f32.mrf.mxu0  ;;  %v7120_v28 = vpop.f32.mrf.mxu1 }
 0x16a   : > { %11118 = vst [vmem:[#allocation38_spill] sm:$0xff] %v7118_v23  ;;  %11119 = vst [vmem:[#allocation39_spill] sm:$0xff] %v7120_v28  ;;  %1830 = vmatpush1.bf16.msra.mxu0 %v5952_v25  ;;  %1933 = vmatpush1.bf16.msra.mxu1 %v5954_v33 }
 0x16b   : > { %v7122_v29 = vpop.f32.mrf.mxu0  ;;  %v7124_v30 = vpop.f32.mrf.mxu1 }
 0x16c   : > { %11120 = vst [vmem:[#allocation40_spill] sm:$0xff] %v7122_v29  ;;  %11121 = vst [vmem:[#allocation41_spill] sm:$0xff] %v7124_v30 }
 0x16d   : > { %v7126_v32 = vpop.f32.mrf.mxu0  ;;  %6053 = vmatmul.mubr.msk.bf16.gmra.mxu0 %vm609_vm0, %v6605_v36  ;;  %v7130_v22 = vpop.f32.mrf.mxu1  ;;  %6062 = vmatmul.mubr.msk.bf16.gmra.mxu1 %vm609_vm0, %v6605_v36 }
 0x16e   : > { %11122 = vst [vmem:[#allocation42_spill] sm:$0xff] %v7126_v32  ;;  %11123 = vst [vmem:[#allocation43_spill] sm:$0xff] %v7130_v22  ;;  %1625 = vmatprep.mubr.bf16.mxu0 %v11116_v20  ;;  %1746 = vmatprep.mubr.bf16.mxu1 %v11116_v20 }
 0x16f   : > { %v7135_v0 = vpop.f32.mrf.mxu0  ;;  %v7138_v24 = vpop.f32.mrf.mxu1 }
 0x170   : > { %11124 = vst [vmem:[#allocation44_spill] sm:$0xff] %v7135_v0  ;;  %11125 = vst [vmem:[#allocation45_spill] sm:$0xff] %v7138_v24  ;;  %v7206_v0 = vpop.permute.xlu0 %2066 }
 0x171   : > { %v7140_v33 = vpop.f32.mrf.mxu0  ;;  %v7142_v25 = vpop.f32.mrf.mxu1  ;;  %11138 = vst [vmem:[#allocation58_spill] sm:$0xff] %v7206_v0 }
 0x172   : > { %11126 = vst [vmem:[#allocation46_spill] sm:$0xff] %v7140_v33  ;;  %11127 = vst [vmem:[#allocation47_spill] sm:$0xff] %v7142_v25 }
 0x173   : > { %v7144_v11 = vpop.f32.mrf.mxu0  ;;  %v7146_v26 = vpop.f32.mrf.mxu1 }
 0x174   : > { %11128 = vst [vmem:[#allocation48_spill] sm:$0xff] %v7144_v11  ;;  %11129 = vst [vmem:[#allocation49_spill] sm:$0xff] %v7146_v26 }
 0x175   : > { %v7148_v27 = vpop.f32.mrf.mxu0  ;;  %6054 = vmatmul.mubr.msk.bf16.gmra.mxu0 %vm609_vm0, %v6644_v47  ;;  %v7152_v36 = vpop.f32.mrf.mxu1  ;;  %6063 = vmatmul.mubr.msk.bf16.gmra.mxu1 %vm609_vm0, %v6644_v47 }
 0x176   : > { %11130 = vst [vmem:[#allocation50_spill] sm:$0xff] %v7148_v27  ;;  %11131 = vst [vmem:[#allocation51_spill] sm:$0xff] %v7152_v36  ;;  %1635 = vmatprep.mubr.bf16.mxu0 %v11116_v20  ;;  %1756 = vmatprep.mubr.bf16.mxu1 %v11116_v20  ;;  %v7212_v27 = vadd.f32 %v7206_v0, %v6986_v14 }
 0x177   : > { %v7157_v63 = vpop.f32.mrf.mxu0  ;;  %v7160_v1 = vpop.f32.mrf.mxu1 }
 0x178   : > { %11132 = vst [vmem:[#allocation52_spill] sm:$0xff] %v7157_v63  ;;  %11133 = vst [vmem:[#allocation53_spill] sm:$0xff] %v7160_v1 }
 0x179   : > { %v7162_v30 = vpop.f32.mrf.mxu0  ;;  %v7164_v29 = vpop.f32.mrf.mxu1  ;;  %11139 = vst [vmem:[#allocation59_spill] sm:$0xff] %v7212_v27 }
 0x17a   : > { %11134 = vst [vmem:[#allocation54_spill] sm:$0xff] %v7162_v30  ;;  %11135 = vst [vmem:[#allocation55_spill] sm:$0xff] %v7164_v29 }
 0x17b   : > { %v7166_v28 = vpop.f32.mrf.mxu0  ;;  %v7168_v23 = vpop.f32.mrf.mxu1 }
 0x17c   : > { %11136 = vst [vmem:[#allocation56_spill] sm:$0xff] %v7166_v28  ;;  %11137 = vst [vmem:[#allocation57_spill] sm:$0xff] %v7168_v23 }
 0x17d   : > { %v7170_v19 = vpop.f32.mrf.mxu0  ;;  %6055 = vmatmul.mubr.msk.bf16.gmra.mxu0 %vm609_vm0, %v6677_v56  ;;  %v7174_v47 = vpop.f32.mrf.mxu1  ;;  %6064 = vmatmul.mubr.msk.bf16.gmra.mxu1 %vm609_vm0, %v6677_v56 }
 0x17e   : > { %1645 = vmatprep.mubr.bf16.mxu0 %v11116_v20  ;;  %1766 = vmatprep.mubr.bf16.mxu1 %v11116_v20 }
 0x17f   : > { %v7179_v16 = vpop.f32.mrf.mxu0  ;;  %v7182_v31 = vpop.f32.mrf.mxu1 }
 0x181   : > { %v7184_v22 = vpop.f32.mrf.mxu0  ;;  %v7186_v24 = vpop.f32.mrf.mxu1 }
 0x183   : > { %v7188_v25 = vpop.f32.mrf.mxu0  ;;  %v7190_v26 = vpop.f32.mrf.mxu1 }
 0x185   : > { %v7192_v33 = vpop.f32.mrf.mxu0  ;;  %6056 = vmatmul.mubr.msk.bf16.gmra.mxu0 %vm609_vm0, %v6688_v57  ;;  %v7196_v56 = vpop.f32.mrf.mxu1  ;;  %6065 = vmatmul.mubr.msk.bf16.gmra.mxu1 %vm609_vm0, %v6688_v57  ;;  %v7218_v57 = vadd.f32 %v7206_v0, %v6988_v15 }
 0x186   : > { %1655 = vmatprep.mubr.bf16.mxu0 %v11116_v20  ;;  %1776 = vmatprep.mubr.bf16.mxu1 %v11116_v20 }
 0x187   : > { %v7201_v36 = vpop.f32.mrf.mxu0  ;;  %v7204_v11 = vpop.f32.mrf.mxu1  ;;  %11140 = vst [vmem:[#allocation60_spill] sm:$0xff] %v7218_v57 }
 0x189   : > { %v7208_v1 = vpop.f32.mrf.mxu0  ;;  %v7214_v32 = vpop.f32.mrf.mxu1 }
 0x18b   : > { %v957_v29 = vpop.f32.mrf.mxu0  ;;  %v1078_v30 = vpop.f32.mrf.mxu1 }
 0x18c   : > { %v2259_v63 = vadd.f32 %v7212_v27, %v957_v29  ;;  %v2261_v23 = vadd.f32 %v7218_v57, %v1078_v30  ;;  %v7238_v57 = vpop.permute.xlu1 %2051 }
 0x18d   : > { %v7224_v9 = vpop.f32.mrf.mxu0  ;;  %6057 = vmatmul.mubr.msk.bf16.gmra.mxu0 %vm609_vm0, %v6699_v58  ;;  %v7228_v28 = vpop.f32.mrf.mxu1  ;;  %6066 = vmatmul.mubr.msk.bf16.gmra.mxu1 %vm609_vm0, %v6699_v58  ;;  %11146 = vst [vmem:[#allocation66_spill] sm:$0xff] %v7238_v57 }
 0x18e   : > { %11142 = vst [vmem:[#allocation62_spill] sm:$0xff] %v7224_v9  ;;  %v2291_v14 = vmax.f32 %v2259_v63, 0.0  ;;  %11143 = vst [vmem:[#allocation63_spill] sm:$0xff] %v7228_v28  ;;  %1665 = vmatprep.mubr.bf16.mxu0 %v11116_v20  ;;  %v2293_v15 = vmax.f32 %v2261_v23, 0.0  ;;  %1786 = vmatprep.mubr.bf16.mxu1 %v11116_v20  ;;  %v7240_v28 = vpop.permute.xlu0 %2061 }
 0x18f   : > { %v7233_v29 = vpop.f32.mrf.mxu0  ;;  %v7236_v27 = vpop.f32.mrf.mxu1  ;;  %11147 = vst [vmem:[#allocation67_spill] sm:$0xff] %v7240_v28 }
 0x190   : > { %11144 = vst [vmem:[#allocation64_spill] sm:$0xff] %v7233_v29  ;;  %11145 = vst [vmem:[#allocation65_spill] sm:$0xff] %v7236_v27  ;;  %2314 = vmatprep.subr.mxu0 %v2291_v14  ;;  %2385 = vmatprep.subr.mxu1 %v2293_v15  ;;  %v7256_v15 = vpop.permute.xlu1 %2041 }
 0x191   : > { %v965_v30 = vpop.f32.mrf.mxu0  ;;  %v1086_v9 = vpop.f32.mrf.mxu1  ;;  %11151 = vst [vmem:[#allocation71_spill] sm:$0xff] %v7256_v15 }
 0x192   : > { %v7260_v30 = vpop.permute.xlu0 %2046 }
 0x193   : > { %v966_v63 = vpop.f32.mrf.mxu0  ;;  %v1087_v7 = vpop.f32.mrf.mxu1  ;;  %11153 = vst [vmem:[#allocation73_spill] sm:$0xff] %v7260_v30 }
 0x195   : > { %v7242_v58 = vpop.f32.mrf.mxu0  ;;  %6058 = vmatmul.mubr.msk.bf16.gmra.mxu0 %vm609_vm0, %v6710_v59  ;;  %v7246_v23 = vpop.f32.mrf.mxu1  ;;  %6067 = vmatmul.mubr.msk.bf16.gmra.mxu1 %vm609_vm0, %v6710_v59 }
 0x196   : > { %11148 = vst [vmem:[#allocation68_spill] sm:$0xff] %v7246_v23  ;;  %1675 = vmatprep.mubr.bf16.mxu0 %v11116_v20  ;;  %1796 = vmatprep.mubr.bf16.mxu1 %v11116_v20 }
 0x197   : > { %v7251_v14 = vpop.f32.mrf.mxu0  ;;  %v7254_v9 = vpop.f32.mrf.mxu1 }
 0x198   : > { %11149 = vst [vmem:[#allocation69_spill] sm:$0xff] %v7251_v14  ;;  %11150 = vst [vmem:[#allocation70_spill] sm:$0xff] %v7254_v9  ;;  %v7277_v9 = vpop.permute.xlu1 %2031 }
 0x199   : > { %v7258_v7 = vpop.f32.mrf.mxu0  ;;  %v7262_v63 = vpop.f32.mrf.mxu1  ;;  %11159 = vst [vmem:[#allocation79_spill] sm:$0xff] %v7277_v9  ;;  %v7304_v23 = vadd.f32 %v7277_v9, %v6900_v38  ;;  %v7326_v38 = vadd.f32 %v7256_v15, %v6910_v43  ;;  %v7348_v43 = vadd.f32 %v7260_v30, %v6926_v49  ;;  %v7373_v49 = vadd.f32 %v7238_v57, %v6932_v52 }
 0x19a   : > { %11152 = vst [vmem:[#allocation72_spill] sm:$0xff] %v7258_v7  ;;  %11154 = vst [vmem:[#allocation74_spill] sm:$0xff] %v7262_v63  ;;  %v7396_v52 = vadd.f32 %v7240_v28, %v6958_v8 }
 0x19b   : > { %v7264_v27 = vpop.f32.mrf.mxu0  ;;  %v7266_v29 = vpop.f32.mrf.mxu1  ;;  %11168 = vst [vmem:[#allocation88_spill] sm:$0xff] %v7304_v23  ;;  %11174 = vst [vmem:[#allocation94_spill] sm:$0xff] %v7326_v38 }
 0x19c   : > { %11155 = vst [vmem:[#allocation75_spill] sm:$0xff] %v7264_v27  ;;  %11156 = vst [vmem:[#allocation76_spill] sm:$0xff] %v7266_v29  ;;  %v7282_v27 = vpop.permute.xlu0 %2036 }
 0x19d   : > { %v7268_v59 = vpop.f32.mrf.mxu0  ;;  %6059 = vmatmul.mubr.msk.bf16.gmra.mxu0 %vm609_vm0, %v6721_v60  ;;  %v7272_v14 = vpop.f32.mrf.mxu1  ;;  %6068 = vmatmul.mubr.msk.bf16.gmra.mxu1 %vm609_vm0, %v6721_v60  ;;  %11161 = vst [vmem:[#allocation81_spill] sm:$0xff] %v7282_v27  ;;  %v7294_v60 = vadd.f32 %v7277_v9, %v6892_v35  ;;  %11180 = vst [vmem:[#allocation100_spill] sm:$0xff] %v7348_v43 }
 0x19e   : > { %11157 = vst [vmem:[#allocation77_spill] sm:$0xff] %v7268_v59  ;;  %11158 = vst [vmem:[#allocation78_spill] sm:$0xff] %v7272_v14  ;;  %1685 = vmatprep.mubr.bf16.mxu0 %v11116_v20  ;;  %1806 = vmatprep.mubr.bf16.mxu1 %v11116_v20  ;;  %v7290_v14 = vadd.f32 %v7277_v9, %v6888_v34  ;;  %v7312_v34 = vadd.f32 %v7282_v27, %v6904_v40 }
 0x19f   : > { %v7279_v7 = vpop.f32.mrf.mxu0  ;;  %v7284_v29 = vpop.f32.mrf.mxu1  ;;  %11165 = vst [vmem:[#allocation85_spill] sm:$0xff] %v7294_v60  ;;  %11185 = vst [vmem:[#allocation105_spill] sm:$0xff] %v7373_v49 }
 0x1a0   : > { %11160 = vst [vmem:[#allocation80_spill] sm:$0xff] %v7279_v7  ;;  %11162 = vst [vmem:[#allocation82_spill] sm:$0xff] %v7284_v29  ;;  %v7300_v7 = vadd.f32 %v7277_v9, %v6897_v37  ;;  %v7308_v29 = vadd.f32 %v7282_v27, %v6902_v39  ;;  %v7322_v37 = vadd.f32 %v7282_v27, %v6908_v42 }
 0x1a1   : > { %v7286_v59 = vpop.f32.mrf.mxu0  ;;  %11164 = vst [vmem:[#allocation84_spill] sm:$0xff] %v7290_v14  ;;  %v7296_v63 = vpop.f32.mrf.mxu1  ;;  %11170 = vst [vmem:[#allocation90_spill] sm:$0xff] %v7312_v34  ;;  %v7330_v39 = vadd.f32 %v7256_v15, %v6914_v44  ;;  %v7344_v42 = vadd.f32 %v7260_v30, %v6924_v48  ;;  %v7364_v48 = vadd.f32 %v7206_v0, %v6982_v12 }
 0x1a2   : > { %11163 = vst [vmem:[#allocation83_spill] sm:$0xff] %v7286_v59  ;;  %11166 = vst [vmem:[#allocation86_spill] sm:$0xff] %v7296_v63  ;;  %v7318_v63 = vadd.f32 %v7282_v27, %v6906_v41  ;;  %v7340_v41 = vadd.f32 %v7256_v15, %v6922_v46  ;;  %v7360_v46 = vadd.f32 %v7260_v30, %v6930_v51 }
 0x1a3   : > { %11167 = vst [vmem:[#allocation87_spill] sm:$0xff] %v7300_v7  ;;  %11169 = vst [vmem:[#allocation89_spill] sm:$0xff] %v7308_v29  ;;  %v7314_v35 = vpop.f32.mrf.mxu0  ;;  %v7332_v40 = vpop.f32.mrf.mxu1  ;;  %v7381_v51 = vadd.f32 %v7240_v28, %v6972_v18  ;;  %v7385_v12 = vadd.f32 %v7206_v0, %v6984_v13  ;;  %v2258_v18 = vadd.f32 %v7364_v48, %v7208_v1 }
 0x1a4   : > { %11171 = vst [vmem:[#allocation91_spill] sm:$0xff] %v7314_v35  ;;  %11172 = vst [vmem:[#allocation92_spill] sm:$0xff] %v7318_v63  ;;  %v7336_v35 = vadd.f32 %v7256_v15, %v6919_v45  ;;  %v7356_v45 = vadd.f32 %v7260_v30, %v6928_v50  ;;  %v7377_v50 = vadd.f32 %v7238_v57, %v6936_v53 }
 0x1a5   : > { %11173 = vst [vmem:[#allocation93_spill] sm:$0xff] %v7322_v37  ;;  %11175 = vst [vmem:[#allocation95_spill] sm:$0xff] %v7330_v39  ;;  %v7350_v44 = vpop.f32.mrf.mxu0  ;;  %6060 = vmatmul.mubr.msk.bf16.gmra.mxu0 %vm609_vm0, %v6732_v61  ;;  %6069 = vmatmul.mubr.msk.bf16.gmra.mxu1 %vm609_vm0, %v6732_v61  ;;  %v7392_v61 = vadd.f32 %v7238_v57, %v6941_v54  ;;  %v7400_v53 = vadd.f32 %v7240_v28, %v6977_v21 }
 0x1a6   : > { %11176 = vst [vmem:[#allocation96_spill] sm:$0xff] %v7332_v40  ;;  %11177 = vst [vmem:[#allocation97_spill] sm:$0xff] %v7336_v35  ;;  %v7366_v40 = vpop.f32.mrf.mxu1  ;;  %1847 = vmatprep.mubr.bf16.mxu0 %v11116_v20  ;;  %1950 = vmatprep.mubr.bf16.mxu1 %v11116_v20  ;;  %v7412_v54 = vadd.f32 %v7240_v28, %v6962_v10  ;;  %v2255_v8 = vadd.f32 %v7381_v51, %v7201_v36 }
 0x1a7   : > { %11178 = vst [vmem:[#allocation98_spill] sm:$0xff] %v7340_v41  ;;  %11179 = vst [vmem:[#allocation99_spill] sm:$0xff] %v7344_v42  ;;  %v2260_v21 = vadd.f32 %v7385_v12, %v7214_v32  ;;  %v7422_v1 = vadd.f32 %v7221_v17, %v6946_v62  ;;  %v2254_v10 = vadd.f32 %v7396_v52, %v7192_v33 }
 0x1a8   : > { %11181 = vst [vmem:[#allocation101_spill] sm:$0xff] %v7350_v44  ;;  %11182 = vst [vmem:[#allocation102_spill] sm:$0xff] %v7360_v46  ;;  %v7404_v13 = vpop.f32.mrf.mxu1  ;;  %v7436_v32 = vadd.f32 %v7238_v57, %v6944_v55  ;;  %v7440_v62 = vadd.f32 %v7221_v17, %v6950_v2  ;;  %v2290_v2 = vmax.f32 %v2258_v18, 0.0 }
 0x1a9   : > { %11183 = vst [vmem:[#allocation103_spill] sm:$0xff] %v7364_v48  ;;  %11184 = vst [vmem:[#allocation104_spill] sm:$0xff] %v7366_v40  ;;  %v7387_v40 = vpop.f32.mrf.mxu0  ;;  %v2250_v55 = vadd.f32 %v7422_v1, %v7184_v22  ;;  %v2246_v22 = vadd.f32 %v7373_v49, %v7170_v19 }
 0x1aa   : > { %11186 = vst [vmem:[#allocation106_spill] sm:$0xff] %v7377_v50  ;;  %11187 = vst [vmem:[#allocation107_spill] sm:$0xff] %v7381_v51  ;;  %v7432_v36 = vpop.f32.mrf.mxu1 }
 0x1ab   : > { %11188 = vst [vmem:[#allocation108_spill] sm:$0xff] %v7385_v12  ;;  %11189 = vst [vmem:[#allocation109_spill] sm:$0xff] %v7387_v40  ;;  %v7408_v40 = vadd.f32 %v7221_v17, %v6954_v5  ;;  %v7418_v44 = vpop.f32.mrf.mxu0  ;;  %v7426_v5 = vadd.f32 %v7221_v17, %v6956_v6 }
 0x1ac   : > { %11190 = vst [vmem:[#allocation110_spill] sm:$0xff] %v7392_v61  ;;  %11191 = vst [vmem:[#allocation111_spill] sm:$0xff] %v7396_v52  ;;  %v7456_v59 = vpop.f32.mrf.mxu1 }
 0x1ad   : > { %11192 = vst [vmem:[#allocation112_spill] sm:$0xff] %v7400_v53  ;;  %11193 = vst [vmem:[#allocation113_spill] sm:$0xff] %v7404_v13  ;;  %v2257_v13 = vadd.f32 %v7400_v53, %v7204_v11  ;;  %v2251_v6 = vadd.f32 %v7408_v40, %v7188_v25  ;;  %v7446_v33 = vpop.f32.mrf.mxu0  ;;  %v7450_v11 = vadd.f32 %v7277_v9, %v7028_v3  ;;  %v6322_v3 = vld [vmem:[%s10721_s2] sm:$0xff]  }
 0x1ae   : > { %11194 = vst [vmem:[#allocation114_spill] sm:$0xff] %v7408_v40  ;;  %11195 = vst [vmem:[#allocation115_spill] sm:$0xff] %v7412_v54  ;;  %v2247_v25 = vadd.f32 %v7392_v61, %v7179_v16  ;;  %6070 = vmatmul.mubr.msk.bf16.vlgmr.msra.gmra.mxu0 %vm609_vm0, %v6322_v3  ;;  %v2286_v16 = vmax.f32 %v2254_v10, 0.0  ;;  %6079 = vmatmul.mubr.msk.bf16.vlgmr.msra.gmra.mxu1 %vm609_vm0, %v6322_v3  ;;  %v11211_v10 = vld [vmem:[#allocation56_spill] sm:$0xff]  ;;  %v2282_v3 = vmax.f32 %v2250_v55, 0.0  ;;  %v11219_v55 = vld [vmem:[#allocation54_spill] sm:$0xff] }
 0x1af   : > { %11196 = vst [vmem:[#allocation116_spill] sm:$0xff] %v7418_v44  ;;  %11197 = vst [vmem:[#allocation117_spill] sm:$0xff] %v7422_v1  ;;  %v2256_v44 = vadd.f32 %v7412_v54, %v7196_v56  ;;  %v2252_v56 = vadd.f32 %v7440_v62, %v7186_v24  ;;  %v2292_v54 = vmax.f32 %v2260_v21, 0.0  ;;  %v7462_v40 = vpop.f32.mrf.mxu0  ;;  %v2289_v18 = vmax.f32 %v2257_v13, 0.0  ;;  %2315 = vmatpush1.msra.mxu0 %v2290_v2 }
 0x1b0   : > { %11198 = vst [vmem:[#allocation118_spill] sm:$0xff] %v7426_v5  ;;  %11199 = vst [vmem:[#allocation119_spill] sm:$0xff] %v7432_v36  ;;  %v2253_v36 = vadd.f32 %v7426_v5, %v7190_v26  ;;  %v2249_v26 = vadd.f32 %v7436_v32, %v7182_v31  ;;  %v7477_v24 = vadd.f32 %v7277_v9, %v7032_v4  ;;  %v2283_v21 = vmax.f32 %v2251_v6, 0.0  ;;  %v11209_v31 = vld [vmem:[#allocation12_spill] sm:$0xff] }
 0x1b1   : > { %11200 = vst [vmem:[#allocation120_spill] sm:$0xff] %v7436_v32  ;;  %11201 = vst [vmem:[#allocation121_spill] sm:$0xff] %v7440_v62  ;;  %2386 = vmatpush1.msra.mxu1 %v2292_v54  ;;  %v7481_v19 = vpop.f32.mrf.mxu0  ;;  %v7485_v13 = vadd.f32 %v7277_v9, %v11209_v31  ;;  %v2243_v2 = vadd.f32 %v7356_v45, %v11211_v10  ;;  %v11215_v54 = vld [vmem:[#allocation57_spill] sm:$0xff]  ;;  %v11217_v10 = vld [vmem:[#allocation14_spill] sm:$0xff]  ;;  %1853 = vmatprep.mubr.bf16.mxu0 %v11116_v20 }
 0x1b2   : > { %11202 = vst [vmem:[#allocation122_spill] sm:$0xff] %v7446_v33  ;;  %11203 = vst [vmem:[#allocation123_spill] sm:$0xff] %v7450_v11  ;;  %v2287_v33 = vmax.f32 %v2255_v8, 0.0  ;;  %v2248_v8 = vadd.f32 %v7377_v50, %v7174_v47  ;;  %2387 = vmatprep.subr.mxu1 %v2289_v18  ;;  %v11213_v47 = vld [vmem:[#allocation13_spill] sm:$0xff]  ;;  %v2245_v6 = vadd.f32 %v7360_v46, %v11215_v54  ;;  %v2278_v18 = vmax.f32 %v2246_v22, 0.0  ;;  %v11221_v54 = vld [vmem:[#allocation15_spill] sm:$0xff] }
 0x1b3   : > { %11204 = vst [vmem:[#allocation124_spill] sm:$0xff] %v7456_v59  ;;  %11205 = vst [vmem:[#allocation125_spill] sm:$0xff] %v7462_v40  ;;  %v7472_v59 = vpop.f32.mrf.mxu1  ;;  %v2288_v40 = vmax.f32 %v2256_v44, 0.0  ;;  %v7493_v44 = vadd.f32 %v7277_v9, %v11213_v47  ;;  %v7497_v31 = vpop.f32.mrf.mxu0  ;;  %v11226_v22 = vld [vmem:[#allocation42_spill] sm:$0xff]  ;;  %v2275_v46 = vmax.f32 %v2243_v2, 0.0  ;;  %1956 = vmatprep.mubr.bf16.mxu1 %v11116_v20 }
 0x1b4   : > { %11206 = vst [vmem:[#allocation126_spill] sm:$0xff] %v7472_v59  ;;  %11207 = vst [vmem:[#allocation127_spill] sm:$0xff] %v7477_v24  ;;  %2316 = vmatprep.subr.mxu0 %v2287_v33  ;;  %v2285_v59 = vmax.f32 %v2253_v36, 0.0  ;;  %v2279_v33 = vmax.f32 %v2247_v25, 0.0  ;;  %v7501_v36 = vadd.f32 %v7282_v27, %v11217_v10  ;;  %v7509_v25 = vadd.f32 %v7282_v27, %v11221_v54  ;;  %v11228_v54 = vld [vmem:[#allocation53_spill] sm:$0xff]  ;;  %v11233_v2 = vld [vmem:[#allocation46_spill] sm:$0xff] }
 0x1b5   : > { %11208 = vst [vmem:[#allocation128_spill] sm:$0xff] %v7481_v19  ;;  %11210 = vst [vmem:[#allocation12_spill] sm:$0xff] %v7485_v13  ;;  %v7489_v4 = vpop.f32.mrf.mxu1  ;;  %2317 = vmatpush1.msra.mxu0 %v2286_v16  ;;  %v2284_v19 = vmax.f32 %v2252_v56, 0.0  ;;  %2388 = vmatpush1.msra.mxu1 %v2288_v40  ;;  %v2242_v16 = vadd.f32 %v7344_v42, %v11219_v55  ;;  %v11223_v40 = vld [vmem:[#allocation52_spill] sm:$0xff]  ;;  %v7515_v55 = vpop.f32.mrf.mxu0 }
 0x1b6   : > { %11212 = vst [vmem:[#allocation56_spill] sm:$0xff] %v7489_v4  ;;  %11214 = vst [vmem:[#allocation13_spill] sm:$0xff] %v7493_v44  ;;  %2318 = vmatprep.subr.mxu0 %v2283_v21  ;;  %v2281_v4 = vmax.f32 %v2249_v26, 0.0  ;;  %2389 = vmatprep.subr.mxu1 %v2285_v59  ;;  %v2239_v56 = vadd.f32 %v7336_v35, %v11223_v40  ;;  %v11224_v21 = vld [vmem:[#allocation55_spill] sm:$0xff]  ;;  %v7519_v59 = vadd.f32 %v7290_v14, %v11226_v22  ;;  %v11227_v26 = vld [vmem:[#allocation50_spill] sm:$0xff] }
 0x1b7   : > { %11216 = vst [vmem:[#allocation57_spill] sm:$0xff] %v7497_v31  ;;  %11218 = vst [vmem:[#allocation14_spill] sm:$0xff] %v7501_v36  ;;  %v7505_v47 = vpop.f32.mrf.mxu1  ;;  %2319 = vmatpush1.msra.mxu0 %v2282_v3  ;;  %v2244_v10 = vadd.f32 %v7348_v43, %v11224_v21  ;;  %v2280_v31 = vmax.f32 %v2248_v8, 0.0  ;;  %2390 = vmatpush1.msra.mxu1 %v2284_v19  ;;  %v2238_v3 = vadd.f32 %v7326_v38, %v11227_v26  ;;  %v11230_v8 = vld [vmem:[#allocation44_spill] sm:$0xff]  ;;  %v7534_v26 = vpop.f32.mrf.mxu0 }
 0x1b8   : > { %11220 = vst [vmem:[#allocation54_spill] sm:$0xff] %v7505_v47  ;;  %11222 = vst [vmem:[#allocation15_spill] sm:$0xff] %v7509_v25  ;;  %2320 = vmatprep.subr.mxu0 %v2279_v33  ;;  %v2241_v47 = vadd.f32 %v7340_v41, %v11228_v54  ;;  %2391 = vmatprep.subr.mxu1 %v2281_v4  ;;  %v2231_v19 = vadd.f32 %v7300_v7, %v11230_v8  ;;  %v11231_v33 = vld [vmem:[#allocation48_spill] sm:$0xff]  ;;  %v2277_v43 = vmax.f32 %v2245_v6, 0.0  ;;  %v11234_v54 = vld [vmem:[#allocation49_spill] sm:$0xff] }
 0x1b9   : > { %11225 = vst [vmem:[#allocation52_spill] sm:$0xff] %v7515_v55  ;;  %v7525_v40 = vpop.f32.mrf.mxu1  ;;  %2321 = vmatpush1.msra.mxu0 %v2278_v18  ;;  %v2235_v21 = vadd.f32 %v7318_v63, %v11231_v33  ;;  %v11232_v55 = vld [vmem:[#allocation51_spill] sm:$0xff]  ;;  %2392 = vmatpush1.msra.mxu1 %v2280_v31  ;;  %v2234_v4 = vadd.f32 %v7308_v29, %v11233_v2  ;;  %v2271_v33 = vmax.f32 %v2239_v56, 0.0  ;;  %v2276_v7 = vmax.f32 %v2244_v10, 0.0 }
 0x1ba   : > { %11229 = vst [vmem:[#allocation55_spill] sm:$0xff] %v7525_v40  ;;  %v2240_v22 = vadd.f32 %v7330_v39, %v11232_v55  ;;  %v2237_v18 = vadd.f32 %v7322_v37, %v11234_v54  ;;  %v2274_v40 = vmax.f32 %v2242_v16, 0.0  ;;  %2322 = vmatprep.subr.mxu0 %v2275_v46  ;;  %v7543_v8 = vadd.f32 %v7450_v11, %v7534_v26  ;;  %v11237_v31 = vld [vmem:[#allocation47_spill] sm:$0xff]  ;;  %v6323_v46 = vld [vmem:[%s10721_s2 + $0x8] sm:$0xff]   ;;  %v7557_v16 = vpop.f32.mrf.mxu0  ;;  %v11240_v54 = vld [vmem:[#allocation45_spill] sm:$0xff] }
 0x1bb   : > { %v7545_v6 = vpop.f32.mrf.mxu1  ;;  %v2236_v55 = vadd.f32 %v7312_v34, %v11237_v31  ;;  %2393 = vmatprep.subr.mxu1 %v2277_v43  ;;  %6071 = vmatmul.mubr.msk.bf16.gmra.mxu0 %vm609_vm0, %v6323_v46  ;;  %11239 = vst [vmem:[#allocation44_spill] sm:$0xff] %v7557_v16  ;;  %v2270_v11 = vmax.f32 %v2238_v3, 0.0  ;;  %v2273_v31 = vmax.f32 %v2241_v47, 0.0  ;;  %v7564_v43 = vadd.f32 %v7485_v13, %v7557_v16  ;;  %v11243_v10 = vld [vmem:[#allocation43_spill] sm:$0xff] }
 0x1bc   : > { %11235 = vst [vmem:[#allocation42_spill] sm:$0xff] %v7543_v8  ;;  %11236 = vst [vmem:[#allocation50_spill] sm:$0xff] %v7545_v6  ;;  %v7551_v2 = vadd.f32 %v7477_v24, %v7545_v6  ;;  %v2233_v8 = vadd.f32 %v7304_v23, %v11240_v54  ;;  %6080 = vmatmul.mubr.msk.bf16.gmra.mxu1 %vm609_vm0, %v6323_v46  ;;  %2323 = vmatpush1.msra.mxu0 %v2274_v40  ;;  %v2267_v6 = vmax.f32 %v2235_v21, 0.0  ;;  %v7574_v47 = vpop.f32.mrf.mxu0  ;;  %v11245_v40 = vld [vmem:[#allocation16_spill] sm:$0xff]  ;;  %v11311_v23 = vld [vmem:[#allocation37_spill] sm:$0xff] }
 0x1bd   : > { %11241 = vst [vmem:[#allocation48_spill] sm:$0xff] %v7564_v43  ;;  %v7566_v56 = vpop.f32.mrf.mxu1  ;;  %v2272_v34 = vmax.f32 %v2240_v22, 0.0  ;;  %2394 = vmatpush1.msra.mxu1 %v2276_v7  ;;  %2324 = vmatprep.subr.mxu0 %v2271_v33  ;;  %v7578_v46 = vadd.f32 %v7282_v27, %v11245_v40  ;;  %v2266_v54 = vmax.f32 %v2234_v4, 0.0  ;;  %v2269_v43 = vmax.f32 %v2237_v18, 0.0  ;;  %v11249_v22 = vld [vmem:[#allocation17_spill] sm:$0xff]  ;;  %v11326_v16 = vld [vmem:[#allocation59_spill] sm:$0xff] }
 0x1be   : > { %11238 = vst [vmem:[#allocation53_spill] sm:$0xff] %v7551_v2  ;;  %11242 = vst [vmem:[#allocation51_spill] sm:$0xff] %v7566_v56  ;;  %v2232_v2 = vadd.f32 %v7294_v60, %v11243_v10  ;;  %v7572_v3 = vadd.f32 %v7493_v44, %v7566_v56  ;;  %2395 = vmatprep.subr.mxu1 %v2273_v31  ;;  %2325 = vmatpush1.msra.mxu0 %v2270_v11  ;;  %v2263_v10 = vmax.f32 %v2231_v19, 0.0  ;;  %v7594_v18 = vpop.f32.mrf.mxu0  ;;  %v11252_v11 = vld [vmem:[#allocation18_spill] sm:$0xff]  ;;  %v11320_v60 = vld [vmem:[#allocation40_spill] sm:$0xff] }
 0x1bf   : > { %11246 = vst [vmem:[#allocation49_spill] sm:$0xff] %v7578_v46  ;;  %v7582_v21 = vadd.f32 %v7501_v36, %v7574_v47  ;;  %v7584_v7 = vpop.f32.mrf.mxu1  ;;  %v7588_v33 = vadd.f32 %v7282_v27, %v11249_v22  ;;  %2396 = vmatpush1.msra.mxu1 %v2272_v34  ;;  %2326 = vmatprep.subr.mxu0 %v2267_v6  ;;  %v2262_v40 = vmax.f32 %v7519_v59, 0.0  ;;  %v11255_v6 = vld [vmem:[#allocation19_spill] sm:$0xff]  ;;  %v11314_v56 = vld [vmem:[#allocation38_spill] sm:$0xff] }
 0x1c0   : > { %11244 = vst [vmem:[#allocation46_spill] sm:$0xff] %v7572_v3  ;;  %11248 = vst [vmem:[#allocation45_spill] sm:$0xff] %v7584_v7  ;;  %v2268_v3 = vmax.f32 %v2236_v55, 0.0  ;;  %v7592_v4 = vadd.f32 %v7509_v25, %v7584_v7  ;;  %v7598_v31 = vadd.f32 %v7256_v15, %v11252_v11  ;;  %2397 = vmatprep.subr.mxu1 %v2269_v43  ;;  %2327 = vmatpush1.msra.mxu0 %v2266_v54  ;;  %v7615_v59 = vpop.f32.mrf.mxu0  ;;  %v11305_v36 = vld [vmem:[#allocation35_spill] sm:$0xff] }
 0x1c1   : > { %11247 = vst [vmem:[#allocation47_spill] sm:$0xff] %v7582_v21  ;;  %11250 = vst [vmem:[#allocation43_spill] sm:$0xff] %v7588_v33  ;;  %v2265_v21 = vmax.f32 %v2233_v8, 0.0  ;;  %v7603_v19 = vadd.f32 %v7578_v46, %v7594_v18  ;;  %v7605_v34 = vpop.f32.mrf.mxu1  ;;  %v7609_v55 = vadd.f32 %v7256_v15, %v11255_v6  ;;  %v2264_v22 = vmax.f32 %v2232_v2, 0.0  ;;  %2328 = vmatprep.subr.mxu0 %v2263_v10  ;;  %v11258_v8 = vld [vmem:[#allocation20_spill] sm:$0xff]  ;;  %v11262_v2 = vld [vmem:[#allocation21_spill] sm:$0xff] }
 0x1c2   : > { %11251 = vst [vmem:[#allocation16_spill] sm:$0xff] %v7592_v4  ;;  %11253 = vst [vmem:[#allocation17_spill] sm:$0xff] %v7598_v31  ;;  %2398 = vmatpush1.msra.mxu1 %v2268_v3  ;;  %v7613_v11 = vadd.f32 %v7588_v33, %v7605_v34  ;;  %v7619_v43 = vadd.f32 %v7256_v15, %v11258_v8  ;;  %2329 = vmatpush1.msra.mxu0 %v2262_v40  ;;  %v7636_v8 = vpop.f32.mrf.mxu0  ;;  %v11272_v4 = vld [vmem:[#allocation24_spill] sm:$0xff] }
 0x1c3   : > { %11254 = vst [vmem:[#allocation18_spill] sm:$0xff] %v7603_v19  ;;  %11256 = vst [vmem:[#allocation19_spill] sm:$0xff] %v7609_v55  ;;  %2399 = vmatprep.subr.mxu1 %v2265_v21  ;;  %v7623_v54 = vadd.f32 %v7598_v31, %v7615_v59  ;;  %v7625_v6 = vpop.f32.mrf.mxu1  ;;  %v7629_v3 = vadd.f32 %v7256_v15, %v11262_v2  ;;  %1859 = vmatprep.mubr.bf16.mxu0 %v11116_v20  ;;  %v11265_v21 = vld [vmem:[#allocation22_spill] sm:$0xff]  ;;  %v6324_v2 = vld [vmem:[%s10721_s2 + $0x10] sm:$0xff]  }
 0x1c4   : > { %11257 = vst [vmem:[#allocation129_spill] sm:$0xff] %v7613_v11  ;;  %11259 = vst [vmem:[#allocation20_spill] sm:$0xff] %v7619_v43  ;;  %2400 = vmatpush1.msra.mxu1 %v2264_v22  ;;  %v7634_v10 = vadd.f32 %v7609_v55, %v7625_v6  ;;  %v7640_v40 = vadd.f32 %v7260_v30, %v11265_v21  ;;  %1962 = vmatprep.mubr.bf16.mxu1 %v11116_v20  ;;  %v7662_v19 = vpop.f32.mrf.mxu0  ;;  %v11290_v55 = vld [vmem:[#allocation30_spill] sm:$0xff]  ;;  %v11296_v31 = vld [vmem:[#allocation32_spill] sm:$0xff] }
 0x1c5   : > { %11260 = vst [vmem:[#allocation130_spill] sm:$0xff] %v7623_v54  ;;  %11261 = vst [vmem:[#allocation131_spill] sm:$0xff] %v7625_v6  ;;  %6072 = vmatmul.mubr.msk.bf16.gmra.mxu0 %vm609_vm0, %v6324_v2  ;;  %v7649_v22 = vadd.f32 %v7619_v43, %v7636_v8  ;;  %v7651_v54 = vpop.f32.mrf.mxu1  ;;  %6081 = vmatmul.mubr.msk.bf16.gmra.mxu1 %vm609_vm0, %v6324_v2  ;;  %v7667_v44 = vadd.f32 %v7260_v30, %v11272_v4  ;;  %v11275_v2 = vld [vmem:[#allocation25_spill] sm:$0xff]  ;;  %v11278_v4 = vld [vmem:[#allocation26_spill] sm:$0xff] }
 0x1c6   : > { %11263 = vst [vmem:[#allocation21_spill] sm:$0xff] %v7629_v3  ;;  %11264 = vst [vmem:[#allocation132_spill] sm:$0xff] %v7634_v10  ;;  %v11269_v10 = vld [vmem:[#allocation23_spill] sm:$0xff]  ;;  %v7660_v21 = vadd.f32 %v7629_v3, %v7651_v54  ;;  %1865 = vmatprep.mubr.bf16.mxu0 %v11116_v20  ;;  %1968 = vmatprep.mubr.bf16.mxu1 %v11116_v20  ;;  %v7678_v13 = vadd.f32 %v7260_v30, %v11275_v2  ;;  %v7684_v33 = vpop.f32.mrf.mxu0 }
 0x1c7   : > { %11266 = vst [vmem:[#allocation22_spill] sm:$0xff] %v7640_v40  ;;  %11267 = vst [vmem:[#allocation133_spill] sm:$0xff] %v7649_v22  ;;  %v7655_v11 = vadd.f32 %v7260_v30, %v11269_v10  ;;  %v7671_v22 = vadd.f32 %v7640_v40, %v7662_v19  ;;  %v7673_v10 = vpop.f32.mrf.mxu1  ;;  %v7688_v46 = vadd.f32 %v7238_v57, %v11278_v4  ;;  %v11281_v43 = vld [vmem:[#allocation27_spill] sm:$0xff]  ;;  %v11284_v40 = vld [vmem:[#allocation28_spill] sm:$0xff] }
 0x1c8   : > { %11268 = vst [vmem:[#allocation134_spill] sm:$0xff] %v7651_v54  ;;  %11271 = vst [vmem:[#allocation135_spill] sm:$0xff] %v7660_v21  ;;  %v7698_v2 = vadd.f32 %v7238_v57, %v11281_v43  ;;  %v7708_v4 = vadd.f32 %v7238_v57, %v11284_v40  ;;  %v11287_v30 = vld [vmem:[#allocation29_spill] sm:$0xff]  ;;  %v7728_v40 = vadd.f32 %v7221_v17, %v11290_v55 }
 0x1c9   : > { %11270 = vst [vmem:[#allocation23_spill] sm:$0xff] %v7655_v11  ;;  %11273 = vst [vmem:[#allocation24_spill] sm:$0xff] %v7667_v44  ;;  %v7682_v21 = vadd.f32 %v7655_v11, %v7673_v10  ;;  %v7694_v3 = vpop.f32.mrf.mxu1  ;;  %v7718_v43 = vadd.f32 %v7238_v57, %v11287_v30 }
 0x1ca   : > { %11274 = vst [vmem:[#allocation136_spill] sm:$0xff] %v7671_v22  ;;  %11276 = vst [vmem:[#allocation25_spill] sm:$0xff] %v7678_v13  ;;  %v7692_v22 = vadd.f32 %v7667_v44, %v7684_v33  ;;  %v7702_v11 = vadd.f32 %v7678_v13, %v7694_v3 }
 0x1cb   : > { %11277 = vst [vmem:[#allocation137_spill] sm:$0xff] %v7682_v21  ;;  %11279 = vst [vmem:[#allocation26_spill] sm:$0xff] %v7688_v46  ;;  %v7704_v21 = vpop.f32.mrf.mxu0 }
 0x1cc   : > { %11280 = vst [vmem:[#allocation138_spill] sm:$0xff] %v7692_v22  ;;  %11282 = vst [vmem:[#allocation27_spill] sm:$0xff] %v7698_v2  ;;  %v7712_v44 = vadd.f32 %v7688_v46, %v7704_v21  ;;  %v7714_v22 = vpop.f32.mrf.mxu1 }
 0x1cd   : > { %11283 = vst [vmem:[#allocation139_spill] sm:$0xff] %v7702_v11  ;;  %11285 = vst [vmem:[#allocation28_spill] sm:$0xff] %v7708_v4  ;;  %v7722_v13 = vadd.f32 %v7698_v2, %v7714_v22  ;;  %v7724_v11 = vpop.f32.mrf.mxu0  ;;  %v11293_v2 = vld [vmem:[#allocation31_spill] sm:$0xff] }
 0x1ce   : > { %11286 = vst [vmem:[#allocation140_spill] sm:$0xff] %v7712_v44  ;;  %11288 = vst [vmem:[#allocation29_spill] sm:$0xff] %v7718_v43  ;;  %v6325_v44 = vld [vmem:[%s10721_s2 + $0x18] sm:$0xff]   ;;  %v7736_v30 = vadd.f32 %v7708_v4, %v7724_v11  ;;  %v7738_v46 = vpop.f32.mrf.mxu1  ;;  %v7754_v4 = vadd.f32 %v7221_v17, %v11296_v31 }
 0x1cf   : > { %11289 = vst [vmem:[#allocation141_spill] sm:$0xff] %v7722_v13  ;;  %11291 = vst [vmem:[#allocation30_spill] sm:$0xff] %v7728_v40  ;;  %6073 = vmatmul.mubr.msk.bf16.gmra.mxu0 %vm609_vm0, %v6325_v44  ;;  %v7742_v13 = vadd.f32 %v7221_v17, %v11293_v2  ;;  %6082 = vmatmul.mubr.msk.bf16.gmra.mxu1 %vm609_vm0, %v6325_v44  ;;  %v7747_v55 = vadd.f32 %v7718_v43, %v7738_v46  ;;  %v7749_v57 = vpop.f32.mrf.mxu0  ;;  %v11299_v44 = vld [vmem:[#allocation33_spill] sm:$0xff]  ;;  %v11302_v31 = vld [vmem:[#allocation34_spill] sm:$0xff] }
 0x1d0   : > { %11292 = vst [vmem:[#allocation142_spill] sm:$0xff] %v7736_v30  ;;  %1871 = vmatprep.mubr.bf16.mxu0 %v11116_v20  ;;  %11297 = vst [vmem:[#allocation32_spill] sm:$0xff] %v7754_v4  ;;  %v7758_v30 = vadd.f32 %v7728_v40, %v7749_v57  ;;  %v7760_v2 = vpop.f32.mrf.mxu1  ;;  %1974 = vmatprep.mubr.bf16.mxu1 %v11116_v20  ;;  %v7765_v43 = vadd.f32 %v7221_v17, %v11299_v44  ;;  %v11308_v17 = vld [vmem:[#allocation36_spill] sm:$0xff] }
 0x1d1   : > { %11294 = vst [vmem:[#allocation31_spill] sm:$0xff] %v7742_v13  ;;  %11295 = vst [vmem:[#allocation143_spill] sm:$0xff] %v7747_v55  ;;  %v7769_v55 = vadd.f32 %v7742_v13, %v7760_v2  ;;  %v7771_v15 = vpop.f32.mrf.mxu0  ;;  %v7775_v25 = vadd.f32 %v7240_v28, %v11302_v31  ;;  %v7785_v44 = vadd.f32 %v7240_v28, %v11305_v36 }
 0x1d2   : > { %11298 = vst [vmem:[#allocation144_spill] sm:$0xff] %v7758_v30  ;;  %11300 = vst [vmem:[#allocation33_spill] sm:$0xff] %v7765_v43  ;;  %v7779_v30 = vadd.f32 %v7754_v4, %v7771_v15  ;;  %v7781_v40 = vpop.f32.mrf.mxu1  ;;  %v7795_v31 = vadd.f32 %v7240_v28, %v11308_v17  ;;  %v7805_v36 = vadd.f32 %v7240_v28, %v11311_v23 }
 0x1d3   : > { %11301 = vst [vmem:[#allocation145_spill] sm:$0xff] %v7769_v55  ;;  %11303 = vst [vmem:[#allocation34_spill] sm:$0xff] %v7775_v25  ;;  %v7789_v13 = vadd.f32 %v7765_v43, %v7781_v40  ;;  %v7791_v55 = vpop.f32.mrf.mxu0  ;;  %v7815_v17 = vadd.f32 %v7206_v0, %v11314_v56 }
 0x1d4   : > { %11304 = vst [vmem:[#allocation146_spill] sm:$0xff] %v7779_v30  ;;  %11306 = vst [vmem:[#allocation35_spill] sm:$0xff] %v7785_v44  ;;  %v7799_v4 = vadd.f32 %v7775_v25, %v7791_v55  ;;  %v7801_v30 = vpop.f32.mrf.mxu1 }
 0x1d5   : > { %11307 = vst [vmem:[#allocation147_spill] sm:$0xff] %v7789_v13  ;;  %11309 = vst [vmem:[#allocation36_spill] sm:$0xff] %v7795_v31  ;;  %v7809_v43 = vadd.f32 %v7785_v44, %v7801_v30  ;;  %v7811_v13 = vpop.f32.mrf.mxu0  ;;  %v11317_v44 = vld [vmem:[#allocation39_spill] sm:$0xff] }
 0x1d6   : > { %11310 = vst [vmem:[#allocation148_spill] sm:$0xff] %v7799_v4  ;;  %11312 = vst [vmem:[#allocation37_spill] sm:$0xff] %v7805_v36  ;;  %v6326_v4 = vld [vmem:[%s10721_s2 + $0x20] sm:$0xff]   ;;  %v7823_v23 = vadd.f32 %v7795_v31, %v7811_v13  ;;  %v7825_v25 = vpop.f32.mrf.mxu1  ;;  %v7841_v31 = vadd.f32 %v7206_v0, %v11320_v60 }
 0x1d7   : > { %11313 = vst [vmem:[#allocation149_spill] sm:$0xff] %v7809_v43  ;;  %11315 = vst [vmem:[#allocation38_spill] sm:$0xff] %v7815_v17  ;;  %6074 = vmatmul.mubr.msk.bf16.gmra.mxu0 %vm609_vm0, %v6326_v4  ;;  %v7829_v43 = vadd.f32 %v7206_v0, %v11317_v44  ;;  %6083 = vmatmul.mubr.msk.bf16.gmra.mxu1 %vm609_vm0, %v6326_v4  ;;  %v7834_v56 = vadd.f32 %v7805_v36, %v7825_v25  ;;  %v7836_v28 = vpop.f32.mrf.mxu0  ;;  %v11323_v4 = vld [vmem:[#allocation41_spill] sm:$0xff] }
 0x1d8   : > { %11316 = vst [vmem:[#allocation150_spill] sm:$0xff] %v7823_v23  ;;  %1881 = vmatprep.mubr.bf16.mxu0 %v11116_v20  ;;  %11321 = vst [vmem:[#allocation40_spill] sm:$0xff] %v7841_v31  ;;  %v7845_v23 = vadd.f32 %v7815_v17, %v7836_v28  ;;  %v7847_v44 = vpop.f32.mrf.mxu1  ;;  %1984 = vmatprep.mubr.bf16.mxu1 %v11116_v20  ;;  %v7852_v36 = vadd.f32 %v7206_v0, %v11323_v4 }
 0x1d9   : > { %11318 = vst [vmem:[#allocation39_spill] sm:$0xff] %v7829_v43  ;;  %11319 = vst [vmem:[#allocation151_spill] sm:$0xff] %v7834_v56  ;;  %v7856_v56 = vadd.f32 %v7829_v43, %v7847_v44  ;;  %v1199_v7 = vpop.f32.mrf.mxu0 }
 0x1da   : > { %11322 = vst [vmem:[#allocation152_spill] sm:$0xff] %v7845_v23  ;;  %11324 = vst [vmem:[#allocation41_spill] sm:$0xff] %v7852_v36  ;;  %v2469_v60 = vadd.f32 %v11326_v16, %v1199_v7  ;;  %v7860_v24 = vadd.f32 %v7841_v31, %v1199_v7  ;;  %v1320_v17 = vpop.f32.mrf.mxu1  ;;  %v11328_v23 = vld [vmem:[#allocation60_spill] sm:$0xff] }
 0x1db   : > { %11325 = vst [vmem:[#allocation153_spill] sm:$0xff] %v7856_v56  ;;  %v2471_v41 = vadd.f32 %v11328_v23, %v1320_v17  ;;  %v7864_v54 = vadd.f32 %v7852_v36, %v1320_v17  ;;  %v7866_v39 = vpop.f32.mrf.mxu0  ;;  %v6327_v16 = vld [vmem:[%s10721_s2 + $0x28] sm:$0xff]  }
 0x1dc   : > { %11327 = vst [vmem:[#allocation154_spill] sm:$0xff] %v7860_v24  ;;  %11330 = vst [vmem:[#allocation156_spill] sm:$0xff] %v7866_v39  ;;  %v7868_v4 = vpop.f32.mrf.mxu1  ;;  %v2501_v0 = vmax.f32 %v2469_v60, 0.0 }
 0x1dd   : > { %11329 = vst [vmem:[#allocation155_spill] sm:$0xff] %v7864_v54  ;;  %11331 = vst [vmem:[#allocation157_spill] sm:$0xff] %v7868_v4  ;;  %v7870_v6 = vpop.f32.mrf.mxu0  ;;  %v2503_v56 = vmax.f32 %v2471_v41, 0.0 }
 0x1de   : > { %11332 = vst [vmem:[#allocation158_spill] sm:$0xff] %v7870_v6  ;;  %v7876_v7 = vpop.f32.mrf.mxu1  ;;  %2520 = vmatprep.subr.mxu0 %v2501_v0  ;;  %v6328_v0 = vld [vmem:[%s10721_s2 + $0x30] sm:$0xff]  }
 0x1df   : > { %6075 = vmatmul.mubr.msk.bf16.gmra.mxu0 %vm609_vm0, %v6327_v16  ;;  %11333 = vst [vmem:[#allocation159_spill] sm:$0xff] %v7876_v7  ;;  %6084 = vmatmul.mubr.msk.bf16.gmra.mxu1 %vm609_vm0, %v6327_v16  ;;  %v1207_v17 = vpop.f32.mrf.mxu0 }
 0x1e0   : > { %2591 = vmatprep.subr.mxu1 %v2503_v56  ;;  %v1328_v39 = vpop.f32.mrf.mxu1  ;;  %1891 = vmatprep.mubr.bf16.mxu0 %v11116_v20 }
 0x1e1   : > { %1994 = vmatprep.mubr.bf16.mxu1 %v11116_v20  ;;  %v1208_v60 = vpop.f32.mrf.mxu0 }
 0x1e2   : > { %v1329_v41 = vpop.f32.mrf.mxu1 }
 0x1e3   : > { %v7881_v4 = vpop.f32.mrf.mxu0 }
 0x1e4   : > { %11334 = vst [vmem:[#allocation160_spill] sm:$0xff] %v7881_v4  ;;  %v7883_v6 = vpop.f32.mrf.mxu1 }
 0x1e5   : > { %11335 = vst [vmem:[#allocation161_spill] sm:$0xff] %v7883_v6  ;;  %v7885_v54 = vpop.f32.mrf.mxu0  ;;  %v2463_v6 = vadd.f32 %v7426_v5, %v7781_v40  ;;  %v2459_v40 = vadd.f32 %v7436_v32, %v7738_v46  ;;  %v2452_v46 = vadd.f32 %v7344_v42, %v7662_v19 }
 0x1e6   : > { %11336 = vst [vmem:[#allocation162_spill] sm:$0xff] %v7885_v54  ;;  %v7891_v16 = vpop.f32.mrf.mxu1 }
 0x1e7   : > { %6076 = vmatmul.mubr.msk.bf16.gmra.mxu0 %vm609_vm0, %v6328_v0  ;;  %11337 = vst [vmem:[#allocation163_spill] sm:$0xff] %v7891_v16  ;;  %6085 = vmatmul.mubr.msk.bf16.gmra.mxu1 %vm609_vm0, %v6328_v0  ;;  %v7894_v39 = vpop.f32.mrf.mxu0  ;;  %v6329_v0 = vld [vmem:[%s10721_s2 + $0x38] sm:$0xff]  }
 0x1e8   : > { %11338 = vst [vmem:[#allocation164_spill] sm:$0xff] %v7894_v39  ;;  %1901 = vmatprep.mubr.bf16.mxu0 %v11116_v20  ;;  %v7897_v56 = vpop.f32.mrf.mxu1  ;;  %2004 = vmatprep.mubr.bf16.mxu1 %v11116_v20  ;;  %v8007_v39 = vadd.f32 %v7326_v38, %v7615_v59 }
 0x1e9   : > { %11339 = vst [vmem:[#allocation165_spill] sm:$0xff] %v7897_v56  ;;  %v7900_v17 = vpop.f32.mrf.mxu0 }
 0x1ea   : > { %11340 = vst [vmem:[#allocation166_spill] sm:$0xff] %v7900_v17  ;;  %v7902_v60 = vpop.f32.mrf.mxu1 }
 0x1eb   : > { %11341 = vst [vmem:[#allocation167_spill] sm:$0xff] %v7902_v60  ;;  %v7904_v41 = vpop.f32.mrf.mxu0 }
 0x1ec   : > { %11342 = vst [vmem:[#allocation168_spill] sm:$0xff] %v7904_v41  ;;  %v7906_v7 = vpop.f32.mrf.mxu1 }
 0x1ed   : > { %11343 = vst [vmem:[#allocation169_spill] sm:$0xff] %v7906_v7  ;;  %v7908_v54 = vpop.f32.mrf.mxu0 }
 0x1ee   : > { %11344 = vst [vmem:[#allocation170_spill] sm:$0xff] %v7908_v54  ;;  %v7914_v16 = vpop.f32.mrf.mxu1 }
 0x1ef   : > { %6077 = vmatmul.mubr.msk.bf16.gmra.mxu0 %vm609_vm0, %v6329_v0  ;;  %11345 = vst [vmem:[#allocation171_spill] sm:$0xff] %v7914_v16  ;;  %6086 = vmatmul.mubr.msk.bf16.gmra.mxu1 %vm609_vm0, %v6329_v0  ;;  %v7917_v24 = vpop.f32.mrf.mxu0  ;;  %v6330_v0 = vld [vmem:[%s10721_s2 + $0x40] ss:$0 sps:$4 sm:$0x33]  }
 0x1f0   : > { %11346 = vst [vmem:[#allocation172_spill] sm:$0xff] %v7917_v24  ;;  %1911 = vmatprep.mubr.bf16.mxu0 %v11116_v20  ;;  %v7920_v60 = vpop.f32.mrf.mxu1  ;;  %2014 = vmatprep.mubr.bf16.mxu1 %v11116_v20 }
 0x1f1   : > { %11347 = vst [vmem:[#allocation173_spill] sm:$0xff] %v7920_v60  ;;  %v7923_v17 = vpop.f32.mrf.mxu0 }
 0x1f2   : > { %11348 = vst [vmem:[#allocation174_spill] sm:$0xff] %v7923_v17  ;;  %v7925_v54 = vpop.f32.mrf.mxu1  ;;  %v10849_v17 = vmov 0.0  }
 0x1f3   : > { %11349 = vst [vmem:[#allocation175_spill] sm:$0xff] %v7925_v54  ;;  %v7927_v7 = vpop.f32.mrf.mxu0 }
 0x1f4   : > { %11350 = vst [vmem:[#allocation176_spill] sm:$0xff] %v7927_v7  ;;  %v7929_v41 = vpop.f32.mrf.mxu1 }
 0x1f5   : > { %11351 = vst [vmem:[#allocation177_spill] sm:$0xff] %v7929_v41  ;;  %v7931_v56 = vpop.f32.mrf.mxu0  ;;  %v11357_v41 = vld [vmem:[#allocation68_spill] sm:$0xff] }
 0x1f6   : > { %11352 = vst [vmem:[#allocation178_spill] sm:$0xff] %v7931_v56  ;;  %v7937_v16 = vpop.f32.mrf.mxu1  ;;  %v7948_v56 = vadd.f32 %v7277_v9, %v7242_v58  ;;  %v7952_v7 = vadd.f32 %v7277_v9, %v11357_v41  ;;  %v2465_v58 = vadd.f32 %v7381_v51, %v7811_v13  ;;  %v2470_v41 = vadd.f32 %v7385_v12, %v7847_v44  ;;  %v7989_v44 = vld [vmem:[%s10723_s4] sm:$0xf] }
 0x1f7   : > { %6078 = vmatmul.mubr.msk.bf16.gmra.mxu0 %vm609_vm0, %v6330_v0  ;;  %11353 = vst [vmem:[#allocation179_spill] sm:$0xff] %v7937_v16  ;;  %6087 = vmatmul.mubr.msk.bf16.gmra.mxu1 %vm609_vm0, %v6330_v0  ;;  %v7940_v20 = vpop.f32.mrf.mxu0  ;;  %v2468_v0 = vadd.f32 %v7364_v48, %v7836_v28  ;;  %v7974_v28 = vadd.f32 %v7290_v14, %v7534_v26  ;;  %11366 = vst [vmem:[#allocation186_spill] sm:$0xff] %v7989_v44 }
 0x1f8   : > { %11354 = vst [vmem:[#allocation180_spill] sm:$0xff] %v7940_v20  ;;  %2362 = vmatprep.mubr.f32.mxu0 %v10849_v17  ;;  %v7943_v54 = vpop.f32.mrf.mxu1  ;;  %2433 = vmatprep.mubr.f32.mxu1 %v10849_v17  ;;  %11356 = vst [vmem:[#allocation182_spill] sm:$0xff] %v7948_v56  ;;  %v11360_v20 = vld [vmem:[#allocation72_spill] sm:$0xff]  ;;  %v7993_v26 = vadd.f32 %v7318_v63, %v7594_v18  ;;  %v2460_v18 = vadd.f32 %v7422_v1, %v7749_v57  ;;  %v2502_v4 = vmax.f32 %v2470_v41, 0.0 }
 0x1f9   : > { %11355 = vst [vmem:[#allocation181_spill] sm:$0xff] %v7943_v54  ;;  %11358 = vst [vmem:[#allocation68_spill] sm:$0xff] %v7952_v7  ;;  %v7956_v16 = vpop.f32.mrf.mxu0  ;;  %v7960_v60 = vadd.f32 %v7282_v27, %v11360_v20  ;;  %v11362_v54 = vld [vmem:[#allocation74_spill] sm:$0xff]  ;;  %v7978_v20 = vadd.f32 %v7308_v29, %v7574_v47  ;;  %v7997_v47 = vadd.f32 %v7322_v37, %v7605_v34  ;;  %v2500_v34 = vmax.f32 %v2468_v0, 0.0 }
 0x1fa   : > { %11359 = vst [vmem:[#allocation183_spill] sm:$0xff] %v7956_v16  ;;  %v7964_v17 = vadd.f32 %v7282_v27, %v11362_v54  ;;  %v7970_v24 = vpop.f32.mrf.mxu1  ;;  %v2464_v54 = vadd.f32 %v7396_v52, %v7791_v55  ;;  %v2467_v16 = vadd.f32 %v7400_v53, %v7825_v25  ;;  %v11367_v55 = vld [vmem:[#allocation114_spill] sm:$0xff]  ;;  %v11368_v25 = vld [vmem:[#allocation115_spill] sm:$0xff]  ;;  %v2456_v57 = vadd.f32 %v7373_v49, %v7704_v21 }
 0x1fb   : > { %11361 = vst [vmem:[#allocation72_spill] sm:$0xff] %v7960_v60  ;;  %11364 = vst [vmem:[#allocation184_spill] sm:$0xff] %v7970_v24  ;;  %v7984_v13 = vpop.f32.mrf.mxu0  ;;  %v2461_v24 = vadd.f32 %v11367_v55, %v7771_v15  ;;  %v2466_v27 = vadd.f32 %v11368_v25, %v7801_v30  ;;  %v2457_v15 = vadd.f32 %v7392_v61, %v7724_v11 }
 0x1fc   : > { %11363 = vst [vmem:[#allocation74_spill] sm:$0xff] %v7964_v17  ;;  %11365 = vst [vmem:[#allocation185_spill] sm:$0xff] %v7984_v13  ;;  %v8003_v13 = vpop.f32.mrf.mxu1  ;;  %v2462_v30 = vadd.f32 %v7440_v62, %v7760_v2  ;;  %v2496_v0 = vmax.f32 %v2464_v54, 0.0  ;;  %v2453_v2 = vadd.f32 %v7356_v45, %v7684_v33  ;;  %v2488_v14 = vmax.f32 %v2456_v57, 0.0 }
 0x1fd   : > { %11369 = vst [vmem:[#allocation187_spill] sm:$0xff] %v8003_v13  ;;  %v8013_v9 = vpop.f32.mrf.mxu0  ;;  %v2497_v13 = vmax.f32 %v2465_v58, 0.0  ;;  %v2458_v58 = vadd.f32 %v7377_v50, %v7714_v22  ;;  %v2498_v41 = vmax.f32 %v2466_v27, 0.0  ;;  %v2493_v21 = vmax.f32 %v2461_v24, 0.0  ;;  %v11376_v22 = vld [vmem:[#allocation100_spill] sm:$0xff] }
 0x1fe   : > { %11370 = vst [vmem:[#allocation188_spill] sm:$0xff] %v8013_v9  ;;  %v8021_v59 = vpop.f32.mrf.mxu1  ;;  %v2499_v9 = vmax.f32 %v2467_v16, 0.0  ;;  %v11374_v16 = vld [vmem:[#allocation102_spill] sm:$0xff]  ;;  %v2449_v27 = vadd.f32 %v7336_v35, %v7636_v8  ;;  %v2454_v24 = vadd.f32 %v11376_v22, %v7673_v10  ;;  %v2485_v10 = vmax.f32 %v2453_v2, 0.0 }
 0x1ff   : > { %6088 = vmatmul.mubr.msk.f32.vlgmr.msra.gmra.mxu0 %vm2294_vm1, %v7989_v44  ;;  %11371 = vst [vmem:[#allocation189_spill] sm:$0xff] %v8021_v59  ;;  %6089 = vmatmul.mubr.msk.f32.vlgmr.msra.gmra.mxu1 %vm2294_vm1, %v7989_v44  ;;  %v8029_v11 = vpop.f32.mrf.mxu0  ;;  %v2455_v54 = vadd.f32 %v11374_v16, %v7694_v3  ;;  %v11379_v3 = vld [vmem:[#allocation95_spill] sm:$0xff]  ;;  %v2490_v37 = vmax.f32 %v2458_v58, 0.0  ;;  %v2484_v57 = vmax.f32 %v2452_v46, 0.0 }
 0x200   : > { %2521 = vmatpush1.msra.mxu0 %v2500_v34  ;;  %11372 = vst [vmem:[#allocation190_spill] sm:$0xff] %v8029_v11  ;;  %2592 = vmatpush1.msra.mxu1 %v2502_v4  ;;  %v8035_v59 = vpop.f32.mrf.mxu1  ;;  %v2492_v34 = vmax.f32 %v2460_v18, 0.0  ;;  %v2495_v11 = vmax.f32 %v2463_v6, 0.0  ;;  %v2489_v4 = vmax.f32 %v2457_v15, 0.0  ;;  %v11383_v15 = vld [vmem:[#allocation123_spill] sm:$0xff]  ;;  %v2481_v46 = vmax.f32 %v2449_v27, 0.0 }
 0x201   : > { %2522 = vmatprep.subr.mxu0 %v2497_v13  ;;  %11373 = vst [vmem:[#allocation191_spill] sm:$0xff] %v8035_v59  ;;  %2593 = vmatprep.subr.mxu1 %v2499_v9  ;;  %v8041_v33 = vpop.f32.mrf.mxu0  ;;  %v2494_v13 = vmax.f32 %v2462_v30, 0.0  ;;  %v11378_v59 = vld [vmem:[#allocation131_spill] sm:$0xff]  ;;  %v11380_v9 = vld [vmem:[#allocation134_spill] sm:$0xff] }
 0x202   : > { %2523 = vmatpush1.msra.mxu0 %v2496_v0  ;;  %11375 = vst [vmem:[#allocation102_spill] sm:$0xff] %v8041_v33  ;;  %2594 = vmatpush1.msra.mxu1 %v2498_v41  ;;  %v8047_v19 = vpop.f32.mrf.mxu1  ;;  %v2450_v18 = vadd.f32 %v11379_v3, %v11378_v59  ;;  %v11381_v0 = vld [vmem:[#allocation98_spill] sm:$0xff]  ;;  %v2491_v33 = vmax.f32 %v2459_v40, 0.0  ;;  %v2487_v40 = vmax.f32 %v2455_v54, 0.0 }
 0x203   : > { %2524 = vmatprep.subr.mxu0 %v2493_v21  ;;  %11377 = vst [vmem:[#allocation192_spill] sm:$0xff] %v8047_v19  ;;  %v2451_v6 = vadd.f32 %v11381_v0, %v11380_v9  ;;  %2595 = vmatprep.subr.mxu1 %v2495_v11  ;;  %v8053_v8 = vpop.f32.mrf.mxu0  ;;  %v11387_v11 = vld [vmem:[#allocation127_spill] sm:$0xff]  ;;  %v11393_v9 = vld [vmem:[#allocation45_spill] sm:$0xff]  ;;  %v11394_v19 = vld [vmem:[#allocation90_spill] sm:$0xff] }
 0x204   : > { %2525 = vmatpush1.msra.mxu0 %v2492_v34  ;;  %11382 = vst [vmem:[#allocation131_spill] sm:$0xff] %v8053_v8  ;;  %2596 = vmatpush1.msra.mxu1 %v2494_v13  ;;  %v8057_v30 = vadd.f32 %v11383_v15, %v8053_v8  ;;  %v8061_v59 = vadd.f32 %v7948_v56, %v8053_v8  ;;  %v8063_v41 = vpop.f32.mrf.mxu1  ;;  %v11391_v34 = vld [vmem:[#allocation44_spill] sm:$0xff]  ;;  %v11396_v54 = vld [vmem:[#allocation50_spill] sm:$0xff]  ;;  %v2480_v56 = vmax.f32 %v8007_v39, 0.0  ;;  %v2476_v39 = vmax.f32 %v7978_v20, 0.0 }
 0x205   : > { %2526 = vmatprep.subr.mxu0 %v2489_v4  ;;  %11386 = vst [vmem:[#allocation193_spill] sm:$0xff] %v8063_v41  ;;  %2597 = vmatprep.subr.mxu1 %v2491_v33  ;;  %v8067_v58 = vadd.f32 %v11387_v11, %v8063_v41  ;;  %v8071_v2 = vadd.f32 %v7952_v7, %v8063_v41  ;;  %v8073_v21 = vpop.f32.mrf.mxu0  ;;  %v11392_v4 = vld [vmem:[#allocation87_spill] sm:$0xff]  ;;  %v2486_v33 = vmax.f32 %v2454_v24, 0.0  ;;  %v11399_v7 = vld [vmem:[#allocation88_spill] sm:$0xff]  ;;  %v2483_v15 = vmax.f32 %v2451_v6, 0.0  ;;  %v11401_v27 = vld [vmem:[#allocation14_spill] sm:$0xff] }
 0x206   : > { %11384 = vst [vmem:[#allocation95_spill] sm:$0xff] %v8057_v30  ;;  %11385 = vst [vmem:[#allocation134_spill] sm:$0xff] %v8061_v59  ;;  %2527 = vmatpush1.msra.mxu0 %v2488_v14  ;;  %v2441_v13 = vadd.f32 %v11392_v4, %v11391_v34  ;;  %v2446_v59 = vadd.f32 %v11394_v19, %v11393_v9  ;;  %2598 = vmatpush1.msra.mxu1 %v2490_v37  ;;  %v8079_v14 = vpop.f32.mrf.mxu1  ;;  %v11398_v11 = vld [vmem:[#allocation51_spill] sm:$0xff]  ;;  %v2482_v9 = vmax.f32 %v2450_v18, 0.0  ;;  %v11461_v41 = vld [vmem:[#allocation122_spill] sm:$0xff] }
 0x207   : > { %11388 = vst [vmem:[#allocation194_spill] sm:$0xff] %v8067_v58  ;;  %11389 = vst [vmem:[#allocation195_spill] sm:$0xff] %v8071_v2  ;;  %2528 = vmatprep.subr.mxu0 %v2485_v10  ;;  %v11397_v58 = vld [vmem:[#allocation85_spill] sm:$0xff]  ;;  %v2443_v2 = vadd.f32 %v11399_v7, %v11398_v11  ;;  %2599 = vmatprep.subr.mxu1 %v2487_v40  ;;  %v8086_v34 = vpop.f32.mrf.mxu0  ;;  %v2477_v37 = vmax.f32 %v7993_v26, 0.0  ;;  %v2479_v18 = vmax.f32 %v7997_v47, 0.0  ;;  %v11405_v6 = vld [vmem:[#allocation15_spill] sm:$0xff] }
 0x208   : > { %11390 = vst [vmem:[#allocation196_spill] sm:$0xff] %v8073_v21  ;;  %11395 = vst [vmem:[#allocation44_spill] sm:$0xff] %v8079_v14  ;;  %v2442_v30 = vadd.f32 %v11397_v58, %v11396_v54  ;;  %2529 = vmatpush1.msra.mxu0 %v2484_v57  ;;  %2600 = vmatpush1.msra.mxu1 %v2486_v33  ;;  %v8091_v24 = vadd.f32 %v11401_v27, %v8086_v34  ;;  %v8097_v11 = vpop.f32.mrf.mxu1  ;;  %v11410_v33 = vld [vmem:[#allocation71_spill] sm:$0xff]  ;;  %v2478_v20 = vmax.f32 %v2446_v59, 0.0  ;;  %v11413_v47 = vld [vmem:[#allocation78_spill] sm:$0xff] }
 0x209   : > { %11400 = vst [vmem:[#allocation45_spill] sm:$0xff] %v8086_v34  ;;  %2530 = vmatprep.subr.mxu0 %v2481_v46  ;;  %v8095_v10 = vadd.f32 %v7960_v60, %v8086_v34  ;;  %11404 = vst [vmem:[#allocation197_spill] sm:$0xff] %v8097_v11  ;;  %2601 = vmatprep.subr.mxu1 %v2483_v15  ;;  %v8103_v57 = vadd.f32 %v11405_v6, %v8097_v11  ;;  %v8109_v40 = vpop.f32.mrf.mxu0  ;;  %v11409_v46 = vld [vmem:[#allocation77_spill] sm:$0xff]  ;;  %v11449_v6 = vld [vmem:[#allocation116_spill] sm:$0xff] }
 0x20a   : > { %11402 = vst [vmem:[#allocation50_spill] sm:$0xff] %v8091_v24  ;;  %2531 = vmatpush1.msra.mxu0 %v2480_v56  ;;  %v8107_v26 = vadd.f32 %v7964_v17, %v8097_v11  ;;  %11408 = vst [vmem:[#allocation200_spill] sm:$0xff] %v8109_v40  ;;  %v8113_v54 = vadd.f32 %v11410_v33, %v11409_v46  ;;  %2602 = vmatpush1.msra.mxu1 %v2482_v9  ;;  %v8115_v56 = vpop.f32.mrf.mxu1  ;;  %v2475_v24 = vmax.f32 %v2443_v2, 0.0  ;;  %v11415_v59 = vld [vmem:[#allocation17_spill] sm:$0xff]  ;;  %v11468_v8 = vld [vmem:[#allocation32_spill] sm:$0xff] }
 0x20b   : > { %11403 = vst [vmem:[#allocation51_spill] sm:$0xff] %v8095_v10  ;;  %11406 = vst [vmem:[#allocation198_spill] sm:$0xff] %v8103_v57  ;;  %v2473_v10 = vmax.f32 %v2441_v13, 0.0  ;;  %2532 = vmatprep.subr.mxu0 %v2477_v37  ;;  %v8119_v15 = vadd.f32 %v11410_v33, %v11413_v47  ;;  %v2472_v57 = vmax.f32 %v7974_v28, 0.0  ;;  %2603 = vmatprep.subr.mxu1 %v2479_v18  ;;  %v2474_v17 = vmax.f32 %v2442_v30, 0.0  ;;  %v11418_v28 = vld [vmem:[#allocation19_spill] sm:$0xff] }
 0x20c   : > { %11407 = vst [vmem:[#allocation199_spill] sm:$0xff] %v8107_v26  ;;  %11411 = vst [vmem:[#allocation77_spill] sm:$0xff] %v8113_v54  ;;  %2533 = vmatpush1.msra.mxu0 %v2476_v39  ;;  %v8122_v26 = vpop.f32.mrf.mxu0  ;;  %2604 = vmatpush1.msra.mxu1 %v2478_v20  ;;  %v8132_v37 = vpop.f32.mrf.mxu1  ;;  %v11422_v39 = vld [vmem:[#allocation83_spill] sm:$0xff]  ;;  %v11423_v18 = vld [vmem:[#allocation73_spill] sm:$0xff]  ;;  %v11426_v47 = vmov 0.0  }
 0x20d   : > { %11412 = vst [vmem:[#allocation201_spill] sm:$0xff] %v8115_v56  ;;  %11414 = vst [vmem:[#allocation78_spill] sm:$0xff] %v8119_v15  ;;  %2534 = vmatprep.subr.mxu0 %v2473_v10  ;;  %v8126_v13 = vadd.f32 %v11415_v59, %v8122_v26  ;;  %v8130_v9 = vadd.f32 %v8113_v54, %v8122_v26  ;;  %2605 = vmatprep.subr.mxu1 %v2475_v24  ;;  %v11427_v24 = vld [vmem:[#allocation86_spill] sm:$0xff]  ;;  %v11450_v60 = vld [vmem:[#allocation61_spill] sm:$0xff] }
 0x20e   : > { %2535 = vmatpush1.msra.mxu0 %v2472_v57  ;;  %v8136_v2 = vadd.f32 %v11418_v28, %v8132_v37  ;;  %v8140_v30 = vadd.f32 %v8119_v15, %v8132_v37  ;;  %v8142_v10 = vpop.f32.mrf.mxu0  ;;  %v8146_v46 = vadd.f32 %v11423_v18, %v11422_v39  ;;  %2606 = vmatpush1.msra.mxu1 %v2474_v17  ;;  %v8148_v20 = vpop.f32.mrf.mxu1  ;;  %v11440_v28 = vld [vmem:[#allocation104_spill] sm:$0xff]  ;;  %v11473_v4 = vld [vmem:[#allocation33_spill] sm:$0xff]  ;;  %v11489_v56 = vld [vmem:[#allocation58_spill] sm:$0xff] }
 0x20f   : > { %11416 = vst [vmem:[#allocation202_spill] sm:$0xff] %v8126_v13  ;;  %11417 = vst [vmem:[#allocation203_spill] sm:$0xff] %v8130_v9  ;;  %2568 = vmatprep.mubr.f32.mxu0 %v11426_v47  ;;  %v8153_v57 = vadd.f32 %v11423_v18, %v11427_v24  ;;  %2639 = vmatprep.mubr.f32.mxu1 %v11426_v47  ;;  %v11432_v24 = vld [vmem:[#allocation23_spill] sm:$0xff]  ;;  %v8240_v7 = vadd.f32 %v11450_v60, %v11461_v41  ;;  %v11479_v11 = vld [vmem:[#allocation128_spill] sm:$0xff] }
 0x210   : > { %11419 = vst [vmem:[#allocation204_spill] sm:$0xff] %v8136_v2  ;;  %11420 = vst [vmem:[#allocation205_spill] sm:$0xff] %v8140_v30  ;;  %v8155_v9 = vpop.f32.mrf.mxu0  ;;  %6090 = vmatmul.mubr.msk.f32.vlgmr.msra.gmra.mxu0 %vm2294_vm1, %v7989_v44  ;;  %v11429_v30 = vld [vmem:[#allocation22_spill] sm:$0xff]  ;;  %v8168_v2 = vpop.f32.mrf.mxu1  ;;  %6091 = vmatmul.mubr.msk.f32.vlgmr.msra.gmra.mxu1 %vm2294_vm1, %v7989_v44 }
 0x211   : > { %11421 = vst [vmem:[#allocation206_spill] sm:$0xff] %v8142_v10  ;;  %11424 = vst [vmem:[#allocation83_spill] sm:$0xff] %v8146_v46  ;;  %v8162_v39 = vadd.f32 %v11429_v30, %v8155_v9  ;;  %v8166_v17 = vadd.f32 %v8146_v46, %v8155_v9  ;;  %2774 = vmatprep.mubr.f32.mxu0 %v11426_v47  ;;  %v8175_v13 = vadd.f32 %v11432_v24, %v8168_v2  ;;  %v11437_v46 = vld [vmem:[#allocation66_spill] sm:$0xff] }
 0x212   : > { %11425 = vst [vmem:[#allocation207_spill] sm:$0xff] %v8148_v20  ;;  %11428 = vst [vmem:[#allocation86_spill] sm:$0xff] %v8153_v57  ;;  %v8179_v18 = vadd.f32 %v8153_v57, %v8168_v2  ;;  %2845 = vmatprep.mubr.f32.mxu1 %v11426_v47  ;;  %v8188_v15 = vpop.f32.mrf.mxu1  ;;  %v8192_v54 = vadd.f32 %v11437_v46, %v11440_v28  ;;  %v11455_v47 = vld [vmem:[#allocation30_spill] sm:$0xff] }
 0x213   : > { %11430 = vst [vmem:[#allocation208_spill] sm:$0xff] %v8162_v39  ;;  %11431 = vst [vmem:[#allocation209_spill] sm:$0xff] %v8166_v17  ;;  %v8181_v39 = vpop.f32.mrf.mxu0  ;;  %v11436_v17 = vld [vmem:[#allocation101_spill] sm:$0xff] }
 0x214   : > { %11433 = vst [vmem:[#allocation210_spill] sm:$0xff] %v8175_v13  ;;  %11434 = vst [vmem:[#allocation211_spill] sm:$0xff] %v8179_v18  ;;  %v8186_v30 = vadd.f32 %v11437_v46, %v11436_v17  ;;  %v11442_v13 = vld [vmem:[#allocation26_spill] sm:$0xff]  ;;  %v8204_v59 = vpop.f32.mrf.mxu1  ;;  %v11445_v17 = vld [vmem:[#allocation27_spill] sm:$0xff] }
 0x215   : > { %11435 = vst [vmem:[#allocation212_spill] sm:$0xff] %v8181_v39  ;;  %11439 = vst [vmem:[#allocation213_spill] sm:$0xff] %v8188_v15  ;;  %v8194_v24 = vpop.f32.mrf.mxu0  ;;  %v8208_v33 = vadd.f32 %v11445_v17, %v8204_v59  ;;  %v8212_v28 = vadd.f32 %v8192_v54, %v8204_v59 }
 0x216   : > { %11438 = vst [vmem:[#allocation101_spill] sm:$0xff] %v8186_v30  ;;  %11441 = vst [vmem:[#allocation104_spill] sm:$0xff] %v8192_v54  ;;  %v8198_v57 = vadd.f32 %v11442_v13, %v8194_v24  ;;  %v8202_v18 = vadd.f32 %v8186_v30, %v8194_v24  ;;  %v8218_v13 = vadd.f32 %v11450_v60, %v11449_v6  ;;  %v11453_v30 = vld [vmem:[#allocation119_spill] sm:$0xff] }
 0x217   : > { %11446 = vst [vmem:[#allocation216_spill] sm:$0xff] %v8208_v33  ;;  %11447 = vst [vmem:[#allocation217_spill] sm:$0xff] %v8212_v28  ;;  %v8214_v46 = vpop.f32.mrf.mxu0  ;;  %v11458_v54 = vld [vmem:[#allocation31_spill] sm:$0xff] }
 0x218   : > { %11443 = vst [vmem:[#allocation214_spill] sm:$0xff] %v8198_v57  ;;  %11444 = vst [vmem:[#allocation215_spill] sm:$0xff] %v8202_v18  ;;  %v8220_v57 = vpop.f32.mrf.mxu1  ;;  %v8224_v18 = vadd.f32 %v11450_v60, %v11453_v30  ;;  %v11463_v30 = vld [vmem:[#allocation124_spill] sm:$0xff] }
 0x219   : > { %11448 = vst [vmem:[#allocation218_spill] sm:$0xff] %v8214_v46  ;;  %11451 = vst [vmem:[#allocation116_spill] sm:$0xff] %v8218_v13  ;;  %v1429_v27 = vpop.f32.mrf.mxu0  ;;  %v8244_v14 = vadd.f32 %v11450_v60, %v11463_v30 }
 0x21a   : > { %11452 = vst [vmem:[#allocation219_spill] sm:$0xff] %v8220_v57  ;;  %11454 = vst [vmem:[#allocation119_spill] sm:$0xff] %v8224_v18  ;;  %v8227_v17 = vadd.f32 %v11455_v47, %v1429_v27  ;;  %v8230_v33 = vadd.f32 %v8218_v13, %v1429_v27  ;;  %v1550_v28 = vpop.f32.mrf.mxu1  ;;  %v11465_v47 = vld [vmem:[#allocation125_spill] sm:$0xff]  ;;  %v11466_v13 = vld [vmem:[#allocation67_spill] sm:$0xff] }
 0x21b   : > { %v8233_v44 = vadd.f32 %v11458_v54, %v1550_v28  ;;  %v8236_v6 = vadd.f32 %v8224_v18, %v1550_v28  ;;  %v1431_v58 = vpop.f32.mrf.mxu0  ;;  %11462 = vst [vmem:[#allocation122_spill] sm:$0xff] %v8240_v7  ;;  %11464 = vst [vmem:[#allocation124_spill] sm:$0xff] %v8244_v14  ;;  %v11470_v18 = vld [vmem:[#allocation126_spill] sm:$0xff] }
 0x21c   : > { %11456 = vst [vmem:[#allocation220_spill] sm:$0xff] %v8227_v17  ;;  %11457 = vst [vmem:[#allocation221_spill] sm:$0xff] %v8230_v33  ;;  %v1552_v17 = vpop.f32.mrf.mxu1  ;;  %v8248_v33 = vadd.f32 %v11466_v13, %v11465_v47  ;;  %v8251_v54 = vadd.f32 %v11468_v8, %v1431_v58  ;;  %v8258_v41 = vadd.f32 %v8240_v7, %v1431_v58  ;;  %v11476_v47 = vld [vmem:[#allocation34_spill] sm:$0xff]  ;;  %v11481_v7 = vld [vmem:[#allocation35_spill] sm:$0xff] }
 0x21d   : > { %11459 = vst [vmem:[#allocation222_spill] sm:$0xff] %v8233_v44  ;;  %11460 = vst [vmem:[#allocation223_spill] sm:$0xff] %v8236_v6  ;;  %v1435_v44 = vpop.f32.mrf.mxu0  ;;  %v8255_v6 = vadd.f32 %v11466_v13, %v11470_v18  ;;  %v8261_v21 = vadd.f32 %v11473_v4, %v1552_v17  ;;  %v8264_v30 = vadd.f32 %v8244_v14, %v1552_v17  ;;  %v11484_v14 = vld [vmem:[#allocation36_spill] sm:$0xff] }
 0x21e   : > { %11467 = vst [vmem:[#allocation125_spill] sm:$0xff] %v8248_v33  ;;  %11469 = vst [vmem:[#allocation224_spill] sm:$0xff] %v8251_v54  ;;  %v1556_v60 = vpop.f32.mrf.mxu1  ;;  %v8267_v19 = vadd.f32 %v11476_v47, %v1435_v44  ;;  %v8270_v54 = vadd.f32 %v8248_v33, %v1435_v44  ;;  %v8274_v18 = vadd.f32 %v11466_v13, %v11479_v11  ;;  %v11486_v47 = vld [vmem:[#allocation56_spill] sm:$0xff]  ;;  %v11488_v33 = vld [vmem:[#allocation57_spill] sm:$0xff] }
 0x21f   : > { %11471 = vst [vmem:[#allocation126_spill] sm:$0xff] %v8255_v6  ;;  %11472 = vst [vmem:[#allocation225_spill] sm:$0xff] %v8258_v41  ;;  %v1437_v8 = vpop.f32.mrf.mxu0  ;;  %v8277_v41 = vadd.f32 %v11481_v7, %v1556_v60  ;;  %v8291_v29 = vadd.f32 %v11489_v56, %v11488_v33  ;;  %v11491_v11 = vld [vmem:[#allocation54_spill] sm:$0xff]  ;;  %v11499_v33 = vld [vmem:[#allocation52_spill] sm:$0xff] }
 0x220   : > { %11474 = vst [vmem:[#allocation226_spill] sm:$0xff] %v8261_v21  ;;  %11475 = vst [vmem:[#allocation227_spill] sm:$0xff] %v8264_v30  ;;  %v8280_v21 = vadd.f32 %v8255_v6, %v1556_v60  ;;  %v8283_v30 = vadd.f32 %v11484_v14, %v1437_v8  ;;  %v1558_v4 = vpop.f32.mrf.mxu1  ;;  %v8295_v7 = vadd.f32 %v11489_v56, %v11491_v11  ;;  %v11494_v14 = vld [vmem:[#allocation37_spill] sm:$0xff] }
 0x221   : > { %11477 = vst [vmem:[#allocation228_spill] sm:$0xff] %v8267_v19  ;;  %11478 = vst [vmem:[#allocation229_spill] sm:$0xff] %v8270_v54  ;;  %v8287_v19 = vadd.f32 %v11466_v13, %v11486_v47  ;;  %v1439_v54 = vpop.f32.mrf.mxu0  ;;  %v11497_v47 = vld [vmem:[#allocation38_spill] sm:$0xff]  ;;  %v8311_v63 = vadd.f32 %v11489_v56, %v11499_v33 }
 0x222   : > { %11480 = vst [vmem:[#allocation128_spill] sm:$0xff] %v8274_v18  ;;  %11482 = vst [vmem:[#allocation230_spill] sm:$0xff] %v8277_v41  ;;  %v8298_v41 = vadd.f32 %v8274_v18, %v1437_v8  ;;  %v8307_v13 = vadd.f32 %v11497_v47, %v1439_v54  ;;  %v8314_v11 = vadd.f32 %v8291_v29, %v1439_v54 }
 0x223   : > { %11483 = vst [vmem:[#allocation231_spill] sm:$0xff] %v8280_v21  ;;  %11485 = vst [vmem:[#allocation232_spill] sm:$0xff] %v8283_v30  ;;  %v1560_v21 = vpop.f32.mrf.mxu1  ;;  %v8301_v30 = vadd.f32 %v11494_v14, %v1558_v4  ;;  %v8304_v6 = vadd.f32 %v8287_v19, %v1558_v4  ;;  %v1441_v34 = vpop.f32.mrf.mxu0  ;;  %v11506_v14 = vld [vmem:[#allocation59_spill] sm:$0xff] }
 0x224   : > { %11487 = vst [vmem:[#allocation56_spill] sm:$0xff] %v8287_v19  ;;  %11490 = vst [vmem:[#allocation57_spill] sm:$0xff] %v8291_v29  ;;  %v8320_v18 = vadd.f32 %v8295_v7, %v1560_v21  ;;  %v11504_v19 = vld [vmem:[#allocation55_spill] sm:$0xff]  ;;  %v2675_v47 = vadd.f32 %v11506_v14, %v1441_v34  ;;  %v8329_v33 = vadd.f32 %v7841_v31, %v1441_v34 }
 0x225   : > { %11492 = vst [vmem:[#allocation54_spill] sm:$0xff] %v8295_v7  ;;  %11493 = vst [vmem:[#allocation233_spill] sm:$0xff] %v8298_v41  ;;  %v8317_v41 = vadd.f32 %v7829_v43, %v1560_v21  ;;  %v8331_v29 = vpop.f32.mrf.mxu0  ;;  %v2676_v7 = vadd.f32 %v7385_v12, %v1560_v21 }
 0x226   : > { %11495 = vst [vmem:[#allocation234_spill] sm:$0xff] %v8301_v30  ;;  %11496 = vst [vmem:[#allocation235_spill] sm:$0xff] %v8304_v6  ;;  %v1562_v30 = vpop.f32.mrf.mxu1  ;;  %v8324_v6 = vadd.f32 %v11489_v56, %v11504_v19  ;;  %v8340_v19 = vadd.f32 %v8311_v63, %v1441_v34  ;;  %v2666_v34 = vadd.f32 %v7422_v1, %v1429_v27 }
 0x227   : > { %11498 = vst [vmem:[#allocation236_spill] sm:$0xff] %v8307_v13  ;;  %11500 = vst [vmem:[#allocation52_spill] sm:$0xff] %v8311_v63  ;;  %v2674_v13 = vadd.f32 %v7364_v48, %v1439_v54  ;;  %v2677_v54 = vadd.f32 %v11328_v23, %v1562_v30  ;;  %v8344_v31 = vadd.f32 %v7852_v36, %v1562_v30 }
 0x228   : > { %11501 = vst [vmem:[#allocation237_spill] sm:$0xff] %v8314_v11  ;;  %11502 = vst [vmem:[#allocation238_spill] sm:$0xff] %v8317_v41  ;;  %v2670_v11 = vadd.f32 %v7396_v52, %v1435_v44  ;;  %v2671_v41 = vadd.f32 %v7381_v51, %v1437_v8  ;;  %v8337_v43 = vpop.f32.mrf.mxu1  ;;  %v8349_v44 = vpop.f32.mrf.mxu0  ;;  %v2667_v8 = vadd.f32 %v11367_v55, %v1431_v58 }
 0x229   : > { %11503 = vst [vmem:[#allocation239_spill] sm:$0xff] %v8320_v18  ;;  %11505 = vst [vmem:[#allocation55_spill] sm:$0xff] %v8324_v6  ;;  %v2673_v18 = vadd.f32 %v7400_v53, %v1558_v4  ;;  %v2672_v4 = vadd.f32 %v11368_v25, %v1556_v60  ;;  %v2709_v63 = vmax.f32 %v2677_v54, 0.0  ;;  %v2663_v58 = vadd.f32 %v7392_v61, %v8214_v46  ;;  %v11627_v46 = vld [vmem:[#allocation86_spill] sm:$0xff] }
 0x22a   : > { %11507 = vst [vmem:[#allocation240_spill] sm:$0xff] %v8329_v33  ;;  %11508 = vst [vmem:[#allocation241_spill] sm:$0xff] %v8331_v29  ;;  %v8347_v29 = vadd.f32 %v8324_v6, %v1562_v30  ;;  %v8353_v21 = vpop.f32.mrf.mxu1  ;;  %v2706_v33 = vmax.f32 %v2674_v13, 0.0  ;;  %v1449_v36 = vpop.f32.mrf.mxu0  ;;  %v2708_v30 = vmax.f32 %v2676_v7, 0.0  ;;  %v2662_v60 = vadd.f32 %v7373_v49, %v8194_v24 }
 0x22b   : > { %11509 = vst [vmem:[#allocation242_spill] sm:$0xff] %v8337_v43  ;;  %11510 = vst [vmem:[#allocation243_spill] sm:$0xff] %v8340_v19  ;;  %v2707_v43 = vmax.f32 %v2675_v47, 0.0  ;;  %v2669_v19 = vadd.f32 %v7426_v5, %v1552_v17  ;;  %v2702_v47 = vmax.f32 %v2670_v11, 0.0  ;;  %2797 = vmatprep.subr.mxu1 %v2709_v63  ;;  %v2705_v27 = vmax.f32 %v2673_v18, 0.0 }
 0x22c   : > { %11511 = vst [vmem:[#allocation244_spill] sm:$0xff] %v8344_v31  ;;  %11512 = vst [vmem:[#allocation245_spill] sm:$0xff] %v8347_v29  ;;  %v2668_v31 = vadd.f32 %v7440_v62, %v1550_v28  ;;  %v1570_v29 = vpop.f32.mrf.mxu1  ;;  %v1450_v17 = vpop.f32.mrf.mxu0  ;;  %v2665_v36 = vadd.f32 %v7436_v32, %v8220_v57  ;;  %v2664_v7 = vadd.f32 %v7377_v50, %v8204_v59  ;;  %2798 = vmatpush1.msra.mxu1 %v2708_v30  ;;  %v11625_v57 = vld [vmem:[#allocation23_spill] sm:$0xff] }
 0x22d   : > { %11513 = vst [vmem:[#allocation246_spill] sm:$0xff] %v8349_v44  ;;  %11514 = vst [vmem:[#allocation247_spill] sm:$0xff] %v8353_v21  ;;  %2726 = vmatprep.subr.mxu0 %v2707_v43  ;;  %v2703_v44 = vmax.f32 %v2671_v41, 0.0  ;;  %v2704_v43 = vmax.f32 %v2672_v4, 0.0  ;;  %v2699_v13 = vmax.f32 %v2667_v8, 0.0  ;;  %v2659_v28 = vadd.f32 %v7356_v45, %v8181_v39  ;;  %2799 = vmatprep.subr.mxu1 %v2705_v27  ;;  %v11520_v27 = vld [vmem:[#allocation45_spill] sm:$0xff] }
 0x22e   : > { %2727 = vmatpush1.msra.mxu0 %v2706_v33  ;;  %v1571_v29 = vpop.f32.mrf.mxu1  ;;  %v2658_v63 = vadd.f32 %v7344_v42, %v8155_v9  ;;  %v2698_v24 = vmax.f32 %v2666_v34, 0.0  ;;  %v2701_v41 = vmax.f32 %v2669_v19, 0.0  ;;  %v8370_v18 = vpop.f32.mrf.mxu0  ;;  %v2661_v59 = vadd.f32 %v11374_v16, %v8188_v15  ;;  %v11521_v17 = vld [vmem:[#allocation89_spill] sm:$0xff]  ;;  %v11620_v15 = vld [vmem:[#allocation22_spill] sm:$0xff] }
 0x22f   : > { %2728 = vmatprep.subr.mxu0 %v2703_v44  ;;  %11515 = vst [vmem:[#allocation248_spill] sm:$0xff] %v8370_v18  ;;  %v2660_v11 = vadd.f32 %v11376_v22, %v8168_v2  ;;  %v2700_v33 = vmax.f32 %v2668_v31, 0.0  ;;  %2800 = vmatpush1.msra.mxu1 %v2704_v43  ;;  %v2695_v44 = vmax.f32 %v2663_v58, 0.0  ;;  %v2655_v9 = vadd.f32 %v7336_v35, %v8142_v10  ;;  %v11618_v10 = vld [vmem:[#allocation173_spill] sm:$0xff] }
 0x230   : > { %2729 = vmatpush1.msra.mxu0 %v2702_v47  ;;  %v8376_v54 = vpop.f32.mrf.mxu1  ;;  %v2654_v19 = vadd.f32 %v7326_v38, %v8122_v26  ;;  %v2694_v8 = vmax.f32 %v2662_v60, 0.0  ;;  %2801 = vmatprep.subr.mxu1 %v2701_v41  ;;  %v2697_v4 = vmax.f32 %v2665_v36, 0.0  ;;  %v8382_v34 = vpop.f32.mrf.mxu0  ;;  %v2657_v31 = vadd.f32 %v11381_v0, %v8148_v20  ;;  %v11519_v26 = vld [vmem:[#allocation92_spill] sm:$0xff]  ;;  %v11525_v41 = vld [vmem:[#allocation197_spill] sm:$0xff] }
 0x231   : > { %2730 = vmatprep.subr.mxu0 %v2699_v13  ;;  %11516 = vst [vmem:[#allocation249_spill] sm:$0xff] %v8376_v54  ;;  %11517 = vst [vmem:[#allocation250_spill] sm:$0xff] %v8382_v34  ;;  %v2656_v2 = vadd.f32 %v11379_v3, %v8132_v37  ;;  %v2696_v30 = vmax.f32 %v2664_v7, 0.0  ;;  %2802 = vmatpush1.msra.mxu1 %v2700_v33  ;;  %v2691_v47 = vmax.f32 %v2659_v28, 0.0  ;;  %v2690_v43 = vmax.f32 %v2658_v63, 0.0  ;;  %v11524_v37 = vld [vmem:[#allocation93_spill] sm:$0xff] }
 0x232   : > { %2731 = vmatpush1.msra.mxu0 %v2698_v24  ;;  %v8388_v58 = vpop.f32.mrf.mxu1  ;;  %v2651_v60 = vadd.f32 %v11519_v26, %v8109_v40  ;;  %v2650_v36 = vadd.f32 %v11521_v17, %v11520_v27  ;;  %2803 = vmatprep.subr.mxu1 %v2697_v4  ;;  %v2693_v29 = vmax.f32 %v2661_v59, 0.0  ;;  %v8394_v13 = vpop.f32.mrf.mxu0  ;;  %v11523_v24 = vld [vmem:[#allocation201_spill] sm:$0xff]  ;;  %v11526_v33 = vld [vmem:[#allocation90_spill] sm:$0xff]  ;;  %v2692_v21 = vmax.f32 %v2660_v11, 0.0  ;;  %v11528_v34 = vld [vmem:[#allocation196_spill] sm:$0xff] }
 0x233   : > { %2732 = vmatprep.subr.mxu0 %v2695_v44  ;;  %11518 = vst [vmem:[#allocation251_spill] sm:$0xff] %v8388_v58  ;;  %11522 = vst [vmem:[#allocation45_spill] sm:$0xff] %v8394_v13  ;;  %v2653_v7 = vadd.f32 %v11524_v37, %v11523_v24  ;;  %v2652_v44 = vadd.f32 %v11526_v33, %v11525_v41  ;;  %2804 = vmatpush1.msra.mxu1 %v2696_v30  ;;  %v2687_v58 = vmax.f32 %v2655_v9, 0.0  ;;  %v11529_v27 = vld [vmem:[#allocation87_spill] sm:$0xff]  ;;  %v11533_v24 = vld [vmem:[#allocation44_spill] sm:$0xff] }
 0x234   : > { %2733 = vmatpush1.msra.mxu0 %v2694_v8  ;;  %v8400_v28 = vpop.f32.mrf.mxu1  ;;  %v2647_v63 = vadd.f32 %v11529_v27, %v11528_v34  ;;  %v11530_v4 = vld [vmem:[#allocation131_spill] sm:$0xff]  ;;  %v11531_v8 = vld [vmem:[#allocation84_spill] sm:$0xff]  ;;  %v2686_v54 = vmax.f32 %v2654_v19, 0.0  ;;  %2805 = vmatprep.subr.mxu1 %v2693_v29  ;;  %v2689_v13 = vmax.f32 %v2657_v31, 0.0  ;;  %v8406_v18 = vpop.f32.mrf.mxu0  ;;  %v11535_v30 = vld [vmem:[#allocation193_spill] sm:$0xff]  ;;  %v2683_v34 = vmax.f32 %v2651_v60, 0.0 }
 0x235   : > { %2734 = vmatprep.subr.mxu0 %v2691_v47  ;;  %11527 = vst [vmem:[#allocation89_spill] sm:$0xff] %v8400_v28  ;;  %v2646_v59 = vadd.f32 %v11531_v8, %v11530_v4  ;;  %11532 = vst [vmem:[#allocation197_spill] sm:$0xff] %v8406_v18  ;;  %v11534_v41 = vld [vmem:[#allocation88_spill] sm:$0xff]  ;;  %v11536_v47 = vld [vmem:[#allocation85_spill] sm:$0xff]  ;;  %v2688_v28 = vmax.f32 %v2656_v2, 0.0  ;;  %2806 = vmatpush1.msra.mxu1 %v2692_v21  ;;  %v2682_v20 = vmax.f32 %v2650_v36, 0.0 }
 0x236   : > { %2735 = vmatpush1.msra.mxu0 %v2690_v43  ;;  %v2649_v11 = vadd.f32 %v11534_v41, %v11533_v24  ;;  %v2648_v40 = vadd.f32 %v11536_v47, %v11535_v30  ;;  %v8412_v9 = vpop.f32.mrf.mxu1  ;;  %2807 = vmatprep.subr.mxu1 %v2689_v13  ;;  %v2685_v19 = vmax.f32 %v2653_v7, 0.0  ;;  %v8414_v43 = vpop.f32.mrf.mxu0  ;;  %v2684_v31 = vmax.f32 %v2652_v44, 0.0  ;;  %v11544_v36 = vld [vmem:[#allocation186_spill] sm:$0xff]  ;;  %v11644_v41 = vld [vmem:[#allocation104_spill] sm:$0xff]  ;;  %v11652_v27 = vld [vmem:[#allocation181_spill] sm:$0xff] }
 0x237   : > { %2736 = vmatprep.subr.mxu0 %v2687_v58  ;;  %11537 = vst [vmem:[#allocation90_spill] sm:$0xff] %v8412_v9  ;;  %11538 = vst [vmem:[#allocation131_spill] sm:$0xff] %v8414_v43  ;;  %2808 = vmatpush1.msra.mxu1 %v2688_v28  ;;  %v2679_v4 = vmax.f32 %v2647_v63, 0.0  ;;  %v2678_v18 = vmax.f32 %v2646_v59, 0.0  ;;  %v11564_v43 = vld [vmem:[#allocation79_spill] sm:$0xff]  ;;  %v11679_v35 = vld [vmem:[#allocation125_spill] sm:$0xff] }
 0x238   : > { %2737 = vmatpush1.msra.mxu0 %v2686_v54  ;;  %v8416_v29 = vpop.f32.mrf.mxu1  ;;  %2809 = vmatprep.subr.mxu1 %v2685_v19  ;;  %v2681_v21 = vmax.f32 %v2649_v11, 0.0  ;;  %v8418_v2 = vpop.f32.mrf.mxu0  ;;  %v2680_v58 = vmax.f32 %v2648_v40, 0.0  ;;  %v11546_v40 = vmov 0.0   ;;  %v11661_v26 = vld [vmem:[#allocation119_spill] sm:$0xff] }
 0x239   : > { %2738 = vmatprep.subr.mxu0 %v2683_v34  ;;  %11539 = vst [vmem:[#allocation193_spill] sm:$0xff] %v8416_v29  ;;  %11540 = vst [vmem:[#allocation252_spill] sm:$0xff] %v8418_v2  ;;  %2810 = vmatpush1.msra.mxu1 %v2684_v31  ;;  %v11563_v29 = vld [vmem:[#allocation160_spill] sm:$0xff]  ;;  %v11567_v2 = vld [vmem:[#allocation161_spill] sm:$0xff] }
 0x23a   : > { %2739 = vmatpush1.msra.mxu0 %v2682_v20  ;;  %v8420_v60 = vpop.f32.mrf.mxu1  ;;  %2811 = vmatprep.subr.mxu1 %v2681_v21  ;;  %v8422_v54 = vpop.f32.mrf.mxu0  ;;  %v8468_v24 = vadd.f32 %v11564_v43, %v11563_v29 }
 0x23b   : > { %2740 = vmatprep.subr.mxu0 %v2679_v4  ;;  %11541 = vst [vmem:[#allocation253_spill] sm:$0xff] %v8420_v60  ;;  %11542 = vst [vmem:[#allocation254_spill] sm:$0xff] %v8422_v54  ;;  %2812 = vmatpush1.msra.mxu1 %v2680_v58 }
 0x23c   : > { %2741 = vmatpush1.msra.mxu0 %v2678_v18  ;;  %v8424_v34 = vpop.f32.mrf.mxu1  ;;  %v8428_v13 = vpop.f32.mrf.mxu0  ;;  %6093 = vmatmul.mubr.msk.f32.vlgmr.msra.gmra.mxu1 %vm2294_vm1, %v11544_v36  ;;  %11565 = vst [vmem:[#allocation160_spill] sm:$0xff] %v8468_v24 }
 0x23d   : > { %11543 = vst [vmem:[#allocation255_spill] sm:$0xff] %v8424_v34  ;;  %6092 = vmatmul.mubr.msk.f32.vlgmr.msra.gmra.mxu0 %vm2294_vm1, %v11544_v36  ;;  %11545 = vst [vmem:[#allocation186_spill] sm:$0xff] %v8428_v13  ;;  %3051 = vmatprep.mubr.f32.mxu1 %v11546_v40  ;;  %v11610_v13 = vld [vmem:[#allocation78_spill] sm:$0xff] }
 0x23e   : > { %2980 = vmatprep.mubr.f32.mxu0 %v11546_v40  ;;  %v8433_v20 = vpop.f32.mrf.mxu1  ;;  %v8436_v18 = vpop.f32.mrf.mxu0 }
 0x23f   : > { %11547 = vst [vmem:[#allocation256_spill] sm:$0xff] %v8433_v20  ;;  %11548 = vst [vmem:[#allocation257_spill] sm:$0xff] %v8436_v18  ;;  %v8474_v20 = vadd.f32 %v11564_v43, %v11567_v2  ;;  %v11608_v18 = vld [vmem:[#allocation19_spill] sm:$0xff] }
 0x240   : > { %v8438_v7 = vpop.f32.mrf.mxu1  ;;  %v8440_v44 = vpop.f32.mrf.mxu0 }
 0x241   : > { %11549 = vst [vmem:[#allocation258_spill] sm:$0xff] %v8438_v7  ;;  %11550 = vst [vmem:[#allocation259_spill] sm:$0xff] %v8440_v44 }
 0x242   : > { %v8442_v28 = vpop.f32.mrf.mxu1  ;;  %v8444_v63 = vpop.f32.mrf.mxu0  ;;  %11568 = vst [vmem:[#allocation161_spill] sm:$0xff] %v8474_v20 }
 0x243   : > { %11551 = vst [vmem:[#allocation260_spill] sm:$0xff] %v8442_v28  ;;  %11552 = vst [vmem:[#allocation261_spill] sm:$0xff] %v8444_v63  ;;  %v11569_v28 = vld [vmem:[#allocation123_spill] sm:$0xff]  ;;  %v11601_v63 = vld [vmem:[#allocation169_spill] sm:$0xff] }
 0x244   : > { %v8446_v59 = vpop.f32.mrf.mxu1  ;;  %v8448_v11 = vpop.f32.mrf.mxu0 }
 0x245   : > { %11553 = vst [vmem:[#allocation262_spill] sm:$0xff] %v8446_v59  ;;  %11554 = vst [vmem:[#allocation263_spill] sm:$0xff] %v8448_v11 }
 0x246   : > { %v8450_v30 = vpop.f32.mrf.mxu1  ;;  %v8452_v19 = vpop.f32.mrf.mxu0 }
 0x247   : > { %11555 = vst [vmem:[#allocation264_spill] sm:$0xff] %v8450_v30  ;;  %11556 = vst [vmem:[#allocation265_spill] sm:$0xff] %v8452_v19  ;;  %v11571_v30 = vld [vmem:[#allocation182_spill] sm:$0xff] }
 0x248   : > { %v8454_v31 = vpop.f32.mrf.mxu1  ;;  %v8456_v4 = vpop.f32.mrf.mxu0  ;;  %v11593_v19 = vld [vmem:[#allocation74_spill] sm:$0xff] }
 0x249   : > { %11557 = vst [vmem:[#allocation266_spill] sm:$0xff] %v8454_v31  ;;  %11558 = vst [vmem:[#allocation267_spill] sm:$0xff] %v8456_v4  ;;  %v11574_v4 = vld [vmem:[#allocation127_spill] sm:$0xff] }
 0x24a   : > { %v8458_v21 = vpop.f32.mrf.mxu1  ;;  %v8460_v58 = vpop.f32.mrf.mxu0  ;;  %v11591_v31 = vld [vmem:[#allocation15_spill] sm:$0xff] }
 0x24b   : > { %11559 = vst [vmem:[#allocation268_spill] sm:$0xff] %v8458_v21  ;;  %11560 = vst [vmem:[#allocation269_spill] sm:$0xff] %v8460_v58  ;;  %v11584_v58 = vld [vmem:[#allocation165_spill] sm:$0xff] }
 0x24c   : > { %v8462_v36 = vpop.f32.mrf.mxu1  ;;  %v8464_v9 = vpop.f32.mrf.mxu0 }
 0x24d   : > { %11561 = vst [vmem:[#allocation270_spill] sm:$0xff] %v8462_v36  ;;  %11562 = vst [vmem:[#allocation271_spill] sm:$0xff] %v8464_v9 }
 0x24e   : > { %v8470_v60 = vpop.f32.mrf.mxu1  ;;  %v8476_v34 = vpop.f32.mrf.mxu0 }
 0x24f   : > { %11566 = vst [vmem:[#allocation272_spill] sm:$0xff] %v8470_v60  ;;  %v8480_v44 = vadd.f32 %v11569_v28, %v8476_v34  ;;  %v8484_v59 = vadd.f32 %v11571_v30, %v8476_v34  ;;  %v8488_v29 = vadd.f32 %v8468_v24, %v8476_v34  ;;  %v11576_v60 = vld [vmem:[#allocation68_spill] sm:$0xff] }
 0x250   : > { %v8490_v21 = vpop.f32.mrf.mxu1  ;;  %v8504_v30 = vpop.f32.mrf.mxu0 }
 0x251   : > { %11570 = vst [vmem:[#allocation273_spill] sm:$0xff] %v8480_v44  ;;  %11572 = vst [vmem:[#allocation274_spill] sm:$0xff] %v8484_v59  ;;  %v8494_v2 = vadd.f32 %v11574_v4, %v8490_v21  ;;  %v8498_v36 = vadd.f32 %v11576_v60, %v8490_v21  ;;  %v8502_v28 = vadd.f32 %v8474_v20, %v8490_v21  ;;  %v11580_v59 = vld [vmem:[#allocation164_spill] sm:$0xff]  ;;  %v11581_v44 = vld [vmem:[#allocation81_spill] sm:$0xff] }
 0x252   : > { %11573 = vst [vmem:[#allocation275_spill] sm:$0xff] %v8488_v29  ;;  %11579 = vst [vmem:[#allocation279_spill] sm:$0xff] %v8504_v30  ;;  %v8508_v24 = vadd.f32 %v11581_v44, %v11580_v59  ;;  %v8510_v29 = vpop.f32.mrf.mxu1  ;;  %v8514_v4 = vadd.f32 %v11581_v44, %v11584_v58  ;;  %v11586_v60 = vld [vmem:[#allocation14_spill] sm:$0xff]  ;;  %v11588_v20 = vld [vmem:[#allocation72_spill] sm:$0xff] }
 0x253   : > { %11575 = vst [vmem:[#allocation276_spill] sm:$0xff] %v8494_v2  ;;  %11577 = vst [vmem:[#allocation277_spill] sm:$0xff] %v8498_v36  ;;  %v8516_v2 = vpop.f32.mrf.mxu0  ;;  %v11654_v30 = vld [vmem:[#allocation30_spill] sm:$0xff] }
 0x254   : > { %11578 = vst [vmem:[#allocation278_spill] sm:$0xff] %v8502_v28  ;;  %11582 = vst [vmem:[#allocation164_spill] sm:$0xff] %v8508_v24  ;;  %v8520_v36 = vadd.f32 %v11586_v60, %v8516_v2  ;;  %v8524_v28 = vadd.f32 %v11588_v20, %v8516_v2  ;;  %v8528_v59 = vadd.f32 %v8508_v24, %v8516_v2  ;;  %v8530_v9 = vpop.f32.mrf.mxu1 }
 0x255   : > { %11583 = vst [vmem:[#allocation280_spill] sm:$0xff] %v8510_v29  ;;  %11585 = vst [vmem:[#allocation165_spill] sm:$0xff] %v8514_v4  ;;  %v8534_v58 = vadd.f32 %v11591_v31, %v8530_v9  ;;  %v8538_v11 = vadd.f32 %v11593_v19, %v8530_v9  ;;  %v8542_v60 = vadd.f32 %v8514_v4, %v8530_v9  ;;  %v8544_v20 = vpop.f32.mrf.mxu0  ;;  %v11603_v19 = vld [vmem:[#allocation17_spill] sm:$0xff] }
 0x256   : > { %11587 = vst [vmem:[#allocation281_spill] sm:$0xff] %v8520_v36  ;;  %11589 = vst [vmem:[#allocation282_spill] sm:$0xff] %v8524_v28  ;;  %v11597_v28 = vld [vmem:[#allocation168_spill] sm:$0xff]  ;;  %v11598_v36 = vld [vmem:[#allocation71_spill] sm:$0xff] }
 0x257   : > { %11590 = vst [vmem:[#allocation283_spill] sm:$0xff] %v8528_v59  ;;  %11592 = vst [vmem:[#allocation284_spill] sm:$0xff] %v8534_v58  ;;  %v8548_v24 = vadd.f32 %v11598_v36, %v11597_v28  ;;  %v8550_v59 = vpop.f32.mrf.mxu1  ;;  %v8554_v31 = vadd.f32 %v11598_v36, %v11601_v63  ;;  %v8556_v58 = vpop.f32.mrf.mxu0  ;;  %v11605_v4 = vld [vmem:[#allocation77_spill] sm:$0xff] }
 0x258   : > { %11594 = vst [vmem:[#allocation285_spill] sm:$0xff] %v8538_v11  ;;  %11595 = vst [vmem:[#allocation286_spill] sm:$0xff] %v8542_v60  ;;  %v8560_v11 = vadd.f32 %v11603_v19, %v8556_v58  ;;  %v8564_v60 = vadd.f32 %v11605_v4, %v8556_v58 }
 0x259   : > { %11596 = vst [vmem:[#allocation287_spill] sm:$0xff] %v8544_v20  ;;  %11599 = vst [vmem:[#allocation168_spill] sm:$0xff] %v8548_v24  ;;  %v8568_v28 = vadd.f32 %v8548_v24, %v8556_v58  ;;  %v8570_v7 = vpop.f32.mrf.mxu1  ;;  %v8584_v4 = vpop.f32.mrf.mxu0 }
 0x25a   : > { %11600 = vst [vmem:[#allocation288_spill] sm:$0xff] %v8550_v59  ;;  %11602 = vst [vmem:[#allocation169_spill] sm:$0xff] %v8554_v31  ;;  %v8574_v63 = vadd.f32 %v11608_v18, %v8570_v7  ;;  %v8578_v54 = vadd.f32 %v11610_v13, %v8570_v7  ;;  %v8582_v19 = vadd.f32 %v8554_v31, %v8570_v7  ;;  %v11659_v59 = vld [vmem:[#allocation31_spill] sm:$0xff] }
 0x25b   : > { %11604 = vst [vmem:[#allocation289_spill] sm:$0xff] %v8560_v11  ;;  %11606 = vst [vmem:[#allocation290_spill] sm:$0xff] %v8564_v60  ;;  %v11614_v60 = vld [vmem:[#allocation172_spill] sm:$0xff]  ;;  %v11615_v11 = vld [vmem:[#allocation73_spill] sm:$0xff] }
 0x25c   : > { %11607 = vst [vmem:[#allocation291_spill] sm:$0xff] %v8568_v28  ;;  %11609 = vst [vmem:[#allocation292_spill] sm:$0xff] %v8574_v63  ;;  %v8588_v24 = vadd.f32 %v11615_v11, %v11614_v60  ;;  %v8590_v28 = vpop.f32.mrf.mxu1  ;;  %v8594_v18 = vadd.f32 %v11615_v11, %v11618_v10  ;;  %v1661_v63 = vpop.f32.mrf.mxu0 }
 0x25d   : > { %11611 = vst [vmem:[#allocation293_spill] sm:$0xff] %v8578_v54  ;;  %11612 = vst [vmem:[#allocation294_spill] sm:$0xff] %v8582_v19  ;;  %v8597_v13 = vadd.f32 %v11620_v15, %v1661_v63  ;;  %v11622_v54 = vld [vmem:[#allocation83_spill] sm:$0xff]  ;;  %v11631_v15 = vld [vmem:[#allocation176_spill] sm:$0xff] }
 0x25e   : > { %11613 = vst [vmem:[#allocation295_spill] sm:$0xff] %v8584_v4  ;;  %11616 = vst [vmem:[#allocation172_spill] sm:$0xff] %v8588_v24  ;;  %v8600_v39 = vadd.f32 %v11622_v54, %v1661_v63  ;;  %v8603_v31 = vadd.f32 %v8588_v24, %v1661_v63  ;;  %v1782_v19 = vpop.f32.mrf.mxu1  ;;  %v8614_v11 = vpop.f32.mrf.mxu0  ;;  %v11635_v24 = vld [vmem:[#allocation177_spill] sm:$0xff] }
 0x25f   : > { %11617 = vst [vmem:[#allocation296_spill] sm:$0xff] %v8590_v28  ;;  %11619 = vst [vmem:[#allocation173_spill] sm:$0xff] %v8594_v18  ;;  %v8606_v60 = vadd.f32 %v11625_v57, %v1782_v19  ;;  %v8609_v40 = vadd.f32 %v11627_v46, %v1782_v19  ;;  %v8612_v10 = vadd.f32 %v8594_v18, %v1782_v19  ;;  %v11642_v57 = vld [vmem:[#allocation27_spill] sm:$0xff] }
 0x260   : > { %11621 = vst [vmem:[#allocation297_spill] sm:$0xff] %v8597_v13  ;;  %11623 = vst [vmem:[#allocation298_spill] sm:$0xff] %v8600_v39  ;;  %v11632_v13 = vld [vmem:[#allocation66_spill] sm:$0xff]  ;;  %v8620_v39 = vpop.f32.mrf.mxu1  ;;  %v8626_v54 = vpop.f32.mrf.mxu0 }
 0x261   : > { %11624 = vst [vmem:[#allocation299_spill] sm:$0xff] %v8603_v31  ;;  %11626 = vst [vmem:[#allocation300_spill] sm:$0xff] %v8606_v60  ;;  %v8618_v6 = vadd.f32 %v11632_v13, %v11631_v15  ;;  %v8624_v31 = vadd.f32 %v11632_v13, %v11635_v24  ;;  %v11637_v60 = vld [vmem:[#allocation26_spill] sm:$0xff] }
 0x262   : > { %11628 = vst [vmem:[#allocation301_spill] sm:$0xff] %v8609_v40  ;;  %11629 = vst [vmem:[#allocation302_spill] sm:$0xff] %v8612_v10  ;;  %v8630_v40 = vadd.f32 %v11637_v60, %v8626_v54  ;;  %v11639_v10 = vld [vmem:[#allocation101_spill] sm:$0xff]  ;;  %v8640_v46 = vpop.f32.mrf.mxu1 }
 0x263   : > { %11630 = vst [vmem:[#allocation303_spill] sm:$0xff] %v8614_v11  ;;  %11633 = vst [vmem:[#allocation176_spill] sm:$0xff] %v8618_v6  ;;  %v8634_v18 = vadd.f32 %v11639_v10, %v8626_v54  ;;  %v8638_v15 = vadd.f32 %v8618_v6, %v8626_v54  ;;  %v8644_v24 = vadd.f32 %v11642_v57, %v8640_v46  ;;  %v8654_v10 = vpop.f32.mrf.mxu0  ;;  %v11649_v60 = vld [vmem:[#allocation61_spill] sm:$0xff] }
 0x264   : > { %11634 = vst [vmem:[#allocation304_spill] sm:$0xff] %v8620_v39  ;;  %11636 = vst [vmem:[#allocation177_spill] sm:$0xff] %v8624_v31  ;;  %v8648_v29 = vadd.f32 %v11644_v41, %v8640_v46  ;;  %v8664_v57 = vadd.f32 %v11649_v60, %v11652_v27 }
 0x265   : > { %11638 = vst [vmem:[#allocation305_spill] sm:$0xff] %v8630_v40  ;;  %11640 = vst [vmem:[#allocation306_spill] sm:$0xff] %v8634_v18  ;;  %v8652_v40 = vadd.f32 %v8624_v31, %v8640_v46  ;;  %v11648_v18 = vld [vmem:[#allocation180_spill] sm:$0xff] }
 0x266   : > { %11641 = vst [vmem:[#allocation307_spill] sm:$0xff] %v8638_v15  ;;  %11643 = vst [vmem:[#allocation308_spill] sm:$0xff] %v8644_v24  ;;  %v8658_v6 = vadd.f32 %v11649_v60, %v11648_v18  ;;  %v8660_v15 = vpop.f32.mrf.mxu1  ;;  %v1671_v24 = vpop.f32.mrf.mxu0 }
 0x267   : > { %11645 = vst [vmem:[#allocation309_spill] sm:$0xff] %v8648_v29  ;;  %11646 = vst [vmem:[#allocation310_spill] sm:$0xff] %v8652_v40  ;;  %v8667_v41 = vadd.f32 %v11654_v30, %v1671_v24  ;;  %v11656_v29 = vld [vmem:[#allocation116_spill] sm:$0xff]  ;;  %v11665_v30 = vld [vmem:[#allocation185_spill] sm:$0xff] }
 0x268   : > { %11647 = vst [vmem:[#allocation311_spill] sm:$0xff] %v8654_v10  ;;  %11650 = vst [vmem:[#allocation180_spill] sm:$0xff] %v8658_v6  ;;  %v8670_v37 = vadd.f32 %v11656_v29, %v1671_v24  ;;  %v8673_v40 = vadd.f32 %v8658_v6, %v1671_v24  ;;  %v1792_v31 = vpop.f32.mrf.mxu1  ;;  %v8684_v60 = vpop.f32.mrf.mxu0  ;;  %v11669_v6 = vld [vmem:[#allocation69_spill] sm:$0xff]  ;;  %v11671_v29 = vld [vmem:[#allocation70_spill] sm:$0xff] }
 0x269   : > { %11651 = vst [vmem:[#allocation312_spill] sm:$0xff] %v8660_v15  ;;  %11653 = vst [vmem:[#allocation181_spill] sm:$0xff] %v8664_v57  ;;  %v8676_v18 = vadd.f32 %v11659_v59, %v1792_v31  ;;  %v8679_v20 = vadd.f32 %v11661_v26, %v1792_v31  ;;  %v8682_v27 = vadd.f32 %v8664_v57, %v1792_v31  ;;  %v11675_v26 = vld [vmem:[#allocation75_spill] sm:$0xff] }
 0x26a   : > { %11655 = vst [vmem:[#allocation313_spill] sm:$0xff] %v8667_v41  ;;  %11657 = vst [vmem:[#allocation314_spill] sm:$0xff] %v8670_v37  ;;  %v11666_v41 = vld [vmem:[#allocation67_spill] sm:$0xff]  ;;  %v8690_v37 = vpop.f32.mrf.mxu1  ;;  %v8706_v59 = vadd.f32 %v11581_v44, %v11675_v26 }
 0x26b   : > { %11658 = vst [vmem:[#allocation315_spill] sm:$0xff] %v8673_v40  ;;  %11660 = vst [vmem:[#allocation316_spill] sm:$0xff] %v8676_v18  ;;  %v8688_v0 = vadd.f32 %v11666_v41, %v11665_v30  ;;  %v8694_v40 = vadd.f32 %v11564_v43, %v11669_v6  ;;  %v8698_v18 = vadd.f32 %v11564_v43, %v11671_v29  ;;  %v11677_v30 = vld [vmem:[#allocation34_spill] sm:$0xff]  ;;  %v11682_v43 = vld [vmem:[#allocation80_spill] sm:$0xff] }
 0x26c   : > { %11662 = vst [vmem:[#allocation317_spill] sm:$0xff] %v8679_v20  ;;  %11663 = vst [vmem:[#allocation318_spill] sm:$0xff] %v8682_v27  ;;  %v11673_v20 = vld [vmem:[#allocation187_spill] sm:$0xff]  ;;  %v1677_v27 = vpop.f32.mrf.mxu0  ;;  %v1798_v29 = vpop.f32.mrf.mxu1 }
 0x26d   : > { %11664 = vst [vmem:[#allocation319_spill] sm:$0xff] %v8684_v60  ;;  %11667 = vst [vmem:[#allocation185_spill] sm:$0xff] %v8688_v0  ;;  %v8702_v57 = vadd.f32 %v11666_v41, %v11673_v20  ;;  %v8709_v28 = vadd.f32 %v11677_v30, %v1677_v27  ;;  %v8712_v4 = vadd.f32 %v11679_v35, %v1677_v27  ;;  %v11684_v20 = vld [vmem:[#allocation35_spill] sm:$0xff] }
 0x26e   : > { %11668 = vst [vmem:[#allocation320_spill] sm:$0xff] %v8690_v37  ;;  %11670 = vst [vmem:[#allocation69_spill] sm:$0xff] %v8694_v40  ;;  %v8715_v6 = vadd.f32 %v8688_v0, %v1677_v27  ;;  %v8722_v41 = vadd.f32 %v11684_v20, %v1798_v29  ;;  %v11686_v40 = vld [vmem:[#allocation126_spill] sm:$0xff] }
 0x26f   : > { %11672 = vst [vmem:[#allocation70_spill] sm:$0xff] %v8698_v18  ;;  %11674 = vst [vmem:[#allocation187_spill] sm:$0xff] %v8702_v57  ;;  %v8719_v18 = vadd.f32 %v11598_v36, %v11682_v43  ;;  %v8725_v26 = vadd.f32 %v11686_v40, %v1798_v29  ;;  %v8728_v30 = vadd.f32 %v8702_v57, %v1798_v29  ;;  %v11697_v40 = vld [vmem:[#allocation191_spill] sm:$0xff] }
 0x270   : > { %11676 = vst [vmem:[#allocation75_spill] sm:$0xff] %v8706_v59  ;;  %11678 = vst [vmem:[#allocation321_spill] sm:$0xff] %v8709_v28  ;;  %v8730_v28 = vpop.f32.mrf.mxu0  ;;  %v8742_v43 = vadd.f32 %v7326_v38, %v8556_v58  ;;  %v8762_v58 = vadd.f32 %v11376_v22, %v1782_v19  ;;  %v11704_v19 = vld [vmem:[#allocation39_spill] sm:$0xff]  ;;  %v11706_v22 = vld [vmem:[#allocation54_spill] sm:$0xff] }
 0x271   : > { %11680 = vst [vmem:[#allocation322_spill] sm:$0xff] %v8712_v4  ;;  %11681 = vst [vmem:[#allocation323_spill] sm:$0xff] %v8715_v6  ;;  %v11690_v4 = vld [vmem:[#allocation109_spill] sm:$0xff]  ;;  %v11692_v6 = vld [vmem:[#allocation190_spill] sm:$0xff] }
 0x272   : > { %11683 = vst [vmem:[#allocation80_spill] sm:$0xff] %v8719_v18  ;;  %11685 = vst [vmem:[#allocation324_spill] sm:$0xff] %v8722_v41  ;;  %v8734_v0 = vadd.f32 %v11632_v13, %v11690_v4  ;;  %v8738_v35 = vadd.f32 %v11489_v56, %v11692_v6  ;;  %v8745_v41 = vadd.f32 %v7344_v42, %v1661_v63  ;;  %v1681_v20 = vpop.f32.mrf.mxu0  ;;  %v11699_v42 = vld [vmem:[#allocation38_spill] sm:$0xff] }
 0x273   : > { %11687 = vst [vmem:[#allocation325_spill] sm:$0xff] %v8725_v26  ;;  %11688 = vst [vmem:[#allocation326_spill] sm:$0xff] %v8728_v30  ;;  %v8747_v26 = vpop.f32.mrf.mxu1  ;;  %v11695_v30 = vld [vmem:[#allocation113_spill] sm:$0xff]  ;;  %v8755_v4 = vadd.f32 %v11489_v56, %v11697_v40  ;;  %v8759_v6 = vadd.f32 %v11531_v8, %v8476_v34  ;;  %v8766_v63 = vadd.f32 %v11536_v47, %v8490_v21 }
 0x274   : > { %11689 = vst [vmem:[#allocation327_spill] sm:$0xff] %v8730_v28  ;;  %11691 = vst [vmem:[#allocation109_spill] sm:$0xff] %v8734_v0  ;;  %v8751_v57 = vadd.f32 %v11632_v13, %v11695_v30  ;;  %v8769_v38 = vadd.f32 %v11699_v42, %v1681_v20  ;;  %v11701_v30 = vld [vmem:[#allocation57_spill] sm:$0xff]  ;;  %v8775_v40 = vadd.f32 %v8738_v35, %v1681_v20 }
 0x275   : > { %11693 = vst [vmem:[#allocation190_spill] sm:$0xff] %v8738_v35  ;;  %11694 = vst [vmem:[#allocation328_spill] sm:$0xff] %v8747_v26  ;;  %v8772_v13 = vadd.f32 %v11701_v30, %v1681_v20  ;;  %v1802_v56 = vpop.f32.mrf.mxu1  ;;  %v8779_v34 = vadd.f32 %v11521_v17, %v8516_v2  ;;  %v8799_v2 = vadd.f32 %v11379_v3, %v8570_v7 }
 0x276   : > { %11696 = vst [vmem:[#allocation113_spill] sm:$0xff] %v8751_v57  ;;  %11698 = vst [vmem:[#allocation191_spill] sm:$0xff] %v8755_v4  ;;  %v8782_v8 = vadd.f32 %v11704_v19, %v1802_v56  ;;  %v8785_v21 = vadd.f32 %v11706_v22, %v1802_v56  ;;  %v8788_v47 = vadd.f32 %v8755_v4, %v1802_v56 }
 0x277   : > { %11700 = vst [vmem:[#allocation329_spill] sm:$0xff] %v8769_v38  ;;  %11702 = vst [vmem:[#allocation330_spill] sm:$0xff] %v8772_v13  ;;  %v8790_v38 = vpop.f32.mrf.mxu0  ;;  %v8794_v13 = vadd.f32 %v11526_v33, %v8530_v9  ;;  %v8802_v35 = vpop.f32.mrf.mxu1  ;;  %v2880_v4 = vadd.f32 %v7364_v48, %v1681_v20  ;;  %v2882_v9 = vadd.f32 %v7385_v12, %v1802_v56 }
 0x278   : > { %11703 = vst [vmem:[#allocation331_spill] sm:$0xff] %v8775_v40  ;;  %11705 = vst [vmem:[#allocation332_spill] sm:$0xff] %v8782_v8  ;;  %v2881_v7 = vadd.f32 %v11506_v14, %v8790_v38  ;;  %v2883_v8 = vadd.f32 %v11328_v23, %v8802_v35  ;;  %v2872_v20 = vadd.f32 %v7422_v1, %v1671_v24  ;;  %v11738_v1 = vld [vmem:[#allocation87_spill] sm:$0xff] }
 0x279   : > { %11707 = vst [vmem:[#allocation333_spill] sm:$0xff] %v8785_v21  ;;  %11708 = vst [vmem:[#allocation334_spill] sm:$0xff] %v8788_v47  ;;  %v8807_v47 = vadd.f32 %v7373_v49, %v8626_v54  ;;  %v8811_v22 = vpop.f32.mrf.mxu0  ;;  %v8813_v40 = vpop.f32.mrf.mxu1  ;;  %v2877_v21 = vadd.f32 %v7381_v51, %v8730_v28  ;;  %v2879_v54 = vadd.f32 %v7400_v53, %v8747_v26  ;;  %v2914_v19 = vmax.f32 %v2882_v9, 0.0 }
 0x27a   : > { %11709 = vst [vmem:[#allocation335_spill] sm:$0xff] %v8790_v38  ;;  %11710 = vst [vmem:[#allocation336_spill] sm:$0xff] %v8802_v35  ;;  %v2874_v56 = vadd.f32 %v7440_v62, %v1792_v31  ;;  %v2913_v14 = vmax.f32 %v2881_v7, 0.0  ;;  %v2915_v23 = vmax.f32 %v2883_v8, 0.0  ;;  %v2873_v51 = vadd.f32 %v11367_v55, %v8684_v60  ;;  %v11737_v62 = vld [vmem:[#allocation279_spill] sm:$0xff] }
 0x27b   : > { %11711 = vst [vmem:[#allocation337_spill] sm:$0xff] %v8811_v22  ;;  %11712 = vst [vmem:[#allocation338_spill] sm:$0xff] %v8813_v40  ;;  %v2876_v22 = vadd.f32 %v7396_v52, %v1677_v27  ;;  %v2878_v40 = vadd.f32 %v11368_v25, %v1798_v29  ;;  %v8827_v30 = vpop.f32.mrf.mxu0  ;;  %v8829_v12 = vpop.f32.mrf.mxu1  ;;  %v2875_v53 = vadd.f32 %v7426_v5, %v8690_v37  ;;  %v2912_v31 = vmax.f32 %v2880_v4, 0.0 }
 0x27c   : > { %11713 = vst [vmem:[#allocation339_spill] sm:$0xff] %v8827_v30  ;;  %11714 = vst [vmem:[#allocation340_spill] sm:$0xff] %v8829_v12  ;;  %v2870_v24 = vadd.f32 %v7377_v50, %v8640_v46  ;;  %v2869_v29 = vadd.f32 %v7392_v61, %v8654_v10  ;;  %v2900_v30 = vmax.f32 %v8807_v47, 0.0  ;;  %2932 = vmatprep.subr.mxu0 %v2913_v14  ;;  %3003 = vmatprep.subr.mxu1 %v2915_v23  ;;  %v11755_v61 = vld [vmem:[#allocation43_spill] sm:$0xff] }
 0x27d   : > { %v1691_v27 = vpop.f32.mrf.mxu0  ;;  %v1812_v8 = vpop.f32.mrf.mxu1  ;;  %v2909_v7 = vmax.f32 %v2877_v21, 0.0  ;;  %v2911_v12 = vmax.f32 %v2879_v54, 0.0  ;;  %v2871_v25 = vadd.f32 %v7436_v32, %v8660_v15  ;;  %v2904_v52 = vmax.f32 %v2872_v20, 0.0  ;;  %2933 = vmatpush1.msra.mxu0 %v2912_v31  ;;  %3004 = vmatpush1.msra.mxu1 %v2914_v19  ;;  %v11717_v19 = vld [vmem:[#allocation296_spill] sm:$0xff] }
 0x27e   : > { %v2906_v5 = vmax.f32 %v2874_v56, 0.0  ;;  %v2908_v55 = vmax.f32 %v2876_v22, 0.0  ;;  %v2910_v46 = vmax.f32 %v2878_v40, 0.0  ;;  %v2905_v27 = vmax.f32 %v2873_v51, 0.0  ;;  %v11715_v22 = vld [vmem:[#allocation295_spill] sm:$0xff]  ;;  %v11716_v40 = vld [vmem:[#allocation97_spill] sm:$0xff] }
 0x27f   : > { %v1692_v4 = vpop.f32.mrf.mxu0  ;;  %2934 = vmatprep.subr.mxu0 %v2909_v7  ;;  %3005 = vmatprep.subr.mxu1 %v2911_v12  ;;  %v1813_v9 = vpop.f32.mrf.mxu1  ;;  %v2907_v47 = vmax.f32 %v2875_v53, 0.0  ;;  %v2865_v23 = vadd.f32 %v7356_v45, %v8614_v11  ;;  %v2867_v14 = vadd.f32 %v11374_v16, %v8620_v39  ;;  %v2901_v54 = vmax.f32 %v2869_v29, 0.0  ;;  %v11718_v56 = vld [vmem:[#allocation98_spill] sm:$0xff]  ;;  %v11719_v12 = vld [vmem:[#allocation287_spill] sm:$0xff]  ;;  %v11720_v8 = vld [vmem:[#allocation92_spill] sm:$0xff] }
 0x280   : > { %2935 = vmatpush1.msra.mxu0 %v2908_v55  ;;  %3006 = vmatpush1.msra.mxu1 %v2910_v46  ;;  %v2861_v20 = vadd.f32 %v11716_v40, %v11715_v22  ;;  %v2863_v31 = vadd.f32 %v11718_v56, %v11717_v19  ;;  %v2857_v51 = vadd.f32 %v11720_v8, %v11719_v12  ;;  %v2903_v7 = vmax.f32 %v2871_v25, 0.0  ;;  %v11721_v4 = vld [vmem:[#allocation40_spill] sm:$0xff]  ;;  %v11723_v55 = vld [vmem:[#allocation41_spill] sm:$0xff] }
 0x281   : > { %v1849_v21 = vpop.f32.mrf.mxu0  ;;  %2936 = vmatprep.subr.mxu0 %v2905_v27  ;;  %3007 = vmatprep.subr.mxu1 %v2907_v47  ;;  %v1952_v53 = vpop.f32.mrf.mxu1  ;;  %v8854_v9 = vadd.f32 %v11721_v4, %v8790_v38  ;;  %v8858_v29 = vadd.f32 %v11723_v55, %v8802_v35  ;;  %v11725_v46 = vld [vmem:[#allocation36_spill] sm:$0xff]  ;;  %v2902_v48 = vmax.f32 %v2870_v24, 0.0  ;;  %v11727_v27 = vld [vmem:[#allocation37_spill] sm:$0xff]  ;;  %v2899_v24 = vmax.f32 %v2867_v14, 0.0 }
 0x282   : > { %v8862_v21 = vadd.f32 %v11725_v46, %v8730_v28  ;;  %2937 = vmatpush1.msra.mxu0 %v2904_v52  ;;  %3008 = vmatpush1.msra.mxu1 %v2906_v5  ;;  %v8866_v47 = vadd.f32 %v11727_v27, %v8747_v26  ;;  %v11729_v25 = vld [vmem:[#allocation32_spill] sm:$0xff]  ;;  %v11734_v5 = vld [vmem:[#allocation93_spill] sm:$0xff]  ;;  %v2853_v27 = vadd.f32 %v11738_v1, %v11737_v62  ;;  %v2895_v50 = vmax.f32 %v2863_v31, 0.0 }
 0x283   : > { %11722 = vst [vmem:[#allocation97_spill] sm:$0xff] %v8854_v9  ;;  %11724 = vst [vmem:[#allocation98_spill] sm:$0xff] %v8858_v29  ;;  %v1850_v42 = vpop.f32.mrf.mxu0  ;;  %v8870_v53 = vadd.f32 %v11729_v25, %v8684_v60  ;;  %v11731_v9 = vld [vmem:[#allocation33_spill] sm:$0xff]  ;;  %2938 = vmatprep.subr.mxu0 %v2901_v54  ;;  %3009 = vmatprep.subr.mxu1 %v2903_v7  ;;  %v1953_v29 = vpop.f32.mrf.mxu1  ;;  %v11733_v52 = vld [vmem:[#allocation288_spill] sm:$0xff] }
 0x284   : > { %11726 = vst [vmem:[#allocation92_spill] sm:$0xff] %v8862_v21  ;;  %11728 = vst [vmem:[#allocation36_spill] sm:$0xff] %v8866_v47  ;;  %v8874_v55 = vadd.f32 %v11731_v9, %v8690_v37  ;;  %v2897_v21 = vmax.f32 %v2865_v23, 0.0  ;;  %v2859_v42 = vadd.f32 %v11734_v5, %v11733_v52  ;;  %v11735_v4 = vld [vmem:[#allocation28_spill] sm:$0xff]  ;;  %2939 = vmatpush1.msra.mxu0 %v2900_v30  ;;  %3010 = vmatpush1.msra.mxu1 %v2902_v48  ;;  %v11741_v23 = vld [vmem:[#allocation29_spill] sm:$0xff] }
 0x285   : > { %11730 = vst [vmem:[#allocation32_spill] sm:$0xff] %v8870_v53  ;;  %v8880_v32 = vadd.f32 %v11735_v4, %v8654_v10  ;;  %v1851_v47 = vpop.f32.mrf.mxu0  ;;  %v2893_v53 = vmax.f32 %v2861_v20, 0.0  ;;  %v11740_v54 = vld [vmem:[#allocation88_spill] sm:$0xff]  ;;  %v8888_v14 = vadd.f32 %v11741_v23, %v8660_v15  ;;  %3011 = vmatprep.subr.mxu1 %v2899_v24  ;;  %v1954_v29 = vpop.f32.mrf.mxu1  ;;  %v11745_v48 = vld [vmem:[#allocation25_spill] sm:$0xff] }
 0x286   : > { %11732 = vst [vmem:[#allocation33_spill] sm:$0xff] %v8874_v55  ;;  %v11739_v55 = vld [vmem:[#allocation280_spill] sm:$0xff]  ;;  %2940 = vmatprep.subr.mxu0 %v2897_v21  ;;  %v8896_v20 = vadd.f32 %v11745_v48, %v8620_v39  ;;  %v11750_v21 = vmax.f32 %v8762_v58, 0.0  ;;  %v11751_v24 = vld [vmem:[#allocation21_spill] sm:$0xff]  ;;  %v2889_v58 = vmax.f32 %v2857_v51, 0.0 }
 0x287   : > { %11736 = vst [vmem:[#allocation93_spill] sm:$0xff] %v8880_v32  ;;  %v2855_v7 = vadd.f32 %v11740_v54, %v11739_v55  ;;  %11742 = vst [vmem:[#allocation87_spill] sm:$0xff] %v8888_v14  ;;  %v11743_v32 = vld [vmem:[#allocation24_spill] sm:$0xff]  ;;  %v2894_v54 = vmax.f32 %v8799_v2, 0.0  ;;  %v11749_v14 = vmax.f32 %v8745_v41, 0.0  ;;  %v1852_v31 = vpop.f32.mrf.mxu0  ;;  %v8909_v29 = vadd.f32 %v11751_v24, %v11717_v19  ;;  %v1955_v41 = vpop.f32.mrf.mxu1 }
 0x288   : > { %v8892_v30 = vadd.f32 %v11743_v32, %v8614_v11  ;;  %11746 = vst [vmem:[#allocation342_spill] sm:$0xff] %v8896_v20  ;;  %v11747_v47 = vld [vmem:[#allocation20_spill] sm:$0xff]  ;;  %3012 = vmatpush1.msra.mxu1 %v11750_v21  ;;  %v2884_v2 = vmax.f32 %v8759_v6, 0.0  ;;  %v11760_v6 = vld [vmem:[#allocation13_spill] sm:$0xff] }
 0x289   : > { %v8900_v49 = vadd.f32 %v11747_v47, %v11715_v22  ;;  %2941 = vmatpush1.msra.mxu0 %v11749_v14  ;;  %11752 = vst [vmem:[#allocation344_spill] sm:$0xff] %v8909_v29  ;;  %3013 = vmatprep.subr.mxu1 %v2895_v50  ;;  %v2891_v14 = vmax.f32 %v2859_v42, 0.0  ;;  %v11757_v21 = vld [vmem:[#allocation12_spill] sm:$0xff]  ;;  %v2888_v29 = vmax.f32 %v8779_v34, 0.0  ;;  %v2887_v50 = vmax.f32 %v2855_v7, 0.0  ;;  %v11764_v34 = vld [vmem:[#allocation55_spill] sm:$0xff] }
 0x28a   : > { %11744 = vst [vmem:[#allocation341_spill] sm:$0xff] %v8892_v30  ;;  %v11753_v30 = vld [vmem:[#allocation49_spill] sm:$0xff]  ;;  %2942 = vmatprep.subr.mxu0 %v2893_v53  ;;  %v8922_v31 = vadd.f32 %v11757_v21, %v11737_v62  ;;  %3014 = vmatpush1.msra.mxu1 %v2894_v54  ;;  %v8930_v53 = vadd.f32 %v11760_v6, %v11739_v55  ;;  %v11762_v51 = vld [vmem:[#allocation52_spill] sm:$0xff]  ;;  %v1855_v54 = vpop.f32.mrf.mxu0 }
 0x28b   : > { %11748 = vst [vmem:[#allocation343_spill] sm:$0xff] %v8900_v49  ;;  %v8913_v20 = vadd.f32 %v11753_v30, %v11719_v12  ;;  %v8917_v49 = vadd.f32 %v11755_v61, %v11733_v52  ;;  %v2890_v30 = vmax.f32 %v8794_v13, 0.0  ;;  %3015 = vmatprep.subr.mxu1 %v2891_v14  ;;  %v8934_v42 = vadd.f32 %v11762_v51, %v8790_v38  ;;  %v11766_v13 = vld [vmem:[#allocation128_spill] sm:$0xff] }
 0x28c   : > { %11758 = vst [vmem:[#allocation347_spill] sm:$0xff] %v8922_v31  ;;  %11761 = vst [vmem:[#allocation348_spill] sm:$0xff] %v8930_v53  ;;  %v8938_v41 = vadd.f32 %v11764_v34, %v8802_v35  ;;  %v11772_v35 = vld [vmem:[#allocation124_spill] sm:$0xff]  ;;  %v8967_v54 = vadd.f32 %v8734_v0, %v8654_v10 }
 0x28d   : > { %11754 = vst [vmem:[#allocation345_spill] sm:$0xff] %v8913_v20  ;;  %11756 = vst [vmem:[#allocation346_spill] sm:$0xff] %v8917_v49  ;;  %v11759_v20 = vmax.f32 %v8742_v43, 0.0  ;;  %v2885_v49 = vmax.f32 %v2853_v27, 0.0  ;;  %v8942_v43 = vadd.f32 %v11766_v13, %v8730_v28  ;;  %v2886_v27 = vmax.f32 %v8766_v63, 0.0  ;;  %3016 = vmatpush1.msra.mxu1 %v2890_v30  ;;  %v11775_v28 = vld [vmem:[#allocation73_spill] sm:$0xff]  ;;  %v1958_v30 = vpop.f32.mrf.mxu1 }
 0x28e   : > { %11763 = vst [vmem:[#allocation52_spill] sm:$0xff] %v8934_v42  ;;  %11765 = vst [vmem:[#allocation55_spill] sm:$0xff] %v8938_v41  ;;  %v8955_v38 = vadd.f32 %v11772_v35, %v8690_v37  ;;  %v11774_v41 = vld [vmem:[#allocation91_spill] sm:$0xff]  ;;  %v11777_v63 = vld [vmem:[#allocation96_spill] sm:$0xff]  ;;  %3017 = vmatprep.subr.mxu1 %v2887_v50  ;;  %v11789_v30 = vmov 0.0  }
 0x28f   : > { %2943 = vmatpush1.msra.mxu0 %v11759_v20  ;;  %11767 = vst [vmem:[#allocation128_spill] sm:$0xff] %v8942_v43  ;;  %v11768_v20 = vld [vmem:[#allocation56_spill] sm:$0xff]  ;;  %v8959_v43 = vadd.f32 %v11775_v28, %v11774_v41  ;;  %11779 = vst [vmem:[#allocation349_spill] sm:$0xff] %v8967_v54  ;;  %v11782_v37 = vld [vmem:[#allocation82_spill] sm:$0xff]  ;;  %v1856_v41 = vpop.f32.mrf.mxu0  ;;  %3018 = vmatpush1.msra.mxu1 %v2886_v27 }
 0x290   : > { %2944 = vmatprep.subr.mxu0 %v2889_v58  ;;  %v8947_v7 = vadd.f32 %v11768_v20, %v8747_v26  ;;  %v11770_v58 = vld [vmem:[#allocation122_spill] sm:$0xff]  ;;  %11773 = vst [vmem:[#allocation124_spill] sm:$0xff] %v8955_v38  ;;  %v8975_v38 = vadd.f32 %v11598_v36, %v11782_v37  ;;  %v8984_v50 = vld [vmem:[%s10723_s4] sm:$0xf] }
 0x291   : > { %2945 = vmatpush1.msra.mxu0 %v2888_v29  ;;  %v8951_v14 = vadd.f32 %v11770_v58, %v8684_v60  ;;  %11776 = vst [vmem:[#allocation91_spill] sm:$0xff] %v8959_v43  ;;  %v8963_v29 = vadd.f32 %v11775_v28, %v11777_v63  ;;  %v11780_v60 = vld [vmem:[#allocation76_spill] sm:$0xff]  ;;  %v8979_v63 = vadd.f32 %v8751_v57, %v8660_v15  ;;  %11785 = vst [vmem:[#allocation351_spill] sm:$0xff] %v8984_v50  ;;  %v1857_v27 = vpop.f32.mrf.mxu0  ;;  %v11795_v15 = vld [vmem:[#allocation70_spill] sm:$0xff] }
 0x292   : > { %11769 = vst [vmem:[#allocation56_spill] sm:$0xff] %v8947_v7  ;;  %2946 = vmatprep.subr.mxu0 %v2885_v49  ;;  %v8971_v26 = vadd.f32 %v11581_v44, %v11780_v60  ;;  %11783 = vst [vmem:[#allocation82_spill] sm:$0xff] %v8975_v38  ;;  %v1959_v49 = vpop.f32.mrf.mxu1  ;;  %6095 = vmatmul.mubr.msk.f32.vlgmr.msra.gmra.mxu1 %vm2294_vm1, %v8984_v50  ;;  %v8992_v37 = vadd.f32 %v8959_v43, %v8614_v11 }
 0x293   : > { %11771 = vst [vmem:[#allocation122_spill] sm:$0xff] %v8951_v14  ;;  %11778 = vst [vmem:[#allocation96_spill] sm:$0xff] %v8963_v29  ;;  %2947 = vmatpush1.msra.mxu0 %v2884_v2  ;;  %v8996_v60 = vadd.f32 %v8963_v29, %v8620_v39  ;;  %v9000_v2 = vadd.f32 %v8719_v18, %v11715_v22  ;;  %3257 = vmatprep.mubr.f32.mxu1 %v11789_v30  ;;  %v11793_v22 = vld [vmem:[#allocation69_spill] sm:$0xff]  ;;  %v1858_v11 = vpop.f32.mrf.mxu0 }
 0x294   : > { %11781 = vst [vmem:[#allocation76_spill] sm:$0xff] %v8971_v26  ;;  %11784 = vst [vmem:[#allocation350_spill] sm:$0xff] %v8979_v63  ;;  %6094 = vmatmul.mubr.msk.f32.vlgmr.msra.gmra.mxu0 %vm2294_vm1, %v8984_v50  ;;  %v9006_v41 = vadd.f32 %v8975_v38, %v11717_v19  ;;  %v9010_v49 = vadd.f32 %v8706_v59, %v11719_v12  ;;  %v9014_v44 = vadd.f32 %v8971_v26, %v11733_v52  ;;  %v1960_v39 = vpop.f32.mrf.mxu1  ;;  %v11856_v50 = vld [vmem:[#allocation118_spill] sm:$0xff] }
 0x295   : > { %11786 = vst [vmem:[#allocation352_spill] sm:$0xff] %v8992_v37  ;;  %11787 = vst [vmem:[#allocation353_spill] sm:$0xff] %v8996_v60  ;;  %3186 = vmatprep.mubr.f32.mxu0 %v11789_v30  ;;  %v9018_v27 = vadd.f32 %v11793_v22, %v11737_v62  ;;  %v9022_v10 = vadd.f32 %v11795_v15, %v11739_v55 }
 0x296   : > { %11788 = vst [vmem:[#allocation354_spill] sm:$0xff] %v9000_v2  ;;  %11790 = vst [vmem:[#allocation355_spill] sm:$0xff] %v9006_v41  ;;  %v1961_v19 = vpop.f32.mrf.mxu1  ;;  %v1861_v41 = vpop.f32.mrf.mxu0 }
 0x297   : > { %11791 = vst [vmem:[#allocation356_spill] sm:$0xff] %v9010_v49  ;;  %11792 = vst [vmem:[#allocation357_spill] sm:$0xff] %v9014_v44 }
 0x298   : > { %11794 = vst [vmem:[#allocation358_spill] sm:$0xff] %v9018_v27  ;;  %11796 = vst [vmem:[#allocation359_spill] sm:$0xff] %v9022_v10  ;;  %v1964_v2 = vpop.f32.mrf.mxu1  ;;  %v1862_v60 = vpop.f32.mrf.mxu0  ;;  %v11812_v10 = vld [vmem:[#allocation23_spill] sm:$0xff] }
 0x29a   : > { %v1965_v12 = vpop.f32.mrf.mxu1  ;;  %v1863_v49 = vpop.f32.mrf.mxu0 }
 0x29c   : > { %v1966_v37 = vpop.f32.mrf.mxu1  ;;  %v1864_v63 = vpop.f32.mrf.mxu0 }
 0x29e   : > { %v1967_v52 = vpop.f32.mrf.mxu1  ;;  %v1867_v44 = vpop.f32.mrf.mxu0 }
 0x2a0   : > { %v1970_v39 = vpop.f32.mrf.mxu1  ;;  %v1868_v54 = vpop.f32.mrf.mxu0 }
 0x2a2   : > { %v1971_v14 = vpop.f32.mrf.mxu1  ;;  %v1869_v62 = vpop.f32.mrf.mxu0 }
 0x2a4   : > { %v1972_v27 = vpop.f32.mrf.mxu1  ;;  %v1870_v11 = vpop.f32.mrf.mxu0 }
 0x2a5   : > { %v11810_v27 = vld [vmem:[#allocation22_spill] sm:$0xff] }
 0x2a6   : > { %v1973_v7 = vpop.f32.mrf.mxu1  ;;  %v9024_v42 = vpop.f32.mrf.mxu0 }
 0x2a7   : > { %11797 = vst [vmem:[#allocation360_spill] sm:$0xff] %v9024_v42  ;;  %v11866_v42 = vld [vmem:[#allocation111_spill] sm:$0xff] }
 0x2a8   : > { %v9026_v55 = vpop.f32.mrf.mxu1  ;;  %v9028_v19 = vpop.f32.mrf.mxu0 }
 0x2a9   : > { %11798 = vst [vmem:[#allocation361_spill] sm:$0xff] %v9026_v55  ;;  %11799 = vst [vmem:[#allocation362_spill] sm:$0xff] %v9028_v19 }
 0x2aa   : > { %v9030_v60 = vpop.f32.mrf.mxu1  ;;  %v9032_v12 = vpop.f32.mrf.mxu0 }
 0x2ab   : > { %11800 = vst [vmem:[#allocation363_spill] sm:$0xff] %v9030_v60  ;;  %11801 = vst [vmem:[#allocation364_spill] sm:$0xff] %v9032_v12 }
 0x2ac   : > { %v9034_v63 = vpop.f32.mrf.mxu1  ;;  %v9036_v44 = vpop.f32.mrf.mxu0 }
 0x2ad   : > { %11802 = vst [vmem:[#allocation365_spill] sm:$0xff] %v9034_v63  ;;  %11803 = vst [vmem:[#allocation366_spill] sm:$0xff] %v9036_v44 }
 0x2ae   : > { %v9038_v52 = vpop.f32.mrf.mxu1  ;;  %v9040_v62 = vpop.f32.mrf.mxu0 }
 0x2af   : > { %11804 = vst [vmem:[#allocation367_spill] sm:$0xff] %v9038_v52  ;;  %11805 = vst [vmem:[#allocation368_spill] sm:$0xff] %v9040_v62 }
 0x2b0   : > { %v9042_v14 = vpop.f32.mrf.mxu1  ;;  %v9044_v7 = vpop.f32.mrf.mxu0 }
 0x2b1   : > { %11806 = vst [vmem:[#allocation369_spill] sm:$0xff] %v9042_v14  ;;  %v9050_v37 = vadd.f32 %v11747_v47, %v9044_v7 }
 0x2b2   : > { %v9046_v54 = vpop.f32.mrf.mxu1  ;;  %v9052_v2 = vpop.f32.mrf.mxu0 }
 0x2b3   : > { %11807 = vst [vmem:[#allocation370_spill] sm:$0xff] %v9046_v54  ;;  %11808 = vst [vmem:[#allocation371_spill] sm:$0xff] %v9050_v37  ;;  %v9056_v41 = vadd.f32 %v11751_v24, %v9046_v54  ;;  %v9062_v39 = vadd.f32 %v11810_v27, %v9052_v2  ;;  %v11816_v37 = vld [vmem:[#allocation26_spill] sm:$0xff] }
 0x2b4   : > { %v9058_v49 = vpop.f32.mrf.mxu1  ;;  %v9064_v11 = vpop.f32.mrf.mxu0 }
 0x2b5   : > { %11809 = vst [vmem:[#allocation372_spill] sm:$0xff] %v9056_v41  ;;  %11811 = vst [vmem:[#allocation22_spill] sm:$0xff] %v9062_v39  ;;  %v9068_v15 = vadd.f32 %v11812_v10, %v9058_v49  ;;  %v9074_v26 = vadd.f32 %v11743_v32, %v9064_v11 }
 0x2b6   : > { %v9070_v22 = vpop.f32.mrf.mxu1  ;;  %v9076_v59 = vpop.f32.mrf.mxu0 }
 0x2b7   : > { %11813 = vst [vmem:[#allocation23_spill] sm:$0xff] %v9068_v15  ;;  %11814 = vst [vmem:[#allocation373_spill] sm:$0xff] %v9074_v26  ;;  %v9080_v41 = vadd.f32 %v11745_v48, %v9070_v22  ;;  %v9086_v39 = vadd.f32 %v11816_v37, %v9076_v59  ;;  %v11818_v15 = vld [vmem:[#allocation27_spill] sm:$0xff] }
 0x2b8   : > { %v9082_v27 = vpop.f32.mrf.mxu1  ;;  %v9088_v10 = vpop.f32.mrf.mxu0 }
 0x2b9   : > { %11815 = vst [vmem:[#allocation374_spill] sm:$0xff] %v9080_v41  ;;  %11817 = vst [vmem:[#allocation26_spill] sm:$0xff] %v9086_v39  ;;  %v9092_v53 = vadd.f32 %v11818_v15, %v9082_v27  ;;  %v9098_v26 = vadd.f32 %v11735_v4, %v9088_v10  ;;  %v11822_v39 = vld [vmem:[#allocation30_spill] sm:$0xff] }
 0x2ba   : > { %v9094_v31 = vpop.f32.mrf.mxu1  ;;  %v9100_v6 = vpop.f32.mrf.mxu0 }
 0x2bb   : > { %11819 = vst [vmem:[#allocation27_spill] sm:$0xff] %v9092_v53  ;;  %11820 = vst [vmem:[#allocation375_spill] sm:$0xff] %v9098_v26  ;;  %v9104_v41 = vadd.f32 %v11741_v23, %v9094_v31  ;;  %v9110_v21 = vadd.f32 %v11822_v39, %v9100_v6  ;;  %v11824_v53 = vld [vmem:[#allocation31_spill] sm:$0xff]  ;;  %v9122_v26 = vadd.f32 %v11738_v1, %v9028_v19  ;;  %v11832_v19 = vld [vmem:[#allocation94_spill] sm:$0xff] }
 0x2bc   : > { %v9106_v37 = vpop.f32.mrf.mxu1  ;;  %v9112_v15 = vpop.f32.mrf.mxu0  ;;  %v9132_v39 = vadd.f32 %v11720_v8, %v9036_v44  ;;  %v9154_v8 = vadd.f32 %v11379_v3, %v9042_v14  ;;  %v9176_v3 = vadd.f32 %v11718_v56, %v9046_v54  ;;  %v9186_v14 = vadd.f32 %v7356_v45, %v9064_v11  ;;  %v11845_v45 = vld [vmem:[#allocation105_spill] sm:$0xff] }
 0x2bd   : > { %11821 = vst [vmem:[#allocation376_spill] sm:$0xff] %v9104_v41  ;;  %11823 = vst [vmem:[#allocation30_spill] sm:$0xff] %v9110_v21  ;;  %v9116_v61 = vadd.f32 %v11824_v53, %v9106_v37  ;;  %v9126_v41 = vadd.f32 %v11729_v25, %v9112_v15  ;;  %v9136_v53 = vadd.f32 %v11521_v17, %v9032_v12  ;;  %v11838_v12 = vld [vmem:[#allocation99_spill] sm:$0xff]  ;;  %v11872_v54 = vld [vmem:[#allocation57_spill] sm:$0xff] }
 0x2be   : > { %v9118_v24 = vpop.f32.mrf.mxu1  ;;  %11826 = vst [vmem:[#allocation377_spill] sm:$0xff] %v9122_v26  ;;  %v9128_v36 = vpop.f32.mrf.mxu0  ;;  %11828 = vst [vmem:[#allocation379_spill] sm:$0xff] %v9132_v39  ;;  %v9150_v21 = vadd.f32 %v11832_v19, %v9040_v62  ;;  %v9158_v17 = vadd.f32 %v11734_v5, %v9038_v52  ;;  %v9168_v44 = vadd.f32 %v11838_v12, %v9052_v2  ;;  %v11840_v5 = vld [vmem:[#allocation35_spill] sm:$0xff] }
 0x2bf   : > { %11825 = vst [vmem:[#allocation31_spill] sm:$0xff] %v9116_v61  ;;  %11827 = vst [vmem:[#allocation378_spill] sm:$0xff] %v9126_v41  ;;  %v9140_v61 = vadd.f32 %v11526_v33, %v9034_v63  ;;  %v9144_v1 = vadd.f32 %v11731_v9, %v9118_v24  ;;  %v11836_v33 = vld [vmem:[#allocation34_spill] sm:$0xff]  ;;  %v9172_v19 = vadd.f32 %v11716_v40, %v9044_v7  ;;  %v11842_v40 = vld [vmem:[#allocation100_spill] sm:$0xff] }
 0x2c0   : > { %11829 = vst [vmem:[#allocation380_spill] sm:$0xff] %v9136_v53  ;;  %v9146_v25 = vpop.f32.mrf.mxu1  ;;  %11833 = vst [vmem:[#allocation94_spill] sm:$0xff] %v9150_v21  ;;  %v9162_v63 = vadd.f32 %v11836_v33, %v9128_v36  ;;  %v9164_v9 = vpop.f32.mrf.mxu0  ;;  %v9190_v12 = vadd.f32 %v11374_v16, %v9070_v22  ;;  %v9194_v62 = vadd.f32 %v11842_v40, %v9058_v49  ;;  %v11846_v16 = vld [vmem:[#allocation106_spill] sm:$0xff]  ;;  %v11847_v40 = vld [vmem:[#allocation37_spill] sm:$0xff] }
 0x2c1   : > { %11830 = vst [vmem:[#allocation381_spill] sm:$0xff] %v9140_v61  ;;  %11831 = vst [vmem:[#allocation382_spill] sm:$0xff] %v9144_v1  ;;  %v9180_v52 = vadd.f32 %v11840_v5, %v9146_v25  ;;  %v9198_v56 = vadd.f32 %v11725_v46, %v9164_v9  ;;  %v11844_v1 = vld [vmem:[#allocation110_spill] sm:$0xff]  ;;  %v11857_v26 = vld [vmem:[#allocation39_spill] sm:$0xff]  ;;  %v3082_v60 = vadd.f32 %v11866_v42, %v9128_v36 }
 0x2c2   : > { %11834 = vst [vmem:[#allocation383_spill] sm:$0xff] %v9154_v8  ;;  %11835 = vst [vmem:[#allocation384_spill] sm:$0xff] %v9158_v17  ;;  %v9182_v33 = vpop.f32.mrf.mxu1  ;;  %v9200_v5 = vpop.f32.mrf.mxu0  ;;  %v9204_v41 = vadd.f32 %v11844_v1, %v9088_v10  ;;  %v11850_v1 = vld [vmem:[#allocation121_spill] sm:$0xff]  ;;  %v11860_v53 = vld [vmem:[#allocation108_spill] sm:$0xff] }
 0x2c3   : > { %11837 = vst [vmem:[#allocation34_spill] sm:$0xff] %v9162_v63  ;;  %11839 = vst [vmem:[#allocation99_spill] sm:$0xff] %v9176_v3  ;;  %v9212_v63 = vadd.f32 %v11846_v16, %v9082_v27  ;;  %v9216_v30 = vadd.f32 %v11847_v40, %v9182_v33  ;;  %v9226_v47 = vadd.f32 %v11850_v1, %v9106_v37  ;;  %v11852_v16 = vld [vmem:[#allocation38_spill] sm:$0xff] }
 0x2c4   : > { %11841 = vst [vmem:[#allocation35_spill] sm:$0xff] %v9180_v52  ;;  %11843 = vst [vmem:[#allocation100_spill] sm:$0xff] %v9198_v56  ;;  %v9208_v52 = vadd.f32 %v11845_v45, %v9076_v59  ;;  %v9218_v46 = vpop.f32.mrf.mxu1  ;;  %v11849_v56 = vld [vmem:[#allocation117_spill] sm:$0xff]  ;;  %v11851_v45 = vld [vmem:[#allocation120_spill] sm:$0xff]  ;;  %v9234_v32 = vadd.f32 %v11852_v16, %v9200_v5  ;;  %v9236_v40 = vpop.f32.mrf.mxu0  ;;  %v3081_v1 = vadd.f32 %v11856_v50, %v9118_v24 }
 0x2c5   : > { %11848 = vst [vmem:[#allocation110_spill] sm:$0xff] %v9216_v30  ;;  %v9222_v28 = vadd.f32 %v11849_v56, %v9100_v6  ;;  %v9230_v48 = vadd.f32 %v11851_v45, %v9094_v31  ;;  %v11854_v30 = vld [vmem:[#allocation103_spill] sm:$0xff]  ;;  %v11855_v56 = vld [vmem:[#allocation114_spill] sm:$0xff]  ;;  %v9246_v61 = vadd.f32 %v11857_v26, %v9218_v46  ;;  %v3088_v17 = vadd.f32 %v11860_v53, %v9218_v46  ;;  %v11864_v50 = vld [vmem:[#allocation60_spill] sm:$0xff] }
 0x2c6   : > { %11853 = vst [vmem:[#allocation105_spill] sm:$0xff] %v9234_v32  ;;  %v3086_v23 = vadd.f32 %v11854_v30, %v9200_v5  ;;  %v3079_v4 = vadd.f32 %v11855_v56, %v9112_v15  ;;  %v9248_v45 = vpop.f32.mrf.mxu1  ;;  %v11859_v16 = vld [vmem:[#allocation59_spill] sm:$0xff]  ;;  %v11862_v56 = vld [vmem:[#allocation40_spill] sm:$0xff]  ;;  %v1913_v53 = vpop.f32.mrf.mxu0 }
 0x2c7   : > { %11858 = vst [vmem:[#allocation106_spill] sm:$0xff] %v9246_v61  ;;  %v3087_v32 = vadd.f32 %v11859_v16, %v9236_v40  ;;  %v11861_v30 = vld [vmem:[#allocation107_spill] sm:$0xff]  ;;  %v9258_v39 = vadd.f32 %v11862_v56, %v9236_v40  ;;  %v3089_v8 = vadd.f32 %v11864_v50, %v9248_v45  ;;  %v11865_v26 = vld [vmem:[#allocation112_spill] sm:$0xff]  ;;  %v11867_v16 = vld [vmem:[#allocation41_spill] sm:$0xff]  ;;  %v9274_v56 = vadd.f32 %v11762_v51, %v9236_v40 }
 0x2c8   : > { %v3083_v55 = vadd.f32 %v11861_v30, %v9164_v9  ;;  %v3085_v61 = vadd.f32 %v11865_v26, %v9182_v33  ;;  %v9268_v21 = vadd.f32 %v11867_v16, %v9248_v45  ;;  %v11869_v30 = vld [vmem:[#allocation115_spill] sm:$0xff]  ;;  %v9278_v50 = vadd.f32 %v11764_v34, %v9248_v45  ;;  %v2016_v26 = vpop.f32.mrf.mxu1 }
 0x2c9   : > { %11863 = vst [vmem:[#allocation37_spill] sm:$0xff] %v9258_v39  ;;  %v3119_v3 = vmax.f32 %v3087_v32, 0.0  ;;  %v3084_v38 = vadd.f32 %v11869_v30, %v9146_v25  ;;  %11870 = vst [vmem:[#allocation121_spill] sm:$0xff] %v9274_v56  ;;  %v3121_v39 = vmax.f32 %v3089_v8, 0.0  ;;  %v3118_v42 = vmax.f32 %v3086_v23, 0.0  ;;  %v11874_v32 = vld [vmem:[#allocation54_spill] sm:$0xff]  ;;  %v1914_v30 = vpop.f32.mrf.mxu0 }
 0x2ca   : > { %11868 = vst [vmem:[#allocation117_spill] sm:$0xff] %v9268_v21  ;;  %11871 = vst [vmem:[#allocation120_spill] sm:$0xff] %v9278_v50  ;;  %v9282_v16 = vadd.f32 %v11872_v54, %v9200_v5  ;;  %v9286_v53 = vadd.f32 %v11874_v32, %v9218_v46  ;;  %v3120_v21 = vmax.f32 %v3088_v17, 0.0  ;;  %v3115_v51 = vmax.f32 %v3083_v55, 0.0  ;;  %v2017_v23 = vpop.f32.mrf.mxu1  ;;  %v11878_v26 = vld [vmem:[#allocation125_spill] sm:$0xff]  ;;  %v11880_v17 = vld [vmem:[#allocation126_spill] sm:$0xff] }
 0x2cb   : > { %3138 = vmatprep.subr.mxu0 %v3119_v3  ;;  %v9290_v56 = vadd.f32 %v11766_v13, %v9164_v9  ;;  %v9294_v34 = vadd.f32 %v11768_v20, %v9182_v33  ;;  %3209 = vmatprep.subr.mxu1 %v3121_v39  ;;  %v3117_v54 = vmax.f32 %v3085_v61, 0.0  ;;  %v3114_v8 = vmax.f32 %v3082_v60, 0.0  ;;  %v1915_v3 = vpop.f32.mrf.mxu0  ;;  %v11884_v23 = vld [vmem:[#allocation116_spill] sm:$0xff] }
 0x2cc   : > { %11873 = vst [vmem:[#allocation38_spill] sm:$0xff] %v9282_v16  ;;  %11875 = vst [vmem:[#allocation103_spill] sm:$0xff] %v9286_v53  ;;  %3139 = vmatpush1.msra.mxu0 %v3118_v42  ;;  %v9298_v32 = vadd.f32 %v11878_v26, %v9128_v36  ;;  %v9302_v55 = vadd.f32 %v11880_v17, %v9146_v25  ;;  %3210 = vmatpush1.msra.mxu1 %v3120_v21  ;;  %v3116_v13 = vmax.f32 %v3084_v38, 0.0  ;;  %v2018_v60 = vpop.f32.mrf.mxu1  ;;  %v11886_v38 = vld [vmem:[#allocation119_spill] sm:$0xff]  ;;  %v11890_v17 = vld [vmem:[#allocation101_spill] sm:$0xff] }
 0x2cd   : > { %11876 = vst [vmem:[#allocation114_spill] sm:$0xff] %v9290_v56  ;;  %11877 = vst [vmem:[#allocation118_spill] sm:$0xff] %v9294_v34  ;;  %3140 = vmatprep.subr.mxu0 %v3115_v51  ;;  %v3111_v30 = vmax.f32 %v3079_v4, 0.0  ;;  %v9306_v20 = vadd.f32 %v11770_v58, %v9112_v15  ;;  %v9310_v61 = vadd.f32 %v11772_v35, %v9118_v24  ;;  %3211 = vmatprep.subr.mxu1 %v3117_v54  ;;  %v1916_v58 = vpop.f32.mrf.mxu0  ;;  %v11982_v50 = vld [vmem:[#allocation20_spill] sm:$0xff] }
 0x2ce   : > { %11879 = vst [vmem:[#allocation39_spill] sm:$0xff] %v9298_v32  ;;  %11881 = vst [vmem:[#allocation59_spill] sm:$0xff] %v9302_v55  ;;  %3141 = vmatpush1.msra.mxu0 %v3114_v8  ;;  %v3113_v39 = vmax.f32 %v3081_v1, 0.0  ;;  %v3110_v42 = vmax.f32 %v9222_v28, 0.0  ;;  %v9315_v21 = vadd.f32 %v11884_v23, %v9100_v6  ;;  %v9319_v4 = vadd.f32 %v11886_v38, %v9106_v37  ;;  %v2019_v54 = vpop.f32.mrf.mxu1  ;;  %v11955_v32 = vld [vmem:[#allocation145_spill] sm:$0xff] }
 0x2cf   : > { %11882 = vst [vmem:[#allocation108_spill] sm:$0xff] %v9306_v20  ;;  %11883 = vst [vmem:[#allocation107_spill] sm:$0xff] %v9310_v61  ;;  %3212 = vmatpush1.msra.mxu1 %v3116_v13  ;;  %3142 = vmatprep.subr.mxu0 %v3111_v30  ;;  %v3112_v35 = vmax.f32 %v9226_v47, 0.0  ;;  %v3107_v51 = vmax.f32 %v9204_v41, 0.0  ;;  %v9325_v1 = vadd.f32 %v8734_v0, %v9088_v10  ;;  %v3109_v8 = vmax.f32 %v9230_v48, 0.0  ;;  %v11892_v41 = vld [vmem:[#allocation104_spill] sm:$0xff] }
 0x2d0   : > { %11885 = vst [vmem:[#allocation40_spill] sm:$0xff] %v9315_v21  ;;  %11887 = vst [vmem:[#allocation60_spill] sm:$0xff] %v9319_v4  ;;  %v9329_v28 = vadd.f32 %v8751_v57, %v9094_v31  ;;  %3213 = vmatprep.subr.mxu1 %v3113_v39  ;;  %3143 = vmatpush1.msra.mxu0 %v3110_v42  ;;  %v3106_v26 = vmax.f32 %v9208_v52, 0.0  ;;  %v9335_v47 = vadd.f32 %v11890_v17, %v9076_v59  ;;  %v11896_v42 = vld [vmem:[#allocation83_spill] sm:$0xff]  ;;  %v11942_v21 = vld [vmem:[#allocation149_spill] sm:$0xff] }
 0x2d1   : > { %11888 = vst [vmem:[#allocation112_spill] sm:$0xff] %v9325_v1  ;;  %v9339_v3 = vadd.f32 %v11892_v41, %v9082_v27  ;;  %3214 = vmatpush1.msra.mxu1 %v3112_v35  ;;  %3144 = vmatprep.subr.mxu0 %v3107_v51  ;;  %v3108_v13 = vmax.f32 %v9212_v63, 0.0  ;;  %v3103_v30 = vmax.f32 %v9186_v14, 0.0  ;;  %v9345_v60 = vadd.f32 %v8959_v43, %v9064_v11  ;;  %v11898_v63 = vld [vmem:[#allocation86_spill] sm:$0xff]  ;;  %v11904_v54 = vld [vmem:[#allocation99_spill] sm:$0xff]  ;;  %v11944_v20 = vld [vmem:[#allocation180_spill] sm:$0xff] }
 0x2d2   : > { %11889 = vst [vmem:[#allocation111_spill] sm:$0xff] %v9329_v28  ;;  %11891 = vst [vmem:[#allocation41_spill] sm:$0xff] %v9335_v47  ;;  %v9349_v48 = vadd.f32 %v8963_v29, %v9070_v22  ;;  %3215 = vmatprep.subr.mxu1 %v3109_v8  ;;  %3145 = vmatpush1.msra.mxu0 %v3106_v26  ;;  %v3105_v52 = vmax.f32 %v9190_v12, 0.0  ;;  %v3102_v39 = vmax.f32 %v9168_v44, 0.0  ;;  %v3104_v38 = vmax.f32 %v9194_v62, 0.0  ;;  %v11901_v12 = vld [vmem:[#allocation370_spill] sm:$0xff] }
 0x2d3   : > { %11893 = vst [vmem:[#allocation115_spill] sm:$0xff] %v9339_v3  ;;  %11894 = vst [vmem:[#allocation57_spill] sm:$0xff] %v9345_v60  ;;  %v9355_v23 = vadd.f32 %v11896_v42, %v9052_v2  ;;  %v9359_v14 = vadd.f32 %v11898_v63, %v9058_v49  ;;  %3216 = vmatpush1.msra.mxu1 %v3108_v13  ;;  %3146 = vmatprep.subr.mxu0 %v3103_v30  ;;  %v3099_v58 = vmax.f32 %v9172_v19, 0.0  ;;  %v11902_v44 = vld [vmem:[#allocation82_spill] sm:$0xff]  ;;  %v11906_v41 = vld [vmem:[#allocation363_spill] sm:$0xff] }
 0x2d4   : > { %11895 = vst [vmem:[#allocation54_spill] sm:$0xff] %v9349_v48  ;;  %v9365_v35 = vadd.f32 %v8719_v18, %v9044_v7  ;;  %v9369_v51 = vadd.f32 %v11902_v44, %v11901_v12  ;;  %3217 = vmatprep.subr.mxu1 %v3105_v52  ;;  %3147 = vmatpush1.msra.mxu0 %v3102_v39  ;;  %v3101_v8 = vmax.f32 %v11904_v54, 0.0  ;;  %v11905_v26 = vld [vmem:[#allocation94_spill] sm:$0xff]  ;;  %v11907_v13 = vld [vmem:[#allocation88_spill] sm:$0xff]  ;;  %v11910_v63 = vld [vmem:[#allocation383_spill] sm:$0xff]  ;;  %v3318_v34 = vmax.f32 %v11955_v32, 0.0 }
 0x2d5   : > { %11897 = vst [vmem:[#allocation125_spill] sm:$0xff] %v9355_v23  ;;  %11899 = vst [vmem:[#allocation126_spill] sm:$0xff] %v9359_v14  ;;  %v3098_v17 = vmax.f32 %v11905_v26, 0.0  ;;  %v3061_v30 = vadd.f32 %v11907_v13, %v11906_v41  ;;  %v11908_v62 = vld [vmem:[#allocation360_spill] sm:$0xff]  ;;  %3218 = vmatpush1.msra.mxu1 %v3104_v38  ;;  %3148 = vmatprep.subr.mxu0 %v3099_v58  ;;  %v11911_v14 = vld [vmem:[#allocation379_spill] sm:$0xff] }
 0x2d6   : > { %11900 = vst [vmem:[#allocation116_spill] sm:$0xff] %v9365_v35  ;;  %11903 = vst [vmem:[#allocation119_spill] sm:$0xff] %v9369_v51  ;;  %v11909_v42 = vld [vmem:[#allocation84_spill] sm:$0xff]  ;;  %v3100_v35 = vmax.f32 %v11910_v63, 0.0  ;;  %v3095_v23 = vmax.f32 %v11911_v14, 0.0  ;;  %v11912_v48 = vld [vmem:[#allocation361_spill] sm:$0xff]  ;;  %3219 = vmatprep.subr.mxu1 %v3101_v8 }
 0x2d7   : > { %v3058_v19 = vadd.f32 %v11909_v42, %v11908_v62  ;;  %v11913_v51 = vld [vmem:[#allocation85_spill] sm:$0xff]  ;;  %3149 = vmatpush1.msra.mxu0 %v3098_v17  ;;  %v11914_v39 = vld [vmem:[#allocation384_spill] sm:$0xff]  ;;  %v3093_v58 = vmax.f32 %v3061_v30, 0.0  ;;  %v11918_v14 = vld [vmem:[#allocation42_spill] sm:$0xff] }
 0x2d8   : > { %v3060_v52 = vadd.f32 %v11913_v51, %v11912_v48  ;;  %v3097_v54 = vmax.f32 %v11914_v39, 0.0  ;;  %v11915_v26 = vld [vmem:[#allocation380_spill] sm:$0xff]  ;;  %3220 = vmatpush1.msra.mxu1 %v3100_v35  ;;  %3150 = vmatprep.subr.mxu0 %v3095_v23  ;;  %v11916_v13 = vld [vmem:[#allocation381_spill] sm:$0xff]  ;;  %v11922_v23 = vld [vmem:[#allocation154_spill] sm:$0xff] }
 0x2d9   : > { %v3094_v60 = vmax.f32 %v11915_v26, 0.0  ;;  %v3096_v3 = vmax.f32 %v11916_v13, 0.0  ;;  %v11917_v42 = vld [vmem:[#allocation377_spill] sm:$0xff]  ;;  %v3090_v63 = vmax.f32 %v3058_v19, 0.0  ;;  %v11920_v8 = vld [vmem:[#allocation48_spill] sm:$0xff]  ;;  %v11921_v26 = vld [vmem:[#allocation46_spill] sm:$0xff] }
 0x2da   : > { %v3091_v38 = vmax.f32 %v11917_v42, 0.0  ;;  %3221 = vmatprep.subr.mxu1 %v3097_v54  ;;  %v11919_v28 = vld [vmem:[#allocation53_spill] sm:$0xff]  ;;  %v3092_v39 = vmax.f32 %v3060_v52, 0.0  ;;  %v3325_v13 = vmax.f32 %v11922_v23, 0.0  ;;  %v11923_v54 = vld [vmem:[#allocation190_spill] sm:$0xff]  ;;  %v11925_v30 = vld [vmem:[#allocation191_spill] sm:$0xff] }
 0x2db   : > { %3151 = vmatpush1.msra.mxu0 %v3094_v60  ;;  %3222 = vmatpush1.msra.mxu1 %v3096_v3  ;;  %v9392_v60 = vadd.f32 %v11923_v54, %v9200_v5  ;;  %v9396_v19 = vadd.f32 %v11925_v30, %v9218_v46  ;;  %v11927_v42 = vld [vmem:[#allocation47_spill] sm:$0xff]  ;;  %v11928_v47 = vld [vmem:[#allocation152_spill] sm:$0xff]  ;;  %v11934_v17 = vld [vmem:[#allocation150_spill] sm:$0xff] }
 0x2dc   : > { %3152 = vmatprep.subr.mxu0 %v3091_v38  ;;  %3223 = vmatprep.subr.mxu1 %v3093_v58  ;;  %v3324_v3 = vmax.f32 %v11928_v47, 0.0  ;;  %v11929_v52 = vld [vmem:[#allocation351_spill] sm:$0xff]  ;;  %v11933_v54 = vld [vmem:[#allocation16_spill] sm:$0xff]  ;;  %v11935_v30 = vld [vmem:[#allocation153_spill] sm:$0xff] }
 0x2dd   : > { %3153 = vmatpush1.msra.mxu0 %v3090_v63  ;;  %11924 = vst [vmem:[#allocation101_spill] sm:$0xff] %v9392_v60  ;;  %11926 = vst [vmem:[#allocation104_spill] sm:$0xff] %v9396_v19  ;;  %3224 = vmatpush1.msra.mxu1 %v3092_v39  ;;  %v11930_v38 = vld [vmem:[#allocation155_spill] sm:$0xff]  ;;  %v11931_v63 = vld [vmem:[#allocation185_spill] sm:$0xff]  ;;  %v3321_v60 = vmax.f32 %v11934_v17, 0.0  ;;  %v3326_v19 = vmax.f32 %v11935_v30, 0.0 }
 0x2de   : > { %6096 = vmatmul.mubr.msk.f32.vlgmr.msra.gmra.mxu0 %vm2294_vm1, %v11929_v52  ;;  %v3327_v58 = vmax.f32 %v11930_v38, 0.0  ;;  %v9405_v23 = vadd.f32 %v11931_v63, %v9128_v36  ;;  %6097 = vmatmul.mubr.msk.f32.vlgmr.msra.gmra.mxu1 %vm2294_vm1, %v11929_v52  ;;  %v11936_v47 = vld [vmem:[#allocation187_spill] sm:$0xff]  ;;  %v11938_v51 = vld [vmem:[#allocation148_spill] sm:$0xff]  ;;  %v11940_v63 = vld [vmem:[#allocation18_spill] sm:$0xff]  ;;  %v3322_v30 = vmax.f32 %v11942_v21, 0.0 }
 0x2df   : > { %3344 = vmatprep.subr.mxu0 %v3325_v13  ;;  %v9414_v39 = vadd.f32 %v11936_v47, %v9146_v25  ;;  %v3320_v38 = vmax.f32 %v11938_v51, 0.0  ;;  %v11939_v1 = vld [vmem:[#allocation151_spill] sm:$0xff]  ;;  %v11943_v61 = vld [vmem:[#allocation146_spill] sm:$0xff]  ;;  %v9424_v47 = vadd.f32 %v11944_v20, %v9100_v6  ;;  %v11946_v51 = vld [vmem:[#allocation181_spill] sm:$0xff] }
 0x2e0   : > { %11932 = vst [vmem:[#allocation83_spill] sm:$0xff] %v9405_v23  ;;  %v3323_v4 = vmax.f32 %v11939_v1, 0.0  ;;  %3415 = vmatprep.subr.mxu1 %v3327_v58  ;;  %3345 = vmatpush1.msra.mxu0 %v3324_v3  ;;  %v11941_v23 = vld [vmem:[#allocation129_spill] sm:$0xff]  ;;  %v3317_v13 = vmax.f32 %v11943_v61, 0.0  ;;  %v11948_v1 = vld [vmem:[#allocation130_spill] sm:$0xff]  ;;  %v11949_v58 = vld [vmem:[#allocation144_spill] sm:$0xff] }
 0x2e1   : > { %11937 = vst [vmem:[#allocation86_spill] sm:$0xff] %v9414_v39  ;;  %3416 = vmatpush1.msra.mxu1 %v3326_v19  ;;  %3346 = vmatprep.subr.mxu0 %v3321_v60  ;;  %11945 = vst [vmem:[#allocation370_spill] sm:$0xff] %v9424_v47  ;;  %v9428_v39 = vadd.f32 %v11946_v51, %v9106_v37  ;;  %v3304_v3 = vmax.f32 %v11948_v1, 0.0  ;;  %v3316_v35 = vmax.f32 %v11949_v58, 0.0  ;;  %v11950_v17 = vld [vmem:[#allocation147_spill] sm:$0xff]  ;;  %v11951_v60 = vld [vmem:[#allocation176_spill] sm:$0xff] }
 0x2e2   : > { %3417 = vmatprep.subr.mxu1 %v3323_v4  ;;  %3347 = vmatpush1.msra.mxu0 %v3320_v38  ;;  %v3319_v21 = vmax.f32 %v11950_v17, 0.0  ;;  %v9435_v19 = vadd.f32 %v11951_v60, %v9076_v59  ;;  %v11953_v61 = vld [vmem:[#allocation132_spill] sm:$0xff]  ;;  %v11954_v20 = vld [vmem:[#allocation142_spill] sm:$0xff]  ;;  %v11956_v51 = vld [vmem:[#allocation177_spill] sm:$0xff] }
 0x2e3   : > { %11947 = vst [vmem:[#allocation99_spill] sm:$0xff] %v9428_v39  ;;  %v3306_v55 = vmax.f32 %v11953_v61, 0.0  ;;  %v3313_v47 = vmax.f32 %v11954_v20, 0.0  ;;  %3418 = vmatpush1.msra.mxu1 %v3322_v30  ;;  %3348 = vmatprep.subr.mxu0 %v3317_v13  ;;  %v9442_v1 = vadd.f32 %v11956_v51, %v9082_v27  ;;  %v11958_v4 = vld [vmem:[#allocation133_spill] sm:$0xff]  ;;  %v11959_v58 = vld [vmem:[#allocation135_spill] sm:$0xff]  ;;  %v11960_v39 = vld [vmem:[#allocation140_spill] sm:$0xff] }
 0x2e4   : > { %11952 = vst [vmem:[#allocation94_spill] sm:$0xff] %v9435_v19  ;;  %v3305_v38 = vmax.f32 %v11958_v4, 0.0  ;;  %v3307_v17 = vmax.f32 %v11959_v58, 0.0  ;;  %v3312_v56 = vmax.f32 %v11960_v39, 0.0  ;;  %v11961_v60 = vld [vmem:[#allocation143_spill] sm:$0xff]  ;;  %3419 = vmatprep.subr.mxu1 %v3319_v21  ;;  %3349 = vmatpush1.msra.mxu0 %v3316_v35  ;;  %v11962_v61 = vld [vmem:[#allocation141_spill] sm:$0xff] }
 0x2e5   : > { %11957 = vst [vmem:[#allocation88_spill] sm:$0xff] %v9442_v1  ;;  %v3315_v19 = vmax.f32 %v11961_v60, 0.0  ;;  %v3314_v20 = vmax.f32 %v11962_v61, 0.0  ;;  %3420 = vmatpush1.msra.mxu1 %v3318_v34  ;;  %3350 = vmatprep.subr.mxu0 %v3313_v47  ;;  %v11963_v32 = vld [vmem:[#allocation138_spill] sm:$0xff]  ;;  %v11964_v13 = vld [vmem:[#allocation172_spill] sm:$0xff]  ;;  %v11966_v4 = vld [vmem:[#allocation173_spill] sm:$0xff] }
 0x2e6   : > { %v3309_v30 = vmax.f32 %v11963_v32, 0.0  ;;  %v9452_v51 = vadd.f32 %v11964_v13, %v9052_v2  ;;  %v9456_v1 = vadd.f32 %v11966_v4, %v9058_v49  ;;  %v11968_v58 = vld [vmem:[#allocation136_spill] sm:$0xff]  ;;  %3351 = vmatpush1.msra.mxu0 %v3312_v56  ;;  %v11969_v21 = vld [vmem:[#allocation139_spill] sm:$0xff]  ;;  %v11970_v60 = vld [vmem:[#allocation218_spill] sm:$0xff] }
 0x2e7   : > { %v3308_v39 = vmax.f32 %v11968_v58, 0.0  ;;  %3421 = vmatprep.subr.mxu1 %v3315_v19  ;;  %v3311_v35 = vmax.f32 %v11969_v21, 0.0  ;;  %v11971_v61 = vld [vmem:[#allocation28_spill] sm:$0xff]  ;;  %v11972_v47 = vld [vmem:[#allocation219_spill] sm:$0xff]  ;;  %v11973_v32 = vld [vmem:[#allocation29_spill] sm:$0xff] }
 0x2e8   : > { %11965 = vst [vmem:[#allocation84_spill] sm:$0xff] %v9452_v51  ;;  %11967 = vst [vmem:[#allocation383_spill] sm:$0xff] %v9456_v1  ;;  %v9462_v34 = vadd.f32 %v11971_v61, %v11970_v60  ;;  %v9466_v53 = vadd.f32 %v11973_v32, %v11972_v47  ;;  %v11974_v13 = vld [vmem:[#allocation137_spill] sm:$0xff]  ;;  %3422 = vmatpush1.msra.mxu1 %v3314_v20  ;;  %3352 = vmatprep.subr.mxu0 %v3309_v30  ;;  %v11975_v4 = vld [vmem:[#allocation212_spill] sm:$0xff] }
 0x2e9   : > { %v3310_v51 = vmax.f32 %v11974_v13, 0.0  ;;  %v11976_v1 = vld [vmem:[#allocation24_spill] sm:$0xff]  ;;  %v11978_v19 = vld [vmem:[#allocation213_spill] sm:$0xff]  ;;  %v11981_v21 = vld [vmem:[#allocation206_spill] sm:$0xff]  ;;  %3423 = vmatprep.subr.mxu1 %v3311_v35  ;;  %3353 = vmatpush1.msra.mxu0 %v3308_v39 }
 0x2ea   : > { %v9471_v16 = vadd.f32 %v11976_v1, %v11975_v4  ;;  %v11979_v56 = vld [vmem:[#allocation25_spill] sm:$0xff]  ;;  %v9479_v61 = vadd.f32 %v11982_v50, %v11981_v21  ;;  %v11985_v32 = vld [vmem:[#allocation254_spill] sm:$0xff]  ;;  %3354 = vmatprep.subr.mxu0 %v3305_v38  ;;  %v11999_v62 = vld [vmem:[#allocation271_spill] sm:$0xff] }
 0x2eb   : > { %v9475_v58 = vadd.f32 %v11979_v56, %v11978_v19  ;;  %v11986_v29 = vld [vmem:[#allocation73_spill] sm:$0xff]  ;;  %v11987_v20 = vld [vmem:[#allocation186_spill] sm:$0xff]  ;;  %v11990_v56 = vld [vmem:[#allocation220_spill] sm:$0xff]  ;;  %3424 = vmatpush1.msra.mxu1 %v3310_v51  ;;  %3355 = vmatpush1.msra.mxu0 %v3304_v3 }
 0x2ec   : > { %11977 = vst [vmem:[#allocation379_spill] sm:$0xff] %v9471_v16  ;;  %11983 = vst [vmem:[#allocation384_spill] sm:$0xff] %v9479_v61  ;;  %v9484_v43 = vadd.f32 %v11986_v29, %v11985_v32  ;;  %v9488_v30 = vadd.f32 %v11986_v29, %v11987_v20  ;;  %v11988_v1 = vld [vmem:[#allocation257_spill] sm:$0xff]  ;;  %v11989_v13 = vld [vmem:[#allocation66_spill] sm:$0xff]  ;;  %3425 = vmatprep.subr.mxu1 %v3307_v17 }
 0x2ed   : > { %11980 = vst [vmem:[#allocation85_spill] sm:$0xff] %v9475_v58  ;;  %v2165_v4 = vadd.f32 %v11989_v13, %v11988_v1  ;;  %v11991_v57 = vld [vmem:[#allocation258_spill] sm:$0xff]  ;;  %v11992_v18 = vld [vmem:[#allocation261_spill] sm:$0xff]  ;;  %v11994_v32 = vld [vmem:[#allocation263_spill] sm:$0xff]  ;;  %3426 = vmatpush1.msra.mxu1 %v3306_v55 }
 0x2ee   : > { %v9495_v50 = vadd.f32 %v11989_v13, %v11991_v57  ;;  %v11993_v21 = vld [vmem:[#allocation61_spill] sm:$0xff]  ;;  %v11995_v20 = vld [vmem:[#allocation222_spill] sm:$0xff]  ;;  %v11997_v1 = vld [vmem:[#allocation67_spill] sm:$0xff] }
 0x2ef   : > { %v2185_v47 = vadd.f32 %v11993_v21, %v11992_v18  ;;  %v2186_v0 = vadd.f32 %v11993_v21, %v11994_v32  ;;  %v11996_v48 = vld [vmem:[#allocation265_spill] sm:$0xff]  ;;  %v11998_v39 = vld [vmem:[#allocation266_spill] sm:$0xff]  ;;  %v12001_v61 = vld [vmem:[#allocation228_spill] sm:$0xff] }
 0x2f0   : > { %v2205_v35 = vadd.f32 %v11997_v1, %v11996_v48  ;;  %v2207_v19 = vadd.f32 %v11997_v1, %v11998_v39  ;;  %v12000_v41 = vld [vmem:[#allocation58_spill] sm:$0xff]  ;;  %v3526_v18 = vmax.f32 %v12001_v61, 0.0  ;;  %v12002_v58 = vld [vmem:[#allocation269_spill] sm:$0xff]  ;;  %v12004_v60 = vld [vmem:[#allocation272_spill] sm:$0xff]  ;;  %v12005_v48 = vmax.f32 %v11940_v63, 0.0 }
 0x2f1   : > { %v2226_v57 = vadd.f32 %v12000_v41, %v11999_v62  ;;  %v2225_v32 = vadd.f32 %v12000_v41, %v12002_v58  ;;  %v12003_v51 = vld [vmem:[#allocation270_spill] sm:$0xff]  ;;  %v2228_v44 = vadd.f32 %v12000_v41, %v12004_v60  ;;  %v12007_v62 = vld [vmem:[#allocation267_spill] sm:$0xff]  ;;  %v12008_v17 = vld [vmem:[#allocation268_spill] sm:$0xff]  ;;  %v12009_v58 = vmax.f32 %v11941_v23, 0.0 }
 0x2f2   : > { %v2227_v38 = vadd.f32 %v12000_v41, %v12003_v51  ;;  %3356 = vmatprep.subr.mxu0 %v12005_v48  ;;  %v12006_v39 = vld [vmem:[#allocation230_spill] sm:$0xff]  ;;  %v2206_v3 = vadd.f32 %v11997_v1, %v12007_v62  ;;  %v2208_v61 = vadd.f32 %v11997_v1, %v12008_v17  ;;  %v12010_v51 = vmax.f32 %v11927_v42, 0.0  ;;  %v12011_v55 = vld [vmem:[#allocation236_spill] sm:$0xff] }
 0x2f3   : > { %v3528_v16 = vmax.f32 %v12006_v39, 0.0  ;;  %3427 = vmatprep.subr.mxu1 %v12009_v58  ;;  %v9527_v60 = vadd.f32 %v2226_v57, %v9236_v40  ;;  %v3530_v63 = vmax.f32 %v12011_v55, 0.0  ;;  %v12012_v48 = vmax.f32 %v11933_v54, 0.0  ;;  %v12016_v17 = vld [vmem:[#allocation238_spill] sm:$0xff]  ;;  %v12026_v55 = vld [vmem:[#allocation240_spill] sm:$0xff] }
 0x2f4   : > { %3357 = vmatpush1.msra.mxu0 %v12010_v51  ;;  %v12013_v39 = vmax.f32 %v11920_v8, 0.0  ;;  %v9535_v62 = vadd.f32 %v2228_v44, %v9248_v45  ;;  %v9538_v23 = vadd.f32 %v2225_v32, %v9200_v5  ;;  %v9541_v42 = vadd.f32 %v2227_v38, %v9218_v46  ;;  %v12022_v32 = vld [vmem:[#allocation262_spill] sm:$0xff]  ;;  %v12023_v38 = vld [vmem:[#allocation264_spill] sm:$0xff] }
 0x2f5   : > { %3428 = vmatpush1.msra.mxu1 %v12012_v48  ;;  %v3532_v57 = vmax.f32 %v12016_v17, 0.0  ;;  %v12017_v58 = vmax.f32 %v11921_v26, 0.0  ;;  %v12018_v54 = vmax.f32 %v11918_v14, 0.0  ;;  %v9549_v8 = vadd.f32 %v2206_v3, %v9164_v9  ;;  %v12030_v17 = vld [vmem:[#allocation244_spill] sm:$0xff] }
 0x2f6   : > { %3358 = vmatprep.subr.mxu0 %v12013_v39  ;;  %12014 = vst [vmem:[#allocation380_spill] sm:$0xff] %v9538_v23  ;;  %12015 = vst [vmem:[#allocation381_spill] sm:$0xff] %v9541_v42  ;;  %v9552_v44 = vadd.f32 %v2208_v61, %v9182_v33  ;;  %v9555_v5 = vadd.f32 %v2205_v35, %v9128_v36  ;;  %v2187_v46 = vadd.f32 %v11993_v21, %v12022_v32  ;;  %v12024_v26 = vmov 0.0   ;;  %v12028_v61 = vld [vmem:[#allocation259_spill] sm:$0xff]  ;;  %v12029_v35 = vld [vmem:[#allocation260_spill] sm:$0xff] }
 0x2f7   : > { %3429 = vmatprep.subr.mxu1 %v12017_v58  ;;  %3359 = vmatpush1.msra.mxu0 %v12018_v54  ;;  %12019 = vst [vmem:[#allocation377_spill] sm:$0xff] %v9549_v8  ;;  %v2188_v51 = vadd.f32 %v11993_v21, %v12023_v38  ;;  %v12025_v14 = vmax.f32 %v11919_v28, 0.0  ;;  %v3531_v3 = vmax.f32 %v12026_v55, 0.0  ;;  %v9566_v48 = vadd.f32 %v2207_v19, %v9146_v25  ;;  %v12032_v25 = vld [vmem:[#allocation232_spill] sm:$0xff]  ;;  %v12284_v8 = vld [vmem:[#allocation287_spill] sm:$0xff]  ;;  %v12288_v42 = vld [vmem:[#allocation302_spill] sm:$0xff] }
 0x2f8   : > { %12020 = vst [vmem:[#allocation42_spill] sm:$0xff] %v9552_v44  ;;  %12021 = vst [vmem:[#allocation53_spill] sm:$0xff] %v9555_v5  ;;  %3392 = vmatprep.mubr.f32.mxu0 %v12024_v26  ;;  %v2166_v36 = vadd.f32 %v11989_v13, %v12028_v61  ;;  %v2168_v39 = vadd.f32 %v11989_v13, %v12029_v35  ;;  %3463 = vmatprep.mubr.f32.mxu1 %v12024_v26  ;;  %v3533_v58 = vmax.f32 %v12030_v17, 0.0  ;;  %v12044_v35 = vld [vmem:[#allocation252_spill] sm:$0xff]  ;;  %v12169_v5 = vld [vmem:[#allocation223_spill] sm:$0xff] }
 0x2f9   : > { %3430 = vmatpush1.msra.mxu1 %v12025_v14  ;;  %12027 = vst [vmem:[#allocation48_spill] sm:$0xff] %v9566_v48  ;;  %6098 = vmatmul.mubr.msk.f32.vlgmr.msra.gmra.mxu0 %vm2294_vm1, %v11929_v52  ;;  %v9577_v28 = vadd.f32 %v2186_v0, %v9112_v15  ;;  %v3527_v19 = vmax.f32 %v12032_v25, 0.0  ;;  %v9583_v54 = vadd.f32 %v2188_v51, %v9118_v24  ;;  %v12036_v14 = vld [vmem:[#allocation234_spill] sm:$0xff]  ;;  %v12040_v51 = vld [vmem:[#allocation255_spill] sm:$0xff] }
 0x2fa   : > { %6099 = vmatmul.mubr.msk.f32.vlgmr.msra.gmra.mxu1 %vm2294_vm1, %v11929_v52  ;;  %3550 = vmatprep.subr.mxu0 %v3531_v3  ;;  %v9586_v32 = vadd.f32 %v2185_v47, %v9100_v6  ;;  %v9589_v38 = vadd.f32 %v2187_v46, %v9106_v37  ;;  %v3529_v0 = vmax.f32 %v12036_v14, 0.0  ;;  %v9593_v55 = vadd.f32 %v2166_v36, %v9088_v10  ;;  %v12041_v47 = vld [vmem:[#allocation256_spill] sm:$0xff] }
 0x2fb   : > { %12031 = vst [vmem:[#allocation46_spill] sm:$0xff] %v9577_v28  ;;  %12033 = vst [vmem:[#allocation154_spill] sm:$0xff] %v9583_v54  ;;  %3621 = vmatprep.subr.mxu1 %v3533_v58  ;;  %3551 = vmatpush1.msra.mxu0 %v3530_v63  ;;  %v9596_v3 = vadd.f32 %v2168_v39, %v9094_v31  ;;  %v9599_v61 = vadd.f32 %v2165_v4, %v9076_v59  ;;  %v12042_v63 = vld [vmem:[#allocation224_spill] sm:$0xff]  ;;  %v12045_v39 = vld [vmem:[#allocation71_spill] sm:$0xff] }
 0x2fc   : > { %12034 = vst [vmem:[#allocation190_spill] sm:$0xff] %v9586_v32  ;;  %12035 = vst [vmem:[#allocation191_spill] sm:$0xff] %v9589_v38  ;;  %v2147_v6 = vadd.f32 %v11986_v29, %v12040_v51  ;;  %v2148_v37 = vadd.f32 %v11986_v29, %v12041_v47  ;;  %3622 = vmatpush1.msra.mxu1 %v3532_v57  ;;  %3552 = vmatprep.subr.mxu0 %v3527_v19  ;;  %v3523_v46 = vmax.f32 %v12042_v63, 0.0  ;;  %v12046_v58 = vld [vmem:[#allocation253_spill] sm:$0xff]  ;;  %v12047_v4 = vld [vmem:[#allocation226_spill] sm:$0xff] }
 0x2fd   : > { %12037 = vst [vmem:[#allocation47_spill] sm:$0xff] %v9593_v55  ;;  %12038 = vst [vmem:[#allocation152_spill] sm:$0xff] %v9596_v3  ;;  %v9608_v36 = vadd.f32 %v9495_v50, %v9082_v27  ;;  %v2126_v17 = vadd.f32 %v12045_v39, %v12044_v35  ;;  %v2128_v59 = vadd.f32 %v12045_v39, %v12046_v58  ;;  %3623 = vmatprep.subr.mxu1 %v3529_v0  ;;  %v12054_v0 = vld [vmem:[#allocation21_spill] sm:$0xff]  ;;  %v12063_v58 = vld [vmem:[#allocation214_spill] sm:$0xff] }
 0x2fe   : > { %12039 = vst [vmem:[#allocation351_spill] sm:$0xff] %v9599_v61  ;;  %3553 = vmatpush1.msra.mxu0 %v3526_v18  ;;  %v3525_v25 = vmax.f32 %v12047_v4, 0.0  ;;  %v9617_v57 = vadd.f32 %v9488_v30, %v9064_v11  ;;  %3624 = vmatpush1.msra.mxu1 %v3528_v16  ;;  %v3519_v19 = vmax.f32 %v9462_v34, 0.0  ;;  %v9621_v27 = vadd.f32 %v2148_v37, %v9070_v22  ;;  %v12053_v16 = vld [vmem:[#allocation207_spill] sm:$0xff]  ;;  %v12060_v37 = vld [vmem:[#allocation200_spill] sm:$0xff]  ;;  %v12061_v63 = vld [vmem:[#allocation49_spill] sm:$0xff] }
 0x2ff   : > { %12043 = vst [vmem:[#allocation155_spill] sm:$0xff] %v9608_v36  ;;  %3554 = vmatprep.subr.mxu0 %v3523_v46  ;;  %v9625_v50 = vadd.f32 %v9484_v43, %v9052_v2  ;;  %v9628_v14 = vadd.f32 %v2147_v6, %v9058_v49  ;;  %v12052_v18 = vmax.f32 %v11990_v56, 0.0  ;;  %v3521_v30 = vmax.f32 %v9466_v53, 0.0  ;;  %v12057_v43 = vld [vmem:[#allocation216_spill] sm:$0xff]  ;;  %v12059_v6 = vld [vmem:[#allocation379_spill] sm:$0xff]  ;;  %v12065_v4 = vld [vmem:[#allocation85_spill] sm:$0xff]  ;;  %3598 = vmatprep.mubr.f32.mxu0 %v12024_v26 }
 0x300   : > { %12048 = vst [vmem:[#allocation185_spill] sm:$0xff] %v9617_v57  ;;  %12049 = vst [vmem:[#allocation16_spill] sm:$0xff] %v9621_v27  ;;  %3625 = vmatprep.subr.mxu1 %v3525_v25  ;;  %v3481_v51 = vadd.f32 %v12054_v0, %v12053_v16  ;;  %v9636_v34 = vadd.f32 %v2126_v17, %v9044_v7  ;;  %v9639_v47 = vadd.f32 %v2128_v59, %v11901_v12  ;;  %v12062_v46 = vld [vmem:[#allocation208_spill] sm:$0xff]  ;;  %v12066_v25 = vld [vmem:[#allocation201_spill] sm:$0xff] }
 0x301   : > { %12050 = vst [vmem:[#allocation150_spill] sm:$0xff] %v9625_v50  ;;  %12051 = vst [vmem:[#allocation153_spill] sm:$0xff] %v9628_v14  ;;  %3555 = vmatpush1.msra.mxu0 %v12052_v18  ;;  %v3520_v2 = vmax.f32 %v12057_v43, 0.0  ;;  %v12058_v49 = vmax.f32 %v11995_v20, 0.0  ;;  %v3515_v56 = vmax.f32 %v12059_v6, 0.0  ;;  %v3475_v53 = vadd.f32 %v12061_v63, %v12060_v37  ;;  %v12067_v18 = vld [vmem:[#allocation43_spill] sm:$0xff]  ;;  %3669 = vmatprep.mubr.f32.mxu1 %v12024_v26 }
 0x302   : > { %12055 = vst [vmem:[#allocation187_spill] sm:$0xff] %v9636_v34  ;;  %12056 = vst [vmem:[#allocation148_spill] sm:$0xff] %v9639_v47  ;;  %3556 = vmatprep.subr.mxu0 %v3519_v19  ;;  %v3514_v35 = vmax.f32 %v12062_v46, 0.0  ;;  %v12064_v17 = vmax.f32 %v12063_v58, 0.0  ;;  %v3517_v59 = vmax.f32 %v12065_v4, 0.0  ;;  %v3477_v0 = vadd.f32 %v12067_v18, %v12066_v25  ;;  %v12068_v43 = vld [vmem:[#allocation210_spill] sm:$0xff] }
 0x303   : > { %3626 = vmatpush1.msra.mxu1 %v12058_v49  ;;  %v3516_v20 = vmax.f32 %v12068_v43, 0.0  ;;  %v12069_v19 = vld [vmem:[#allocation384_spill] sm:$0xff]  ;;  %v12072_v14 = vld [vmem:[#allocation202_spill] sm:$0xff]  ;;  %v3507_v43 = vmax.f32 %v3475_v53, 0.0  ;;  %v12080_v53 = vld [vmem:[#allocation97_spill] sm:$0xff] }
 0x304   : > { %3627 = vmatprep.subr.mxu1 %v3521_v30  ;;  %3557 = vmatpush1.msra.mxu0 %v12064_v17  ;;  %v3511_v49 = vmax.f32 %v12069_v19, 0.0  ;;  %v12070_v6 = vld [vmem:[#allocation196_spill] sm:$0xff]  ;;  %v3510_v46 = vmax.f32 %v12072_v14, 0.0  ;;  %v3513_v30 = vmax.f32 %v3481_v51, 0.0  ;;  %v12074_v17 = vld [vmem:[#allocation13_spill] sm:$0xff]  ;;  %v3509_v19 = vmax.f32 %v3477_v0, 0.0 }
 0x305   : > { %3628 = vmatpush1.msra.mxu1 %v3520_v2  ;;  %3558 = vmatprep.subr.mxu0 %v3515_v56  ;;  %v12071_v47 = vld [vmem:[#allocation12_spill] sm:$0xff]  ;;  %v12076_v2 = vld [vmem:[#allocation50_spill] sm:$0xff]  ;;  %v3737_v0 = vmax.f32 %v12080_v53, 0.0  ;;  %v12141_v55 = vld [vmem:[#allocation365_spill] sm:$0xff] }
 0x306   : > { %v3471_v34 = vadd.f32 %v12071_v47, %v12070_v6  ;;  %3629 = vmatprep.subr.mxu1 %v3517_v59  ;;  %3559 = vmatpush1.msra.mxu0 %v3514_v35  ;;  %v12073_v58 = vld [vmem:[#allocation44_spill] sm:$0xff]  ;;  %v3506_v56 = vmax.f32 %v12076_v2, 0.0  ;;  %v12077_v57 = vld [vmem:[#allocation198_spill] sm:$0xff]  ;;  %v12078_v35 = vld [vmem:[#allocation95_spill] sm:$0xff] }
 0x307   : > { %v3473_v4 = vadd.f32 %v12074_v17, %v12073_v58  ;;  %v12075_v50 = vld [vmem:[#allocation204_spill] sm:$0xff]  ;;  %3630 = vmatpush1.msra.mxu1 %v3516_v20  ;;  %3560 = vmatprep.subr.mxu0 %v3511_v49  ;;  %v3508_v36 = vmax.f32 %v12077_v57, 0.0  ;;  %v3502_v51 = vmax.f32 %v12078_v35, 0.0  ;;  %v12079_v61 = vld [vmem:[#allocation194_spill] sm:$0xff]  ;;  %v12081_v57 = vld [vmem:[#allocation329_spill] sm:$0xff] }
 0x308   : > { %v3512_v27 = vmax.f32 %v12075_v50, 0.0  ;;  %3631 = vmatprep.subr.mxu1 %v3513_v30  ;;  %3561 = vmatpush1.msra.mxu0 %v3510_v46  ;;  %v3503_v14 = vmax.f32 %v3471_v34, 0.0  ;;  %v3504_v50 = vmax.f32 %v12079_v61, 0.0  ;;  %v12082_v34 = vld [vmem:[#allocation98_spill] sm:$0xff]  ;;  %v12083_v49 = vld [vmem:[#allocation332_spill] sm:$0xff]  ;;  %v12085_v30 = vld [vmem:[#allocation321_spill] sm:$0xff] }
 0x309   : > { %3562 = vmatprep.subr.mxu0 %v3507_v43  ;;  %v3505_v59 = vmax.f32 %v3473_v4, 0.0  ;;  %v3739_v20 = vmax.f32 %v12082_v34, 0.0  ;;  %v3738_v61 = vmax.f32 %v12083_v49, 0.0  ;;  %v3732_v4 = vmax.f32 %v12085_v30, 0.0  ;;  %v12086_v43 = vld [vmem:[#allocation36_spill] sm:$0xff]  ;;  %v12092_v34 = vld [vmem:[#allocation93_spill] sm:$0xff] }
 0x30a   : > { %3632 = vmatpush1.msra.mxu1 %v3512_v27  ;;  %3563 = vmatpush1.msra.mxu0 %v3506_v56  ;;  %v3736_v27 = vmax.f32 %v12081_v57, 0.0  ;;  %v3735_v2 = vmax.f32 %v12086_v43, 0.0  ;;  %v12087_v56 = vld [vmem:[#allocation324_spill] sm:$0xff]  ;;  %v12096_v43 = vld [vmem:[#allocation341_spill] sm:$0xff]  ;;  %v12145_v32 = vld [vmem:[#allocation363_spill] sm:$0xff] }
 0x30b   : > { %3633 = vmatprep.subr.mxu1 %v3509_v19  ;;  %3564 = vmatprep.subr.mxu0 %v3503_v14  ;;  %v3734_v19 = vmax.f32 %v12087_v56, 0.0  ;;  %v12088_v14 = vld [vmem:[#allocation32_spill] sm:$0xff]  ;;  %v12148_v28 = vld [vmem:[#allocation361_spill] sm:$0xff] }
 0x30c   : > { %3634 = vmatpush1.msra.mxu1 %v3508_v36  ;;  %3565 = vmatpush1.msra.mxu0 %v3502_v51  ;;  %v12084_v36 = vld [vmem:[#allocation92_spill] sm:$0xff]  ;;  %v3729_v35 = vmax.f32 %v12088_v14, 0.0  ;;  %v12089_v51 = vld [vmem:[#allocation313_spill] sm:$0xff] }
 0x30d   : > { %3635 = vmatprep.subr.mxu1 %v3505_v59  ;;  %6100 = vmatmul.mubr.msk.f32.vlgmr.msra.gmra.mxu0 %vm2294_vm1, %v11929_v52  ;;  %v3733_v46 = vmax.f32 %v12084_v36, 0.0  ;;  %v3728_v59 = vmax.f32 %v12089_v51, 0.0 }
 0x30e   : > { %3636 = vmatpush1.msra.mxu1 %v3504_v50  ;;  %3756 = vmatprep.subr.mxu0 %v3737_v0  ;;  %v12090_v50 = vld [vmem:[#allocation33_spill] sm:$0xff]  ;;  %v12091_v0 = vld [vmem:[#allocation316_spill] sm:$0xff] }
 0x30f   : > { %6101 = vmatmul.mubr.msk.f32.vlgmr.msra.gmra.mxu1 %vm2294_vm1, %v11929_v52  ;;  %3827 = vmatprep.subr.mxu1 %v3739_v20  ;;  %v3731_v53 = vmax.f32 %v12090_v50, 0.0  ;;  %v3730_v57 = vmax.f32 %v12091_v0, 0.0  ;;  %v12093_v20 = vld [vmem:[#allocation305_spill] sm:$0xff]  ;;  %v12100_v50 = vld [vmem:[#allocation343_spill] sm:$0xff] }
 0x310   : > { %3757 = vmatpush1.msra.mxu0 %v3736_v27  ;;  %3828 = vmatpush1.msra.mxu1 %v3738_v61  ;;  %v3725_v27 = vmax.f32 %v12092_v34, 0.0  ;;  %v3724_v49 = vmax.f32 %v12093_v20, 0.0  ;;  %v12094_v61 = vld [vmem:[#allocation87_spill] sm:$0xff] }
 0x311   : > { %3758 = vmatprep.subr.mxu0 %v3733_v46  ;;  %3829 = vmatprep.subr.mxu1 %v3735_v2  ;;  %v3727_v36 = vmax.f32 %v12094_v61, 0.0  ;;  %v12095_v46 = vld [vmem:[#allocation308_spill] sm:$0xff]  ;;  %v12097_v2 = vld [vmem:[#allocation297_spill] sm:$0xff] }
 0x312   : > { %3759 = vmatpush1.msra.mxu0 %v3732_v4  ;;  %3830 = vmatpush1.msra.mxu1 %v3734_v19  ;;  %v3726_v30 = vmax.f32 %v12095_v46, 0.0  ;;  %v3721_v4 = vmax.f32 %v12096_v43, 0.0  ;;  %v3720_v56 = vmax.f32 %v12097_v2, 0.0  ;;  %v12098_v19 = vld [vmem:[#allocation342_spill] sm:$0xff]  ;;  %v12104_v61 = vld [vmem:[#allocation345_spill] sm:$0xff] }
 0x313   : > { %3760 = vmatprep.subr.mxu0 %v3729_v35  ;;  %3831 = vmatprep.subr.mxu1 %v3731_v53  ;;  %v3723_v14 = vmax.f32 %v12098_v19, 0.0  ;;  %v12099_v35 = vld [vmem:[#allocation300_spill] sm:$0xff]  ;;  %v12101_v53 = vld [vmem:[#allocation289_spill] sm:$0xff]  ;;  %v12108_v19 = vld [vmem:[#allocation347_spill] sm:$0xff] }
 0x314   : > { %3761 = vmatpush1.msra.mxu0 %v3728_v59  ;;  %3832 = vmatpush1.msra.mxu1 %v3730_v57  ;;  %v3722_v51 = vmax.f32 %v12099_v35, 0.0  ;;  %v3717_v59 = vmax.f32 %v12100_v50, 0.0  ;;  %v3716_v0 = vmax.f32 %v12101_v53, 0.0  ;;  %v12102_v57 = vld [vmem:[#allocation344_spill] sm:$0xff] }
 0x315   : > { %3762 = vmatprep.subr.mxu0 %v3725_v27  ;;  %3833 = vmatprep.subr.mxu1 %v3727_v36  ;;  %v3719_v34 = vmax.f32 %v12102_v57, 0.0  ;;  %v12103_v27 = vld [vmem:[#allocation292_spill] sm:$0xff]  ;;  %v12105_v36 = vld [vmem:[#allocation281_spill] sm:$0xff] }
 0x316   : > { %3763 = vmatpush1.msra.mxu0 %v3724_v49  ;;  %3834 = vmatpush1.msra.mxu1 %v3726_v30  ;;  %v3718_v20 = vmax.f32 %v12103_v27, 0.0  ;;  %v3713_v49 = vmax.f32 %v12104_v61, 0.0  ;;  %v3712_v46 = vmax.f32 %v12105_v36, 0.0  ;;  %v12106_v30 = vld [vmem:[#allocation346_spill] sm:$0xff] }
 0x317   : > { %3764 = vmatprep.subr.mxu0 %v3721_v4  ;;  %3835 = vmatprep.subr.mxu1 %v3723_v14  ;;  %v3715_v43 = vmax.f32 %v12106_v30, 0.0  ;;  %v12107_v4 = vld [vmem:[#allocation284_spill] sm:$0xff]  ;;  %v12109_v14 = vld [vmem:[#allocation273_spill] sm:$0xff] }
 0x318   : > { %3765 = vmatpush1.msra.mxu0 %v3720_v56  ;;  %3836 = vmatpush1.msra.mxu1 %v3722_v51  ;;  %v3714_v2 = vmax.f32 %v12107_v4, 0.0  ;;  %v3709_v56 = vmax.f32 %v12108_v19, 0.0  ;;  %v3708_v35 = vmax.f32 %v12109_v14, 0.0  ;;  %v12110_v51 = vld [vmem:[#allocation348_spill] sm:$0xff] }
 0x319   : > { %3766 = vmatprep.subr.mxu0 %v3717_v59  ;;  %3837 = vmatprep.subr.mxu1 %v3719_v34  ;;  %v3711_v50 = vmax.f32 %v12110_v51, 0.0  ;;  %v12111_v59 = vld [vmem:[#allocation276_spill] sm:$0xff]  ;;  %v12113_v34 = vld [vmem:[#allocation117_spill] sm:$0xff] }
 0x31a   : > { %3767 = vmatpush1.msra.mxu0 %v3716_v0  ;;  %3838 = vmatpush1.msra.mxu1 %v3718_v20  ;;  %v3710_v53 = vmax.f32 %v12111_v59, 0.0  ;;  %v12112_v0 = vld [vmem:[#allocation37_spill] sm:$0xff]  ;;  %v3945_v27 = vmax.f32 %v12113_v34, 0.0  ;;  %v12122_v59 = vld [vmem:[#allocation30_spill] sm:$0xff]  ;;  %v12124_v34 = vld [vmem:[#allocation375_spill] sm:$0xff] }
 0x31b   : > { %3768 = vmatprep.subr.mxu0 %v3713_v49  ;;  %3839 = vmatprep.subr.mxu1 %v3715_v43  ;;  %v3943_v57 = vmax.f32 %v12112_v0, 0.0  ;;  %v12114_v20 = vld [vmem:[#allocation105_spill] sm:$0xff]  ;;  %v12115_v49 = vld [vmem:[#allocation106_spill] sm:$0xff]  ;;  %v12123_v0 = vld [vmem:[#allocation31_spill] sm:$0xff] }
 0x31c   : > { %3769 = vmatpush1.msra.mxu0 %v3712_v46  ;;  %3840 = vmatpush1.msra.mxu1 %v3714_v2  ;;  %v3942_v61 = vmax.f32 %v12114_v20, 0.0  ;;  %v3944_v36 = vmax.f32 %v12115_v49, 0.0  ;;  %v12116_v46 = vld [vmem:[#allocation100_spill] sm:$0xff]  ;;  %v12117_v43 = vld [vmem:[#allocation110_spill] sm:$0xff] }
 0x31d   : > { %3770 = vmatprep.subr.mxu0 %v3709_v56  ;;  %3841 = vmatprep.subr.mxu1 %v3711_v50  ;;  %v3939_v30 = vmax.f32 %v12116_v46, 0.0  ;;  %v3941_v4 = vmax.f32 %v12117_v43, 0.0  ;;  %v12118_v2 = vld [vmem:[#allocation34_spill] sm:$0xff]  ;;  %v12119_v56 = vld [vmem:[#allocation35_spill] sm:$0xff]  ;;  %v12125_v20 = vld [vmem:[#allocation376_spill] sm:$0xff] }
 0x31e   : > { %3771 = vmatpush1.msra.mxu0 %v3708_v35  ;;  %3804 = vmatprep.mubr.f32.mxu0 %v12024_v26  ;;  %v3938_v19 = vmax.f32 %v12118_v2, 0.0  ;;  %v3940_v14 = vmax.f32 %v12119_v56, 0.0  ;;  %v12120_v35 = vld [vmem:[#allocation378_spill] sm:$0xff]  ;;  %v12127_v46 = vld [vmem:[#allocation368_spill] sm:$0xff] }
 0x31f   : > { %3842 = vmatpush1.msra.mxu1 %v3710_v53  ;;  %3875 = vmatprep.mubr.f32.mxu1 %v12024_v26  ;;  %v3935_v51 = vmax.f32 %v12120_v35, 0.0  ;;  %v3934_v53 = vmax.f32 %v12122_v59, 0.0  ;;  %v12126_v49 = vld [vmem:[#allocation26_spill] sm:$0xff]  ;;  %v12132_v35 = vld [vmem:[#allocation19_spill] sm:$0xff] }
 0x320   : > { %6102 = vmatmul.mubr.msk.f32.vlgmr.msra.gmra.mxu0 %vm2294_vm1, %v11929_v52  ;;  %6103 = vmatmul.mubr.msk.f32.vlgmr.msra.gmra.mxu1 %vm2294_vm1, %v11929_v52  ;;  %v12121_v52 = vld [vmem:[#allocation382_spill] sm:$0xff] }
 0x321   : > { %3962 = vmatprep.subr.mxu0 %v3943_v57  ;;  %4033 = vmatprep.subr.mxu1 %v3945_v27  ;;  %v3937_v50 = vmax.f32 %v12121_v52, 0.0  ;;  %v3936_v57 = vmax.f32 %v12123_v0, 0.0  ;;  %v3931_v27 = vmax.f32 %v12124_v34, 0.0  ;;  %v12133_v52 = vld [vmem:[#allocation366_spill] sm:$0xff] }
 0x322   : > { %3963 = vmatpush1.msra.mxu0 %v3942_v61  ;;  %4034 = vmatpush1.msra.mxu1 %v3944_v36  ;;  %v3933_v61 = vmax.f32 %v12125_v20, 0.0  ;;  %v3930_v36 = vmax.f32 %v12126_v49, 0.0  ;;  %v12134_v59 = vld [vmem:[#allocation374_spill] sm:$0xff]  ;;  %v12136_v20 = vld [vmem:[#allocation367_spill] sm:$0xff] }
 0x323   : > { %3964 = vmatprep.subr.mxu0 %v3939_v30  ;;  %4035 = vmatprep.subr.mxu1 %v3941_v4  ;;  %v12128_v30 = vld [vmem:[#allocation17_spill] sm:$0xff]  ;;  %v12129_v4 = vld [vmem:[#allocation27_spill] sm:$0xff]  ;;  %v12135_v0 = vld [vmem:[#allocation22_spill] sm:$0xff] }
 0x324   : > { %3965 = vmatpush1.msra.mxu0 %v3938_v19  ;;  %4036 = vmatpush1.msra.mxu1 %v3940_v14  ;;  %v3890_v43 = vadd.f32 %v12128_v30, %v12127_v46  ;;  %v3932_v2 = vmax.f32 %v12129_v4, 0.0  ;;  %v12130_v19 = vld [vmem:[#allocation373_spill] sm:$0xff]  ;;  %v3926_v34 = vmax.f32 %v12135_v0, 0.0  ;;  %v12138_v49 = vld [vmem:[#allocation14_spill] sm:$0xff]  ;;  %v12139_v4 = vld [vmem:[#allocation23_spill] sm:$0xff] }
 0x325   : > { %3966 = vmatprep.subr.mxu0 %v3935_v51  ;;  %4037 = vmatprep.subr.mxu1 %v3937_v50  ;;  %v3927_v56 = vmax.f32 %v12130_v19, 0.0  ;;  %v12131_v14 = vld [vmem:[#allocation369_spill] sm:$0xff]  ;;  %v3887_v50 = vadd.f32 %v12061_v63, %v12133_v52  ;;  %v3928_v19 = vmax.f32 %v12139_v4, 0.0  ;;  %v12142_v63 = vld [vmem:[#allocation15_spill] sm:$0xff]  ;;  %v12144_v0 = vld [vmem:[#allocation372_spill] sm:$0xff] }
 0x326   : > { %3967 = vmatpush1.msra.mxu0 %v3934_v53  ;;  %4038 = vmatpush1.msra.mxu1 %v3936_v57  ;;  %v3892_v51 = vadd.f32 %v12132_v35, %v12131_v14  ;;  %v3929_v53 = vmax.f32 %v12134_v59, 0.0  ;;  %v3889_v57 = vadd.f32 %v12067_v18, %v12136_v20  ;;  %v12140_v35 = vld [vmem:[#allocation371_spill] sm:$0xff]  ;;  %v3925_v38 = vmax.f32 %v12144_v0, 0.0 }
 0x327   : > { %3968 = vmatprep.subr.mxu0 %v3931_v27  ;;  %4039 = vmatprep.subr.mxu1 %v3933_v61  ;;  %v12137_v27 = vld [vmem:[#allocation364_spill] sm:$0xff]  ;;  %v3923_v3 = vmax.f32 %v12140_v35, 0.0  ;;  %v3888_v61 = vadd.f32 %v12142_v63, %v12141_v55  ;;  %v3922_v18 = vmax.f32 %v3890_v43, 0.0  ;;  %v3919_v35 = vmax.f32 %v3887_v50, 0.0  ;;  %v12149_v63 = vld [vmem:[#allocation127_spill] sm:$0xff]  ;;  %v12151_v50 = vld [vmem:[#allocation237_spill] sm:$0xff] }
 0x328   : > { %3969 = vmatpush1.msra.mxu0 %v3930_v36  ;;  %v3886_v30 = vadd.f32 %v12138_v49, %v12137_v27  ;;  %4040 = vmatpush1.msra.mxu1 %v3932_v2  ;;  %v12143_v36 = vld [vmem:[#allocation362_spill] sm:$0xff]  ;;  %v3885_v49 = vadd.f32 %v12074_v17, %v12145_v32  ;;  %v12146_v2 = vld [vmem:[#allocation360_spill] sm:$0xff]  ;;  %v3924_v4 = vmax.f32 %v3892_v51, 0.0  ;;  %v3884_v48 = vadd.f32 %v12149_v63, %v12148_v28 }
 0x329   : > { %3970 = vmatprep.subr.mxu0 %v3927_v56  ;;  %v3883_v59 = vadd.f32 %v12071_v47, %v12143_v36  ;;  %4041 = vmatprep.subr.mxu1 %v3929_v53  ;;  %v12147_v56 = vld [vmem:[#allocation123_spill] sm:$0xff]  ;;  %v3921_v47 = vmax.f32 %v3889_v57, 0.0  ;;  %v3920_v43 = vmax.f32 %v3888_v61, 0.0  ;;  %v4148_v57 = vmax.f32 %v12151_v50, 0.0  ;;  %v12163_v50 = vld [vmem:[#allocation212_spill] sm:$0xff] }
 0x32a   : > { %3971 = vmatpush1.msra.mxu0 %v3926_v34  ;;  %v3882_v54 = vadd.f32 %v12147_v56, %v12146_v2  ;;  %4042 = vmatpush1.msra.mxu1 %v3928_v19  ;;  %v3918_v53 = vmax.f32 %v3886_v30, 0.0  ;;  %v3917_v17 = vmax.f32 %v3885_v49, 0.0  ;;  %v9758_v30 = vld [vmem:[%s10723_s4] sm:$0xf]  ;;  %v12155_v49 = vld [vmem:[#allocation218_spill] sm:$0xff]  ;;  %v12156_v56 = vld [vmem:[#allocation109_spill] sm:$0xff] }
 0x32b   : > { %3972 = vmatprep.subr.mxu0 %v3923_v3  ;;  %4043 = vmatprep.subr.mxu1 %v3925_v38  ;;  %v3915_v34 = vmax.f32 %v3883_v59, 0.0  ;;  %v3916_v3 = vmax.f32 %v3884_v48, 0.0  ;;  %v12150_v38 = vld [vmem:[#allocation243_spill] sm:$0xff]  ;;  %v12152_v48 = vld [vmem:[#allocation245_spill] sm:$0xff] }
 0x32c   : > { %3973 = vmatpush1.msra.mxu0 %v3922_v18  ;;  %4044 = vmatpush1.msra.mxu1 %v3924_v4  ;;  %v3914_v0 = vmax.f32 %v3882_v54, 0.0  ;;  %v4149_v51 = vmax.f32 %v12150_v38, 0.0  ;;  %v4151_v54 = vmax.f32 %v12152_v48, 0.0  ;;  %v12153_v19 = vld [vmem:[#allocation239_spill] sm:$0xff]  ;;  %v12154_v59 = vld [vmem:[#allocation233_spill] sm:$0xff]  ;;  %v4105_v4 = vadd.f32 %v12156_v56, %v12155_v49 }
 0x32d   : > { %3974 = vmatprep.subr.mxu0 %v3919_v35  ;;  %4045 = vmatprep.subr.mxu1 %v3921_v47  ;;  %v4150_v61 = vmax.f32 %v12153_v19, 0.0  ;;  %v4145_v18 = vmax.f32 %v12154_v59, 0.0  ;;  %v12157_v35 = vld [vmem:[#allocation229_spill] sm:$0xff]  ;;  %v12158_v47 = vld [vmem:[#allocation235_spill] sm:$0xff] }
 0x32e   : > { %3975 = vmatpush1.msra.mxu0 %v3918_v53  ;;  %4046 = vmatpush1.msra.mxu1 %v3920_v43  ;;  %v4144_v63 = vmax.f32 %v12157_v35, 0.0  ;;  %v4147_v53 = vmax.f32 %v12158_v47, 0.0  ;;  %v12159_v43 = vld [vmem:[#allocation219_spill] sm:$0xff]  ;;  %v12162_v38 = vld [vmem:[#allocation225_spill] sm:$0xff]  ;;  %v12168_v35 = vld [vmem:[#allocation96_spill] sm:$0xff] }
 0x32f   : > { %3976 = vmatprep.subr.mxu0 %v3915_v34  ;;  %4047 = vmatprep.subr.mxu1 %v3917_v17  ;;  %v12160_v34 = vld [vmem:[#allocation113_spill] sm:$0xff]  ;;  %v12164_v48 = vld [vmem:[#allocation91_spill] sm:$0xff] }
 0x330   : > { %3977 = vmatpush1.msra.mxu0 %v3914_v0  ;;  %4010 = vmatprep.mubr.f32.mxu0 %v12024_v26  ;;  %v4107_v17 = vadd.f32 %v12160_v34, %v12159_v43  ;;  %v12161_v0 = vld [vmem:[#allocation231_spill] sm:$0xff]  ;;  %v4101_v19 = vadd.f32 %v12164_v48, %v12163_v50  ;;  %v12165_v59 = vld [vmem:[#allocation221_spill] sm:$0xff]  ;;  %v4142_v43 = vmax.f32 %v12169_v5, 0.0  ;;  %v12171_v34 = vld [vmem:[#allocation80_spill] sm:$0xff] }
 0x331   : > { %4048 = vmatpush1.msra.mxu1 %v3916_v3  ;;  %4081 = vmatprep.mubr.f32.mxu1 %v12024_v26  ;;  %v4146_v3 = vmax.f32 %v12161_v0, 0.0  ;;  %v4140_v49 = vmax.f32 %v12165_v59, 0.0  ;;  %v12167_v56 = vld [vmem:[#allocation213_spill] sm:$0xff]  ;;  %v12175_v5 = vld [vmem:[#allocation75_spill] sm:$0xff] }
 0x332   : > { %6104 = vmatmul.mubr.msk.f32.vlgmr.msra.gmra.mxu0 %vm2294_vm1, %v9758_v30  ;;  %6105 = vmatmul.mubr.msk.f32.vlgmr.msra.gmra.mxu1 %vm2294_vm1, %v9758_v30  ;;  %v4103_v47 = vadd.f32 %v12168_v35, %v12167_v56  ;;  %v4139_v50 = vmax.f32 %v4107_v17, 0.0  ;;  %v12174_v48 = vld [vmem:[#allocation217_spill] sm:$0xff]  ;;  %v12178_v17 = vld [vmem:[#allocation211_spill] sm:$0xff] }
 0x333   : > { %4168 = vmatprep.subr.mxu0 %v4149_v51  ;;  %4239 = vmatprep.subr.mxu1 %v4151_v54  ;;  %v4141_v51 = vmax.f32 %v12162_v38, 0.0  ;;  %v12166_v54 = vld [vmem:[#allocation227_spill] sm:$0xff]  ;;  %v4138_v59 = vmax.f32 %v12174_v48, 0.0  ;;  %v4134_v35 = vmax.f32 %v12178_v17, 0.0 }
 0x334   : > { %4169 = vmatpush1.msra.mxu0 %v4148_v57  ;;  %4240 = vmatpush1.msra.mxu1 %v4150_v61  ;;  %v4143_v57 = vmax.f32 %v12166_v54, 0.0  ;;  %v4137_v61 = vmax.f32 %v4105_v4, 0.0  ;;  %v12172_v38 = vld [vmem:[#allocation215_spill] sm:$0xff]  ;;  %v4133_v54 = vmax.f32 %v4101_v19, 0.0  ;;  %v12176_v4 = vld [vmem:[#allocation209_spill] sm:$0xff]  ;;  %v4135_v56 = vmax.f32 %v4103_v47, 0.0 }
 0x335   : > { %4170 = vmatprep.subr.mxu0 %v4145_v18  ;;  %4241 = vmatprep.subr.mxu1 %v4147_v53  ;;  %v12170_v18 = vld [vmem:[#allocation206_spill] sm:$0xff]  ;;  %v4136_v44 = vmax.f32 %v12172_v38, 0.0  ;;  %v12180_v19 = vld [vmem:[#allocation203_spill] sm:$0xff]  ;;  %v12182_v47 = vld [vmem:[#allocation205_spill] sm:$0xff] }
 0x336   : > { %4171 = vmatpush1.msra.mxu0 %v4144_v63  ;;  %4242 = vmatpush1.msra.mxu1 %v4146_v3  ;;  %v4097_v0 = vadd.f32 %v12171_v34, %v12170_v18  ;;  %v12173_v63 = vld [vmem:[#allocation82_spill] sm:$0xff]  ;;  %v4093_v3 = vadd.f32 %v12175_v5, %v12060_v37  ;;  %v4128_v18 = vmax.f32 %v12180_v19, 0.0  ;;  %v4130_v38 = vmax.f32 %v12182_v47, 0.0  ;;  %v12184_v48 = vld [vmem:[#allocation199_spill] sm:$0xff] }
 0x337   : > { %4172 = vmatprep.subr.mxu0 %v4141_v51  ;;  %4243 = vmatprep.subr.mxu1 %v4143_v57  ;;  %v4099_v53 = vadd.f32 %v12173_v63, %v12053_v16  ;;  %v4132_v51 = vmax.f32 %v12176_v4, 0.0  ;;  %v12177_v57 = vld [vmem:[#allocation76_spill] sm:$0xff]  ;;  %v12181_v34 = vld [vmem:[#allocation70_spill] sm:$0xff]  ;;  %v12186_v4 = vld [vmem:[#allocation195_spill] sm:$0xff] }
 0x338   : > { %4173 = vmatpush1.msra.mxu0 %v4140_v49  ;;  %4244 = vmatpush1.msra.mxu1 %v4142_v43  ;;  %v4095_v49 = vadd.f32 %v12177_v57, %v12066_v25  ;;  %v4129_v16 = vmax.f32 %v4097_v0, 0.0  ;;  %v12179_v43 = vld [vmem:[#allocation69_spill] sm:$0xff]  ;;  %v4125_v25 = vmax.f32 %v4093_v3, 0.0  ;;  %v12187_v3 = vld [vmem:[#allocation52_spill] sm:$0xff] }
 0x339   : > { %4174 = vmatprep.subr.mxu0 %v4137_v61  ;;  %4245 = vmatprep.subr.mxu1 %v4139_v50  ;;  %v4089_v61 = vadd.f32 %v12179_v43, %v12070_v6  ;;  %v4131_v37 = vmax.f32 %v4099_v53, 0.0  ;;  %v12183_v50 = vld [vmem:[#allocation51_spill] sm:$0xff]  ;;  %v4126_v6 = vmax.f32 %v12184_v48, 0.0 }
 0x33a   : > { %4175 = vmatpush1.msra.mxu0 %v4136_v44  ;;  %4246 = vmatpush1.msra.mxu1 %v4138_v59  ;;  %v4091_v44 = vadd.f32 %v12181_v34, %v12073_v58  ;;  %v4124_v63 = vmax.f32 %v12183_v50, 0.0  ;;  %v4127_v0 = vmax.f32 %v4095_v49, 0.0  ;;  %v12188_v49 = vld [vmem:[#allocation330_spill] sm:$0xff]  ;;  %v12194_v50 = vld [vmem:[#allocation325_spill] sm:$0xff] }
 0x33b   : > { %4176 = vmatprep.subr.mxu0 %v4133_v54  ;;  %4247 = vmatprep.subr.mxu1 %v4135_v56  ;;  %v4121_v59 = vmax.f32 %v4089_v61, 0.0  ;;  %v12185_v54 = vld [vmem:[#allocation134_spill] sm:$0xff]  ;;  %v4355_v56 = vmax.f32 %v12187_v3, 0.0  ;;  %v4354_v17 = vmax.f32 %v12188_v49, 0.0  ;;  %v12190_v61 = vld [vmem:[#allocation333_spill] sm:$0xff] }
 0x33c   : > { %4177 = vmatpush1.msra.mxu0 %v4132_v51  ;;  %4248 = vmatpush1.msra.mxu1 %v4134_v35  ;;  %v4120_v53 = vmax.f32 %v12185_v54, 0.0  ;;  %v4123_v58 = vmax.f32 %v4091_v44, 0.0  ;;  %v4122_v51 = vmax.f32 %v12186_v4, 0.0  ;;  %v12189_v35 = vld [vmem:[#allocation55_spill] sm:$0xff]  ;;  %v4356_v19 = vmax.f32 %v12190_v61, 0.0  ;;  %v12192_v44 = vld [vmem:[#allocation322_spill] sm:$0xff] }
 0x33d   : > { %4178 = vmatprep.subr.mxu0 %v4129_v16  ;;  %4249 = vmatprep.subr.mxu1 %v4131_v37  ;;  %v4357_v16 = vmax.f32 %v12189_v35, 0.0  ;;  %v4350_v47 = vmax.f32 %v12192_v44, 0.0  ;;  %v12197_v54 = vld [vmem:[#allocation124_spill] sm:$0xff] }
 0x33e   : > { %4179 = vmatpush1.msra.mxu0 %v4128_v18  ;;  %4250 = vmatpush1.msra.mxu1 %v4130_v38  ;;  %v12191_v18 = vld [vmem:[#allocation128_spill] sm:$0xff] }
 0x33f   : > { %4180 = vmatprep.subr.mxu0 %v4125_v25  ;;  %4251 = vmatprep.subr.mxu1 %v4127_v0  ;;  %v4351_v37 = vmax.f32 %v12191_v18, 0.0  ;;  %v12193_v38 = vld [vmem:[#allocation56_spill] sm:$0xff]  ;;  %v12195_v0 = vld [vmem:[#allocation122_spill] sm:$0xff] }
 0x340   : > { %4181 = vmatpush1.msra.mxu0 %v4124_v63  ;;  %4252 = vmatpush1.msra.mxu1 %v4126_v6  ;;  %v4353_v25 = vmax.f32 %v12193_v38, 0.0  ;;  %v4352_v63 = vmax.f32 %v12194_v50, 0.0  ;;  %v4347_v48 = vmax.f32 %v12195_v0, 0.0  ;;  %v12196_v6 = vld [vmem:[#allocation314_spill] sm:$0xff] }
 0x341   : > { %4182 = vmatprep.subr.mxu0 %v4121_v59  ;;  %4253 = vmatprep.subr.mxu1 %v4123_v58  ;;  %v4346_v59 = vmax.f32 %v12196_v6, 0.0  ;;  %v12198_v58 = vld [vmem:[#allocation317_spill] sm:$0xff] }
 0x342   : > { %4183 = vmatpush1.msra.mxu0 %v4120_v53  ;;  %4216 = vmatprep.mubr.f32.mxu0 %v12024_v26  ;;  %v4349_v53 = vmax.f32 %v12197_v54, 0.0  ;;  %v4348_v4 = vmax.f32 %v12198_v58, 0.0 }
 0x343   : > { %4254 = vmatpush1.msra.mxu1 %v4122_v51  ;;  %4287 = vmatprep.mubr.f32.mxu1 %v12024_v26  ;;  %v12199_v51 = vld [vmem:[#allocation349_spill] sm:$0xff] }
 0x344   : > { %6106 = vmatmul.mubr.msk.f32.vlgmr.msra.gmra.mxu0 %vm2294_vm1, %v9758_v30  ;;  %6107 = vmatmul.mubr.msk.f32.vlgmr.msra.gmra.mxu1 %vm2294_vm1, %v9758_v30  ;;  %v4343_v3 = vmax.f32 %v12199_v51, 0.0 }
 0x345   : > { %4374 = vmatprep.subr.mxu0 %v4355_v56  ;;  %4445 = vmatprep.subr.mxu1 %v4357_v16  ;;  %v12200_v56 = vld [vmem:[#allocation306_spill] sm:$0xff]  ;;  %v12202_v16 = vld [vmem:[#allocation309_spill] sm:$0xff] }
 0x346   : > { %4375 = vmatpush1.msra.mxu0 %v4354_v17  ;;  %4446 = vmatpush1.msra.mxu1 %v4356_v19  ;;  %v4342_v49 = vmax.f32 %v12200_v56, 0.0  ;;  %v12201_v17 = vld [vmem:[#allocation350_spill] sm:$0xff]  ;;  %v4344_v61 = vmax.f32 %v12202_v16, 0.0  ;;  %v12203_v19 = vld [vmem:[#allocation352_spill] sm:$0xff] }
 0x347   : > { %4376 = vmatprep.subr.mxu0 %v4351_v37  ;;  %4447 = vmatprep.subr.mxu1 %v4353_v25  ;;  %v4345_v35 = vmax.f32 %v12201_v17, 0.0  ;;  %v4339_v18 = vmax.f32 %v12203_v19, 0.0  ;;  %v12204_v37 = vld [vmem:[#allocation298_spill] sm:$0xff]  ;;  %v12206_v25 = vld [vmem:[#allocation301_spill] sm:$0xff] }
 0x348   : > { %4377 = vmatpush1.msra.mxu0 %v4350_v47  ;;  %4448 = vmatpush1.msra.mxu1 %v4352_v63  ;;  %v4338_v44 = vmax.f32 %v12204_v37, 0.0  ;;  %v12205_v47 = vld [vmem:[#allocation353_spill] sm:$0xff]  ;;  %v4340_v50 = vmax.f32 %v12206_v25, 0.0  ;;  %v12207_v63 = vld [vmem:[#allocation354_spill] sm:$0xff] }
 0x349   : > { %4378 = vmatprep.subr.mxu0 %v4347_v48  ;;  %4449 = vmatprep.subr.mxu1 %v4349_v53  ;;  %v4341_v38 = vmax.f32 %v12205_v47, 0.0  ;;  %v4335_v0 = vmax.f32 %v12207_v63, 0.0  ;;  %v12208_v48 = vld [vmem:[#allocation290_spill] sm:$0xff]  ;;  %v12210_v53 = vld [vmem:[#allocation293_spill] sm:$0xff] }
 0x34a   : > { %4379 = vmatpush1.msra.mxu0 %v4346_v59  ;;  %4450 = vmatpush1.msra.mxu1 %v4348_v4  ;;  %v4334_v6 = vmax.f32 %v12208_v48, 0.0  ;;  %v12209_v59 = vld [vmem:[#allocation355_spill] sm:$0xff]  ;;  %v4336_v58 = vmax.f32 %v12210_v53, 0.0  ;;  %v12211_v4 = vld [vmem:[#allocation356_spill] sm:$0xff] }
 0x34b   : > { %4380 = vmatprep.subr.mxu0 %v4343_v3  ;;  %4451 = vmatprep.subr.mxu1 %v4345_v35  ;;  %v4337_v54 = vmax.f32 %v12209_v59, 0.0  ;;  %v4331_v51 = vmax.f32 %v12211_v4, 0.0  ;;  %v12212_v3 = vld [vmem:[#allocation282_spill] sm:$0xff]  ;;  %v12214_v35 = vld [vmem:[#allocation285_spill] sm:$0xff] }
 0x34c   : > { %4381 = vmatpush1.msra.mxu0 %v4342_v49  ;;  %4452 = vmatpush1.msra.mxu1 %v4344_v61  ;;  %v4330_v56 = vmax.f32 %v12212_v3, 0.0  ;;  %v12213_v49 = vld [vmem:[#allocation357_spill] sm:$0xff]  ;;  %v4332_v16 = vmax.f32 %v12214_v35, 0.0  ;;  %v12215_v61 = vld [vmem:[#allocation358_spill] sm:$0xff] }
 0x34d   : > { %4382 = vmatprep.subr.mxu0 %v4339_v18  ;;  %4453 = vmatprep.subr.mxu1 %v4341_v38  ;;  %v4333_v17 = vmax.f32 %v12213_v49, 0.0  ;;  %v4327_v19 = vmax.f32 %v12215_v61, 0.0  ;;  %v12216_v18 = vld [vmem:[#allocation274_spill] sm:$0xff]  ;;  %v12218_v38 = vld [vmem:[#allocation277_spill] sm:$0xff] }
 0x34e   : > { %4383 = vmatpush1.msra.mxu0 %v4338_v44  ;;  %4454 = vmatpush1.msra.mxu1 %v4340_v50  ;;  %v4326_v37 = vmax.f32 %v12216_v18, 0.0  ;;  %v12217_v44 = vld [vmem:[#allocation359_spill] sm:$0xff]  ;;  %v4328_v25 = vmax.f32 %v12218_v38, 0.0  ;;  %v12219_v50 = vld [vmem:[#allocation121_spill] sm:$0xff] }
 0x34f   : > { %4384 = vmatprep.subr.mxu0 %v4335_v0  ;;  %4455 = vmatprep.subr.mxu1 %v4337_v54  ;;  %v4329_v47 = vmax.f32 %v12217_v44, 0.0  ;;  %v4561_v63 = vmax.f32 %v12219_v50, 0.0  ;;  %v12220_v0 = vld [vmem:[#allocation120_spill] sm:$0xff]  ;;  %v12222_v54 = vld [vmem:[#allocation103_spill] sm:$0xff] }
 0x350   : > { %4385 = vmatpush1.msra.mxu0 %v4334_v6  ;;  %4456 = vmatpush1.msra.mxu1 %v4336_v58  ;;  %v4563_v48 = vmax.f32 %v12220_v0, 0.0  ;;  %v12221_v6 = vld [vmem:[#allocation38_spill] sm:$0xff]  ;;  %v4562_v53 = vmax.f32 %v12222_v54, 0.0 }
 0x351   : > { %4386 = vmatprep.subr.mxu0 %v4331_v51  ;;  %4457 = vmatprep.subr.mxu1 %v4333_v17  ;;  %v4560_v59 = vmax.f32 %v12221_v6, 0.0  ;;  %v12223_v58 = vld [vmem:[#allocation114_spill] sm:$0xff]  ;;  %v12226_v17 = vld [vmem:[#allocation59_spill] sm:$0xff] }
 0x352   : > { %4387 = vmatpush1.msra.mxu0 %v4330_v56  ;;  %4458 = vmatpush1.msra.mxu1 %v4332_v16  ;;  %v4557_v4 = vmax.f32 %v12223_v58, 0.0  ;;  %v12224_v51 = vld [vmem:[#allocation118_spill] sm:$0xff]  ;;  %v12225_v56 = vld [vmem:[#allocation39_spill] sm:$0xff]  ;;  %v4558_v35 = vmax.f32 %v12226_v17, 0.0  ;;  %v12227_v16 = vld [vmem:[#allocation108_spill] sm:$0xff] }
 0x353   : > { %4388 = vmatprep.subr.mxu0 %v4327_v19  ;;  %4459 = vmatprep.subr.mxu1 %v4329_v47  ;;  %v4559_v3 = vmax.f32 %v12224_v51, 0.0  ;;  %v4556_v49 = vmax.f32 %v12225_v56, 0.0  ;;  %v4553_v61 = vmax.f32 %v12227_v16, 0.0  ;;  %v12228_v19 = vld [vmem:[#allocation107_spill] sm:$0xff]  ;;  %v12230_v47 = vld [vmem:[#allocation60_spill] sm:$0xff]  ;;  %v12238_v17 = vld [vmem:[#allocation54_spill] sm:$0xff] }
 0x354   : > { %4389 = vmatpush1.msra.mxu0 %v4326_v37  ;;  %4422 = vmatprep.mubr.f32.mxu0 %v12024_v26  ;;  %v4555_v18 = vmax.f32 %v12228_v19, 0.0  ;;  %v12229_v37 = vld [vmem:[#allocation40_spill] sm:$0xff]  ;;  %v4554_v38 = vmax.f32 %v12230_v47, 0.0  ;;  %v12239_v16 = vld [vmem:[#allocation125_spill] sm:$0xff]  ;;  %v4507_v19 = vadd.f32 %v12177_v57, %v12136_v20 }
 0x355   : > { %4460 = vmatpush1.msra.mxu1 %v4328_v25  ;;  %4493 = vmatprep.mubr.f32.mxu1 %v12024_v26  ;;  %v4552_v44 = vmax.f32 %v12229_v37, 0.0  ;;  %v12231_v25 = vld [vmem:[#allocation112_spill] sm:$0xff] }
 0x356   : > { %6108 = vmatmul.mubr.msk.f32.vlgmr.msra.gmra.mxu0 %vm2294_vm1, %v9758_v30  ;;  %6109 = vmatmul.mubr.msk.f32.vlgmr.msra.gmra.mxu1 %vm2294_vm1, %v9758_v30  ;;  %v4549_v50 = vmax.f32 %v12231_v25, 0.0 }
 0x357   : > { %4580 = vmatprep.subr.mxu0 %v4561_v63  ;;  %4651 = vmatprep.subr.mxu1 %v4563_v48  ;;  %v12232_v63 = vld [vmem:[#allocation111_spill] sm:$0xff]  ;;  %v12233_v48 = vld [vmem:[#allocation41_spill] sm:$0xff] }
 0x358   : > { %4581 = vmatpush1.msra.mxu0 %v4560_v59  ;;  %4652 = vmatpush1.msra.mxu1 %v4562_v53  ;;  %v4551_v0 = vmax.f32 %v12232_v63, 0.0  ;;  %v4548_v6 = vmax.f32 %v12233_v48, 0.0  ;;  %v12234_v59 = vld [vmem:[#allocation77_spill] sm:$0xff]  ;;  %v12235_v53 = vld [vmem:[#allocation115_spill] sm:$0xff]  ;;  %v4501_v63 = vadd.f32 %v12179_v43, %v12143_v36  ;;  %v12247_v43 = vld [vmem:[#allocation68_spill] sm:$0xff] }
 0x359   : > { %4582 = vmatprep.subr.mxu0 %v4557_v4  ;;  %4653 = vmatprep.subr.mxu1 %v4559_v3  ;;  %v4508_v54 = vadd.f32 %v12234_v59, %v12127_v46  ;;  %v4550_v58 = vmax.f32 %v12235_v53, 0.0  ;;  %v12236_v4 = vld [vmem:[#allocation57_spill] sm:$0xff]  ;;  %v12237_v3 = vld [vmem:[#allocation78_spill] sm:$0xff] }
 0x35a   : > { %4583 = vmatpush1.msra.mxu0 %v4556_v49  ;;  %4654 = vmatpush1.msra.mxu1 %v4558_v35  ;;  %v4545_v51 = vmax.f32 %v12236_v4, 0.0  ;;  %v4510_v56 = vadd.f32 %v12237_v3, %v12131_v14  ;;  %v4505_v49 = vadd.f32 %v12175_v5, %v12133_v52  ;;  %v4547_v35 = vmax.f32 %v12238_v17, 0.0  ;;  %v12243_v5 = vld [vmem:[#allocation74_spill] sm:$0xff] }
 0x35b   : > { %4584 = vmatprep.subr.mxu0 %v4553_v61  ;;  %4655 = vmatprep.subr.mxu1 %v4555_v18  ;;  %v4544_v61 = vmax.f32 %v12239_v16, 0.0  ;;  %v12240_v18 = vld [vmem:[#allocation72_spill] sm:$0xff]  ;;  %v4540_v57 = vmax.f32 %v4508_v54, 0.0  ;;  %v12245_v59 = vld [vmem:[#allocation182_spill] sm:$0xff]  ;;  %v4502_v17 = vadd.f32 %v12247_v43, %v12148_v28  ;;  %v12258_v43 = vld [vmem:[#allocation319_spill] sm:$0xff] }
 0x35c   : > { %4585 = vmatpush1.msra.mxu0 %v4552_v44  ;;  %4656 = vmatpush1.msra.mxu1 %v4554_v38  ;;  %v4504_v37 = vadd.f32 %v12240_v18, %v12137_v27  ;;  %v12241_v44 = vld [vmem:[#allocation126_spill] sm:$0xff]  ;;  %v12242_v38 = vld [vmem:[#allocation116_spill] sm:$0xff]  ;;  %v4500_v53 = vadd.f32 %v12245_v59, %v12146_v2  ;;  %v4537_v3 = vmax.f32 %v4505_v49, 0.0  ;;  %v12250_v49 = vld [vmem:[#allocation335_spill] sm:$0xff] }
 0x35d   : > { %4586 = vmatprep.subr.mxu0 %v4549_v50  ;;  %4657 = vmatprep.subr.mxu1 %v4551_v0  ;;  %v4546_v47 = vmax.f32 %v12241_v44, 0.0  ;;  %v4541_v25 = vmax.f32 %v12242_v38, 0.0  ;;  %v4506_v50 = vadd.f32 %v12243_v5, %v12141_v55  ;;  %v12244_v0 = vld [vmem:[#allocation119_spill] sm:$0xff]  ;;  %v12251_v38 = vld [vmem:[#allocation189_spill] sm:$0xff]  ;;  %v12255_v59 = vld [vmem:[#allocation184_spill] sm:$0xff] }
 0x35e   : > { %4587 = vmatpush1.msra.mxu0 %v4548_v6  ;;  %4658 = vmatpush1.msra.mxu1 %v4550_v58  ;;  %v4543_v48 = vmax.f32 %v12244_v0, 0.0  ;;  %v4503_v6 = vadd.f32 %v12181_v34, %v12145_v32  ;;  %v12246_v58 = vld [vmem:[#allocation102_spill] sm:$0xff]  ;;  %v4539_v34 = vmax.f32 %v4507_v19, 0.0  ;;  %v4536_v16 = vmax.f32 %v4504_v37, 0.0  ;;  %v12252_v37 = vld [vmem:[#allocation336_spill] sm:$0xff]  ;;  %v12253_v0 = vld [vmem:[#allocation183_spill] sm:$0xff] }
 0x35f   : > { %4588 = vmatprep.subr.mxu0 %v4545_v51  ;;  %4659 = vmatprep.subr.mxu1 %v4547_v35  ;;  %v9890_v4 = vadd.f32 %v12000_v41, %v12246_v58  ;;  %v4542_v51 = vmax.f32 %v4510_v56, 0.0  ;;  %v12248_v35 = vld [vmem:[#allocation192_spill] sm:$0xff]  ;;  %v4538_v44 = vmax.f32 %v4506_v50, 0.0  ;;  %v4533_v56 = vmax.f32 %v4501_v63, 0.0  ;;  %v12254_v63 = vld [vmem:[#allocation327_spill] sm:$0xff]  ;;  %v12257_v58 = vld [vmem:[#allocation178_spill] sm:$0xff] }
 0x360   : > { %4589 = vmatpush1.msra.mxu0 %v4544_v61  ;;  %4660 = vmatpush1.msra.mxu1 %v4546_v47  ;;  %v9896_v54 = vadd.f32 %v12000_v41, %v12248_v35  ;;  %v12249_v61 = vld [vmem:[#allocation188_spill] sm:$0xff]  ;;  %v4535_v41 = vmax.f32 %v4503_v6, 0.0  ;;  %v4532_v19 = vmax.f32 %v4500_v53, 0.0  ;;  %v4534_v50 = vmax.f32 %v4502_v17, 0.0  ;;  %v12259_v35 = vld [vmem:[#allocation179_spill] sm:$0xff] }
 0x361   : > { %4590 = vmatprep.subr.mxu0 %v4541_v25  ;;  %4661 = vmatprep.subr.mxu1 %v4543_v48  ;;  %v9900_v18 = vadd.f32 %v11997_v1, %v12249_v61  ;;  %v4735_v47 = vadd.f32 %v9890_v4, %v12250_v49  ;;  %v9906_v25 = vadd.f32 %v11997_v1, %v12251_v38  ;;  %v12256_v6 = vld [vmem:[#allocation328_spill] sm:$0xff]  ;;  %v12262_v49 = vld [vmem:[#allocation174_spill] sm:$0xff] }
 0x362   : > { %4591 = vmatpush1.msra.mxu0 %v4540_v57  ;;  %4662 = vmatpush1.msra.mxu1 %v4542_v51  ;;  %v4737_v5 = vadd.f32 %v9896_v54, %v12252_v37  ;;  %v9912_v48 = vadd.f32 %v11993_v21, %v12253_v0  ;;  %v9918_v1 = vadd.f32 %v11993_v21, %v12255_v59  ;;  %v12263_v38 = vld [vmem:[#allocation334_spill] sm:$0xff]  ;;  %v12265_v0 = vld [vmem:[#allocation175_spill] sm:$0xff] }
 0x363   : > { %4592 = vmatprep.subr.mxu0 %v4537_v3  ;;  %4663 = vmatprep.subr.mxu1 %v4539_v34  ;;  %v4731_v57 = vadd.f32 %v9900_v18, %v12254_v63  ;;  %v4733_v53 = vadd.f32 %v9906_v25, %v12256_v6  ;;  %v9924_v51 = vadd.f32 %v11989_v13, %v12257_v58  ;;  %v4767_v3 = vmax.f32 %v4735_v47, 0.0  ;;  %v12260_v34 = vld [vmem:[#allocation331_spill] sm:$0xff]  ;;  %v12267_v6 = vld [vmem:[#allocation312_spill] sm:$0xff] }
 0x364   : > { %4593 = vmatpush1.msra.mxu0 %v4536_v16  ;;  %4664 = vmatpush1.msra.mxu1 %v4538_v44  ;;  %v4727_v17 = vadd.f32 %v9912_v48, %v12258_v43  ;;  %v9931_v21 = vadd.f32 %v11989_v13, %v12259_v35  ;;  %v4766_v16 = vmax.f32 %v12260_v34, 0.0  ;;  %v4769_v61 = vmax.f32 %v4737_v5, 0.0  ;;  %v12261_v44 = vld [vmem:[#allocation320_spill] sm:$0xff]  ;;  %v12268_v43 = vld [vmem:[#allocation170_spill] sm:$0xff] }
 0x365   : > { %4594 = vmatprep.subr.mxu0 %v4533_v56  ;;  %4665 = vmatprep.subr.mxu1 %v4535_v41  ;;  %v4729_v56 = vadd.f32 %v9918_v1, %v12261_v44  ;;  %v9941_v47 = vadd.f32 %v11986_v29, %v12262_v49  ;;  %v4768_v41 = vmax.f32 %v12263_v38, 0.0  ;;  %v4763_v13 = vmax.f32 %v4731_v57, 0.0  ;;  %v12269_v57 = vld [vmem:[#allocation326_spill] sm:$0xff]  ;;  %v12270_v44 = vld [vmem:[#allocation303_spill] sm:$0xff] }
 0x366   : > { %4595 = vmatpush1.msra.mxu0 %v4532_v19  ;;  %4628 = vmatprep.mubr.f32.mxu0 %v12024_v26  ;;  %v12264_v19 = vld [vmem:[#allocation311_spill] sm:$0xff]  ;;  %v9950_v5 = vadd.f32 %v11986_v29, %v12265_v0  ;;  %v4765_v59 = vmax.f32 %v4733_v53, 0.0  ;;  %v4725_v58 = vadd.f32 %v9931_v21, %v12267_v6  ;;  %v9957_v35 = vadd.f32 %v12045_v39, %v12268_v43  ;;  %v12275_v6 = vld [vmem:[#allocation81_spill] sm:$0xff] }
 0x367   : > { %4666 = vmatpush1.msra.mxu1 %v4534_v50  ;;  %4699 = vmatprep.mubr.f32.mxu1 %v12024_v26  ;;  %v4723_v37 = vadd.f32 %v9924_v51, %v12264_v19  ;;  %v12266_v50 = vld [vmem:[#allocation323_spill] sm:$0xff]  ;;  %v4759_v34 = vmax.f32 %v4727_v17, 0.0  ;;  %v4719_v29 = vadd.f32 %v9941_v47, %v12270_v44  ;;  %v4761_v38 = vmax.f32 %v4729_v56, 0.0  ;;  %v12273_v19 = vld [vmem:[#allocation304_spill] sm:$0xff]  ;;  %v12276_v17 = vld [vmem:[#allocation318_spill] sm:$0xff] }
 0x368   : > { %6110 = vmatmul.mubr.msk.f32.vlgmr.msra.gmra.mxu0 %vm2294_vm1, %v9758_v30  ;;  %6111 = vmatmul.mubr.msk.f32.vlgmr.msra.gmra.mxu1 %vm2294_vm1, %v9758_v30  ;;  %v4762_v63 = vmax.f32 %v12266_v50, 0.0  ;;  %v12271_v49 = vld [vmem:[#allocation171_spill] sm:$0xff]  ;;  %v4721_v0 = vadd.f32 %v9950_v5, %v12273_v19  ;;  %v12274_v50 = vld [vmem:[#allocation166_spill] sm:$0xff]  ;;  %v12280_v19 = vld [vmem:[#allocation296_spill] sm:$0xff] }
 0x369   : > { %4786 = vmatprep.subr.mxu0 %v4767_v3  ;;  %4857 = vmatprep.subr.mxu1 %v4769_v61  ;;  %v4764_v3 = vmax.f32 %v12269_v57, 0.0  ;;  %v9964_v61 = vadd.f32 %v12045_v39, %v12271_v49  ;;  %v12272_v53 = vld [vmem:[#allocation315_spill] sm:$0xff]  ;;  %v4755_v43 = vmax.f32 %v4723_v37, 0.0  ;;  %v12281_v39 = vld [vmem:[#allocation162_spill] sm:$0xff] }
 0x36a   : > { %4787 = vmatpush1.msra.mxu0 %v4766_v16  ;;  %4858 = vmatpush1.msra.mxu1 %v4768_v41  ;;  %v4758_v16 = vmax.f32 %v12272_v53, 0.0  ;;  %v9971_v41 = vadd.f32 %v12275_v6, %v12274_v50  ;;  %v12277_v57 = vld [vmem:[#allocation295_spill] sm:$0xff]  ;;  %v4757_v53 = vmax.f32 %v4725_v58, 0.0  ;;  %v12283_v37 = vld [vmem:[#allocation310_spill] sm:$0xff] }
 0x36b   : > { %4788 = vmatprep.subr.mxu0 %v4763_v13  ;;  %4859 = vmatprep.subr.mxu1 %v4765_v59  ;;  %v4760_v13 = vmax.f32 %v12276_v17, 0.0  ;;  %v4715_v44 = vadd.f32 %v9957_v35, %v12277_v57  ;;  %v12278_v49 = vld [vmem:[#allocation167_spill] sm:$0xff]  ;;  %v4717_v50 = vadd.f32 %v9964_v61, %v12280_v19  ;;  %v4751_v57 = vmax.f32 %v4719_v29, 0.0  ;;  %v12287_v19 = vld [vmem:[#allocation288_spill] sm:$0xff] }
 0x36c   : > { %4789 = vmatpush1.msra.mxu0 %v4762_v63  ;;  %4860 = vmatpush1.msra.mxu1 %v4764_v3  ;;  %v9978_v59 = vadd.f32 %v12275_v6, %v12278_v49  ;;  %v12279_v56 = vld [vmem:[#allocation307_spill] sm:$0xff]  ;;  %v4711_v49 = vadd.f32 %v9971_v41, %v12284_v8 }
 0x36d   : > { %4790 = vmatprep.subr.mxu0 %v4759_v34  ;;  %v4754_v63 = vmax.f32 %v12279_v56, 0.0  ;;  %4861 = vmatprep.subr.mxu1 %v4761_v38  ;;  %v12282_v17 = vld [vmem:[#allocation79_spill] sm:$0xff]  ;;  %v4756_v34 = vmax.f32 %v12283_v37, 0.0  ;;  %v4753_v56 = vmax.f32 %v4721_v0, 0.0  ;;  %v4752_v37 = vmax.f32 %v12288_v42, 0.0  ;;  %v12292_v0 = vld [vmem:[#allocation294_spill] sm:$0xff] }
 0x36e   : > { %4791 = vmatpush1.msra.mxu0 %v4758_v16  ;;  %v9985_v3 = vadd.f32 %v12282_v17, %v12281_v39  ;;  %4862 = vmatpush1.msra.mxu1 %v4760_v13  ;;  %v12285_v6 = vld [vmem:[#allocation163_spill] sm:$0xff]  ;;  %v4713_v39 = vadd.f32 %v9978_v59, %v12287_v19  ;;  %v4747_v29 = vmax.f32 %v4715_v44, 0.0  ;;  %v4743_v19 = vmax.f32 %v4711_v49, 0.0 }
 0x36f   : > { %4792 = vmatprep.subr.mxu0 %v4755_v43  ;;  %v9992_v38 = vadd.f32 %v12282_v17, %v12285_v6  ;;  %v12286_v58 = vld [vmem:[#allocation299_spill] sm:$0xff]  ;;  %4863 = vmatprep.subr.mxu1 %v4757_v53  ;;  %v4749_v6 = vmax.f32 %v4717_v50, 0.0  ;;  %v4748_v53 = vmax.f32 %v12292_v0, 0.0  ;;  %v4941_v50 = vadd.f32 %v9890_v4, %v9236_v40 }
 0x370   : > { %v4750_v16 = vmax.f32 %v12286_v58, 0.0  ;;  %4793 = vmatpush1.msra.mxu0 %v4754_v63  ;;  %4864 = vmatpush1.msra.mxu1 %v4756_v34  ;;  %v12289_v13 = vld [vmem:[#allocation279_spill] sm:$0xff]  ;;  %v12291_v58 = vld [vmem:[#allocation280_spill] sm:$0xff]  ;;  %v4745_v44 = vmax.f32 %v4713_v39, 0.0  ;;  %v4943_v49 = vadd.f32 %v9896_v54, %v9248_v45  ;;  %v4939_v40 = vadd.f32 %v9906_v25, %v9182_v33  ;;  %v12297_v54 = vld [vmem:[#allocation101_spill] sm:$0xff] }
 0x371   : > { %4794 = vmatprep.subr.mxu0 %v4751_v57  ;;  %v4707_v8 = vadd.f32 %v9985_v3, %v12289_v13  ;;  %v12290_v43 = vld [vmem:[#allocation291_spill] sm:$0xff]  ;;  %4865 = vmatprep.subr.mxu1 %v4753_v56  ;;  %v4709_v63 = vadd.f32 %v9992_v38, %v12291_v58  ;;  %v12294_v57 = vld [vmem:[#allocation286_spill] sm:$0xff]  ;;  %v4973_v4 = vmax.f32 %v4941_v50, 0.0  ;;  %v4933_v39 = vadd.f32 %v9912_v48, %v9112_v15  ;;  %v12298_v33 = vld [vmem:[#allocation104_spill] sm:$0xff] }
 0x372   : > { %v4746_v23 = vmax.f32 %v12290_v43, 0.0  ;;  %4795 = vmatpush1.msra.mxu0 %v4750_v16  ;;  %4866 = vmatpush1.msra.mxu1 %v4752_v37  ;;  %v12293_v42 = vld [vmem:[#allocation283_spill] sm:$0xff]  ;;  %v4744_v13 = vmax.f32 %v12294_v57, 0.0  ;;  %v4975_v45 = vmax.f32 %v4943_v49, 0.0  ;;  %v4974_v25 = vmax.f32 %v12298_v33, 0.0  ;;  %v12304_v50 = vld [vmem:[#allocation168_spill] sm:$0xff] }
 0x373   : > { %4796 = vmatprep.subr.mxu0 %v4747_v29  ;;  %v4742_v34 = vmax.f32 %v12293_v42, 0.0  ;;  %4867 = vmatprep.subr.mxu1 %v4749_v6  ;;  %v4739_v56 = vmax.f32 %v4707_v8, 0.0  ;;  %v12295_v16 = vld [vmem:[#allocation275_spill] sm:$0xff]  ;;  %v4741_v37 = vmax.f32 %v4709_v63, 0.0  ;;  %v12296_v29 = vld [vmem:[#allocation278_spill] sm:$0xff]  ;;  %v4929_v15 = vadd.f32 %v9924_v51, %v9088_v10  ;;  %v12311_v33 = vld [vmem:[#allocation160_spill] sm:$0xff] }
 0x374   : > { %4797 = vmatpush1.msra.mxu0 %v4746_v23  ;;  %4868 = vmatpush1.msra.mxu1 %v4748_v53  ;;  %v4738_v43 = vmax.f32 %v12295_v16, 0.0  ;;  %v4740_v6 = vmax.f32 %v12296_v29, 0.0  ;;  %v4937_v23 = vadd.f32 %v9900_v18, %v9164_v9  ;;  %v4972_v9 = vmax.f32 %v12297_v54, 0.0  ;;  %v12299_v58 = vld [vmem:[#allocation83_spill] sm:$0xff]  ;;  %v12301_v10 = vld [vmem:[#allocation370_spill] sm:$0xff]  ;;  %v12307_v29 = vld [vmem:[#allocation84_spill] sm:$0xff] }
 0x375   : > { %4798 = vmatprep.subr.mxu0 %v4743_v19  ;;  %4869 = vmatprep.subr.mxu1 %v4745_v44  ;;  %v4935_v18 = vadd.f32 %v9918_v1, %v9118_v24  ;;  %v4971_v48 = vmax.f32 %v4939_v40, 0.0  ;;  %v4968_v63 = vmax.f32 %v12299_v58, 0.0  ;;  %v4931_v0 = vadd.f32 %v9931_v21, %v9094_v31  ;;  %v12300_v24 = vld [vmem:[#allocation86_spill] sm:$0xff]  ;;  %v12302_v44 = vld [vmem:[#allocation99_spill] sm:$0xff] }
 0x376   : > { %4799 = vmatpush1.msra.mxu0 %v4742_v34  ;;  %4870 = vmatpush1.msra.mxu1 %v4744_v13  ;;  %v4969_v8 = vmax.f32 %v4937_v23, 0.0  ;;  %v4970_v1 = vmax.f32 %v12300_v24, 0.0  ;;  %v4965_v53 = vmax.f32 %v4933_v39, 0.0  ;;  %v4925_v19 = vadd.f32 %v9941_v47, %v9064_v11  ;;  %v12303_v11 = vld [vmem:[#allocation94_spill] sm:$0xff]  ;;  %v12309_v40 = vld [vmem:[#allocation383_spill] sm:$0xff] }
 0x377   : > { %4800 = vmatprep.subr.mxu0 %v4739_v56  ;;  %4871 = vmatprep.subr.mxu1 %v4741_v37  ;;  %v4967_v42 = vmax.f32 %v4935_v18, 0.0  ;;  %v4964_v51 = vmax.f32 %v12301_v10, 0.0  ;;  %v4927_v34 = vadd.f32 %v9950_v5, %v9070_v22  ;;  %v4966_v31 = vmax.f32 %v12302_v44, 0.0  ;;  %v12305_v22 = vld [vmem:[#allocation88_spill] sm:$0xff]  ;;  %v12306_v37 = vld [vmem:[#allocation169_spill] sm:$0xff] }
 0x378   : > { %4801 = vmatpush1.msra.mxu0 %v4738_v43  ;;  %4834 = vmatprep.mubr.f32.mxu0 %v12024_v26  ;;  %v4961_v21 = vmax.f32 %v4929_v15, 0.0  ;;  %v4921_v57 = vadd.f32 %v9957_v35, %v9044_v7  ;;  %v4963_v13 = vmax.f32 %v4931_v0, 0.0  ;;  %v4960_v47 = vmax.f32 %v12303_v11, 0.0  ;;  %v12313_v10 = vld [vmem:[#allocation380_spill] sm:$0xff] }
 0x379   : > { %4872 = vmatpush1.msra.mxu1 %v4740_v6  ;;  %4905 = vmatprep.mubr.f32.mxu1 %v12024_v26  ;;  %v4923_v56 = vadd.f32 %v9964_v61, %v11901_v12  ;;  %v4920_v16 = vadd.f32 %v12304_v50, %v12127_v46  ;;  %v4962_v5 = vmax.f32 %v12305_v22, 0.0  ;;  %v4957_v43 = vmax.f32 %v4925_v19, 0.0  ;;  %v12308_v61 = vld [vmem:[#allocation164_spill] sm:$0xff] }
 0x37a   : > { %6112 = vmatmul.mubr.msk.f32.vlgmr.msra.gmra.mxu0 %vm2294_vm1, %v9758_v30  ;;  %6113 = vmatmul.mubr.msk.f32.vlgmr.msra.gmra.mxu1 %vm2294_vm1, %v9758_v30  ;;  %v4922_v49 = vadd.f32 %v12306_v37, %v12131_v14  ;;  %v4917_v7 = vadd.f32 %v9971_v41, %v12133_v52  ;;  %v4959_v35 = vmax.f32 %v4927_v34, 0.0  ;;  %v4956_v6 = vmax.f32 %v12307_v29, 0.0  ;;  %v12314_v34 = vld [vmem:[#allocation248_spill] sm:$0xff]  ;;  %v12322_v37 = vld [vmem:[#allocation45_spill] sm:$0xff] }
 0x37b   : > { %4992 = vmatprep.subr.mxu0 %v4973_v4  ;;  %5063 = vmatprep.subr.mxu1 %v4975_v45  ;;  %v4919_v12 = vadd.f32 %v9978_v59, %v12136_v20  ;;  %v4916_v23 = vadd.f32 %v12308_v61, %v12137_v27  ;;  %v4958_v4 = vmax.f32 %v12309_v40, 0.0  ;;  %v4953_v39 = vmax.f32 %v4921_v57, 0.0  ;;  %v12310_v45 = vld [vmem:[#allocation165_spill] sm:$0xff]  ;;  %v12327_v40 = vld [vmem:[#allocation131_spill] sm:$0xff] }
 0x37c   : > { %4993 = vmatpush1.msra.mxu0 %v4972_v9  ;;  %5064 = vmatpush1.msra.mxu1 %v4974_v25  ;;  %v4918_v54 = vadd.f32 %v12310_v45, %v12141_v55  ;;  %v4913_v41 = vadd.f32 %v9985_v3, %v12143_v36  ;;  %v4955_v9 = vmax.f32 %v4923_v56, 0.0  ;;  %v4952_v18 = vmax.f32 %v4920_v16, 0.0  ;;  %v12316_v57 = vld [vmem:[#allocation377_spill] sm:$0xff]  ;;  %v12329_v45 = vld [vmem:[#allocation154_spill] sm:$0xff] }
 0x37d   : > { %4994 = vmatprep.subr.mxu0 %v4969_v8  ;;  %5065 = vmatprep.subr.mxu1 %v4971_v48  ;;  %v4915_v59 = vadd.f32 %v9992_v38, %v12145_v32  ;;  %v4912_v25 = vadd.f32 %v12311_v33, %v12146_v2  ;;  %v4954_v8 = vmax.f32 %v4922_v49, 0.0  ;;  %v4949_v15 = vmax.f32 %v4917_v7, 0.0  ;;  %v12312_v48 = vld [vmem:[#allocation161_spill] sm:$0xff] }
 0x37e   : > { %4995 = vmatpush1.msra.mxu0 %v4968_v63  ;;  %5066 = vmatpush1.msra.mxu1 %v4970_v1  ;;  %v4914_v58 = vadd.f32 %v12312_v48, %v12148_v28  ;;  %v4951_v3 = vmax.f32 %v4919_v12, 0.0  ;;  %v4948_v63 = vmax.f32 %v4916_v23, 0.0  ;;  %v4950_v0 = vmax.f32 %v4918_v54, 0.0  ;;  %v12320_v16 = vld [vmem:[#allocation53_spill] sm:$0xff] }
 0x37f   : > { %4996 = vmatprep.subr.mxu0 %v4965_v53  ;;  %5067 = vmatprep.subr.mxu1 %v4967_v42  ;;  %v4945_v24 = vmax.f32 %v4913_v41, 0.0  ;;  %v4947_v38 = vmax.f32 %v4915_v59, 0.0  ;;  %v4944_v1 = vmax.f32 %v4912_v25, 0.0  ;;  %v5179_v19 = vmax.f32 %v9527_v60, 0.0  ;;  %v12323_v49 = vld [vmem:[#allocation81_spill] sm:$0xff]  ;;  %v12333_v25 = vld [vmem:[#allocation191_spill] sm:$0xff] }
 0x380   : > { %4997 = vmatpush1.msra.mxu0 %v4964_v51  ;;  %5068 = vmatpush1.msra.mxu1 %v4966_v31  ;;  %v4946_v53 = vmax.f32 %v4914_v58, 0.0  ;;  %v5181_v42 = vmax.f32 %v9535_v62, 0.0  ;;  %v5178_v51 = vmax.f32 %v12313_v10, 0.0  ;;  %v2085_v44 = vadd.f32 %v12282_v17, %v12314_v34  ;;  %v12315_v31 = vld [vmem:[#allocation381_spill] sm:$0xff]  ;;  %v12319_v62 = vld [vmem:[#allocation42_spill] sm:$0xff] }
 0x381   : > { %4998 = vmatprep.subr.mxu0 %v4961_v21  ;;  %5069 = vmatprep.subr.mxu1 %v4963_v13  ;;  %v5180_v21 = vmax.f32 %v12315_v31, 0.0  ;;  %v5175_v60 = vmax.f32 %v12316_v57, 0.0  ;;  %v12317_v13 = vld [vmem:[#allocation249_spill] sm:$0xff]  ;;  %v5177_v50 = vmax.f32 %v12319_v62, 0.0  ;;  %v5174_v22 = vmax.f32 %v12320_v16, 0.0  ;;  %v12335_v58 = vld [vmem:[#allocation90_spill] sm:$0xff] }
 0x382   : > { %4999 = vmatpush1.msra.mxu0 %v4960_v47  ;;  %5070 = vmatpush1.msra.mxu1 %v4962_v5  ;;  %v2087_v11 = vadd.f32 %v12282_v17, %v12317_v13  ;;  %v12318_v47 = vld [vmem:[#allocation250_spill] sm:$0xff]  ;;  %v12321_v5 = vld [vmem:[#allocation251_spill] sm:$0xff]  ;;  %v2105_v7 = vadd.f32 %v12323_v49, %v12322_v37  ;;  %v12326_v61 = vld [vmem:[#allocation89_spill] sm:$0xff]  ;;  %v5173_v54 = vmax.f32 %v12329_v45, 0.0 }
 0x383   : > { %5000 = vmatprep.subr.mxu0 %v4957_v43  ;;  %5071 = vmatprep.subr.mxu1 %v4959_v35  ;;  %v2086_v56 = vadd.f32 %v12282_v17, %v12318_v47  ;;  %v2088_v43 = vadd.f32 %v12282_v17, %v12321_v5  ;;  %v12324_v35 = vld [vmem:[#allocation48_spill] sm:$0xff]  ;;  %v2107_v23 = vadd.f32 %v12323_v49, %v12326_v61  ;;  %v12330_v17 = vld [vmem:[#allocation190_spill] sm:$0xff]  ;;  %v12332_v59 = vld [vmem:[#allocation193_spill] sm:$0xff] }
 0x384   : > { %5001 = vmatpush1.msra.mxu0 %v4956_v6  ;;  %5072 = vmatpush1.msra.mxu1 %v4958_v4  ;;  %v5176_v29 = vmax.f32 %v12324_v35, 0.0  ;;  %v12325_v6 = vld [vmem:[#allocation46_spill] sm:$0xff]  ;;  %v12328_v4 = vld [vmem:[#allocation71_spill] sm:$0xff]  ;;  %v5170_v41 = vmax.f32 %v12330_v17, 0.0  ;;  %v12340_v31 = vld [vmem:[#allocation16_spill] sm:$0xff]  ;;  %v5120_v35 = vadd.f32 %v2087_v11, %v12148_v28  ;;  %v10132_v28 = vpop.f32.mrf.mxu0 }
 0x385   : > { %5002 = vmatprep.subr.mxu0 %v4953_v39  ;;  %5073 = vmatprep.subr.mxu1 %v4955_v9  ;;  %v5171_v12 = vmax.f32 %v12325_v6, 0.0  ;;  %v2125_v39 = vadd.f32 %v12328_v4, %v12327_v40  ;;  %v12331_v9 = vld [vmem:[#allocation197_spill] sm:$0xff]  ;;  %v2127_v33 = vadd.f32 %v12328_v4, %v12332_v59  ;;  %v12341_v57 = vld [vmem:[#allocation150_spill] sm:$0xff] }
 0x386   : > { %5003 = vmatpush1.msra.mxu0 %v4952_v18  ;;  %5074 = vmatpush1.msra.mxu1 %v4954_v8  ;;  %v2106_v18 = vadd.f32 %v12323_v49, %v12331_v9  ;;  %v5172_v8 = vmax.f32 %v12333_v25, 0.0  ;;  %v12342_v47 = vld [vmem:[#allocation153_spill] sm:$0xff]  ;;  %v10136_v11 = vpop.f32.mrf.mxu0 }
 0x387   : > { %5004 = vmatprep.subr.mxu0 %v4949_v15  ;;  %5075 = vmatprep.subr.mxu1 %v4951_v3  ;;  %v12334_v15 = vld [vmem:[#allocation47_spill] sm:$0xff]  ;;  %v2108_v3 = vadd.f32 %v12323_v49, %v12335_v58  ;;  %v5164_v62 = vmax.f32 %v12342_v47, 0.0  ;;  %v5121_v49 = vadd.f32 %v2088_v43, %v12145_v32 }
 0x388   : > { %5005 = vmatpush1.msra.mxu0 %v4948_v63  ;;  %5076 = vmatpush1.msra.mxu1 %v4950_v0  ;;  %v5167_v48 = vmax.f32 %v12334_v15, 0.0  ;;  %v12336_v63 = vld [vmem:[#allocation152_spill] sm:$0xff]  ;;  %v5123_v34 = vadd.f32 %v2106_v18, %v12133_v52  ;;  %v5119_v52 = vadd.f32 %v2086_v56, %v12143_v36 }
 0x389   : > { %5006 = vmatprep.subr.mxu0 %v4945_v24  ;;  %5077 = vmatprep.subr.mxu1 %v4947_v38  ;;  %v5169_v0 = vmax.f32 %v12336_v63, 0.0  ;;  %v12337_v24 = vld [vmem:[#allocation351_spill] sm:$0xff]  ;;  %v5125_v13 = vadd.f32 %v2108_v3, %v12136_v20  ;;  %v5118_v20 = vadd.f32 %v2085_v44, %v12146_v2  ;;  %v5153_v6 = vmax.f32 %v5121_v49, 0.0  ;;  %v10134_v44 = vpop.f32.mrf.mxu1 }
 0x38a   : > { %5007 = vmatpush1.msra.mxu0 %v4944_v1  ;;  %5040 = vmatprep.mubr.f32.mxu0 %v12024_v26  ;;  %v5166_v38 = vmax.f32 %v12337_v24, 0.0  ;;  %v5126_v1 = vadd.f32 %v2125_v39, %v12127_v46  ;;  %v5122_v46 = vadd.f32 %v2105_v7, %v12137_v27  ;;  %v5155_v7 = vmax.f32 %v5123_v34, 0.0 }
 0x38b   : > { %5078 = vmatpush1.msra.mxu1 %v4946_v53  ;;  %5111 = vmatprep.mubr.f32.mxu1 %v12024_v26  ;;  %v12338_v53 = vld [vmem:[#allocation155_spill] sm:$0xff]  ;;  %v5151_v56 = vmax.f32 %v5119_v52, 0.0  ;;  %v5150_v32 = vmax.f32 %v5118_v20, 0.0  ;;  %v5152_v2 = vmax.f32 %v5120_v35, 0.0  ;;  %v10138_v43 = vpop.f32.mrf.mxu1 }
 0x38c   : > { %6114 = vmatmul.mubr.msk.f32.vlgmr.msra.gmra.mxu0 %vm2294_vm1, %v9758_v30  ;;  %6115 = vmatmul.mubr.msk.f32.vlgmr.msra.gmra.mxu1 %vm2294_vm1, %v9758_v30  ;;  %v5158_v37 = vmax.f32 %v5126_v1, 0.0 }
 0x38d   : > { %5198 = vmatprep.subr.mxu0 %v5179_v19  ;;  %5269 = vmatprep.subr.mxu1 %v5181_v42  ;;  %v5168_v19 = vmax.f32 %v12338_v53, 0.0  ;;  %v12339_v42 = vld [vmem:[#allocation185_spill] sm:$0xff]  ;;  %v10142_v61 = vpop.f32.mrf.mxu1 }
 0x38e   : > { %5199 = vmatpush1.msra.mxu0 %v5178_v51  ;;  %5270 = vmatpush1.msra.mxu1 %v5180_v21  ;;  %v5163_v10 = vmax.f32 %v12339_v42, 0.0  ;;  %v5128_v51 = vadd.f32 %v2127_v33, %v12131_v14  ;;  %v5165_v21 = vmax.f32 %v12340_v31, 0.0  ;;  %v5124_v14 = vadd.f32 %v2107_v23, %v12141_v55 }
 0x38f   : > { %5200 = vmatprep.subr.mxu0 %v5175_v60  ;;  %5271 = vmatprep.subr.mxu1 %v5177_v50  ;;  %v5162_v60 = vmax.f32 %v12341_v57, 0.0  ;;  %v12343_v50 = vld [vmem:[#allocation187_spill] sm:$0xff]  ;;  %v5157_v55 = vmax.f32 %v5125_v13, 0.0 }
 0x390   : > { %5201 = vmatpush1.msra.mxu0 %v5174_v22  ;;  %5272 = vmatpush1.msra.mxu1 %v5176_v29  ;;  %v5159_v16 = vmax.f32 %v12343_v50, 0.0  ;;  %v12344_v22 = vld [vmem:[#allocation148_spill] sm:$0xff]  ;;  %v5160_v27 = vmax.f32 %v5128_v51, 0.0  ;;  %v5154_v29 = vmax.f32 %v5122_v46, 0.0  ;;  %v5156_v36 = vmax.f32 %v5124_v14, 0.0 }
 0x391   : > { %5202 = vmatprep.subr.mxu0 %v5171_v12  ;;  %5273 = vmatprep.subr.mxu1 %v5173_v54  ;;  %v5161_v5 = vmax.f32 %v12344_v22, 0.0  ;;  %v10140_v12 = vpop.f32.mrf.mxu0 }
 0x392   : > { %5203 = vmatpush1.msra.mxu0 %v5170_v41  ;;  %5274 = vmatpush1.msra.mxu1 %v5172_v8 }
 0x393   : > { %5204 = vmatprep.subr.mxu0 %v5167_v48  ;;  %5275 = vmatprep.subr.mxu1 %v5169_v0  ;;  %v10144_v23 = vpop.f32.mrf.mxu0 }
 0x394   : > { %5205 = vmatpush1.msra.mxu0 %v5166_v38  ;;  %5276 = vmatpush1.msra.mxu1 %v5168_v19 }
 0x395   : > { %5206 = vmatprep.subr.mxu0 %v5163_v10  ;;  %5277 = vmatprep.subr.mxu1 %v5165_v21  ;;  %v10148_v40 = vpop.f32.mrf.mxu0 }
 0x396   : > { %5207 = vmatpush1.msra.mxu0 %v5162_v60  ;;  %5278 = vmatpush1.msra.mxu1 %v5164_v62 }
 0x397   : > { %5208 = vmatprep.subr.mxu0 %v5159_v16  ;;  %5279 = vmatprep.subr.mxu1 %v5161_v5 }
 0x398   : > { %5209 = vmatpush1.msra.mxu0 %v5158_v37  ;;  %5280 = vmatpush1.msra.mxu1 %v5160_v27  ;;  %v5324_v27 = vmax.f32 %v10132_v28, %v10140_v12 }
 0x399   : > { %5210 = vmatprep.subr.mxu0 %v5155_v7  ;;  %5281 = vmatprep.subr.mxu1 %v5157_v55 }
 0x39a   : > { %5211 = vmatpush1.msra.mxu0 %v5154_v29  ;;  %5282 = vmatpush1.msra.mxu1 %v5156_v36 }
 0x39b   : > { %5212 = vmatprep.subr.mxu0 %v5151_v56  ;;  %5283 = vmatprep.subr.mxu1 %v5153_v6 }
 0x39c   : > { %5213 = vmatpush1.msra.mxu0 %v5150_v32  ;;  %5246 = vmatprep.mubr.f32.mxu0 %v12024_v26 }
 0x39d   : > { %5284 = vmatpush1.msra.mxu1 %v5152_v2  ;;  %5317 = vmatprep.mubr.f32.mxu1 %v12024_v26  ;;  %v10146_v26 = vpop.f32.mrf.mxu1 }
 0x39e   : > { %6116 = vmatmul.mubr.msk.f32.vlgmr.msra.gmra.mxu0 %vm2294_vm1, %v9758_v30  ;;  %6117 = vmatmul.mubr.msk.f32.vlgmr.msra.gmra.mxu1 %vm2294_vm1, %v9758_v30  ;;  %v10152_v30 = vpop.f32.mrf.mxu0 }
 0x39f   : > { %v10150_v4 = vpop.f32.mrf.mxu1 }
 0x3a0   : > { %v10156_v45 = vpop.f32.mrf.mxu0 }
 0x3a1   : > { %v10154_v39 = vpop.f32.mrf.mxu1  ;;  %v5328_v7 = vmax.f32 %v10148_v40, %v10156_v45 }
 0x3a2   : > { %v10160_v17 = vpop.f32.mrf.mxu0 }
 0x3a3   : > { %v10158_v54 = vpop.f32.mrf.mxu1 }
 0x3a4   : > { %v10162_v41 = vpop.f32.mrf.mxu0 }
 0x3a5   : > { %v10164_v9 = vpop.f32.mrf.mxu1 }
 0x3a6   : > { %v10168_v59 = vpop.f32.mrf.mxu0 }
 0x3a7   : > { %v10166_v18 = vpop.f32.mrf.mxu1 }
 0x3a9   : > { %v10172_v25 = vpop.f32.mrf.mxu1 }
 0x3b9   : > { %v10170_v33 = vpop.f32.mrf.mxu0 }
 0x3ba   : > { %v10174_v8 = vpop.f32.mrf.mxu1  ;;  %v5332_v35 = vmax.f32 %v10162_v41, %v10170_v33 }
 0x3bb   : > { %v10176_v15 = vpop.f32.mrf.mxu0 }
 0x3bc   : > { %v10180_v58 = vpop.f32.mrf.mxu1 }
 0x3cd   : > { %v10178_v48 = vpop.f32.mrf.mxu0 }
 0x3cf   : > { %v10182_v3 = vpop.f32.mrf.mxu1  ;;  %v10184_v63 = vpop.f32.mrf.mxu0 }
 0x3d1   : > { %v10188_v24 = vpop.f32.mrf.mxu1 }
 0x3e0   : > { %v10186_v0 = vpop.f32.mrf.mxu0  ;;  %v10190_v38 = vpop.f32.mrf.mxu1 }
 0x3e1   : > { %12345 = vst [vmem:[#allocation151_spill] sm:$0xff] %v10190_v38  ;;  %v5336_v49 = vmax.f32 %v10178_v48, %v10186_v0 }
 0x3e2   : > { %v10192_v1 = vpop.f32.mrf.mxu0  ;;  %v10196_v19 = vpop.f32.mrf.mxu1 }
 0x3e3   : > { %12346 = vst [vmem:[#allocation18_spill] sm:$0xff] %v10196_v19  ;;  %v5356_v56 = vmax.f32 %v5332_v35, %v5336_v49  ;;  %v5338_v49 = vmax.f32 %v10182_v3, %v10190_v38 }
 0x3f2   : > { %v10194_v53 = vpop.f32.mrf.mxu0  ;;  %v10198_v42 = vpop.f32.mrf.mxu1 }
 0x3f4   : > { %v10200_v10 = vpop.f32.mrf.mxu0  ;;  %v10204_v34 = vpop.f32.mrf.mxu1 }
 0x3f5   : > { %12347 = vst [vmem:[#allocation129_spill] sm:$0xff] %v10204_v34 }
 0x404   : > { %v10202_v51 = vpop.f32.mrf.mxu0  ;;  %v10206_v31 = vpop.f32.mrf.mxu1 }
 0x405   : > { %v5340_v6 = vmax.f32 %v10194_v53, %v10202_v51 }
 0x406   : > { %v10208_v21 = vpop.f32.mrf.mxu0  ;;  %v10212_v60 = vpop.f32.mrf.mxu1 }
 0x407   : > { %12349 = vst [vmem:[#allocation146_spill] sm:$0xff] %v10212_v60 }
 0x416   : > { %v10210_v57 = vpop.f32.mrf.mxu0  ;;  %v10214_v13 = vpop.f32.mrf.mxu1 }
 0x417   : > { %12348 = vst [vmem:[#allocation149_spill] sm:$0xff] %v10210_v57  ;;  %12350 = vst [vmem:[#allocation180_spill] sm:$0xff] %v10214_v13 }
 0x418   : > { %v10216_v46 = vpop.f32.mrf.mxu0  ;;  %v10220_v62 = vpop.f32.mrf.mxu1 }
 0x419   : > { %12352 = vst [vmem:[#allocation130_spill] sm:$0xff] %v10220_v62 }
 0x428   : > { %v10218_v47 = vpop.f32.mrf.mxu0  ;;  %v10222_v50 = vpop.f32.mrf.mxu1 }
 0x429   : > { %12351 = vst [vmem:[#allocation181_spill] sm:$0xff] %v10218_v47  ;;  %12353 = vst [vmem:[#allocation144_spill] sm:$0xff] %v10222_v50  ;;  %v5344_v55 = vmax.f32 %v10210_v57, %v10218_v47  ;;  %v5346_v35 = vmax.f32 %v10214_v13, %v10222_v50 }
 0x42a   : > { %v10224_v16 = vpop.f32.mrf.mxu0  ;;  %v10228_v52 = vpop.f32.mrf.mxu1 }
 0x42b   : > { %12354 = vst [vmem:[#allocation147_spill] sm:$0xff] %v10228_v52  ;;  %v5360_v62 = vmax.f32 %v5340_v6, %v5344_v55 }
 0x43a   : > { %v10226_v14 = vpop.f32.mrf.mxu0  ;;  %v10230_v22 = vpop.f32.mrf.mxu1 }
 0x43b   : > { %12355 = vst [vmem:[#allocation176_spill] sm:$0xff] %v10230_v22 }
 0x43c   : > { %v10232_v5 = vpop.f32.mrf.mxu0  ;;  %v10238_v20 = vpop.f32.mrf.mxu1 }
 0x43d   : > { %12357 = vst [vmem:[#allocation142_spill] sm:$0xff] %v10238_v20  ;;  %v5352_v20 = vmax.f32 %v5324_v27, %v5328_v7  ;;  %v5326_v27 = vmax.f32 %v10134_v44, %v10142_v61 }
 0x43f   : > { %v5368_v47 = vmax.f32 %v5352_v20, %v5356_v56  ;;  %v5330_v20 = vmax.f32 %v10150_v4, %v10158_v54 }
 0x441   : > { %v5354_v50 = vmax.f32 %v5326_v27, %v5330_v20 }
 0x44c   : > { %v10234_v37 = vpop.f32.mrf.mxu0  ;;  %v10248_v29 = vpop.f32.mrf.mxu1 }
 0x44d   : > { %12356 = vst [vmem:[#allocation132_spill] sm:$0xff] %v10234_v37  ;;  %12358 = vst [vmem:[#allocation145_spill] sm:$0xff] %v10248_v29  ;;  %v5348_v32 = vmax.f32 %v10226_v14, %v10234_v37  ;;  %v5350_v37 = vmax.f32 %v10230_v22, %v10248_v29 }
 0x44e   : > { %v10250_v36 = vpop.f32.mrf.mxu0  ;;  %v10258_v52 = vpop.f32.mrf.mxu1 }
 0x44f   : > { %12359 = vst [vmem:[#allocation177_spill] sm:$0xff] %v10258_v52 }
 0x45e   : > { %v10256_v2 = vpop.f32.mrf.mxu0  ;;  %v10261_v60 = vpop.f32.mrf.mxu1 }
 0x45f   : > { %v5364_v34 = vmax.f32 %v5348_v32, %v10256_v2  ;;  %12360 = vst [vmem:[#allocation133_spill] sm:$0xff] %v10261_v60  ;;  %v5366_v55 = vmax.f32 %v5350_v37, %v10261_v60 }
 0x460   : > { %v10312_v20 = vpop.f32.mrf.mxu0 }
 0x461   : > { %v5372_v57 = vmax.f32 %v5360_v62, %v5364_v34  ;;  %v5334_v34 = vmax.f32 %v10166_v18, %v10174_v8  ;;  %v5342_v62 = vmax.f32 %v10198_v42, %v10206_v31 }
 0x463   : > { %v10271_v7 = vmax.f32 %v5368_v47, %v5372_v57  ;;  %v5358_v47 = vmax.f32 %v5334_v34, %v5338_v49  ;;  %v5362_v32 = vmax.f32 %v5342_v62, %v5346_v35  ;;  %v5349_v34 = vmax.f32 %v10232_v5, %v10250_v36 }
 0x465   : > { %v5380_v56 = vsub.f32 %v10132_v28, %v10271_v7  ;;  %v5404_v6 = vsub.f32 %v10140_v12, %v10271_v7  ;;  %v5428_v57 = vsub.f32 %v10148_v40, %v10271_v7  ;;  %v5374_v13 = vmax.f32 %v5362_v32, %v5366_v55 }
 0x466   : > { %v5452_v37 = vsub.f32 %v10156_v45, %v10271_v7  ;;  %v5370_v60 = vmax.f32 %v5354_v50, %v5358_v47  ;;  %v5337_v28 = vmax.f32 %v10184_v63, %v10192_v1  ;;  %v5325_v40 = vmax.f32 %v10136_v11, %v10144_v23 }
 0x467   : > { %v5384_v29 = vmul.f32 1.442695, %v5380_v56  ;;  %v5408_v22 = vmul.f32 1.442695, %v5404_v6  ;;  %v5432_v38 = vmul.f32 1.442695, %v5428_v57  ;;  %v5476_v35 = vsub.f32 %v10162_v41, %v10271_v7 }
 0x468   : > { %v10290_v12 = vmax.f32 %v5370_v60, %v5374_v13  ;;  %v5456_v49 = vmul.f32 1.442695, %v5452_v37  ;;  %v5329_v45 = vmax.f32 %v10152_v30, %v10160_v17  ;;  %v5331_v50 = vmax.f32 %v10154_v39, %v10164_v9 }
 0x469   : > { %6190 = vpow2.f32 %v5384_v29  ;;  %v5327_v29 = vmax.f32 %v10138_v43, %v10146_v26  ;;  %v5333_v60 = vmax.f32 %v10168_v59, %v10176_v15  ;;  %v5500_v13 = vsub.f32 %v10170_v33, %v10271_v7 }
 0x46a   : > { %6192 = vpow2.f32 %v5408_v22  ;;  %v5339_v22 = vmax.f32 %v10188_v24, %v10196_v19  ;;  %v5345_v41 = vmax.f32 %v10216_v46, %v10224_v16  ;;  %v5382_v27 = vsub.f32 %v10134_v44, %v10290_v12  ;;  %v12364_v19 = vld [vmem:[#allocation130_spill] sm:$0xff] }
 0x46b   : > { %6194 = vpow2.f32 %v5432_v38  ;;  %v5357_v38 = vmax.f32 %v5333_v60, %v5337_v28  ;;  %v5480_v62 = vmul.f32 1.442695, %v5476_v35  ;;  %v5406_v33 = vsub.f32 %v10142_v61, %v10290_v12  ;;  %v12362_v60 = vld [vmem:[#allocation129_spill] sm:$0xff] }
 0x46c   : > { %6196 = vpow2.f32 %v5456_v49  ;;  %v5353_v55 = vmax.f32 %v5325_v40, %v5329_v45  ;;  %v10318_v56 = vmax.f32 %v5327_v29, %v5331_v50  ;;  %v5335_v6 = vmax.f32 %v10172_v25, %v10180_v58  ;;  %v12361_v50 = vld [vmem:[#allocation146_spill] sm:$0xff] }
 0x46d   : > { %v5341_v57 = vmax.f32 %v10200_v10, %v10208_v21  ;;  %v5504_v44 = vmul.f32 1.442695, %v5500_v13  ;;  %v5524_v47 = vsub.f32 %v10178_v48, %v10271_v7  ;;  %v5365_v32 = vmax.f32 %v5349_v34, %v10312_v20  ;;  %v12363_v48 = vld [vmem:[#allocation147_spill] sm:$0xff] }
 0x46e   : > { %v5369_v37 = vmax.f32 %v5353_v55, %v5357_v38  ;;  %v10327_v28 = vmax.f32 %v5335_v6, %v5339_v22  ;;  %v5548_v61 = vsub.f32 %v10186_v0, %v10271_v7  ;;  %v5388_v40 = vmul.f32 1.442695, %v5382_v27  ;;  %v12365_v38 = vld [vmem:[#allocation142_spill] sm:$0xff] }
 0x46f   : > { %v5361_v49 = vmax.f32 %v5341_v57, %v5345_v41  ;;  %6198 = vpow2.f32 %v5480_v62  ;;  %v5412_v35 = vmul.f32 1.442695, %v5406_v33  ;;  %v5430_v29 = vsub.f32 %v10150_v4, %v10290_v12  ;;  %v10343_v33 = vpop.f32.mrf.mxu1  ;;  %v12366_v57 = vld [vmem:[#allocation149_spill] sm:$0xff] }
 0x470   : > { %v5343_v13 = vmax.f32 %v12362_v60, %v12361_v50  ;;  %v5347_v34 = vmax.f32 %v12364_v19, %v12363_v48  ;;  %v5351_v22 = vmax.f32 %v12365_v38, %v10258_v52  ;;  %v5572_v0 = vsub.f32 %v10194_v53, %v10271_v7 }
 0x471   : > { %6200 = vpow2.f32 %v5504_v44  ;;  %v5528_v41 = vmul.f32 1.442695, %v5524_v47  ;;  %v5596_v62 = vsub.f32 %v10202_v51, %v10271_v7  ;;  %v5373_v4 = vmax.f32 %v5361_v49, %v5365_v32  ;;  %v12367_v49 = vld [vmem:[#allocation181_spill] sm:$0xff] }
 0x472   : > { %v5552_v6 = vmul.f32 1.442695, %v5548_v61  ;;  %v5620_v48 = vsub.f32 %v12366_v57, %v10271_v7  ;;  %6202 = vpow2.f32 %v5388_v40  ;;  %v5436_v53 = vmul.f32 1.442695, %v5430_v29 }
 0x473   : > { %6204 = vpow2.f32 %v5412_v35  ;;  %v5454_v44 = vsub.f32 %v10158_v54, %v10290_v12  ;;  %v10353_v51 = vmax.f32 %v5343_v13, %v5347_v34  ;;  %v5576_v32 = vmul.f32 1.442695, %v5572_v0  ;;  %v12368_v13 = vld [vmem:[#allocation132_spill] sm:$0xff] }
 0x474   : > { %v5644_v61 = vsub.f32 %v12367_v49, %v10271_v7  ;;  %v10358_v38 = vmax.f32 %v5351_v22, %v10343_v33  ;;  %6206 = vpow2.f32 %v5528_v41  ;;  %v5600_v57 = vmul.f32 1.442695, %v5596_v62 }
 0x475   : > { %v10361_v35 = vmax.f32 %v5369_v37, %v5373_v4  ;;  %6208 = vpow2.f32 %v5552_v6  ;;  %v5624_v29 = vmul.f32 1.442695, %v5620_v48  ;;  %v5668_v54 = vsub.f32 %v10226_v14, %v10271_v7 }
 0x476   : > { %v6191_v45 = vpop.eup %6190  ;;  %v5692_v34 = vsub.f32 %v12368_v13, %v10271_v7  ;;  %v5716_v0 = vsub.f32 %v10256_v2, %v10271_v7  ;;  %6210 = vpow2.f32 %v5436_v53  ;;  %v5460_v22 = vmul.f32 1.442695, %v5454_v44 }
 0x477   : > { %v6193_v27 = vpop.eup %6192  ;;  %6212 = vpow2.f32 %v5576_v32  ;;  %v5648_v37 = vmul.f32 1.442695, %v5644_v61  ;;  %v5502_v48 = vsub.f32 %v10174_v8, %v10290_v12  ;;  %v5526_v14 = vsub.f32 %v10182_v3, %v10290_v12  ;;  %v12369_v61 = vld [vmem:[#allocation8_spill] sm:$0xff] }
 0x478   : > { %v5416_v55 = vadd.f32 %v6193_v27, %v6191_v45  ;;  %v10351_v47 = vpop.eup %6194  ;;  %6214 = vpow2.f32 %v5600_v57  ;;  %v5381_v2 = vsub.f32 %v10136_v11, %v10361_v35  ;;  %v5375_v7 = vmax.f32 %v10353_v51, %v10358_v38 }
 0x479   : > { %v10371_v41 = vpop.eup %6196  ;;  %6216 = vpow2.f32 %v5624_v29  ;;  %v5696_v4 = vmul.f32 1.442695, %v5692_v34  ;;  %v5405_v6 = vsub.f32 %v10144_v23, %v10361_v35  ;;  %v5720_v53 = vmul.f32 1.442695, %v5716_v0 }
 0x47a   : > { %v5440_v40 = vadd.f32 %v10351_v47, %v5416_v55  ;;  %v5478_v55 = vsub.f32 %v10166_v18, %v10290_v12  ;;  %v5672_v18 = vmul.f32 1.442695, %v5668_v54  ;;  %6218 = vpow2.f32 %v5460_v22 }
 0x47b   : > { %v5429_v3 = vsub.f32 %v10152_v30, %v10361_v35  ;;  %6220 = vpow2.f32 %v5648_v37  ;;  %v5508_v32 = vmul.f32 1.442695, %v5502_v48  ;;  %v5532_v11 = vmul.f32 1.442695, %v5526_v14  ;;  %v12370_v30 = vld [vmem:[#allocation151_spill] sm:$0xff]  ;;  %v12371_v37 = vld [vmem:[#allocation180_spill] sm:$0xff] }
 0x47c   : > { %v5464_v62 = vadd.f32 %v10371_v41, %v5440_v40  ;;  %v5484_v8 = vmul.f32 1.442695, %v5478_v55  ;;  %v10386_v44 = vpop.eup %6198  ;;  %v5453_v49 = vsub.f32 %v10160_v17, %v10361_v35  ;;  %v5396_v40 = vmul.f32 %v6191_v45, %v12369_v61  ;;  %v12372_v14 = vld [vmem:[#allocation144_spill] sm:$0xff] }
 0x47d   : > { %v5420_v57 = vmul.f32 %v6193_v27, %v12369_v61  ;;  %v5386_v29 = vmul.f32 1.442695, %v5381_v2  ;;  %6222 = vpow2.f32 %v5672_v18  ;;  %v5550_v13 = vsub.f32 %v12370_v30, %v10290_v12 }
 0x47e   : > { %v5488_v23 = vadd.f32 %v10386_v44, %v5464_v62  ;;  %v10393_v54 = vpop.eup %6200  ;;  %v5574_v34 = vsub.f32 %v10198_v42, %v10290_v12  ;;  %v5410_v0 = vmul.f32 1.442695, %v5405_v6  ;;  %6224 = vpow2.f32 %v5484_v8 }
 0x47f   : > { %v10399_v22 = vpop.eup %6202  ;;  %v5598_v17 = vsub.f32 %v10206_v31, %v10290_v12  ;;  %v5434_v45 = vmul.f32 1.442695, %v5429_v3  ;;  %v5477_v27 = vsub.f32 %v10168_v59, %v10361_v35  ;;  %6226 = vpow2.f32 %v5508_v32 }
 0x480   : > { %v10405_v55 = vpop.eup %6204  ;;  %v5622_v48 = vsub.f32 %v12371_v37, %v10290_v12  ;;  %v5646_v42 = vsub.f32 %v12372_v14, %v10290_v12  ;;  %v5458_v62 = vmul.f32 1.442695, %v5453_v49  ;;  %v5424_v2 = vadd.f32 %v5420_v57, %v5396_v40  ;;  %v12373_v49 = vld [vmem:[#allocation176_spill] sm:$0xff] }
 0x481   : > { %v5512_v18 = vadd.f32 %v10393_v54, %v5488_v23  ;;  %v5418_v31 = vadd.f32 %v10405_v55, %v10399_v22  ;;  %6228 = vpow2.f32 %v5386_v29  ;;  %v6207_v6 = vpop.eup %6206  ;;  %v5556_v8 = vmul.f32 1.442695, %v5550_v13 }
 0x482   : > { %v5580_v59 = vmul.f32 1.442695, %v5574_v34  ;;  %6230 = vpow2.f32 %v5410_v0  ;;  %v5501_v3 = vsub.f32 %v10176_v15, %v10361_v35  ;;  %v6209_v32 = vpop.eup %6208  ;;  %v5444_v30 = vmul.f32 %v10351_v47, %v12369_v61 }
 0x483   : > { %v5670_v40 = vsub.f32 %v12373_v49, %v10290_v12  ;;  %6232 = vpow2.f32 %v5434_v45  ;;  %v5482_v57 = vmul.f32 1.442695, %v5477_v27  ;;  %v10420_v23 = vpop.eup %6210  ;;  %v10422_v37 = vmul.f32 1.442695, %v5598_v17  ;;  %v12374_v45 = vld [vmem:[#allocation145_spill] sm:$0xff] }
 0x484   : > { %v10424_v29 = vmul.f32 1.442695, %v5622_v48  ;;  %6234 = vpow2.f32 %v5458_v62  ;;  %v5525_v13 = vsub.f32 %v10184_v63, %v10361_v35  ;;  %v6213_v15 = vpop.eup %6212  ;;  %v5448_v34 = vadd.f32 %v5444_v30, %v5424_v2  ;;  %v12375_v17 = vld [vmem:[#allocation133_spill] sm:$0xff] }
 0x485   : > { %v5536_v0 = vadd.f32 %v6207_v6, %v5512_v18  ;;  %6236 = vpow2.f32 %v5696_v4  ;;  %v5442_v47 = vadd.f32 %v10420_v23, %v5418_v31  ;;  %v6215_v14 = vpop.eup %6214  ;;  %v5694_v27 = vsub.f32 %v12374_v45, %v10290_v12  ;;  %v12378_v45 = vld [vmem:[#allocation156_spill] sm:$0xff] }
 0x486   : > { %6238 = vpow2.f32 %v5532_v11  ;;  %v5718_v49 = vsub.f32 %v12375_v17, %v10290_v12  ;;  %v5506_v48 = vmul.f32 1.442695, %v5501_v3  ;;  %v10433_v52 = vpop.eup %6216  ;;  %v5468_v63 = vmul.f32 %v10371_v41, %v12369_v61 }
 0x487   : > { %v10437_v62 = vmul.f32 1.442695, %v5646_v42  ;;  %v10439_v2 = vmul.f32 1.442695, %v5670_v40  ;;  %6240 = vpow2.f32 %v5482_v57  ;;  %v10441_v4 = vpop.eup %6218  ;;  %v5530_v11 = vmul.f32 1.442695, %v5525_v13 }
 0x488   : > { %6242 = vpow2.f32 %v5720_v53  ;;  %v5549_v18 = vsub.f32 %v10192_v1, %v10361_v35  ;;  %v12376_v12 = vmax.f32 %v10318_v56, %v10327_v28  ;;  %v10453_v41 = vpop.eup %6220  ;;  %v5472_v42 = vadd.f32 %v5468_v63, %v5448_v34  ;;  %v12377_v28 = vld [vmem:[#allocation62_spill] sm:$0xff] }
 0x489   : > { %v5560_v3 = vadd.f32 %v6209_v32, %v5536_v0  ;;  %v5466_v30 = vadd.f32 %v10441_v4, %v5442_v47  ;;  %v5573_v53 = vsub.f32 %v10200_v10, %v10361_v35  ;;  %v10458_v40 = vmul.f32 1.442695, %v5694_v27  ;;  %v12380_v63 = vld [vmem:[#allocation10_spill] sm:$0xff] }
 0x48a   : > { %v10451_v31 = vmax.f32 %v12376_v12, %v5375_v7  ;;  %v10460_v1 = vmul.f32 1.442695, %v5718_v49  ;;  %6244 = vpow2.f32 %v5506_v48  ;;  %v5554_v38 = vmul.f32 1.442695, %v5549_v18  ;;  %v10462_v51 = vpop.eup %6222 }
 0x48b   : > { %v5492_v56 = vmul.f32 %v10386_v44, %v12369_v61  ;;  %v5516_v7 = vmul.f32 %v10393_v54, %v12377_v28  ;;  %6246 = vpow2.f32 %v5556_v8  ;;  %v5578_v57 = vmul.f32 1.442695, %v5573_v53  ;;  %v10468_v13 = vpop.eup %6224 }
 0x48c   : > { %v10471_v10 = vmul.f32 %v6207_v6, %v12377_v28  ;;  %v10474_v34 = vmul.f32 %v6209_v32, %v12377_v28  ;;  %v10477_v0 = vmul.f32 %v6213_v15, %v12377_v28  ;;  %6248 = vpow2.f32 %v5530_v11  ;;  %v10479_v47 = vpop.eup %6226  ;;  %v12379_v6 = vld [vmem:[#allocation9_spill] sm:$0xff] }
 0x48d   : > { %v5496_v44 = vadd.f32 %v5492_v56, %v5472_v42  ;;  %v5584_v61 = vadd.f32 %v6213_v15, %v5560_v3  ;;  %v5490_v54 = vadd.f32 %v10468_v13, %v5466_v30  ;;  %6250 = vpow2.f32 %v5580_v59 }
 0x48e   : > { %v6229_v8 = vpop.eup %6228  ;;  %v10483_v27 = vmul.f32 %v6215_v14, %v12378_v45  ;;  %v5398_v17 = vmul.f32 %v10399_v22, %v12379_v6  ;;  %6252 = vpow2.f32 %v5554_v38  ;;  %v5597_v32 = vsub.f32 %v10208_v21, %v10361_v35 }
 0x48f   : > { %v6231_v49 = vpop.eup %6230  ;;  %v5422_v48 = vmul.f32 %v10405_v55, %v12379_v6  ;;  %v5397_v15 = vmul.f32 %v6229_v8, %v12380_v63  ;;  %6254 = vpow2.f32 %v5578_v57  ;;  %v5621_v59 = vsub.f32 %v10216_v46, %v10361_v35 }
 0x490   : > { %v6233_v11 = vpop.eup %6232  ;;  %v5417_v18 = vadd.f32 %v6231_v49, %v6229_v8  ;;  %v5421_v12 = vmul.f32 %v6231_v49, %v12380_v63  ;;  %v5602_v42 = vmul.f32 1.442695, %v5597_v32  ;;  %v5645_v22 = vsub.f32 %v10224_v16, %v10361_v35 }
 0x491   : > { %v6235_v3 = vpop.eup %6234  ;;  %v5608_v21 = vadd.f32 %v6215_v14, %v5584_v61  ;;  %v5514_v30 = vadd.f32 %v10479_v47, %v5490_v54  ;;  %6256 = vpow2.f32 %v10422_v37  ;;  %v5626_v55 = vmul.f32 1.442695, %v5621_v59 }
 0x492   : > { %v10499_v53 = vpop.eup %6236  ;;  %v5425_v38 = vadd.f32 %v5421_v12, %v5397_v15  ;;  %v5441_v56 = vadd.f32 %v6233_v11, %v5417_v18  ;;  %v5445_v46 = vmul.f32 %v6233_v11, %v12380_v63  ;;  %6258 = vpow2.f32 %v5602_v42 }
 0x493   : > { %v10502_v28 = vpop.eup %6238  ;;  %v5520_v57 = vadd.f32 %v5516_v7, %v5496_v44  ;;  %v5426_v8 = vadd.f32 %v5422_v48, %v5398_v17  ;;  %6260 = vpow2.f32 %v10424_v29  ;;  %v5469_v16 = vmul.f32 %v6235_v3, %v12380_v63 }
 0x494   : > { %v6241_v14 = vpop.eup %6240  ;;  %v5449_v61 = vadd.f32 %v5445_v46, %v5425_v38  ;;  %v5465_v54 = vadd.f32 %v6235_v3, %v5441_v56  ;;  %6262 = vpow2.f32 %v5626_v55  ;;  %v5650_v37 = vmul.f32 1.442695, %v5645_v22  ;;  %v12381_v46 = vld [vmem:[#allocation64_spill] sm:$0xff] }
 0x495   : > { %v10506_v32 = vpop.eup %6242  ;;  %v5632_v49 = vadd.f32 %v10433_v52, %v5608_v21  ;;  %v5446_v15 = vmul.f32 %v10420_v23, %v12379_v6  ;;  %v5538_v59 = vadd.f32 %v10502_v28, %v5514_v30  ;;  %v5669_v7 = vsub.f32 %v10232_v5, %v10361_v35 }
 0x496   : > { %v5473_v29 = vadd.f32 %v5469_v16, %v5449_v61  ;;  %v5489_v44 = vadd.f32 %v6241_v14, %v5465_v54  ;;  %6264 = vpow2.f32 %v5650_v37  ;;  %v5693_v17 = vsub.f32 %v10250_v36, %v10361_v35 }
 0x497   : > { %v6245_v48 = vpop.eup %6244  ;;  %v5450_v11 = vadd.f32 %v5446_v15, %v5426_v8  ;;  %6266 = vpow2.f32 %v10437_v62  ;;  %v5493_v18 = vmul.f32 %v6241_v14, %v12380_v63  ;;  %v5674_v12 = vmul.f32 1.442695, %v5669_v7 }
 0x498   : > { %v10518_v42 = vpop.eup %6246  ;;  %v5513_v23 = vadd.f32 %v6245_v48, %v5489_v44  ;;  %v5698_v22 = vmul.f32 1.442695, %v5693_v17  ;;  %v5717_v5 = vsub.f32 %v10312_v20, %v10361_v35  ;;  %v5383_v3 = vsub.f32 %v10138_v43, %v10451_v31 }
 0x499   : > { %v6249_v21 = vpop.eup %6248  ;;  %v5656_v36 = vadd.f32 %v10453_v41, %v5632_v49  ;;  %v5470_v30 = vmul.f32 %v10441_v4, %v12379_v6  ;;  %v5562_v62 = vadd.f32 %v10518_v42, %v5538_v59  ;;  %6268 = vpow2.f32 %v5674_v12 }
 0x49a   : > { %v10528_v63 = vpop.eup %6250  ;;  %v5544_v55 = vadd.f32 %v10471_v10, %v5520_v57  ;;  %6270 = vpow2.f32 %v10439_v2  ;;  %v5497_v38 = vadd.f32 %v5493_v18, %v5473_v29  ;;  %v5537_v20 = vadd.f32 %v6249_v21, %v5513_v23 }
 0x49b   : > { %v6253_v35 = vpop.eup %6252  ;;  %v5474_v56 = vadd.f32 %v5470_v30, %v5450_v11  ;;  %v5494_v43 = vmul.f32 %v10468_v13, %v12379_v6  ;;  %6272 = vpow2.f32 %v10458_v40  ;;  %v5517_v4 = vmul.f32 %v6245_v48, %v12381_v46  ;;  %v12382_v40 = vld [vmem:[#allocation63_spill] sm:$0xff] }
 0x49c   : > { %v6255_v8 = vpop.eup %6254  ;;  %v5561_v16 = vadd.f32 %v6253_v35, %v5537_v20  ;;  %6274 = vpow2.f32 %v5698_v22  ;;  %v5722_v14 = vmul.f32 1.442695, %v5717_v5  ;;  %v5390_v61 = vmul.f32 1.442695, %v5383_v3 }
 0x49d   : > { %v5680_v10 = vadd.f32 %v10462_v51, %v5656_v36  ;;  %v5586_v2 = vadd.f32 %v10528_v63, %v5562_v62  ;;  %v5407_v57 = vsub.f32 %v10146_v26, %v10451_v31  ;;  %v5431_v54 = vsub.f32 %v10154_v39, %v10451_v31 }
 0x49e   : > { %v10542_v13 = vpop.eup %6256  ;;  %v5518_v6 = vmul.f32 %v10479_v47, %v12382_v40  ;;  %v5521_v37 = vadd.f32 %v5517_v4, %v5497_v38  ;;  %v5585_v49 = vadd.f32 %v6255_v8, %v5561_v16  ;;  %6276 = vpow2.f32 %v5390_v61 }
 0x49f   : > { %v10546_v15 = vpop.eup %6258  ;;  %v5498_v59 = vadd.f32 %v5494_v43, %v5474_v56  ;;  %v5414_v7 = vmul.f32 1.442695, %v5407_v57  ;;  %v5438_v29 = vmul.f32 1.442695, %v5431_v54  ;;  %v5455_v44 = vsub.f32 %v10164_v9, %v10451_v31 }
 0x4a0   : > { %v10550_v26 = vpop.eup %6260  ;;  %v5541_v39 = vmul.f32 %v6249_v21, %v12381_v46  ;;  %v5609_v17 = vadd.f32 %v10546_v15, %v5585_v49  ;;  %6278 = vpow2.f32 %v5722_v14  ;;  %v5479_v47 = vsub.f32 %v10172_v25, %v10451_v31 }
 0x4a1   : > { %v10556_v48 = vpop.eup %6262  ;;  %v5704_v11 = vadd.f32 %v10499_v53, %v5680_v10  ;;  %v5610_v18 = vadd.f32 %v10542_v13, %v5586_v2  ;;  %6280 = vpow2.f32 %v5414_v7  ;;  %v5462_v12 = vmul.f32 1.442695, %v5455_v44  ;;  %v12384_v44 = vld [vmem:[#allocation158_spill] sm:$0xff] }
 0x4a2   : > { %v5545_v23 = vadd.f32 %v5541_v39, %v5521_v37  ;;  %v5633_v9 = vadd.f32 %v10556_v48, %v5609_v17  ;;  %6282 = vpow2.f32 %v5438_v29  ;;  %v5486_v22 = vmul.f32 1.442695, %v5479_v47  ;;  %v12385_v17 = vld [vmem:[#allocation147_spill] sm:$0xff] }
 0x4a3   : > { %v10561_v5 = vpop.eup %6264  ;;  %v5568_v3 = vadd.f32 %v10474_v34, %v5544_v55  ;;  %6284 = vpow2.f32 %v5462_v12  ;;  %v5503_v25 = vsub.f32 %v10180_v58, %v10451_v31  ;;  %v5527_v21 = vsub.f32 %v10188_v24, %v10451_v31  ;;  %v12383_v55 = vld [vmem:[#allocation18_spill] sm:$0xff]  ;;  %v12386_v12 = vld [vmem:[#allocation11_spill] sm:$0xff] }
 0x4a4   : > { %v10568_v36 = vpop.eup %6266  ;;  %v5522_v30 = vadd.f32 %v5518_v6, %v5498_v59  ;;  %v5542_v62 = vmul.f32 %v10502_v28, %v12382_v40  ;;  %v5565_v38 = vmul.f32 %v6253_v35, %v12381_v46  ;;  %v5657_v20 = vadd.f32 %v10561_v5, %v5633_v9 }
 0x4a5   : > { %6286 = vpow2.f32 %v5486_v22  ;;  %v5510_v56 = vmul.f32 1.442695, %v5503_v25  ;;  %v5534_v34 = vmul.f32 1.442695, %v5527_v21  ;;  %v5551_v43 = vsub.f32 %v12383_v55, %v10451_v31  ;;  %v12387_v22 = vld [vmem:[#allocation142_spill] sm:$0xff]  ;;  %v12388_v21 = vld [vmem:[#allocation157_spill] sm:$0xff] }
 0x4a6   : > { %v10576_v58 = vpop.eup %6268  ;;  %v5728_v24 = vadd.f32 %v10506_v32, %v5704_v11  ;;  %v5634_v4 = vadd.f32 %v10550_v26, %v5610_v18  ;;  %v5569_v16 = vadd.f32 %v5565_v38, %v5545_v23  ;;  %v5575_v28 = vsub.f32 %v12362_v60, %v10451_v31 }
 0x4a7   : > { %v10582_v14 = vpop.eup %6270  ;;  %v5681_v35 = vadd.f32 %v10576_v58, %v5657_v20  ;;  %6288 = vpow2.f32 %v5510_v56  ;;  %v5558_v61 = vmul.f32 1.442695, %v5551_v43  ;;  %v5599_v10 = vsub.f32 %v12361_v50, %v10451_v31  ;;  %v12389_v43 = vld [vmem:[#allocation177_spill] sm:$0xff] }
 0x4a8   : > { %v10587_v2 = vpop.eup %6272  ;;  %v5546_v57 = vadd.f32 %v5542_v62, %v5522_v30  ;;  %6290 = vpow2.f32 %v10460_v1  ;;  %v5589_v54 = vmul.f32 %v6255_v8, %v12381_v46  ;;  %v5623_v6 = vsub.f32 %v12364_v19, %v10451_v31 }
 0x4a9   : > { %v10593_v60 = vpop.eup %6274  ;;  %v5592_v37 = vadd.f32 %v10477_v0, %v5568_v3  ;;  %v5566_v49 = vmul.f32 %v10518_v42, %v12382_v40  ;;  %6292 = vpow2.f32 %v5534_v34  ;;  %v5582_v59 = vmul.f32 1.442695, %v5575_v28 }
 0x4aa   : > { %6294 = vrcp.f32 %v5728_v24  ;;  %v5658_v50 = vadd.f32 %v10568_v36, %v5634_v4  ;;  %v5593_v7 = vadd.f32 %v5589_v54, %v5569_v16  ;;  %v5705_v1 = vadd.f32 %v10593_v60, %v5681_v35 }
 0x4ab   : > { %v6277_v29 = vpop.eup %6276  ;;  %v5636_v46 = vmul.f32 %v10433_v52, %v12378_v45  ;;  %v5660_v19 = vmul.f32 %v10453_v41, %v12378_v45  ;;  %6296 = vpow2.f32 %v5558_v61  ;;  %v5606_v0 = vmul.f32 1.442695, %v5599_v10 }
 0x4ac   : > { %v5570_v8 = vadd.f32 %v5566_v49, %v5546_v57  ;;  %v5613_v42 = vmul.f32 %v10546_v15, %v12384_v44  ;;  %v5630_v39 = vmul.f32 1.442695, %v5623_v6  ;;  %v5647_v47 = vsub.f32 %v12385_v17, %v10451_v31 }
 0x4ad   : > { %v10608_v11 = vpop.eup %6278  ;;  %v5616_v18 = vadd.f32 %v10483_v27, %v5592_v37  ;;  %v5590_v52 = vmul.f32 %v10528_v63, %v12382_v40  ;;  %v5399_v23 = vmul.f32 %v6277_v29, %v12386_v12  ;;  %6298 = vpow2.f32 %v5582_v59 }
 0x4ae   : > { %v6281_v41 = vpop.eup %6280  ;;  %v5682_v45 = vadd.f32 %v10582_v14, %v5658_v50  ;;  %v5617_v9 = vadd.f32 %v5613_v42, %v5593_v7  ;;  %v5729_v15 = vadd.f32 %v10608_v11, %v5705_v1  ;;  %v5671_v3 = vsub.f32 %v12387_v22, %v10451_v31 }
 0x4af   : > { %v6283_v25 = vpop.eup %6282  ;;  %v5614_v30 = vmul.f32 %v10542_v13, %v12388_v21  ;;  %v5419_v27 = vadd.f32 %v6281_v41, %v6277_v29  ;;  %v5423_v62 = vmul.f32 %v6281_v41, %v12386_v12  ;;  %6300 = vpow2.f32 %v5606_v0 }
 0x4b0   : > { %v6285_v63 = vpop.eup %6284  ;;  %v5594_v40 = vadd.f32 %v5590_v52, %v5570_v8  ;;  %v5637_v38 = vmul.f32 %v10556_v48, %v12384_v44  ;;  %6302 = vpow2.f32 %v5630_v39  ;;  %v5654_v20 = vmul.f32 1.442695, %v5647_v47  ;;  %v12391_v52 = vld [vmem:[#allocation246_spill] sm:$0xff] }
 0x4b1   : > { %v5427_v56 = vadd.f32 %v5423_v62, %v5399_v23  ;;  %v5443_v34 = vadd.f32 %v6283_v25, %v5419_v27  ;;  %v5447_v55 = vmul.f32 %v6283_v25, %v12386_v12  ;;  %v5695_v24 = vsub.f32 %v12389_v43, %v10451_v31 }
 0x4b2   : > { %v6287_v4 = vpop.eup %6286  ;;  %v5706_v13 = vadd.f32 %v10587_v2, %v5682_v45  ;;  %v5641_v16 = vadd.f32 %v5637_v38, %v5617_v9  ;;  %6304 = vrcp.f32 %v5729_v15  ;;  %v5678_v28 = vmul.f32 1.442695, %v5671_v3  ;;  %v12392_v9 = vld [vmem:[#allocation241_spill] sm:$0xff] }
 0x4b3   : > { %v5451_v35 = vadd.f32 %v5447_v55, %v5427_v56  ;;  %v5467_v61 = vadd.f32 %v6285_v63, %v5443_v34  ;;  %v5471_v10 = vmul.f32 %v6285_v63, %v12386_v12  ;;  %v5719_v48 = vsub.f32 %v10343_v33, %v10451_v31  ;;  %v12393_v56 = vld [vmem:[#allocation242_spill] sm:$0xff] }
 0x4b4   : > { %v6289_v57 = vpop.eup %6288  ;;  %v5640_v54 = vadd.f32 %v5636_v46, %v5616_v18  ;;  %v5618_v6 = vadd.f32 %v5614_v30, %v5594_v40  ;;  %v5661_v37 = vmul.f32 %v10561_v5, %v12384_v44  ;;  %6306 = vpow2.f32 %v5654_v20  ;;  %v12390_v5 = vld [vmem:[#allocation65_spill] sm:$0xff] }
 0x4b5   : > { %v10632_v49 = vpop.eup %6290  ;;  %v5475_v59 = vadd.f32 %v5471_v10, %v5451_v35  ;;  %v5491_v50 = vadd.f32 %v6287_v4, %v5467_v61  ;;  %v5495_v7 = vmul.f32 %v6287_v4, %v12386_v12  ;;  %v5702_v1 = vmul.f32 1.442695, %v5695_v24  ;;  %v12395_v35 = vld [vmem:[#allocation159_spill] sm:$0xff] }
 0x4b6   : > { %v6293_v29 = vpop.eup %6292  ;;  %v5638_v0 = vmul.f32 %v10550_v26, %v12388_v21  ;;  %v5730_v33 = vadd.f32 %v10632_v49, %v5706_v13  ;;  %v5665_v31 = vadd.f32 %v5661_v37, %v5641_v16  ;;  %6308 = vpow2.f32 %v5678_v28  ;;  %v12394_v28 = vld [vmem:[#allocation339_spill] sm:$0xff] }
 0x4b7   : > { %v6295_v46 = vpop.eup %6294  ;;  %v5499_v8 = vadd.f32 %v5495_v7, %v5475_v59  ;;  %v5515_v42 = vadd.f32 %v6289_v57, %v5491_v50  ;;  %v5519_v44 = vmul.f32 %v6289_v57, %v12390_v5  ;;  %v5726_v39 = vmul.f32 1.442695, %v5719_v48  ;;  %v12396_v48 = vld [vmem:[#allocation337_spill] sm:$0xff] }
 0x4b8   : > { %v6297_v17 = vpop.eup %6296  ;;  %v5664_v47 = vadd.f32 %v5660_v19, %v5640_v54  ;;  %v5642_v18 = vadd.f32 %v5638_v0, %v5618_v6  ;;  %v5685_v12 = vmul.f32 %v10576_v58, %v12391_v52  ;;  %v5543_v26 = vmul.f32 %v6293_v29, %v12390_v5 }
 0x4b9   : > { %v5523_v23 = vadd.f32 %v5519_v44, %v5499_v8  ;;  %v5539_v41 = vadd.f32 %v6293_v29, %v5515_v42  ;;  %6310 = vpow2.f32 %v5702_v1  ;;  %v5684_v15 = vmul.f32 %v10462_v51, %v12392_v9 }
 0x4ba   : > { %v6299_v45 = vpop.eup %6298  ;;  %v5662_v22 = vmul.f32 %v10568_v36, %v12388_v21  ;;  %6312 = vrcp.f32 %v5730_v33  ;;  %v5689_v3 = vadd.f32 %v5685_v12, %v5665_v31  ;;  %v5567_v30 = vmul.f32 %v6297_v17, %v12390_v5  ;;  %v12397_v31 = vld [vmem:[#allocation338_spill] sm:$0xff] }
 0x4bb   : > { %v5547_v25 = vadd.f32 %v5543_v26, %v5523_v23  ;;  %v5563_v19 = vadd.f32 %v6297_v17, %v5539_v41  ;;  %6314 = vpow2.f32 %v5726_v39  ;;  %v5688_v27 = vadd.f32 %v5684_v15, %v5664_v47 }
 0x4bc   : > { %v6301_v58 = vpop.eup %6300  ;;  %v5666_v62 = vadd.f32 %v5662_v22, %v5642_v18  ;;  %v5709_v40 = vmul.f32 %v10593_v60, %v12391_v52  ;;  %v5591_v51 = vmul.f32 %v6299_v45, %v12390_v5  ;;  %v5708_v36 = vmul.f32 %v10499_v53, %v12392_v9 }
 0x4bd   : > { %v6303_v63 = vpop.eup %6302  ;;  %v5571_v38 = vadd.f32 %v5567_v30, %v5547_v25  ;;  %v5587_v20 = vadd.f32 %v6299_v45, %v5563_v19  ;;  %v5686_v34 = vmul.f32 %v10582_v14, %v12393_v56  ;;  %v5733_v60 = vmul.f32 %v10608_v11, %v12394_v28  ;;  %v12399_v19 = vld [vmem:[#allocation340_spill] sm:$0xff] }
 0x4be   : > { %v5713_v55 = vadd.f32 %v5709_v40, %v5689_v3  ;;  %v5712_v4 = vadd.f32 %v5708_v36, %v5688_v27  ;;  %v5615_v61 = vmul.f32 %v6301_v58, %v12395_v35  ;;  %v5732_v57 = vmul.f32 %v10506_v32, %v12396_v48 }
 0x4bf   : > { %v6305_v21 = vpop.eup %6304  ;;  %v5595_v43 = vadd.f32 %v5591_v51, %v5571_v38  ;;  %v5611_v24 = vadd.f32 %v6301_v58, %v5587_v20  ;;  %v5690_v16 = vadd.f32 %v5686_v34, %v5666_v62  ;;  %v5710_v54 = vmul.f32 %v10587_v2, %v12393_v56 }
 0x4c0   : > { %v5737_v14 = vadd.f32 %v5733_v60, %v5713_v55  ;;  %v5736_v59 = vadd.f32 %v5732_v57, %v5712_v4  ;;  %v5639_v1 = vmul.f32 %v6303_v63, %v12395_v35  ;;  %v5734_v8 = vmul.f32 %v10632_v49, %v12397_v31 }
 0x4c1   : > { %v6307_v13 = vpop.eup %6306  ;;  %v5635_v10 = vadd.f32 %v6303_v63, %v5611_v24  ;;  %v5619_v6 = vadd.f32 %v5615_v61, %v5595_v43  ;;  %v5714_v50 = vadd.f32 %v5710_v54, %v5690_v16  ;;  %v6432_v34 = vmov 1966171168  }
 0x4c2   : > { %v5745_v7 = vmul.f32 %v6305_v21, %v5737_v14  ;;  %v5744_v33 = vmul.f32 %v6295_v46, %v5736_v59  ;;  %v5663_v39 = vmul.f32 %v6307_v13, %v12395_v35  ;;  %v12398_v46 = vld [vmem:[#allocation247_spill] sm:$0xff]  ;;  %v5785_v55 = vunpack.c.l.s4 %v6432_v34 }
 0x4c3   : > { %v6309_v53 = vpop.eup %6308  ;;  %v5659_v37 = vadd.f32 %v6307_v13, %v5635_v10  ;;  %v5643_v32 = vadd.f32 %v5639_v1, %v5619_v6  ;;  %v5738_v2 = vadd.f32 %v5734_v8, %v5714_v50  ;;  %v5787_v43 = vlaneseq  ;;  %v5777_v1 = vld [vmem:[%s259_s15] sm:$0xf] }
 0x4c4   : > { %v5756_v44 = vsel %vm5748_vm2, %v5745_v7, 0.0  ;;  %v5749_v47 = vsel %vm5748_vm2, %v5744_v33, 0.0  ;;  %v5687_v23 = vmul.f32 %v6309_v53, %v12398_v46  ;;  %v5786_v60 = vunpack.c.0.s8 %v5785_v55 }
 0x4c5   : > { %v5683_v29 = vadd.f32 %v6309_v53, %v5659_v37  ;;  %v5667_v52 = vadd.f32 %v5663_v39, %v5643_v32  ;;  %v5757_v12 = vrot.slane %v5756_v44, 4  ;;  %v5750_v41 = vrot.slane %v5749_v47, 4 }
 0x4c6   : > { %v6311_v11 = vpop.eup %6310  ;;  %v5788_v35 = vshrl.u32 %v5787_v43, 7  ;;  %vm5816_vm3 = vcmp.lt.s32.totalorder %v5787_v43, 512 }
 0x4c7   : > { %v6313_v0 = vpop.eup %6312  ;;  %v5707_v42 = vadd.f32 %v6311_v11, %v5683_v29  ;;  %v5691_v26 = vadd.f32 %v5687_v23, %v5667_v52  ;;  %v5758_v45 = vadd.f32 %v5757_v12, %v5756_v44  ;;  %v5711_v9 = vmul.f32 %v6311_v11, %v12398_v46 }
 0x4c8   : > { %v6315_v5 = vpop.eup %6314  ;;  %v5746_v18 = vmul.f32 %v6313_v0, %v5738_v2  ;;  %v5751_v15 = vadd.f32 %v5750_v41, %v5749_v47  ;;  %v5789_v54 = vsub.s32 %v5786_v60, %v5788_v35 }
 0x4c9   : > { %v5731_v17 = vadd.f32 %v6315_v5, %v5707_v42  ;;  %v5715_v3 = vadd.f32 %v5711_v9, %v5691_v26  ;;  %v5759_v25 = vrot.slane %v5758_v45, 2  ;;  %v5735_v30 = vmul.f32 %v6315_v5, %v12399_v19 }
 0x4ca   : > { %v5763_v49 = vsel %vm5748_vm2, %v5746_v18, 0.0  ;;  %v5752_v58 = vrot.slane %v5751_v15, 2 }
 0x4cb   : > { %6316 = vrcp.f32 %v5731_v17  ;;  %v5764_v22 = vrot.slane %v5763_v49, 4  ;;  %v5739_v62 = vadd.f32 %v5735_v30, %v5715_v3  ;;  %v5760_v40 = vadd.f32 %v5759_v25, %v5758_v45 }
 0x4cc   : > { %v5753_v20 = vadd.f32 %v5752_v58, %v5751_v15 }
 0x4cd   : > { %v5765_v27 = vadd.f32 %v5764_v22, %v5763_v49  ;;  %v5761_v56 = vrot.slane %v5760_v40, 1 }
 0x4ce   : > { %v5754_v13 = vrot.slane %v5753_v20, 1 }
 0x4cf   : > { %v5766_v51 = vrot.slane %v5765_v27, 2  ;;  %v5762_v28 = vadd.f32 %v5761_v56, %v5760_v40 }
 0x4d0   : > { %v5755_v10 = vadd.f32 %v5754_v13, %v5753_v20 }
 0x4d1   : > { %v5767_v24 = vadd.f32 %v5766_v51, %v5765_v27 }
 0x4d2   : > { %v5782_v53 = vcombine.low %v5755_v10, %v5762_v28 }
 0x4d3   : > { %v5768_v48 = vrot.slane %v5767_v24, 1 }
 0x4d4   : > { %v5790_v59 = vrot.slane %v5782_v53, %v5789_v54 }
 0x4d5   : > { %v5769_v14 = vadd.f32 %v5768_v48, %v5767_v24 }
 0x4d8   : > { %v6317_v63 = vpop.eup %6316 }
 0x4d9   : > { %v5747_v38 = vmul.f32 %v6317_v63, %v5739_v62 }
 0x4db   : > { %v5770_v36 = vsel %vm5748_vm2, %v5747_v38, 0.0 }
 0x4dc   : > { %v5771_v21 = vrot.slane %v5770_v36, 4 }
 0x4de   : > { %v5772_v4 = vadd.f32 %v5771_v21, %v5770_v36 }
 0x4e0   : > { %v5773_v16 = vrot.slane %v5772_v4, 2 }
 0x4e2   : > { %v5774_v61 = vadd.f32 %v5773_v16, %v5772_v4 }
 0x4e4   : > { %v5775_v57 = vrot.slane %v5774_v61, 1 }
 0x4e6   : > { %v5776_v6 = vadd.f32 %v5775_v57, %v5774_v61 }
 0x4e8   : > { %v5783_v37 = vcombine.low %v5769_v14, %v5776_v6 }
 0x4ea   : > { %v5797_v50 = vrot.slane %v5783_v37, %v5789_v54 }
 0x4ec   : > { %v5798_v7 = vcombine.low %v5790_v59, %v5797_v50 }
 0x4ee   : > { %v5805_v29 = vrot.slane %v5798_v7, %v5789_v54 }
 0x4f0   : > { %v5807_v11 = vadd.f32 %v5805_v29, %v5777_v1 }
 0x4f2   : > { %v6118_v0 = vmul.f32 -1.442695, %v5807_v11 }
 0x4f4   : > { %6318 = vpow2.f32 %v6118_v0 }
 0x501   : > { %v6319_v33 = vpop.eup %6318 }
 0x502   : > { %v5811_v31 = vadd.f32 1.0, %v6319_v33 }
 0x504   : > { %6320 = vrcp.f32 %v5811_v31 }
 0x511   : > { %v6321_v8 = vpop.eup %6320 }
 0x512   : > { %5818 = vst.msk [vmem:[%s255_s6] sm:$0xf] %vm5816_vm3, %v6321_v8 }
 0x513   : > { %6374 = shalt.err (!%p6371_p0)
}
 0x514   : > { %s6375_s11 = scalar_lea.hbm %s10682_s13, 64  ;;  %s6379_s14 = scalar_lea.hbm %s10724_s5, 128 }
 0x515   : > { %p6376_p2 = scmp.ne.s32.totalorder %s10682_s13, %s6375_s11  ;;  %p6380_p3 = scmp.lt.s32.totalorder %s10682_s13, %s10724_s5 }
 0x516   : > { %p6381_p6 = scmp.lt.s32.totalorder %s6379_s14, %s6375_s11 }
 0x517   : > { %p6377_p9 = pnand %p6376_p2, %p12400_p13 }
 0x518   : > { %p6382_p11 = por %p6381_p6, %p6380_p3 }
 0x519   : > { %p6378_p1 = pneg %p6377_p9 }
 0x51b   : > { %p6383_p12 = pnand %p6382_p11, %p6378_p1 }
 0x51d   : > { %6386 = shalt.err (!%p6383_p12)
}
 0x51e   : > { %6130 = dma.vmem_to_hbm [thread:$0]  (%p12400_p13), %s5835_s8, 64, %s10682_s13, %s5820_s16  }
 0x51f PF: > { %s5846_s26 = sand.u32 1, %s6413_s18   ;;  %p12401_p4 = scmp.ne.s32.totalorder %s11082_s30, 0 }
 0x520   : > { %p12402_p5 = scmp.ge.s32.totalorder %s6425_s21, 2  ;;  %s5847_s6 = scalar_lea.sflag [#allocation4], %s5846_s26 }
 0x522   : > { %p6137_p7 = pnand %p12402_p5, %p12401_p4 }
 0x524   : > { %p6138_p8 = pneg %p6137_p7 }
 0x526   : > { %6408 = dma.done.wait (%p6138_p8), %s5847_s6, 64  }
 0x527   : > { %6410 = vsyncadd (%p6138_p8), %s5847_s6, 4294967232  ;;  %p18_p10 = scmp.ge.s32.totalorder %s6489_s24, 4   ;;  %s12403_s18 = smov %s6417_s19 }
 0x528   : > { %s12404_s19 = smov %s6421_s20  ;;  %s12405_s20 = smov %s6501_s27 }
 0x529   : > { %s12406_s21 = smov %s6489_s24  ;;  %20 = sbr.rel (!%p18_p10) target bundleno = 5 (0x5), region = 88 }
 0x52e   :  { %5852 = vsyncpa [#allocation3], 1 }
 0x52f   :  { %5854 = vsyncpa [#allocation3 + $0x1], 1 }
 0x530   :  { %5855 = vsyncpa [#allocation4], 1 }
 0x531   :  { %5857 = vsyncpa [#allocation4 + $0x1], 1 }

</bundles_post_ra>
